<compile_context>
chip_gen: v5e
topology: v5e:2x2
jax: 0.10.0
libtpu: 0.0.40
codegen_flags: <defaults>
</compile_context>

<pallas_src>
import functools

import jax
import jax.numpy as jnp
from jax import lax
from jax.experimental import pallas as pl
from jax.experimental.pallas import tpu as pltpu


# ----------------------------------------------------------------------------
# Reference FourierConv2d math (plain JAX; used for operator construction + ref)
# ----------------------------------------------------------------------------
def fourier_conv_2d(x, w_cplx, b_cplx):
    """x: (..., Cin, T, S) real. w: (Cin, Cout, T, S) cplx. b: (Cout, T, S) cplx.

    Non-periodic: zero-pad both spatial dims to (2T, 2S), rfft2, per-mode
    complex mixing over the first (T, S) modes + complex bias, zero the other
    modes, irfft2, crop back to (T, S)."""
    T, S = x.shape[-2], x.shape[-1]
    pad = [(0, 0)] * (x.ndim - 2) + [(0, T), (0, S)]
    xp = jnp.pad(x, pad)
    xf = jnp.fft.rfft2(xp, axes=(-2, -1))                       # (..., Cin, 2T, S+1)
    of = jnp.einsum("...ixy,ioxy->...oxy", xf[..., :T, :S], w_cplx) + b_cplx
    full = jnp.zeros(of.shape[:-2] + (2 * T, S + 1), of.dtype)
    full = full.at[..., :T, :S].set(of)
    y = jnp.fft.irfft2(full, s=(2 * T, 2 * S), axes=(-2, -1))
    return y[..., :T, :S]


# ----------------------------------------------------------------------------
# Pallas kernel: the whole block recurrence in one gridless call
# ----------------------------------------------------------------------------
def fno_rnn_block_kernel(x0_ref, ac_ref, bac_ref, mout_ref, bout_ref, out_ref,
                         *, depth, wts, num_blocks):
    def block_step(nb, x):
        # `cell`: depth layers, each fused into ONE (B, WTS) x (WTS, 2*WTS) matmul.
        for l in range(depth):                                   # static unroll
            z = jnp.dot(x.astype(jnp.bfloat16), ac_ref[l],
                        preferred_element_type=jnp.float32) + bac_ref[l]
            # first half = spectral conv (x1), second half = 1x1 conv (x2)
            x = jnp.maximum(z[:, :wts], 0.0) + z[:, wts:]        # relu(x1) + x2
        # out_mapping fused over the flattened state; lane-dense (Tb*S*OC) cols.
        y = jnp.dot(x.astype(jnp.bfloat16), mout_ref[...],
                    preferred_element_type=jnp.float32) + bout_ref[...]
        out_ref[nb] = y
        return x                                                  # recurrent state

    lax.fori_loop(0, num_blocks, block_step, x0_ref[...],
                  unroll=num_blocks <= 8)


# ----------------------------------------------------------------------------
# Parameter init (deterministic, synthetic)
# ----------------------------------------------------------------------------
def init_params(key, c_in, c_out, Tb, S, W, depth):
    ks = jax.random.split(key, 10)
    Win = jax.random.normal(ks[0], (W, c_in), jnp.float32) / jnp.sqrt(c_in)
    b_in = 0.1 * jax.random.normal(ks[1], (W,), jnp.float32)
    fw = ((jax.random.uniform(ks[2], (depth, W, W, Tb, S))
           + 1j * jax.random.uniform(ks[3], (depth, W, W, Tb, S))) / (W * W))
    fb = ((jax.random.uniform(ks[4], (depth, W, Tb, S))
           + 1j * jax.random.uniform(ks[5], (depth, W, Tb, S))) / W)
    cw = 0.5 * jax.random.normal(ks[6], (depth, W, W), jnp.float32) / jnp.sqrt(W)
    cb = 0.1 * jax.random.normal(ks[7], (depth, W), jnp.float32)
    Wout = jax.random.normal(ks[8], (c_out, W), jnp.float32) / jnp.sqrt(W)
    b_out = 0.1 * jax.random.normal(ks[9], (c_out,), jnp.float32)
    return dict(Win=Win, b_in=b_in, fw=fw.astype(jnp.complex64),
                fb=fb.astype(jnp.complex64), cw=cw, cb=cb, Wout=Wout, b_out=b_out)


# ----------------------------------------------------------------------------
# Precompose the spectral conv / 1x1 conv / out_mapping into dense operators
# ----------------------------------------------------------------------------
def build_operators(p, Tb, S, W, OC, depth):
    TS = Tb * S
    WTS = W * TS

    # Spectral conv: probe with the unit basis (exact, since the domain is fixed).
    basis = jnp.eye(WTS, dtype=jnp.float32).reshape(WTS, W, Tb, S)
    A_list, bA_list = [], []
    for l in range(depth):
        zero_b = jnp.zeros_like(p["fb"][l])
        A_l = fourier_conv_2d(basis, p["fw"][l], zero_b).reshape(WTS, WTS)
        bA_l = fourier_conv_2d(jnp.zeros((W, Tb, S), jnp.float32),
                               p["fw"][l], p["fb"][l]).reshape(WTS)
        A_list.append(A_l)
        bA_list.append(bA_l)
    A = jnp.stack(A_list)                                   # (depth, WTS, WTS)
    bA = jnp.stack(bA_list)                                 # (depth, WTS)

    eyeTS = jnp.eye(TS, dtype=jnp.float32)
    # 1x1 Conv2d: C[l, (i,m), (o,n)] = cw[l,o,i] * delta(m, n)
    C = jnp.einsum("loi,mn->limon", p["cw"], eyeTS).reshape(depth, WTS, WTS)
    bC = jnp.repeat(p["cb"], TS, axis=-1)                   # (depth, WTS)

    # Fuse A|C into one (WTS, 2*WTS) operator per layer -> one MXU matmul/layer.
    AC = jnp.concatenate([A, C], axis=2).astype(jnp.bfloat16)
    bAC = jnp.concatenate([bA, bC], axis=1).astype(jnp.float32)

    # out_mapping: Mout[(w,m), (n,c)] = Wout[c,w] * delta(m, n)
    Mout = jnp.einsum("cw,mn->wmnc", p["Wout"], eyeTS).reshape(WTS, TS * OC)
    bout = jnp.tile(p["b_out"], TS).astype(jnp.float32)     # (TS*OC,)
    return AC, bAC, Mout.astype(jnp.bfloat16), bout


# ----------------------------------------------------------------------------
# Wrapper (mirrors FNO_RNN_1d_block.forward)
# ----------------------------------------------------------------------------
def fno_rnn_block_pallas(p, x, num_time_steps, depth, block_size):
    B, Tb, S, _ = x.shape
    assert Tb == block_size
    W = p["Win"].shape[0]
    OC = p["Wout"].shape[0]
    TS = Tb * S
    WTS = W * TS
    TSOC = TS * OC
    num_blocks = num_time_steps // block_size

    if num_blocks == 0:
        return jnp.zeros((B, num_time_steps, S, OC), jnp.float32)

    AC, bAC, Mout, bout = build_operators(p, Tb, S, W, OC, depth)
    # Hoisted bias broadcasts (done once, outside the hot recurrent loop).
    bAC_b = jnp.broadcast_to(bAC[:, None, :], (depth, B, 2 * WTS)).astype(jnp.float32)
    bout_b = jnp.broadcast_to(bout[None, :], (B, TSOC)).astype(jnp.float32)

    # in_mapping (applied once, before the recurrence), flattened channel-major
    # (B, W*Tb*S) to match the precomposed operators' layout.
    h0 = x @ p["Win"].T + p["b_in"]                          # (B, Tb, S, W)
    x0 = jnp.transpose(h0, (0, 3, 1, 2)).reshape(B, WTS).astype(jnp.float32)

    kernel = functools.partial(fno_rnn_block_kernel, depth=depth, wts=WTS,
                               num_blocks=num_blocks)
    out_flat = pl.pallas_call(
        kernel,
        out_shape=jax.ShapeDtypeStruct((num_blocks, B, TSOC), jnp.float32),
        in_specs=[pl.BlockSpec(memory_space=pltpu.MemorySpace.VMEM)] * 5,
        out_specs=pl.BlockSpec(memory_space=pltpu.MemorySpace.VMEM),
        # Explicit VMEM budget guard (weights + output are a few MiB here; safe
        # on v5e/v6e/v7x).  No grid -> no double-buffering of invariant weights.
        compiler_params=pltpu.CompilerParams(vmem_limit_bytes=32 * 1024 * 1024),
    )(x0, AC, bAC_b, Mout, bout_b)

    # (num_blocks, B, Tb*S*OC) -> (B, num_blocks*Tb, S, OC); pad the unwritten
    # tail with zeros exactly like the torch.zeros-preallocated output.
    out = jnp.transpose(out_flat.reshape(num_blocks, B, Tb, S, OC),
                        (1, 0, 2, 3, 4)).reshape(B, num_blocks * Tb, S, OC)
    tail = num_time_steps - num_blocks * Tb
    if tail > 0:
        out = jnp.concatenate(
            [out, jnp.zeros((B, tail, S, OC), out.dtype)], axis=1)
    return out


# ----------------------------------------------------------------------------
# Pure-JAX reference (mirrors the PyTorch forward exactly)
# ----------------------------------------------------------------------------
def reference_forward(p, x, num_time_steps, depth, block_size):
    B, Tb, S, _ = x.shape
    OC = p["Wout"].shape[0]
    num_blocks = num_time_steps // block_size
    h = x @ p["Win"].T + p["b_in"]                           # in_mapping (B,Tb,S,W)
    out = jnp.zeros((B, num_time_steps, S, OC), jnp.float32)
    for i in range(num_blocks):
        z = jnp.transpose(h, (0, 3, 1, 2))                   # (B, W, Tb, S)
        for l in range(depth):
            x1 = fourier_conv_2d(z, p["fw"][l], p["fb"][l])
            x2 = (jnp.einsum("oi,bits->bots", p["cw"][l], z)
                  + p["cb"][l][None, :, None, None])
            z = jnp.maximum(x1, 0.0) + x2
        h = jnp.transpose(z, (0, 2, 3, 1))                   # new recurrent state
        y = h @ p["Wout"].T + p["b_out"]                     # out_mapping
        out = out.at[:, i * block_size:(i + 1) * block_size].set(y)
    return out


if __name__ == "__main__":
    # Small shapes consistent with the module:
    #   batch=2, in_channels=3, out_channels=2, spatial=16, width=4,
    #   depth=2, block_size=8, num_time_steps=16 (2 blocks).
    B, S, C_IN, C_OUT, WIDTH, DEPTH, BLOCK = 2, 16, 3, 2, 4, 2, 8
    T = 2 * BLOCK

    key = jax.random.PRNGKey(0)
    kp, kx = jax.random.split(key)
    params = init_params(kp, C_IN, C_OUT, BLOCK, S, WIDTH, DEPTH)
    x = jax.random.normal(kx, (B, BLOCK, S, C_IN), jnp.float32)

    out = fno_rnn_block_pallas(params, x, T, DEPTH, BLOCK)
    out = jax.block_until_ready(out)

    ref = reference_forward(params, x, T, DEPTH, BLOCK)
    assert out.shape == (B, T, S, C_OUT), out.shape
    err = float(jnp.max(jnp.abs(out - ref)))
    scale = float(jnp.max(jnp.abs(ref)))
    assert err <= 5e-3 + 5e-2 * scale, f"max abs err {err} (ref scale {scale})"

    print("KERNEL_OK")
</pallas_src>

<mosaic_0001>
module attributes {stable_mosaic.version = 11 : i64} {
  func.func @fno_rnn_block_kernel(%arg0: memref<2x512xf32, #tpu.memory_space<vmem>>, %arg1: memref<2x512x1024xbf16, #tpu.memory_space<vmem>>, %arg2: memref<2x2x1024xf32, #tpu.memory_space<vmem>>, %arg3: memref<512x256xbf16, #tpu.memory_space<vmem>>, %arg4: memref<2x256xf32, #tpu.memory_space<vmem>>, %arg5: memref<2x2x256xf32, #tpu.memory_space<vmem>>) attributes {dimension_semantics = [], scalar_prefetch = 0 : i64, scratch_operands = 0 : i64, tpu.core_type = #tpu.core_type<tc>} {
    %c0 = arith.constant 0 : index
    %c0_0 = arith.constant 0 : index
    %0 = vector.load %arg0[%c0, %c0_0] : memref<2x512xf32, #tpu.memory_space<vmem>>, vector<2x512xf32>
    %c0_i32 = arith.constant 0 : i32
    %1 = arith.truncf %0 : vector<2x512xf32> to vector<2x512xbf16>
    %c0_1 = arith.constant 0 : index
    %c0_2 = arith.constant 0 : index
    %c0_3 = arith.constant 0 : index
    %2 = vector.load %arg1[%c0_1, %c0_2, %c0_3] : memref<2x512x1024xbf16, #tpu.memory_space<vmem>>, vector<1x512x1024xbf16>
    %3 = vector.shape_cast %2 : vector<1x512x1024xbf16> to vector<512x1024xbf16>
    %cst = arith.constant dense<0.000000e+00> : vector<2x1024xf32>
    %4 = tpu.matmul %1, %3, %cst {dimension_numbers = #tpu.dot_dimension_numbers<[1], [0], [0], [1], [0, 0, 1, 1], [], []>} : vector<2x512xbf16>, vector<512x1024xbf16>, vector<2x1024xf32> -> vector<2x1024xf32>
    %c0_4 = arith.constant 0 : index
    %c0_5 = arith.constant 0 : index
    %c0_6 = arith.constant 0 : index
    %5 = vector.load %arg2[%c0_4, %c0_5, %c0_6] : memref<2x2x1024xf32, #tpu.memory_space<vmem>>, vector<1x2x1024xf32>
    %6 = vector.shape_cast %5 : vector<1x2x1024xf32> to vector<2x1024xf32>
    %7 = arith.addf %4, %6 : vector<2x1024xf32>
    %8 = vector.extract_strided_slice %7 {offsets = [0, 0], sizes = [2, 512], strides = [1, 1]} : vector<2x1024xf32> to vector<2x512xf32>
    %cst_7 = arith.constant 0.000000e+00 : f32
    %9 = vector.broadcast %cst_7 : f32 to vector<2x512xf32>
    %10 = arith.maximumf %8, %9 : vector<2x512xf32>
    %11 = vector.extract_strided_slice %7 {offsets = [0, 512], sizes = [2, 512], strides = [1, 1]} : vector<2x1024xf32> to vector<2x512xf32>
    %12 = arith.addf %10, %11 : vector<2x512xf32>
    %13 = arith.truncf %12 : vector<2x512xf32> to vector<2x512xbf16>
    %c1 = arith.constant 1 : index
    %c0_8 = arith.constant 0 : index
    %c0_9 = arith.constant 0 : index
    %14 = vector.load %arg1[%c1, %c0_8, %c0_9] : memref<2x512x1024xbf16, #tpu.memory_space<vmem>>, vector<1x512x1024xbf16>
    %15 = vector.shape_cast %14 : vector<1x512x1024xbf16> to vector<512x1024xbf16>
    %cst_10 = arith.constant dense<0.000000e+00> : vector<2x1024xf32>
    %16 = tpu.matmul %13, %15, %cst_10 {dimension_numbers = #tpu.dot_dimension_numbers<[1], [0], [0], [1], [0, 0, 1, 1], [], []>} : vector<2x512xbf16>, vector<512x1024xbf16>, vector<2x1024xf32> -> vector<2x1024xf32>
    %c1_11 = arith.constant 1 : index
    %c0_12 = arith.constant 0 : index
    %c0_13 = arith.constant 0 : index
    %17 = vector.load %arg2[%c1_11, %c0_12, %c0_13] : memref<2x2x1024xf32, #tpu.memory_space<vmem>>, vector<1x2x1024xf32>
    %18 = vector.shape_cast %17 : vector<1x2x1024xf32> to vector<2x1024xf32>
    %19 = arith.addf %16, %18 : vector<2x1024xf32>
    %20 = vector.extract_strided_slice %19 {offsets = [0, 0], sizes = [2, 512], strides = [1, 1]} : vector<2x1024xf32> to vector<2x512xf32>
    %cst_14 = arith.constant 0.000000e+00 : f32
    %21 = vector.broadcast %cst_14 : f32 to vector<2x512xf32>
    %22 = arith.maximumf %20, %21 : vector<2x512xf32>
    %23 = vector.extract_strided_slice %19 {offsets = [0, 512], sizes = [2, 512], strides = [1, 1]} : vector<2x1024xf32> to vector<2x512xf32>
    %24 = arith.addf %22, %23 : vector<2x512xf32>
    %25 = arith.truncf %24 : vector<2x512xf32> to vector<2x512xbf16>
    %c0_15 = arith.constant 0 : index
    %c0_16 = arith.constant 0 : index
    %26 = vector.load %arg3[%c0_15, %c0_16] : memref<512x256xbf16, #tpu.memory_space<vmem>>, vector<512x256xbf16>
    %cst_17 = arith.constant dense<0.000000e+00> : vector<2x256xf32>
    %27 = tpu.matmul %25, %26, %cst_17 {dimension_numbers = #tpu.dot_dimension_numbers<[1], [0], [0], [1], [0, 0, 1, 1], [], []>} : vector<2x512xbf16>, vector<512x256xbf16>, vector<2x256xf32> -> vector<2x256xf32>
    %c0_18 = arith.constant 0 : index
    %c0_19 = arith.constant 0 : index
    %28 = vector.load %arg4[%c0_18, %c0_19] : memref<2x256xf32, #tpu.memory_space<vmem>>, vector<2x256xf32>
    %29 = arith.addf %27, %28 : vector<2x256xf32>
    %30 = arith.index_cast %c0_i32 : i32 to index
    %c0_20 = arith.constant 0 : index
    %c0_21 = arith.constant 0 : index
    %31 = vector.load %arg5[%30, %c0_20, %c0_21] : memref<2x2x256xf32, #tpu.memory_space<vmem>>, vector<1x2x256xf32>
    %32 = vector.shape_cast %31 : vector<1x2x256xf32> to vector<2x256xf32>
    %33 = vector.shape_cast %29 : vector<2x256xf32> to vector<1x2x256xf32>
    tpu.vector_store %arg5[%30, %c0_20, %c0_21], %33 {strides = array<i32>} : memref<2x2x256xf32, #tpu.memory_space<vmem>>, vector<1x2x256xf32>,
    %c1_i32 = arith.constant 1 : i32
    %34 = arith.truncf %24 : vector<2x512xf32> to vector<2x512xbf16>
    %c0_22 = arith.constant 0 : index
    %c0_23 = arith.constant 0 : index
    %c0_24 = arith.constant 0 : index
    %35 = vector.load %arg1[%c0_22, %c0_23, %c0_24] : memref<2x512x1024xbf16, #tpu.memory_space<vmem>>, vector<1x512x1024xbf16>
    %36 = vector.shape_cast %35 : vector<1x512x1024xbf16> to vector<512x1024xbf16>
    %cst_25 = arith.constant dense<0.000000e+00> : vector<2x1024xf32>
    %37 = tpu.matmul %34, %36, %cst_25 {dimension_numbers = #tpu.dot_dimension_numbers<[1], [0], [0], [1], [0, 0, 1, 1], [], []>} : vector<2x512xbf16>, vector<512x1024xbf16>, vector<2x1024xf32> -> vector<2x1024xf32>
    %c0_26 = arith.constant 0 : index
    %c0_27 = arith.constant 0 : index
    %c0_28 = arith.constant 0 : index
    %38 = vector.load %arg2[%c0_26, %c0_27, %c0_28] : memref<2x2x1024xf32, #tpu.memory_space<vmem>>, vector<1x2x1024xf32>
    %39 = vector.shape_cast %38 : vector<1x2x1024xf32> to vector<2x1024xf32>
    %40 = arith.addf %37, %39 : vector<2x1024xf32>
    %41 = vector.extract_strided_slice %40 {offsets = [0, 0], sizes = [2, 512], strides = [1, 1]} : vector<2x1024xf32> to vector<2x512xf32>
    %cst_29 = arith.constant 0.000000e+00 : f32
    %42 = vector.broadcast %cst_29 : f32 to vector<2x512xf32>
    %43 = arith.maximumf %41, %42 : vector<2x512xf32>
    %44 = vector.extract_strided_slice %40 {offsets = [0, 512], sizes = [2, 512], strides = [1, 1]} : vector<2x1024xf32> to vector<2x512xf32>
    %45 = arith.addf %43, %44 : vector<2x512xf32>
    %46 = arith.truncf %45 : vector<2x512xf32> to vector<2x512xbf16>
    %c1_30 = arith.constant 1 : index
    %c0_31 = arith.constant 0 : index
    %c0_32 = arith.constant 0 : index
    %47 = vector.load %arg1[%c1_30, %c0_31, %c0_32] : memref<2x512x1024xbf16, #tpu.memory_space<vmem>>, vector<1x512x1024xbf16>
    %48 = vector.shape_cast %47 : vector<1x512x1024xbf16> to vector<512x1024xbf16>
    %cst_33 = arith.constant dense<0.000000e+00> : vector<2x1024xf32>
    %49 = tpu.matmul %46, %48, %cst_33 {dimension_numbers = #tpu.dot_dimension_numbers<[1], [0], [0], [1], [0, 0, 1, 1], [], []>} : vector<2x512xbf16>, vector<512x1024xbf16>, vector<2x1024xf32> -> vector<2x1024xf32>
    %c1_34 = arith.constant 1 : index
    %c0_35 = arith.constant 0 : index
    %c0_36 = arith.constant 0 : index
    %50 = vector.load %arg2[%c1_34, %c0_35, %c0_36] : memref<2x2x1024xf32, #tpu.memory_space<vmem>>, vector<1x2x1024xf32>
    %51 = vector.shape_cast %50 : vector<1x2x1024xf32> to vector<2x1024xf32>
    %52 = arith.addf %49, %51 : vector<2x1024xf32>
    %53 = vector.extract_strided_slice %52 {offsets = [0, 0], sizes = [2, 512], strides = [1, 1]} : vector<2x1024xf32> to vector<2x512xf32>
    %cst_37 = arith.constant 0.000000e+00 : f32
    %54 = vector.broadcast %cst_37 : f32 to vector<2x512xf32>
    %55 = arith.maximumf %53, %54 : vector<2x512xf32>
    %56 = vector.extract_strided_slice %52 {offsets = [0, 512], sizes = [2, 512], strides = [1, 1]} : vector<2x1024xf32> to vector<2x512xf32>
    %57 = arith.addf %55, %56 : vector<2x512xf32>
    %58 = arith.truncf %57 : vector<2x512xf32> to vector<2x512xbf16>
    %c0_38 = arith.constant 0 : index
    %c0_39 = arith.constant 0 : index
    %59 = vector.load %arg3[%c0_38, %c0_39] : memref<512x256xbf16, #tpu.memory_space<vmem>>, vector<512x256xbf16>
    %cst_40 = arith.constant dense<0.000000e+00> : vector<2x256xf32>
    %60 = tpu.matmul %58, %59, %cst_40 {dimension_numbers = #tpu.dot_dimension_numbers<[1], [0], [0], [1], [0, 0, 1, 1], [], []>} : vector<2x512xbf16>, vector<512x256xbf16>, vector<2x256xf32> -> vector<2x256xf32>
    %c0_41 = arith.constant 0 : index
    %c0_42 = arith.constant 0 : index
    %61 = vector.load %arg4[%c0_41, %c0_42] : memref<2x256xf32, #tpu.memory_space<vmem>>, vector<2x256xf32>
    %62 = arith.addf %60, %61 : vector<2x256xf32>
    %63 = arith.index_cast %c1_i32 : i32 to index
    %c0_43 = arith.constant 0 : index
    %c0_44 = arith.constant 0 : index
    %64 = vector.load %arg5[%63, %c0_43, %c0_44] : memref<2x2x256xf32, #tpu.memory_space<vmem>>, vector<1x2x256xf32>
    %65 = vector.shape_cast %64 : vector<1x2x256xf32> to vector<2x256xf32>
    %66 = vector.shape_cast %62 : vector<2x256xf32> to vector<1x2x256xf32>
    tpu.vector_store %arg5[%63, %c0_43, %c0_44], %66 {strides = array<i32>} : memref<2x2x256xf32, #tpu.memory_space<vmem>>, vector<1x2x256xf32>,
    %c2_i32 = arith.constant 2 : i32
    return
  }
}

</mosaic_0001>

<bundles_post_ra>
// kernel: tpu_custom_call.1
= control target key start
LH: loop header
LB: loop body
LE: loop exit
PB: predicated region body
PF: predicated region fallthrough
CT: control target
= control target key end

     0   :  { %10 = vsyncpa [#allocation3], 0  ;;  %s15543_s0 = inlined_call_operand.hbm [shape: f32[2,512], index: 0, kind: input, shape index: {}]   ;;  %s15544_s1 = inlined_call_operand.hbm [shape: bf16[2,512,1024], index: 1, kind: input, shape index: {}]   ;;  %s15545_s2 = inlined_call_operand.hbm [shape: f32[2,2,1024], index: 2, kind: input, shape index: {}]   ;;  %s15546_s3 = inlined_call_operand.hbm [shape: bf16[512,256], index: 3, kind: input, shape index: {}]   ;;  %s15547_s4 = inlined_call_operand.hbm [shape: f32[2,256], index: 4, kind: input, shape index: {}]   ;;  %s15548_s5 = inlined_call_operand.hbm [shape: f32[2,2,256], index: 5, kind: output, shape index: {}]  }
   0x1   :  { %11 = vsyncpa [#allocation6], 0 }
   0x2   :  { %12 = vsyncpa [#allocation9], 0  ;;  %s29_s20 = sshll.u32 %s15544_s1, 4  ;;  %s30_s20 = int_to_ptr.hbm [resolvable:$true] %s29_s20 }
   0x3   :  { %13 = vsyncpa [#allocation4], 0  ;;  %s15011_s21 = smov [#allocation5]   ;;  %s55_s25 = sshll.u32 %s15546_s3, 4  ;;  %s56_s25 = int_to_ptr.hbm [resolvable:$true] %s55_s25 }
   0x4   :  { %s31_s22 = sshll.u32 %s15011_s21, 4  ;;  %s15012_s26 = smov 512   ;;  %s32_s22 = int_to_ptr.vmem [resolvable:$true] %s31_s22 }
   0x5   :  { %s15013_s27 = smov 32   ;;  %s15014_s28 = smov [#allocation8]  }
   0x6   :  { %37 = dma.hbm_to_vmem [thread:$0]  %s30_s20, 65536, %s32_s22, [#allocation6], %s15012_s26, %s15012_s26, %s15013_s27  }
   0x7   :  { %s57_s29 = sshll.u32 %s15014_s28, 4  ;;  %s15015_s30 = smov 128   ;;  %s58_s29 = int_to_ptr.vmem [resolvable:$true] %s57_s29 }
   0x8   :  { %s15016_s6 = smov 8   ;;  %s19_s8 = sshll.u32 %s15543_s0, 4  ;;  %s20_s8 = int_to_ptr.hbm [resolvable:$true] %s19_s8 }
   0x9   :  { %63 = dma.hbm_to_vmem [thread:$0]  %s56_s25, 8192, %s58_s29, [#allocation9], %s15015_s30, %s15015_s30, %s15016_s6  }
   0xa   :  { %s15017_s9 = smov [#allocation2]   ;;  %s42_s12 = sshll.u32 %s15545_s2, 4  ;;  %s43_s12 = int_to_ptr.hbm [resolvable:$true] %s42_s12 }
   0xb   :  { %s21_s10 = sshll.u32 %s15017_s9, 4  ;;  %s15018_s13 = smov [#allocation7]   ;;  %s22_s10 = int_to_ptr.vmem [resolvable:$true] %s21_s10 }
   0xc   :  { %24 = dma.hbm_to_vmem [thread:$0]  %s20_s8, 128, %s22_s10, [#allocation3]  }
   0xd   :  { %s44_s14 = sshll.u32 %s15018_s13, 4  ;;  %s15019_s15 = smov 256   ;;  %s45_s14 = int_to_ptr.vmem [resolvable:$true] %s44_s14 }
   0xe   :  { %s15020_s16 = smov 16   ;;  %s69_s0 = sshll.u32 %s15547_s4, 4  ;;  %s70_s0 = int_to_ptr.hbm [resolvable:$true] %s69_s0 }
   0xf   :  { %50 = dma.hbm_to_vmem [thread:$0]  %s43_s12, 512, %s45_s14, [#allocation6], %s15019_s15, %s15019_s15, %s15020_s16  }
  0x10   :  { %s15021_s19 = smov [#allocation10]  }
  0x11   :  { %s71_s20 = sshll.u32 %s15021_s19, 4  ;;  %s72_s20 = int_to_ptr.vmem [resolvable:$true] %s71_s20 }
  0x12   :  { %74 = dma.hbm_to_vmem [thread:$0]  %s70_s0, 64, %s72_s20, [#allocation9]  }
  0x13   :  { %15003 = dma.done.wait [#allocation3], 128  }
  0x14   :  { %15004 = vsyncadd [#allocation3], 4294967168 }
  0x15   :  { %15005 = dma.done.wait [#allocation6], 66048  }
  0x16   :  { %15006 = vsyncadd [#allocation6], 4294901248 }
  0x17   :  { %15007 = dma.done.wait [#allocation9], 8256  }
  0x18   :  { %15008 = vsyncadd [#allocation9], 4294959040  ;;  %v9311_v0 = vld [vmem:[#allocation5 + $0x1c0] sm:$0xf]  ;;  %vm4584_vm0 = vcmask 1041408   ;;  %s15022_s2 = smov [#allocation11]  }
  0x19   :  { %v13753_v1 = vld [vmem:[#allocation5 + $0x1dc] sm:$0xf0]  ;;  %s9068_s4 = sshll.u32 %s15022_s2, 4  ;;  %s9070_s23 = sshll.u32 %s15548_s5, 4  ;;  %s9069_s4 = int_to_ptr.vmem [resolvable:$true] %s9068_s4  ;;  %s9071_s23 = int_to_ptr.hbm [resolvable:$true] %s9070_s23 }
  0x1a   :  { %v9567_v2 = vld [vmem:[#allocation5 + $0x3c0] sm:$0xf]  ;;  %v9312_v3 = vor.u32 %v13753_v1, %v9311_v0  ;;  %s15023_s24 = smov 64   ;;  %s15024_s25 = smov 4  }
  0x1b   :  { %v13817_v4 = vld [vmem:[#allocation5 + $0x3dc] sm:$0xf0] }
  0x1c   :  { %v9823_v5 = vld [vmem:[#allocation5 + $0x5c0] sm:$0xf]  ;;  %v9568_v7 = vor.u32 %v13817_v4, %v9567_v2  ;;  %1669 = vmatpush.bf16.msra.mxu0 %v9312_v3 }
  0x1d   :  { %v13881_v6 = vld [vmem:[#allocation5 + $0x5dc] sm:$0xf0] }
  0x1e   :  { %v9824_v8 = vor.u32 %v13881_v6, %v9823_v5  ;;  %v10079_v9 = vld [vmem:[#allocation5 + $0x7c0] sm:$0xf]  ;;  %1682 = vmatpush.bf16.msra.mxu1 %v9568_v7 }
  0x1f   :  { %v13945_v10 = vld [vmem:[#allocation5 + $0x7dc] sm:$0xf0] }
  0x20   :  { %v9279_v11 = vld [vmem:[#allocation5 + $0x180] sm:$0xf]  ;;  %v10080_v12 = vor.u32 %v13945_v10, %v10079_v9  ;;  %1695 = vmatpush.bf16.msra.mxu2 %v9824_v8 }
  0x21   :  { %v13745_v13 = vld [vmem:[#allocation5 + $0x19c] sm:$0xf0] }
  0x22   :  { %v9535_v14 = vld [vmem:[#allocation5 + $0x380] sm:$0xf]  ;;  %v9280_v16 = vor.u32 %v13745_v13, %v9279_v11  ;;  %1708 = vmatpush.bf16.msra.mxu3 %v10080_v12 }
  0x23   :  { %v13809_v15 = vld [vmem:[#allocation5 + $0x39c] sm:$0xf0] }
  0x24   :  { %v9536_v17 = vor.u32 %v13809_v15, %v9535_v14  ;;  %v9791_v18 = vld [vmem:[#allocation5 + $0x580] sm:$0xf]  ;;  %1670 = vmatpush.bf16.msra.mxu0 %v9280_v16 }
  0x25   :  { %v13873_v19 = vld [vmem:[#allocation5 + $0x59c] sm:$0xf0] }
  0x26   :  { %v10047_v20 = vld [vmem:[#allocation5 + $0x780] sm:$0xf]  ;;  %v9792_v21 = vor.u32 %v13873_v19, %v9791_v18  ;;  %1683 = vmatpush.bf16.msra.mxu1 %v9536_v17 }
  0x27   :  { %v13937_v22 = vld [vmem:[#allocation5 + $0x79c] sm:$0xf0] }
  0x28   :  { %v9247_v23 = vld [vmem:[#allocation5 + $0x140] sm:$0xf]  ;;  %v10048_v25 = vor.u32 %v13937_v22, %v10047_v20  ;;  %1696 = vmatpush.bf16.msra.mxu2 %v9792_v21 }
  0x29   :  { %v13737_v24 = vld [vmem:[#allocation5 + $0x15c] sm:$0xf0] }
  0x2a   :  { %v9503_v26 = vld [vmem:[#allocation5 + $0x340] sm:$0xf]  ;;  %v9248_v29 = vor.u32 %v13737_v24, %v9247_v23  ;;  %1709 = vmatpush.bf16.msra.mxu3 %v10048_v25 }
  0x2b   :  { %v13801_v27 = vld [vmem:[#allocation5 + $0x35c] sm:$0xf0] }
  0x2c   :  { %v9759_v28 = vld [vmem:[#allocation5 + $0x540] sm:$0xf]  ;;  %v9504_v33 = vor.u32 %v13801_v27, %v9503_v26  ;;  %1671 = vmatpush.bf16.msra.mxu0 %v9248_v29  ;;  %v9313_v29 = vld [vmem:[#allocation5 + $0x1e0] sm:$0xf0] }
  0x2d   :  { %v13865_v30 = vld [vmem:[#allocation5 + $0x55c] sm:$0xf0] }
  0x2e   :  { %v10015_v31 = vld [vmem:[#allocation5 + $0x740] sm:$0xf]  ;;  %v9760_v34 = vor.u32 %v13865_v30, %v9759_v28  ;;  %1684 = vmatpush.bf16.msra.mxu1 %v9504_v33  ;;  %v13749_v28 = vld [vmem:[#allocation5 + $0x1c4] sm:$0xf] }
  0x2f   :  { %v13929_v32 = vld [vmem:[#allocation5 + $0x75c] sm:$0xf0]  ;;  %v13813_v30 = vld [vmem:[#allocation5 + $0x3c4] sm:$0xf] }
  0x30   :  { %v9215_v35 = vld [vmem:[#allocation5 + $0x100] sm:$0xf]  ;;  %v10016_v38 = vor.u32 %v13929_v32, %v10015_v31  ;;  %1697 = vmatpush.bf16.msra.mxu2 %v9760_v34  ;;  %v9569_v32 = vld [vmem:[#allocation5 + $0x3e0] sm:$0xf0] }
  0x31   :  { %v13729_v36 = vld [vmem:[#allocation5 + $0x11c] sm:$0xf0]  ;;  %v13877_v33 = vld [vmem:[#allocation5 + $0x5c4] sm:$0xf] }
  0x32   :  { %v9471_v37 = vld [vmem:[#allocation5 + $0x300] sm:$0xf]  ;;  %v9216_v44 = vor.u32 %v13729_v36, %v9215_v35  ;;  %1710 = vmatpush.bf16.msra.mxu3 %v10016_v38  ;;  %v9825_v34 = vld [vmem:[#allocation5 + $0x5e0] sm:$0xf0] }
  0x33   :  { %v13793_v39 = vld [vmem:[#allocation5 + $0x31c] sm:$0xf0]  ;;  %v10081_v38 = vld [vmem:[#allocation5 + $0x7e0] sm:$0xf0] }
  0x34   :  { %v9727_v40 = vld [vmem:[#allocation5 + $0x500] sm:$0xf]  ;;  %v9472_v45 = vor.u32 %v13793_v39, %v9471_v37  ;;  %1672 = vmatpush.bf16.msra.mxu0 %v9216_v44  ;;  %v13941_v37 = vld [vmem:[#allocation5 + $0x7c4] sm:$0xf] }
  0x35   :  { %v13857_v41 = vld [vmem:[#allocation5 + $0x51c] sm:$0xf0]  ;;  %v9281_v44 = vld [vmem:[#allocation5 + $0x1a0] sm:$0xf0] }
  0x36   :  { %v9983_v42 = vld [vmem:[#allocation5 + $0x700] sm:$0xf]  ;;  %v9728_v46 = vor.u32 %v13857_v41, %v9727_v40  ;;  %1685 = vmatpush.bf16.msra.mxu1 %v9472_v45  ;;  %v9316_v40 = vor.u32 %v13749_v28, %v9313_v29  ;;  %v9572_v41 = vor.u32 %v13813_v30, %v9569_v32  ;;  %v13805_v45 = vld [vmem:[#allocation5 + $0x384] sm:$0xf] }
  0x37   :  { %v13921_v43 = vld [vmem:[#allocation5 + $0x71c] sm:$0xf0]  ;;  %v13773_v29 = vld [vmem:[#allocation5 + $0x284] sm:$0xf] }
  0x38   :  { %v9183_v47 = vld [vmem:[#allocation5 + $0xc0] sm:$0xf]  ;;  %v9984_v50 = vor.u32 %v13921_v43, %v9983_v42  ;;  %1698 = vmatpush.bf16.msra.mxu2 %v9728_v46  ;;  %v9828_v42 = vor.u32 %v13877_v33, %v9825_v34  ;;  %v13741_v43 = vld [vmem:[#allocation5 + $0x184] sm:$0xf]  ;;  %v10084_v46 = vor.u32 %v13941_v37, %v10081_v38 }
  0x39   :  { %v13721_v48 = vld [vmem:[#allocation5 + $0xdc] sm:$0xf0]  ;;  %v9409_v38 = vld [vmem:[#allocation5 + $0x2a0] sm:$0xf0] }
  0x3a   :  { %v9439_v49 = vld [vmem:[#allocation5 + $0x2c0] sm:$0xf]  ;;  %v9184_v56 = vor.u32 %v13721_v48, %v9183_v47  ;;  %1711 = vmatpush.bf16.msra.mxu3 %v9984_v50  ;;  %v9537_v47 = vld [vmem:[#allocation5 + $0x3a0] sm:$0xf0] }
  0x3b   :  { %v13785_v51 = vld [vmem:[#allocation5 + $0x2dc] sm:$0xf0]  ;;  %v13869_v48 = vld [vmem:[#allocation5 + $0x584] sm:$0xf] }
  0x3c   :  { %v9695_v52 = vld [vmem:[#allocation5 + $0x4c0] sm:$0xf]  ;;  %v9440_v57 = vor.u32 %v13785_v51, %v9439_v49  ;;  %1673 = vmatpush.bf16.msra.mxu0 %v9184_v56  ;;  %v9793_v49 = vld [vmem:[#allocation5 + $0x5a0] sm:$0xf0] }
  0x3d   :  { %v13849_v53 = vld [vmem:[#allocation5 + $0x4dc] sm:$0xf0]  ;;  %v13933_v50 = vld [vmem:[#allocation5 + $0x784] sm:$0xf] }
  0x3e   :  { %v9951_v54 = vld [vmem:[#allocation5 + $0x6c0] sm:$0xf]  ;;  %v9696_v58 = vor.u32 %v13849_v53, %v9695_v52  ;;  %1686 = vmatpush.bf16.msra.mxu1 %v9440_v57  ;;  %v10049_v51 = vld [vmem:[#allocation5 + $0x7a0] sm:$0xf0]  ;;  %v9284_v52 = vor.u32 %v13741_v43, %v9281_v44  ;;  %v9540_v53 = vor.u32 %v13805_v45, %v9537_v47 }
  0x3f   :  { %v13913_v55 = vld [vmem:[#allocation5 + $0x6dc] sm:$0xf0]  ;;  %v9249_v56 = vld [vmem:[#allocation5 + $0x160] sm:$0xf0] }
  0x40   :  { %v9151_v59 = vld [vmem:[#allocation5 + $0x80] sm:$0xf]  ;;  %v9952_v62 = vor.u32 %v13913_v55, %v9951_v54  ;;  %1699 = vmatpush.bf16.msra.mxu2 %v9696_v58  ;;  %v9796_v54 = vor.u32 %v13869_v48, %v9793_v49  ;;  %v13733_v55 = vld [vmem:[#allocation5 + $0x144] sm:$0xf]  ;;  %v10052_v58 = vor.u32 %v13933_v50, %v10049_v51 }
  0x41   :  { %v13713_v60 = vld [vmem:[#allocation5 + $0x9c] sm:$0xf0]  ;;  %v13797_v57 = vld [vmem:[#allocation5 + $0x344] sm:$0xf] }
  0x42   :  { %v9407_v61 = vld [vmem:[#allocation5 + $0x280] sm:$0xf]  ;;  %v9152_v4 = vor.u32 %v13713_v60, %v9151_v59  ;;  %1712 = vmatpush.bf16.msra.mxu3 %v9952_v62  ;;  %v9505_v59 = vld [vmem:[#allocation5 + $0x360] sm:$0xf0] }
  0x43   :  { %v13777_v63 = vld [vmem:[#allocation5 + $0x29c] sm:$0xf0]  ;;  %v13861_v60 = vld [vmem:[#allocation5 + $0x544] sm:$0xf] }
  0x44   :  { %v9663_v0 = vld [vmem:[#allocation5 + $0x480] sm:$0xf]  ;;  %v9408_v5 = vor.u32 %v13777_v63, %v9407_v61  ;;  %1674 = vmatpush.bf16.msra.mxu0 %v9152_v4  ;;  %v9761_v61 = vld [vmem:[#allocation5 + $0x560] sm:$0xf0] }
  0x45   :  { %v13841_v1 = vld [vmem:[#allocation5 + $0x49c] sm:$0xf0]  ;;  %v13925_v62 = vld [vmem:[#allocation5 + $0x744] sm:$0xf]  ;;  %v9764_v4 = vor.u32 %v13861_v60, %v9761_v61 }
  0x46   :  { %v9919_v2 = vld [vmem:[#allocation5 + $0x680] sm:$0xf]  ;;  %v9664_v6 = vor.u32 %v13841_v1, %v9663_v0  ;;  %1687 = vmatpush.bf16.msra.mxu1 %v9408_v5  ;;  %v10017_v63 = vld [vmem:[#allocation5 + $0x760] sm:$0xf0]  ;;  %v9252_v0 = vor.u32 %v13733_v55, %v9249_v56 }
  0x47   :  { %v13905_v3 = vld [vmem:[#allocation5 + $0x69c] sm:$0xf0]  ;;  %v13725_v1 = vld [vmem:[#allocation5 + $0x104] sm:$0xf] }
  0x48   :  { %v9119_v7 = vld [vmem:[#allocation5 + $0x40] sm:$0xf]  ;;  %v9920_v10 = vor.u32 %v13905_v3, %v9919_v2  ;;  %1700 = vmatpush.bf16.msra.mxu2 %v9664_v6  ;;  %v95_v2 = vld [vmem:[#allocation2] sm:$0xff]  ;;  %v9508_v3 = vor.u32 %v13797_v57, %v9505_v59  ;;  %v9217_v5 = vld [vmem:[#allocation5 + $0x120] sm:$0xf0] }
  0x49   :  { %v13705_v8 = vld [vmem:[#allocation5 + $0x5c] sm:$0xf0]  ;;  %v13789_v6 = vld [vmem:[#allocation5 + $0x304] sm:$0xf]  ;;  %97 = vst [vmem:[#allocation1] ss:$4 sm:$0xff] %v95_v2 }
  0x4a   :  { %v9375_v9 = vld [vmem:[#allocation5 + $0x240] sm:$0xf]  ;;  %v9120_v16 = vor.u32 %v13705_v8, %v9119_v7  ;;  %1713 = vmatpush.bf16.msra.mxu3 %v9920_v10  ;;  %v10020_v7 = vor.u32 %v13925_v62, %v10017_v63  ;;  %v9473_v8 = vld [vmem:[#allocation5 + $0x320] sm:$0xf0] }
  0x4b   :  { %v13769_v11 = vld [vmem:[#allocation5 + $0x25c] sm:$0xf0]  ;;  %v9729_v10 = vld [vmem:[#allocation5 + $0x520] sm:$0xf0] }
  0x4c   :  { %v9631_v12 = vld [vmem:[#allocation5 + $0x440] sm:$0xf]  ;;  %v9376_v19 = vor.u32 %v13769_v11, %v9375_v9  ;;  %1675 = vmatpush.bf16.msra.mxu0 %v9120_v16  ;;  %v13853_v9 = vld [vmem:[#allocation5 + $0x504] sm:$0xf] }
  0x4d   :  { %v13833_v13 = vld [vmem:[#allocation5 + $0x45c] sm:$0xf0]  ;;  %v13917_v11 = vld [vmem:[#allocation5 + $0x704] sm:$0xf]  ;;  %v9732_v16 = vor.u32 %v13853_v9, %v9729_v10  ;;  %v13818_v9 = vld [vmem:[#allocation5 + $0x3e4] sm:$0xf0] }
  0x4e   :  { %v9887_v14 = vld [vmem:[#allocation5 + $0x640] sm:$0xf]  ;;  %v9632_v20 = vor.u32 %v13833_v13, %v9631_v12  ;;  %1688 = vmatpush.bf16.msra.mxu1 %v9376_v19  ;;  %v9985_v12 = vld [vmem:[#allocation5 + $0x720] sm:$0xf0]  ;;  %v9220_v13 = vor.u32 %v13725_v1, %v9217_v5  ;;  %v9319_v5 = vld [vmem:[#allocation5 + $0x1c8] sm:$0xf] }
  0x4f   :  { %v13897_v15 = vld [vmem:[#allocation5 + $0x65c] sm:$0xf0]  ;;  %v9441_v19 = vld [vmem:[#allocation5 + $0x2e0] sm:$0xf0]  ;;  %v9831_v10 = vld [vmem:[#allocation5 + $0x5c8] sm:$0xf] }
  0x50   :  { %v9087_v17 = vld [vmem:[#allocation5] sm:$0xf]  ;;  %v9888_v24 = vor.u32 %v13897_v15, %v9887_v14  ;;  %1701 = vmatpush.bf16.msra.mxu2 %v9632_v20  ;;  %v13717_v14 = vld [vmem:[#allocation5 + $0xc4] sm:$0xf]  ;;  %v9476_v15 = vor.u32 %v13789_v6, %v9473_v8  ;;  %v9988_v20 = vor.u32 %v13917_v11, %v9985_v12  ;;  %v13754_v6 = vld [vmem:[#allocation5 + $0x1e4] sm:$0xf0] }
  0x51   :  { %v13697_v18 = vld [vmem:[#allocation5 + $0x1c] sm:$0xf0]  ;;  %v13901_v43 = vld [vmem:[#allocation5 + $0x684] sm:$0xf]  ;;  %v13882_v11 = vld [vmem:[#allocation5 + $0x5e4] sm:$0xf0] }
  0x52   :  { %v9343_v21 = vld [vmem:[#allocation5 + $0x200] sm:$0xf]  ;;  %v9088_v31 = vor.u32 %v13697_v18, %v9087_v17  ;;  %1714 = vmatpush.bf16.msra.mxu3 %v9888_v24  ;;  %v9185_v17 = vld [vmem:[#allocation5 + $0xe0] sm:$0xf0] }
  0x53   :  { %v13761_v22 = vld [vmem:[#allocation5 + $0x21c] sm:$0xf0]  ;;  %v13781_v18 = vld [vmem:[#allocation5 + $0x2c4] sm:$0xf] }
  0x54   :  { %v9599_v23 = vld [vmem:[#allocation5 + $0x400] sm:$0xf]  ;;  %v9344_v35 = vor.u32 %v13761_v22, %v9343_v21  ;;  %1676 = vmatpush.bf16.msra.mxu0 %v9088_v31  ;;  %v13845_v21 = vld [vmem:[#allocation5 + $0x4c4] sm:$0xf]  ;;  %v9444_v28 = vor.u32 %v13781_v18, %v9441_v19  ;;  %v9832_v19 = vor.u32 %v13882_v11, %v9831_v10  ;;  %v9415_v10 = vld [vmem:[#allocation5 + $0x288] sm:$0xf] }
  0x55   :  { %v13825_v25 = vld [vmem:[#allocation5 + $0x41c] sm:$0xf0]  ;;  %v9697_v22 = vld [vmem:[#allocation5 + $0x4e0] sm:$0xf0] }
  0x56   :  { %v9855_v26 = vld [vmem:[#allocation5 + $0x600] sm:$0xf]  ;;  %v9600_v36 = vor.u32 %v13825_v25, %v9599_v23  ;;  %1689 = vmatpush.bf16.msra.mxu1 %v9344_v35  ;;  %v13909_v23 = vld [vmem:[#allocation5 + $0x6c4] sm:$0xf]  ;;  %v9700_v32 = vor.u32 %v13845_v21, %v9697_v22  ;;  %v13746_v21 = vld [vmem:[#allocation5 + $0x1a4] sm:$0xf0] }
  0x57   :  { %v13889_v27 = vld [vmem:[#allocation5 + $0x61c] sm:$0xf0]  ;;  %v9953_v24 = vld [vmem:[#allocation5 + $0x6e0] sm:$0xf0]  ;;  %v9543_v22 = vld [vmem:[#allocation5 + $0x388] sm:$0xf] }
  0x58   :  { %v9856_v39 = vor.u32 %v13889_v27, %v9855_v26  ;;  %1702 = vmatpush.bf16.msra.mxu2 %v9600_v36  ;;  %1721 = vmatpush.bf16.msrb.mxu0 %v9316_v40  ;;  %v13709_v25 = vld [vmem:[#allocation5 + $0x84] sm:$0xf]  ;;  %v9188_v27 = vor.u32 %v13717_v14, %v9185_v17  ;;  %v98_v31 = vld.sshfl [vmem:[#allocation1] sm:$0xff pattern:$0x73625140]  ;;  %v9956_v37 = vor.u32 %v13909_v23, %v9953_v24 }
  0x59   :  { %v9153_v26 = vld [vmem:[#allocation5 + $0xa0] sm:$0xf0]  ;;  %v15072_v34 = vpack.c.bf16 %v98_v31, %v98_v31  ;;  %v101_v35 = vld.sshfl [vmem:[#allocation1 + $0x18] sm:$0xff pattern:$0x73625140]  ;;  %v9320_v17 = vor.u32 %v13754_v6, %v9319_v5 }
  0x5a   :  { %1715 = vmatpush.bf16.msra.mxu3 %v9856_v39  ;;  %1734 = vmatpush.bf16.msrb.mxu1 %v9572_v41  ;;  %v100_v30 = vld.sshfl [vmem:[#allocation1 + $0x10] sm:$0xff pattern:$0x73625140]  ;;  %v99_v36 = vld.sshfl [vmem:[#allocation1 + $0x8] sm:$0xff pattern:$0x73625140]  ;;  %v15074_v41 = vpack.c.bf16 %v101_v35, %v101_v35  ;;  %v9156_v45 = vor.u32 %v13709_v25, %v9153_v26 }
  0x5b   :  { %v15070_v33 = vpack.c.bf16 %v100_v30, %v100_v30  ;;  %v13837_v39 = vld [vmem:[#allocation5 + $0x484] sm:$0xf]  ;;  %1677 = vmatmul.bf16.vlgmr.msra.gmra.mxu0 %v15072_v34  ;;  %v10087_v14 = vld [vmem:[#allocation5 + $0x7c8] sm:$0xf] }
  0x5c   :  { %1747 = vmatpush.bf16.msrb.mxu2 %v9828_v42  ;;  %1722 = vmatpush.bf16.msrb.mxu0 %v9284_v52  ;;  %v9665_v40 = vld [vmem:[#allocation5 + $0x4a0] sm:$0xf0]  ;;  %v15076_v42 = vpack.c.bf16 %v99_v36, %v99_v36  ;;  %v13810_v24 = vld [vmem:[#allocation5 + $0x3a4] sm:$0xf0] }
  0x5d   :  { %v9921_v44 = vld [vmem:[#allocation5 + $0x6a0] sm:$0xf0]  ;;  %1703 = vmatmul.bf16.vlgmr.msra.gmra.mxu2 %v15070_v33  ;;  %1716 = vmatmul.bf16.vlgmr.msra.gmra.mxu3 %v15074_v41  ;;  %v9668_v47 = vor.u32 %v13837_v39, %v9665_v40  ;;  %v9799_v25 = vld [vmem:[#allocation5 + $0x588] sm:$0xf]  ;;  %v9544_v30 = vor.u32 %v13810_v24, %v9543_v22 }
  0x5e   :  { %1760 = vmatpush.bf16.msrb.mxu3 %v10084_v46  ;;  %1735 = vmatpush.bf16.msrb.mxu1 %v9540_v53  ;;  %v9412_v46 = vor.u32 %v13773_v29, %v9409_v38  ;;  %v13701_v48 = vld [vmem:[#allocation5 + $0x44] sm:$0xf]  ;;  %v9924_v51 = vor.u32 %v13901_v43, %v9921_v44  ;;  %v13874_v26 = vld [vmem:[#allocation5 + $0x5a4] sm:$0xf0] }
  0x5f   :  { %v9121_v49 = vld [vmem:[#allocation5 + $0x60] sm:$0xf0]  ;;  %1690 = vmatmul.bf16.vlgmr.msra.gmra.mxu1 %v15076_v42  ;;  %v9800_v31 = vor.u32 %v13874_v26, %v9799_v25  ;;  %v13738_v35 = vld [vmem:[#allocation5 + $0x164] sm:$0xf0] }
  0x60   :  { %1748 = vmatpush.bf16.msrb.mxu2 %v9796_v54  ;;  %1723 = vmatpush.bf16.msrb.mxu0 %v9252_v0  ;;  %v13765_v50 = vld [vmem:[#allocation5 + $0x244] sm:$0xf]  ;;  %v9124_v57 = vor.u32 %v13701_v48, %v9121_v49  ;;  %v9511_v36 = vld [vmem:[#allocation5 + $0x348] sm:$0xf] }
  0x61   :  { %v9377_v52 = vld [vmem:[#allocation5 + $0x260] sm:$0xf0]  ;;  %v13802_v38 = vld [vmem:[#allocation5 + $0x364] sm:$0xf0] }
  0x62   :  { %1761 = vmatpush.bf16.msrb.mxu3 %v10052_v58  ;;  %1736 = vmatpush.bf16.msrb.mxu1 %v9508_v3  ;;  %v13829_v53 = vld [vmem:[#allocation5 + $0x444] sm:$0xf]  ;;  %v9380_v60 = vor.u32 %v13765_v50, %v9377_v52  ;;  %v9767_v39 = vld [vmem:[#allocation5 + $0x548] sm:$0xf] }
  0x63   :  { %v9633_v54 = vld [vmem:[#allocation5 + $0x460] sm:$0xf0]  ;;  %v13866_v40 = vld [vmem:[#allocation5 + $0x564] sm:$0xf0] }
  0x64   :  { %1749 = vmatpush.bf16.msrb.mxu2 %v9764_v4  ;;  %1724 = vmatpush.bf16.msrb.mxu0 %v9220_v13  ;;  %v13893_v55 = vld [vmem:[#allocation5 + $0x644] sm:$0xf]  ;;  %v9636_v61 = vor.u32 %v13829_v53, %v9633_v54  ;;  %v10023_v43 = vld [vmem:[#allocation5 + $0x748] sm:$0xf] }
  0x65   :  { %v9889_v56 = vld [vmem:[#allocation5 + $0x660] sm:$0xf0]  ;;  %v13930_v44 = vld [vmem:[#allocation5 + $0x764] sm:$0xf0] }
  0x66   :  { %1762 = vmatpush.bf16.msrb.mxu3 %v10020_v7  ;;  %1737 = vmatpush.bf16.msrb.mxu1 %v9476_v15  ;;  %v13693_v58 = vld [vmem:[#allocation5 + $0x4] sm:$0xf]  ;;  %v9892_v1 = vor.u32 %v13893_v55, %v9889_v56  ;;  %v9575_v7 = vld [vmem:[#allocation5 + $0x3c8] sm:$0xf] }
  0x67   :  { %v9089_v59 = vld [vmem:[#allocation5 + $0x20] sm:$0xf0]  ;;  %v13946_v15 = vld [vmem:[#allocation5 + $0x7e4] sm:$0xf0]  ;;  %v9576_v18 = vor.u32 %v13818_v9, %v9575_v7 }
  0x68   :  { %1750 = vmatpush.bf16.msrb.mxu2 %v9732_v16  ;;  %1725 = vmatpush.bf16.msrb.mxu0 %v9188_v27  ;;  %v13757_v62 = vld [vmem:[#allocation5 + $0x204] sm:$0xf]  ;;  %v9092_v8 = vor.u32 %v13693_v58, %v9089_v59  ;;  %v10088_v23 = vor.u32 %v13946_v15, %v10087_v14  ;;  %v10055_v27 = vld [vmem:[#allocation5 + $0x788] sm:$0xf] }
  0x69   :  { %v9345_v63 = vld [vmem:[#allocation5 + $0x220] sm:$0xf0]  ;;  %v9223_v48 = vld [vmem:[#allocation5 + $0x108] sm:$0xf] }
  0x6a   :  { %1763 = vmatpush.bf16.msrb.mxu3 %v9988_v20  ;;  %1738 = vmatpush.bf16.msrb.mxu1 %v9444_v28  ;;  %v13821_v0 = vld [vmem:[#allocation5 + $0x404] sm:$0xf]  ;;  %v9348_v12 = vor.u32 %v13757_v62, %v9345_v63  ;;  %v9287_v20 = vld [vmem:[#allocation5 + $0x188] sm:$0xf] }
  0x6b   :  { %v9601_v2 = vld [vmem:[#allocation5 + $0x420] sm:$0xf0]  ;;  %v13938_v28 = vld [vmem:[#allocation5 + $0x7a4] sm:$0xf0]  ;;  %v9288_v29 = vor.u32 %v13746_v21, %v9287_v20 }
  0x6c   :  { %1751 = vmatpush.bf16.msrb.mxu2 %v9700_v32  ;;  %1726 = vmatpush.bf16.msrb.mxu0 %v9156_v45  ;;  %v13885_v3 = vld [vmem:[#allocation5 + $0x604] sm:$0xf]  ;;  %v9604_v13 = vor.u32 %v13821_v0, %v9601_v2  ;;  %v9255_v32 = vld [vmem:[#allocation5 + $0x148] sm:$0xf] }
  0x6d   :  { %v9857_v4 = vld [vmem:[#allocation5 + $0x620] sm:$0xf0]  ;;  %v9256_v45 = vor.u32 %v13738_v35, %v9255_v32  ;;  %v13730_v49 = vld [vmem:[#allocation5 + $0x124] sm:$0xf0] }
  0x6e   :  { %1764 = vmatpush.bf16.msrb.mxu3 %v9956_v37  ;;  %1739 = vmatpush.bf16.msrb.mxu1 %v9412_v46  ;;  %v9860_v16 = vor.u32 %v13885_v3, %v9857_v4  ;;  %v10056_v37 = vor.u32 %v13938_v28, %v10055_v27  ;;  %v9512_v46 = vor.u32 %v13802_v38, %v9511_v36  ;;  %v9479_v50 = vld [vmem:[#allocation5 + $0x308] sm:$0xf] }
  0x6f   :  { %v13794_v52 = vld [vmem:[#allocation5 + $0x324] sm:$0xf0] }
  0x70   :  { %1752 = vmatpush.bf16.msrb.mxu2 %v9668_v47  ;;  %1727 = vmatpush.bf16.msrb.mxu0 %v9124_v57  ;;  %v9768_v47 = vor.u32 %v13866_v40, %v9767_v39  ;;  %v9735_v53 = vld [vmem:[#allocation5 + $0x508] sm:$0xf]  ;;  %v9224_v57 = vor.u32 %v13730_v49, %v9223_v48  ;;  %v9480_v58 = vor.u32 %v13794_v52, %v9479_v50  ;;  %v9577_v49 = vld [vmem:[#allocation5 + $0x3e8] sm:$0xf0] }
  0x71   :  { %v13858_v54 = vld [vmem:[#allocation5 + $0x524] sm:$0xf0]  ;;  %v13878_v50 = vld [vmem:[#allocation5 + $0x5cc] sm:$0xf] }
  0x72   :  { %1765 = vmatpush.bf16.msrb.mxu3 %v9924_v51  ;;  %1740 = vmatpush.bf16.msrb.mxu1 %v9380_v60  ;;  %v10024_v51 = vor.u32 %v13930_v44, %v10023_v43  ;;  %v9991_v55 = vld [vmem:[#allocation5 + $0x708] sm:$0xf]  ;;  %v9736_v59 = vor.u32 %v13858_v54, %v9735_v53  ;;  %v13942_v54 = vld [vmem:[#allocation5 + $0x7cc] sm:$0xf] }
  0x73   :  { %v13922_v56 = vld [vmem:[#allocation5 + $0x724] sm:$0xf0] }
  0x74   :  { %1753 = vmatpush.bf16.msrb.mxu2 %v9636_v61  ;;  %1728 = vmatpush.bf16.msrb.mxu0 %v9092_v8  ;;  %v9191_v60 = vld [vmem:[#allocation5 + $0xc8] sm:$0xf]  ;;  %v9992_v63 = vor.u32 %v13922_v56, %v9991_v55  ;;  %v10089_v55 = vld [vmem:[#allocation5 + $0x7e8] sm:$0xf0] }
  0x75   :  { %v13722_v61 = vld [vmem:[#allocation5 + $0xe4] sm:$0xf0] }
  0x76   :  { %1766 = vmatpush.bf16.msrb.mxu3 %v9892_v1  ;;  %1741 = vmatpush.bf16.msrb.mxu1 %v9348_v12  ;;  %v9447_v62 = vld [vmem:[#allocation5 + $0x2c8] sm:$0xf]  ;;  %v9192_v5 = vor.u32 %v13722_v61, %v9191_v60  ;;  %v13742_v60 = vld [vmem:[#allocation5 + $0x18c] sm:$0xf] }
  0x77   :  { %1729 = vmatmul.bf16.vlgmr.msrb.gmra.mxu0 %v15072_v34  ;;  %v13786_v0 = vld [vmem:[#allocation5 + $0x2e4] sm:$0xf0]  ;;  %v9289_v61 = vld [vmem:[#allocation5 + $0x1a8] sm:$0xf0] }
  0x78   :  { %1754 = vmatpush.bf16.msrb.mxu2 %v9604_v13  ;;  %1773 = vmatpush.bf16.msra.mxu0 %v9320_v17  ;;  %v9703_v1 = vld [vmem:[#allocation5 + $0x4c8] sm:$0xf]  ;;  %v9448_v6 = vor.u32 %v13786_v0, %v9447_v62  ;;  %v13806_v62 = vld [vmem:[#allocation5 + $0x38c] sm:$0xf] }
  0x79   :  { %1742 = vmatmul.bf16.vlgmr.msrb.gmra.mxu1 %v15076_v42  ;;  %v13850_v2 = vld [vmem:[#allocation5 + $0x4e4] sm:$0xf0]  ;;  %v9545_v0 = vld [vmem:[#allocation5 + $0x3a8] sm:$0xf0] }
  0x7a   :  { %1767 = vmatpush.bf16.msrb.mxu3 %v9860_v16  ;;  %1786 = vmatpush.bf16.msra.mxu1 %v9576_v18  ;;  %v9959_v3 = vld [vmem:[#allocation5 + $0x6c8] sm:$0xf]  ;;  %v9704_v7 = vor.u32 %v13850_v2, %v9703_v1  ;;  %v13870_v1 = vld [vmem:[#allocation5 + $0x58c] sm:$0xf] }
  0x7b   :  { %1755 = vmatmul.bf16.vlgmr.msrb.gmra.mxu2 %v15070_v33  ;;  %v13914_v4 = vld [vmem:[#allocation5 + $0x6e4] sm:$0xf0]  ;;  %v9801_v2 = vld [vmem:[#allocation5 + $0x5a8] sm:$0xf0] }
  0x7c   :  { %1799 = vmatpush.bf16.msra.mxu2 %v9832_v19  ;;  %1774 = vmatpush.bf16.msra.mxu0 %v9288_v29  ;;  %v9159_v8 = vld [vmem:[#allocation5 + $0x88] sm:$0xf]  ;;  %v9960_v11 = vor.u32 %v13914_v4, %v9959_v3  ;;  %v13934_v3 = vld [vmem:[#allocation5 + $0x78c] sm:$0xf] }
  0x7d   :  { %1768 = vmatmul.bf16.vlgmr.msrb.gmra.mxu3 %v15074_v41  ;;  %v13714_v9 = vld [vmem:[#allocation5 + $0xa4] sm:$0xf0]  ;;  %v10057_v4 = vld [vmem:[#allocation5 + $0x7a8] sm:$0xf0] }
  0x7e   :  { %1812 = vmatpush.bf16.msra.mxu3 %v10088_v23  ;;  %1787 = vmatpush.bf16.msra.mxu1 %v9544_v30  ;;  %v13778_v12 = vld [vmem:[#allocation5 + $0x2a4] sm:$0xf0]  ;;  %v9160_v17 = vor.u32 %v13714_v9, %v9159_v8  ;;  %v13734_v8 = vld [vmem:[#allocation5 + $0x14c] sm:$0xf] }
  0x7f   :  { %v9671_v13 = vld [vmem:[#allocation5 + $0x488] sm:$0xf]  ;;  %v9416_v18 = vor.u32 %v13778_v12, %v9415_v10  ;;  %v9257_v9 = vld [vmem:[#allocation5 + $0x168] sm:$0xf0] }
  0x80   :  { %1800 = vmatpush.bf16.msra.mxu2 %v9800_v31  ;;  %1775 = vmatpush.bf16.msra.mxu0 %v9256_v45  ;;  %v13842_v14 = vld [vmem:[#allocation5 + $0x4a4] sm:$0xf0]  ;;  %v13750_v45 = vld [vmem:[#allocation5 + $0x1cc] sm:$0xf] }
  0x81   :  { %v9927_v15 = vld [vmem:[#allocation5 + $0x688] sm:$0xf]  ;;  %v9672_v19 = vor.u32 %v13842_v14, %v9671_v13  ;;  %v13798_v10 = vld [vmem:[#allocation5 + $0x34c] sm:$0xf] }
  0x82   :  { %1813 = vmatpush.bf16.msra.mxu3 %v10056_v37  ;;  %1788 = vmatpush.bf16.msra.mxu1 %v9512_v46  ;;  %v13906_v16 = vld [vmem:[#allocation5 + $0x6a4] sm:$0xf0]  ;;  %v9321_v46 = vld [vmem:[#allocation5 + $0x1e8] sm:$0xf0] }
  0x83   :  { %v9127_v20 = vld [vmem:[#allocation5 + $0x48] sm:$0xf]  ;;  %v9928_v23 = vor.u32 %v13906_v16, %v9927_v15  ;;  %v9513_v12 = vld [vmem:[#allocation5 + $0x368] sm:$0xf0] }
  0x84   :  { %1801 = vmatpush.bf16.msra.mxu2 %v9768_v47  ;;  %1776 = vmatpush.bf16.msra.mxu0 %v9224_v57  ;;  %v13706_v21 = vld [vmem:[#allocation5 + $0x64] sm:$0xf0]  ;;  %v13814_v47 = vld [vmem:[#allocation5 + $0x3cc] sm:$0xf]  ;;  %v9324_v57 = vor.u32 %v13750_v45, %v9321_v46 }
  0x85   :  { %v9383_v22 = vld [vmem:[#allocation5 + $0x248] sm:$0xf]  ;;  %v9128_v29 = vor.u32 %v13706_v21, %v9127_v20  ;;  %v13862_v13 = vld [vmem:[#allocation5 + $0x54c] sm:$0xf] }
  0x86   :  { %1814 = vmatpush.bf16.msra.mxu3 %v10024_v51  ;;  %1789 = vmatpush.bf16.msra.mxu1 %v9480_v58  ;;  %v13770_v24 = vld [vmem:[#allocation5 + $0x264] sm:$0xf0]  ;;  %v9833_v51 = vld [vmem:[#allocation5 + $0x5e8] sm:$0xf0]  ;;  %v9580_v58 = vor.u32 %v13814_v47, %v9577_v49 }
  0x87   :  { %v9639_v25 = vld [vmem:[#allocation5 + $0x448] sm:$0xf]  ;;  %v9384_v32 = vor.u32 %v13770_v24, %v9383_v22  ;;  %v9769_v14 = vld [vmem:[#allocation5 + $0x568] sm:$0xf0] }
  0x88   :  { %1802 = vmatpush.bf16.msra.mxu2 %v9736_v59  ;;  %1777 = vmatpush.bf16.msra.mxu0 %v9192_v5  ;;  %v13834_v26 = vld [vmem:[#allocation5 + $0x464] sm:$0xf0]  ;;  %v9836_v59 = vor.u32 %v13878_v50, %v9833_v51  ;;  %v9292_v5 = vor.u32 %v13742_v60, %v9289_v61  ;;  %v13926_v15 = vld [vmem:[#allocation5 + $0x74c] sm:$0xf] }
  0x89   :  { %v9895_v27 = vld [vmem:[#allocation5 + $0x648] sm:$0xf]  ;;  %v9640_v35 = vor.u32 %v13834_v26, %v9639_v25  ;;  %v10025_v16 = vld [vmem:[#allocation5 + $0x768] sm:$0xf0] }
  0x8a   :  { %1815 = vmatpush.bf16.msra.mxu3 %v9992_v63  ;;  %1790 = vmatpush.bf16.msra.mxu1 %v9448_v6  ;;  %v13898_v28 = vld [vmem:[#allocation5 + $0x664] sm:$0xf0]  ;;  %v10092_v63 = vor.u32 %v13942_v54, %v10089_v55  ;;  %v9548_v6 = vor.u32 %v13806_v62, %v9545_v0  ;;  %v13726_v20 = vld [vmem:[#allocation5 + $0x10c] sm:$0xf] }
  0x8b   :  { %v9095_v30 = vld [vmem:[#allocation5 + $0x8] sm:$0xf]  ;;  %v9896_v39 = vor.u32 %v13898_v28, %v9895_v27  ;;  %v9225_v21 = vld [vmem:[#allocation5 + $0x128] sm:$0xf0] }
  0x8c   :  { %1803 = vmatpush.bf16.msra.mxu2 %v9704_v7  ;;  %1778 = vmatpush.bf16.msra.mxu0 %v9160_v17  ;;  %v13698_v31 = vld [vmem:[#allocation5 + $0x24] sm:$0xf0]  ;;  %v9804_v7 = vor.u32 %v13870_v1, %v9801_v2  ;;  %v9260_v17 = vor.u32 %v13734_v8, %v9257_v9  ;;  %v13790_v22 = vld [vmem:[#allocation5 + $0x30c] sm:$0xf] }
  0x8d   :  { %v9351_v36 = vld [vmem:[#allocation5 + $0x208] sm:$0xf]  ;;  %v9096_v48 = vor.u32 %v13698_v31, %v9095_v30  ;;  %v9481_v24 = vld [vmem:[#allocation5 + $0x328] sm:$0xf0] }
  0x8e   :  { %1816 = vmatpush.bf16.msra.mxu3 %v9960_v11  ;;  %1791 = vmatpush.bf16.msra.mxu1 %v9416_v18  ;;  %v13762_v37 = vld [vmem:[#allocation5 + $0x224] sm:$0xf0]  ;;  %v10060_v11 = vor.u32 %v13934_v3, %v10057_v4  ;;  %v9516_v18 = vor.u32 %v13798_v10, %v9513_v12  ;;  %v13854_v25 = vld [vmem:[#allocation5 + $0x50c] sm:$0xf]  ;;  %v9484_v30 = vor.u32 %v13790_v22, %v9481_v24  ;;  %v9839_v22 = vld [vmem:[#allocation5 + $0x5d0] sm:$0xf] }
  0x8f   :  { %v9607_v38 = vld [vmem:[#allocation5 + $0x408] sm:$0xf]  ;;  %v9352_v52 = vor.u32 %v13762_v37, %v9351_v36  ;;  %v9737_v26 = vld [vmem:[#allocation5 + $0x528] sm:$0xf0] }
  0x90   :  { %1804 = vmatpush.bf16.msra.mxu2 %v9672_v19  ;;  %v13826_v40 = vld [vmem:[#allocation5 + $0x424] sm:$0xf0]  ;;  %1779 = vmatpush.bf16.msra.mxu0 %v9128_v29  ;;  %v9772_v19 = vor.u32 %v13862_v13, %v9769_v14  ;;  %v13918_v27 = vld [vmem:[#allocation5 + $0x70c] sm:$0xf]  ;;  %v9228_v29 = vor.u32 %v13726_v20, %v9225_v21  ;;  %v9740_v31 = vor.u32 %v13854_v25, %v9737_v26  ;;  %v13819_v21 = vld [vmem:[#allocation5 + $0x3ec] sm:$0xf0] }
  0x91   :  { %v9863_v43 = vld [vmem:[#allocation5 + $0x608] sm:$0xf]  ;;  %v9608_v53 = vor.u32 %v13826_v40, %v9607_v38  ;;  %v9993_v28 = vld [vmem:[#allocation5 + $0x728] sm:$0xf0]  ;;  %v10095_v26 = vld [vmem:[#allocation5 + $0x7d0] sm:$0xf] }
  0x92   :  { %1817 = vmatpush.bf16.msra.mxu3 %v9928_v23  ;;  %v13890_v44 = vld [vmem:[#allocation5 + $0x624] sm:$0xf0]  ;;  %1792 = vmatpush.bf16.msra.mxu1 %v9384_v32  ;;  %v10028_v23 = vor.u32 %v13926_v15, %v10025_v16  ;;  %v13718_v32 = vld [vmem:[#allocation5 + $0xcc] sm:$0xf]  ;;  %v9996_v37 = vor.u32 %v13918_v27, %v9993_v28  ;;  %v13947_v27 = vld [vmem:[#allocation5 + $0x7ec] sm:$0xf0] }
  0x93   :  { %v9864_v56 = vor.u32 %v13890_v44, %v9863_v43  ;;  %v13782_v36 = vld [vmem:[#allocation5 + $0x2cc] sm:$0xf] }
  0x94   :  { %1805 = vmatpush.bf16.msra.mxu2 %v9640_v35  ;;  %1780 = vmatpush.bf16.msra.mxu0 %v9096_v48  ;;  %v9193_v35 = vld [vmem:[#allocation5 + $0xe8] sm:$0xf0] }
  0x95   :  { %v9449_v38 = vld [vmem:[#allocation5 + $0x2e8] sm:$0xf0]  ;;  %v9196_v45 = vor.u32 %v13718_v32, %v9193_v35  ;;  %v9295_v32 = vld [vmem:[#allocation5 + $0x190] sm:$0xf] }
  0x96   :  { %1818 = vmatpush.bf16.msra.mxu3 %v9896_v39  ;;  %1793 = vmatpush.bf16.msra.mxu1 %v9352_v52  ;;  %v13846_v39 = vld [vmem:[#allocation5 + $0x4cc] sm:$0xf]  ;;  %v9452_v46 = vor.u32 %v13782_v36, %v9449_v38  ;;  %v13747_v35 = vld [vmem:[#allocation5 + $0x1ac] sm:$0xf0] }
  0x97   :  { %1781 = vmatmul.bf16.vlgmr.msra.gmra.mxu0 %v15072_v34  ;;  %v9705_v40 = vld [vmem:[#allocation5 + $0x4e8] sm:$0xf0]  ;;  %v9551_v36 = vld [vmem:[#allocation5 + $0x390] sm:$0xf] }
  0x98   :  { %1806 = vmatpush.bf16.msra.mxu2 %v9608_v53  ;;  %1825 = vmatpush.bf16.msrb.mxu0 %v9324_v57  ;;  %v13910_v43 = vld [vmem:[#allocation5 + $0x6cc] sm:$0xf]  ;;  %v9708_v47 = vor.u32 %v13846_v39, %v9705_v40  ;;  %v13811_v38 = vld [vmem:[#allocation5 + $0x3ac] sm:$0xf0] }
  0x99   :  { %1794 = vmatmul.bf16.vlgmr.msra.gmra.mxu1 %v15076_v42  ;;  %v9961_v44 = vld [vmem:[#allocation5 + $0x6e8] sm:$0xf0]  ;;  %v9807_v39 = vld [vmem:[#allocation5 + $0x590] sm:$0xf] }
  0x9a   :  { %1819 = vmatpush.bf16.msra.mxu3 %v9864_v56  ;;  %1838 = vmatpush.bf16.msrb.mxu1 %v9580_v58  ;;  %v13710_v48 = vld [vmem:[#allocation5 + $0x8c] sm:$0xf]  ;;  %v9964_v51 = vor.u32 %v13910_v43, %v9961_v44  ;;  %v13875_v40 = vld [vmem:[#allocation5 + $0x5ac] sm:$0xf0] }
  0x9b   :  { %1807 = vmatmul.bf16.vlgmr.msra.gmra.mxu2 %v15070_v33  ;;  %v9161_v49 = vld [vmem:[#allocation5 + $0xa8] sm:$0xf0]  ;;  %v10063_v43 = vld [vmem:[#allocation5 + $0x790] sm:$0xf] }
  0x9c   :  { %1851 = vmatpush.bf16.msrb.mxu2 %v9836_v59  ;;  %1826 = vmatpush.bf16.msrb.mxu0 %v9292_v5  ;;  %v13774_v50 = vld [vmem:[#allocation5 + $0x28c] sm:$0xf]  ;;  %v9164_v57 = vor.u32 %v13710_v48, %v9161_v49  ;;  %v13939_v44 = vld [vmem:[#allocation5 + $0x7ac] sm:$0xf0] }
  0x9d   :  { %1820 = vmatmul.bf16.vlgmr.msra.gmra.mxu3 %v15074_v41  ;;  %v9417_v52 = vld [vmem:[#allocation5 + $0x2a8] sm:$0xf0]  ;;  %v9263_v48 = vld [vmem:[#allocation5 + $0x150] sm:$0xf] }
  0x9e   :  { %1864 = vmatpush.bf16.msrb.mxu3 %v10092_v63  ;;  %1839 = vmatpush.bf16.msrb.mxu1 %v9548_v6  ;;  %v13838_v53 = vld [vmem:[#allocation5 + $0x48c] sm:$0xf]  ;;  %v9420_v58 = vor.u32 %v13774_v50, %v9417_v52  ;;  %v13739_v49 = vld [vmem:[#allocation5 + $0x16c] sm:$0xf0] }
  0x9f   :  { %v9673_v54 = vld [vmem:[#allocation5 + $0x4a8] sm:$0xf0]  ;;  %v9519_v50 = vld [vmem:[#allocation5 + $0x350] sm:$0xf] }
  0xa0   :  { %1852 = vmatpush.bf16.msrb.mxu2 %v9804_v7  ;;  %1827 = vmatpush.bf16.msrb.mxu0 %v9260_v17  ;;  %v13902_v55 = vld [vmem:[#allocation5 + $0x68c] sm:$0xf]  ;;  %v9676_v59 = vor.u32 %v13838_v53, %v9673_v54  ;;  %v9327_v17 = vld [vmem:[#allocation5 + $0x1d0] sm:$0xf] }
  0xa1   :  { %v9929_v56 = vld [vmem:[#allocation5 + $0x6a8] sm:$0xf0]  ;;  %v13803_v52 = vld [vmem:[#allocation5 + $0x36c] sm:$0xf0] }
  0xa2   :  { %1865 = vmatpush.bf16.msrb.mxu3 %v10060_v11  ;;  %1840 = vmatpush.bf16.msrb.mxu1 %v9516_v18  ;;  %v13702_v60 = vld [vmem:[#allocation5 + $0x4c] sm:$0xf]  ;;  %v9932_v63 = vor.u32 %v13902_v55, %v9929_v56  ;;  %v13755_v18 = vld [vmem:[#allocation5 + $0x1ec] sm:$0xf0] }
  0xa3   :  { %v9129_v61 = vld [vmem:[#allocation5 + $0x68] sm:$0xf0]  ;;  %v9775_v53 = vld [vmem:[#allocation5 + $0x550] sm:$0xf] }
  0xa4   :  { %1853 = vmatpush.bf16.msrb.mxu2 %v9772_v19  ;;  %1828 = vmatpush.bf16.msrb.mxu0 %v9228_v29  ;;  %v13766_v62 = vld [vmem:[#allocation5 + $0x24c] sm:$0xf]  ;;  %v9132_v5 = vor.u32 %v13702_v60, %v9129_v61  ;;  %v9583_v19 = vld [vmem:[#allocation5 + $0x3d0] sm:$0xf]  ;;  %v9328_v29 = vor.u32 %v13755_v18, %v9327_v17 }
  0xa5   :  { %v9385_v0 = vld [vmem:[#allocation5 + $0x268] sm:$0xf0]  ;;  %v13867_v54 = vld [vmem:[#allocation5 + $0x56c] sm:$0xf0] }
  0xa6   :  { %1866 = vmatpush.bf16.msrb.mxu3 %v10028_v23  ;;  %1841 = vmatpush.bf16.msrb.mxu1 %v9484_v30  ;;  %v13830_v1 = vld [vmem:[#allocation5 + $0x44c] sm:$0xf]  ;;  %v9388_v8 = vor.u32 %v13766_v62, %v9385_v0  ;;  %v13883_v23 = vld [vmem:[#allocation5 + $0x5ec] sm:$0xf0]  ;;  %v9584_v30 = vor.u32 %v13819_v21, %v9583_v19 }
  0xa7   :  { %v9641_v2 = vld [vmem:[#allocation5 + $0x468] sm:$0xf0]  ;;  %v10031_v55 = vld [vmem:[#allocation5 + $0x750] sm:$0xf] }
  0xa8   :  { %1854 = vmatpush.bf16.msrb.mxu2 %v9740_v31  ;;  %1829 = vmatpush.bf16.msrb.mxu0 %v9196_v45  ;;  %v13894_v3 = vld [vmem:[#allocation5 + $0x64c] sm:$0xf]  ;;  %v9644_v9 = vor.u32 %v13830_v1, %v9641_v2  ;;  %v9840_v31 = vor.u32 %v13883_v23, %v9839_v22  ;;  %v9296_v45 = vor.u32 %v13747_v35, %v9295_v32  ;;  %v13931_v56 = vld [vmem:[#allocation5 + $0x76c] sm:$0xf0] }
  0xa9   :  { %v9897_v4 = vld [vmem:[#allocation5 + $0x668] sm:$0xf0]  ;;  %v9231_v60 = vld [vmem:[#allocation5 + $0x110] sm:$0xf] }
  0xaa   :  { %1867 = vmatpush.bf16.msrb.mxu3 %v9996_v37  ;;  %1842 = vmatpush.bf16.msrb.mxu1 %v9452_v46  ;;  %v13694_v6 = vld [vmem:[#allocation5 + $0xc] sm:$0xf]  ;;  %v9900_v13 = vor.u32 %v13894_v3, %v9897_v4  ;;  %v10096_v37 = vor.u32 %v13947_v27, %v10095_v26  ;;  %v9552_v46 = vor.u32 %v13811_v38, %v9551_v36  ;;  %v13731_v61 = vld [vmem:[#allocation5 + $0x12c] sm:$0xf0] }
  0xab   :  { %v9097_v7 = vld [vmem:[#allocation5 + $0x28] sm:$0xf0]  ;;  %v9487_v62 = vld [vmem:[#allocation5 + $0x310] sm:$0xf] }
  0xac   :  { %1855 = vmatpush.bf16.msrb.mxu2 %v9708_v47  ;;  %1830 = vmatpush.bf16.msrb.mxu0 %v9164_v57  ;;  %v13758_v10 = vld [vmem:[#allocation5 + $0x20c] sm:$0xf]  ;;  %v9100_v20 = vor.u32 %v13694_v6, %v9097_v7  ;;  %v9808_v47 = vor.u32 %v13875_v40, %v9807_v39  ;;  %v9264_v57 = vor.u32 %v13739_v49, %v9263_v48  ;;  %v13795_v0 = vld [vmem:[#allocation5 + $0x32c] sm:$0xf0] }
  0xad   :  { %v9353_v11 = vld [vmem:[#allocation5 + $0x228] sm:$0xf0]  ;;  %v9743_v1 = vld [vmem:[#allocation5 + $0x510] sm:$0xf]  ;;  %v9488_v6 = vor.u32 %v13795_v0, %v9487_v62  ;;  %v13879_v62 = vld [vmem:[#allocation5 + $0x5d4] sm:$0xf] }
  0xae   :  { %1868 = vmatpush.bf16.msrb.mxu3 %v9964_v51  ;;  %1843 = vmatpush.bf16.msrb.mxu1 %v9420_v58  ;;  %v13822_v12 = vld [vmem:[#allocation5 + $0x40c] sm:$0xf]  ;;  %v9356_v24 = vor.u32 %v13758_v10, %v9353_v11  ;;  %v10064_v51 = vor.u32 %v13939_v44, %v10063_v43  ;;  %v9520_v58 = vor.u32 %v13803_v52, %v9519_v50  ;;  %v13859_v2 = vld [vmem:[#allocation5 + $0x52c] sm:$0xf0] }
  0xaf   :  { %v9609_v14 = vld [vmem:[#allocation5 + $0x428] sm:$0xf0]  ;;  %v9999_v3 = vld [vmem:[#allocation5 + $0x710] sm:$0xf]  ;;  %v9744_v7 = vor.u32 %v13859_v2, %v9743_v1  ;;  %v13943_v2 = vld [vmem:[#allocation5 + $0x7d4] sm:$0xf] }
  0xb0   :  { %1856 = vmatpush.bf16.msrb.mxu2 %v9676_v59  ;;  %v13886_v15 = vld [vmem:[#allocation5 + $0x60c] sm:$0xf]  ;;  %1831 = vmatpush.bf16.msrb.mxu0 %v9132_v5  ;;  %v9612_v25 = vor.u32 %v13822_v12, %v9609_v14  ;;  %v9776_v59 = vor.u32 %v13867_v54, %v9775_v53  ;;  %v13923_v4 = vld [vmem:[#allocation5 + $0x72c] sm:$0xf0]  ;;  %v9232_v5 = vor.u32 %v13731_v61, %v9231_v60  ;;  %v9585_v61 = vld [vmem:[#allocation5 + $0x3f0] sm:$0xf0] }
  0xb1   :  { %v9865_v16 = vld [vmem:[#allocation5 + $0x628] sm:$0xf0]  ;;  %v9455_v10 = vld [vmem:[#allocation5 + $0x2d0] sm:$0xf]  ;;  %v10000_v11 = vor.u32 %v13923_v4, %v9999_v3  ;;  %v10097_v3 = vld [vmem:[#allocation5 + $0x7f0] sm:$0xf0] }
  0xb2   :  { %1869 = vmatpush.bf16.msrb.mxu3 %v9932_v63  ;;  %1844 = vmatpush.bf16.msrb.mxu1 %v9388_v8  ;;  %v9868_v28 = vor.u32 %v13886_v15, %v9865_v16  ;;  %v10032_v63 = vor.u32 %v13931_v56, %v10031_v55  ;;  %v9199_v8 = vld [vmem:[#allocation5 + $0xd0] sm:$0xf] }
  0xb3   :  { %v13787_v12 = vld [vmem:[#allocation5 + $0x2ec] sm:$0xf0] }
  0xb4   :  { %1857 = vmatpush.bf16.msrb.mxu2 %v9644_v9  ;;  %1832 = vmatpush.bf16.msrb.mxu0 %v9100_v20  ;;  %v13723_v9 = vld [vmem:[#allocation5 + $0xec] sm:$0xf0]  ;;  %v9456_v18 = vor.u32 %v13787_v12, %v9455_v10  ;;  %v13807_v10 = vld [vmem:[#allocation5 + $0x394] sm:$0xf] }
  0xb5   :  { %v13851_v14 = vld [vmem:[#allocation5 + $0x4ec] sm:$0xf0]  ;;  %v9200_v17 = vor.u32 %v13723_v9, %v9199_v8  ;;  %v13743_v8 = vld [vmem:[#allocation5 + $0x194] sm:$0xf] }
  0xb6   :  { %1870 = vmatpush.bf16.msrb.mxu3 %v9900_v13  ;;  %1845 = vmatpush.bf16.msrb.mxu1 %v9356_v24  ;;  %v9711_v13 = vld [vmem:[#allocation5 + $0x4d0] sm:$0xf]  ;;  %v9297_v9 = vld [vmem:[#allocation5 + $0x1b0] sm:$0xf0] }
  0xb7   :  { %1833 = vmatmul.bf16.vlgmr.msrb.gmra.mxu0 %v15072_v34  ;;  %v9967_v15 = vld [vmem:[#allocation5 + $0x6d0] sm:$0xf]  ;;  %v9712_v19 = vor.u32 %v13851_v14, %v9711_v13  ;;  %v9553_v12 = vld [vmem:[#allocation5 + $0x3b0] sm:$0xf0] }
  0xb8   :  { %1858 = vmatpush.bf16.msrb.mxu2 %v9612_v25  ;;  %1877 = vmatpush.bf16.msra.mxu0 %v9328_v29  ;;  %v13915_v16 = vld [vmem:[#allocation5 + $0x6ec] sm:$0xf0]  ;;  %v13871_v13 = vld [vmem:[#allocation5 + $0x594] sm:$0xf] }
  0xb9   :  { %1846 = vmatmul.bf16.vlgmr.msrb.gmra.mxu1 %v15076_v42  ;;  %v9167_v20 = vld [vmem:[#allocation5 + $0x90] sm:$0xf]  ;;  %v9968_v23 = vor.u32 %v13915_v16, %v9967_v15  ;;  %v9809_v14 = vld [vmem:[#allocation5 + $0x5b0] sm:$0xf0] }
  0xba   :  { %1871 = vmatpush.bf16.msrb.mxu3 %v9868_v28  ;;  %1890 = vmatpush.bf16.msra.mxu1 %v9584_v30  ;;  %v13715_v21 = vld [vmem:[#allocation5 + $0xac] sm:$0xf0]  ;;  %v13935_v15 = vld [vmem:[#allocation5 + $0x794] sm:$0xf] }
  0xbb   :  { %1859 = vmatmul.bf16.vlgmr.msrb.gmra.mxu2 %v15070_v33  ;;  %v9423_v22 = vld [vmem:[#allocation5 + $0x290] sm:$0xf]  ;;  %v9168_v29 = vor.u32 %v13715_v21, %v9167_v20  ;;  %v10065_v16 = vld [vmem:[#allocation5 + $0x7b0] sm:$0xf0]  ;;  %v9556_v20 = vor.u32 %v13807_v10, %v9553_v12  ;;  %v9812_v21 = vor.u32 %v13871_v13, %v9809_v14 }
  0xbc   :  { %1903 = vmatpush.bf16.msra.mxu2 %v9840_v31  ;;  %1878 = vmatpush.bf16.msra.mxu0 %v9296_v45  ;;  %v13779_v24 = vld [vmem:[#allocation5 + $0x2ac] sm:$0xf0]  ;;  %v9393_v12 = vld [vmem:[#allocation5 + $0x270] sm:$0xf0] }
  0xbd   :  { %1872 = vmatmul.bf16.vlgmr.msrb.gmra.mxu3 %v15074_v41  ;;  %v9679_v25 = vld [vmem:[#allocation5 + $0x490] sm:$0xf]  ;;  %v9424_v30 = vor.u32 %v13779_v24, %v9423_v22  ;;  %v9265_v22 = vld [vmem:[#allocation5 + $0x170] sm:$0xf0]  ;;  %v10068_v24 = vor.u32 %v13935_v15, %v10065_v16 }
  0xbe   :  { %1916 = vmatpush.bf16.msra.mxu3 %v10096_v37  ;;  %1891 = vmatpush.bf16.msra.mxu1 %v9552_v46  ;;  %v13843_v26 = vld [vmem:[#allocation5 + $0x4ac] sm:$0xf0]  ;;  %v13831_v13 = vld [vmem:[#allocation5 + $0x454] sm:$0xf] }
  0xbf   :  { %v9935_v27 = vld [vmem:[#allocation5 + $0x690] sm:$0xf]  ;;  %v9680_v31 = vor.u32 %v13843_v26, %v9679_v25  ;;  %v9521_v25 = vld [vmem:[#allocation5 + $0x370] sm:$0xf0] }
  0xc0   :  { %1904 = vmatpush.bf16.msra.mxu2 %v9808_v47  ;;  %1879 = vmatpush.bf16.msra.mxu0 %v9264_v57  ;;  %v13907_v28 = vld [vmem:[#allocation5 + $0x6ac] sm:$0xf0]  ;;  %v13751_v57 = vld [vmem:[#allocation5 + $0x1d4] sm:$0xf] }
  0xc1   :  { %v9135_v32 = vld [vmem:[#allocation5 + $0x50] sm:$0xf]  ;;  %v9936_v37 = vor.u32 %v13907_v28, %v9935_v27  ;;  %v13863_v26 = vld [vmem:[#allocation5 + $0x554] sm:$0xf] }
  0xc2   :  { %1917 = vmatpush.bf16.msra.mxu3 %v10064_v51  ;;  %1892 = vmatpush.bf16.msra.mxu1 %v9520_v58  ;;  %v13707_v35 = vld [vmem:[#allocation5 + $0x6c] sm:$0xf0]  ;;  %v9329_v58 = vld [vmem:[#allocation5 + $0x1f0] sm:$0xf0] }
  0xc3   :  { %v9391_v36 = vld [vmem:[#allocation5 + $0x250] sm:$0xf]  ;;  %v9136_v45 = vor.u32 %v13707_v35, %v9135_v32  ;;  %v9777_v27 = vld [vmem:[#allocation5 + $0x570] sm:$0xf0] }
  0xc4   :  { %1905 = vmatpush.bf16.msra.mxu2 %v9776_v59  ;;  %1880 = vmatpush.bf16.msra.mxu0 %v9232_v5  ;;  %v13771_v38 = vld [vmem:[#allocation5 + $0x26c] sm:$0xf0]  ;;  %v13815_v59 = vld [vmem:[#allocation5 + $0x3d4] sm:$0xf]  ;;  %v9332_v5 = vor.u32 %v13751_v57, %v9329_v58  ;;  %v9780_v32 = vor.u32 %v13863_v26, %v9777_v27 }
  0xc5   :  { %v9647_v39 = vld [vmem:[#allocation5 + $0x450] sm:$0xf]  ;;  %v9392_v48 = vor.u32 %v13771_v38, %v9391_v36  ;;  %v13927_v28 = vld [vmem:[#allocation5 + $0x754] sm:$0xf] }
  0xc6   :  { %1918 = vmatpush.bf16.msra.mxu3 %v10032_v63  ;;  %1893 = vmatpush.bf16.msra.mxu1 %v9488_v6  ;;  %v13835_v40 = vld [vmem:[#allocation5 + $0x46c] sm:$0xf0]  ;;  %v9841_v63 = vld [vmem:[#allocation5 + $0x5f0] sm:$0xf0]  ;;  %v9588_v6 = vor.u32 %v13815_v59, %v9585_v61 }
  0xc7   :  { %v9903_v43 = vld [vmem:[#allocation5 + $0x650] sm:$0xf]  ;;  %v9648_v49 = vor.u32 %v13835_v40, %v9647_v39  ;;  %v13727_v35 = vld [vmem:[#allocation5 + $0x114] sm:$0xf] }
  0xc8   :  { %1906 = vmatpush.bf16.msra.mxu2 %v9744_v7  ;;  %1881 = vmatpush.bf16.msra.mxu0 %v9200_v17  ;;  %v13899_v44 = vld [vmem:[#allocation5 + $0x66c] sm:$0xf0]  ;;  %v9844_v7 = vor.u32 %v13879_v62, %v9841_v63  ;;  %v9300_v17 = vor.u32 %v13743_v8, %v9297_v9  ;;  %v9233_v36 = vld [vmem:[#allocation5 + $0x130] sm:$0xf0] }
  0xc9   :  { %v9103_v46 = vld [vmem:[#allocation5 + $0x10] sm:$0xf]  ;;  %v9904_v53 = vor.u32 %v13899_v44, %v9903_v43  ;;  %v9489_v39 = vld [vmem:[#allocation5 + $0x330] sm:$0xf0] }
  0xca   :  { %1919 = vmatpush.bf16.msra.mxu3 %v10000_v11  ;;  %1894 = vmatpush.bf16.msra.mxu1 %v9456_v18  ;;  %v13699_v47 = vld [vmem:[#allocation5 + $0x2c] sm:$0xf0]  ;;  %v10100_v11 = vor.u32 %v13943_v2, %v10097_v3  ;;  %v13735_v18 = vld [vmem:[#allocation5 + $0x154] sm:$0xf] }
  0xcb   :  { %v9359_v50 = vld [vmem:[#allocation5 + $0x210] sm:$0xf]  ;;  %v9104_v60 = vor.u32 %v13699_v47, %v9103_v46  ;;  %v13855_v40 = vld [vmem:[#allocation5 + $0x514] sm:$0xf]  ;;  %v9236_v46 = vor.u32 %v13727_v35, %v9233_v36  ;;  %v9335_v35 = vld [vmem:[#allocation5 + $0x1d8] sm:$0xf] }
  0xcc   :  { %1907 = vmatpush.bf16.msra.mxu2 %v9712_v19  ;;  %1882 = vmatpush.bf16.msra.mxu0 %v9168_v29  ;;  %v13763_v51 = vld [vmem:[#allocation5 + $0x22c] sm:$0xf0]  ;;  %v366_v19 = vld [vmem:[#allocation7] sm:$0xff]  ;;  %v10033_v29 = vld [vmem:[#allocation5 + $0x770] sm:$0xf0] }
  0xcd   :  { %v9615_v52 = vld [vmem:[#allocation5 + $0x410] sm:$0xf]  ;;  %v9360_v0 = vor.u32 %v13763_v51, %v9359_v50  ;;  %1650 = vst [vmem:[#allocation1] ss:$4 sm:$0xff] %v366_v19  ;;  %v10036_v38 = vor.u32 %v13927_v28, %v10033_v29  ;;  %v9745_v43 = vld [vmem:[#allocation5 + $0x530] sm:$0xf0] }
  0xce   :  { %1920 = vmatpush.bf16.msra.mxu3 %v9968_v23  ;;  %1895 = vmatpush.bf16.msra.mxu1 %v9424_v30  ;;  %v13827_v54 = vld [vmem:[#allocation5 + $0x42c] sm:$0xf0]  ;;  %v13799_v23 = vld [vmem:[#allocation5 + $0x354] sm:$0xf]  ;;  %v9268_v30 = vor.u32 %v13735_v18, %v9265_v22  ;;  %v13756_v36 = vld [vmem:[#allocation5 + $0x1f4] sm:$0xf0] }
  0xcf   :  { %v9871_v55 = vld [vmem:[#allocation5 + $0x610] sm:$0xf]  ;;  %v9616_v1 = vor.u32 %v13827_v54, %v9615_v52  ;;  %v13919_v44 = vld [vmem:[#allocation5 + $0x714] sm:$0xf] }
  0xd0   :  { %1908 = vmatpush.bf16.msra.mxu2 %v9680_v31  ;;  %v13891_v56 = vld [vmem:[#allocation5 + $0x62c] sm:$0xf0]  ;;  %1883 = vmatpush.bf16.msra.mxu0 %v9136_v45  ;;  %v9524_v31 = vor.u32 %v13799_v23, %v9521_v25  ;;  %v10001_v45 = vld [vmem:[#allocation5 + $0x730] sm:$0xf0] }
  0xd1   :  { %v9872_v4 = vor.u32 %v13891_v56, %v9871_v55  ;;  %v9201_v50 = vld [vmem:[#allocation5 + $0xf0] sm:$0xf0]  ;;  %v10004_v52 = vor.u32 %v13919_v44, %v10001_v45  ;;  %v13884_v44 = vld [vmem:[#allocation5 + $0x5f4] sm:$0xf0] }
  0xd2   :  { %1921 = vmatpush.bf16.msra.mxu3 %v9936_v37  ;;  %1896 = vmatpush.bf16.msra.mxu1 %v9392_v48  ;;  %v13791_v37 = vld [vmem:[#allocation5 + $0x314] sm:$0xf]  ;;  %v9748_v48 = vor.u32 %v13855_v40, %v9745_v43  ;;  %v13820_v40 = vld [vmem:[#allocation5 + $0x3f4] sm:$0xf0] }
  0xd3   :  { %v9492_v47 = vor.u32 %v13791_v37, %v9489_v39  ;;  %v13783_v51 = vld [vmem:[#allocation5 + $0x2d4] sm:$0xf]  ;;  %v9591_v37 = vld [vmem:[#allocation5 + $0x3d8] sm:$0xf] }
  0xd4   :  { %1909 = vmatpush.bf16.msra.mxu2 %v9648_v49  ;;  %1884 = vmatpush.bf16.msra.mxu0 %v9104_v60  ;;  %v13719_v49 = vld [vmem:[#allocation5 + $0xd4] sm:$0xf]  ;;  %v9847_v43 = vld [vmem:[#allocation5 + $0x5d8] sm:$0xf] }
  0xd5   :  { %v13847_v54 = vld [vmem:[#allocation5 + $0x4d4] sm:$0xf]  ;;  %v9204_v58 = vor.u32 %v13719_v49, %v9201_v50  ;;  %v13948_v49 = vld [vmem:[#allocation5 + $0x7f4] sm:$0xf0] }
  0xd6   :  { %1922 = vmatpush.bf16.msra.mxu3 %v9904_v53  ;;  %1897 = vmatpush.bf16.msra.mxu1 %v9360_v0  ;;  %v9457_v53 = vld [vmem:[#allocation5 + $0x2f0] sm:$0xf0] }
  0xd7   :  { %1885 = vmatmul.bf16.vlgmr.msra.gmra.mxu0 %v15072_v34  ;;  %v9713_v55 = vld [vmem:[#allocation5 + $0x4f0] sm:$0xf0]  ;;  %v9460_v59 = vor.u32 %v13783_v51, %v9457_v53  ;;  %v9336_v51 = vor.u32 %v13756_v36, %v9335_v35  ;;  %v9592_v53 = vor.u32 %v13820_v40, %v9591_v37  ;;  %v9463_v40 = vld [vmem:[#allocation5 + $0x2d8] sm:$0xf] }
  0xd8   :  { %1910 = vmatpush.bf16.msra.mxu2 %v9616_v1  ;;  %1929 = vmatpush.bf16.msrb.mxu0 %v9332_v5  ;;  %v13911_v56 = vld [vmem:[#allocation5 + $0x6d4] sm:$0xf]  ;;  %v9716_v60 = vor.u32 %v13847_v54, %v9713_v55  ;;  %v1678_v22 = vpop.f32.mrf.mxu0  ;;  %v9848_v54 = vor.u32 %v13884_v44, %v9847_v43  ;;  %v9303_v55 = vld [vmem:[#allocation5 + $0x198] sm:$0xf] }
  0xd9   :  { %1898 = vmatmul.bf16.vlgmr.msra.gmra.mxu1 %v15076_v42  ;;  %v9969_v57 = vld [vmem:[#allocation5 + $0x6f0] sm:$0xf0] }
  0xda   :  { %1923 = vmatpush.bf16.msra.mxu3 %v9872_v4  ;;  %1942 = vmatpush.bf16.msrb.mxu1 %v9588_v6  ;;  %v13711_v61 = vld [vmem:[#allocation5 + $0x94] sm:$0xf]  ;;  %v9972_v0 = vor.u32 %v13911_v56, %v9969_v57  ;;  %v13748_v56 = vld [vmem:[#allocation5 + $0x1b4] sm:$0xf0] }
  0xdb   :  { %1911 = vmatmul.bf16.vlgmr.msra.gmra.mxu2 %v15070_v33  ;;  %v9169_v62 = vld [vmem:[#allocation5 + $0xb0] sm:$0xf0]  ;;  %v9559_v57 = vld [vmem:[#allocation5 + $0x398] sm:$0xf] }
  0xdc   :  { %1955 = vmatpush.bf16.msrb.mxu2 %v9844_v7  ;;  %1930 = vmatpush.bf16.msrb.mxu0 %v9300_v17  ;;  %v13775_v63 = vld [vmem:[#allocation5 + $0x294] sm:$0xf]  ;;  %v9172_v6 = vor.u32 %v13711_v61, %v9169_v62  ;;  %v13812_v61 = vld [vmem:[#allocation5 + $0x3b4] sm:$0xf0] }
  0xdd   :  { %1924 = vmatmul.bf16.vlgmr.msra.gmra.mxu3 %v15074_v41  ;;  %v9425_v1 = vld [vmem:[#allocation5 + $0x2b0] sm:$0xf0]  ;;  %v9815_v62 = vld [vmem:[#allocation5 + $0x598] sm:$0xf] }
  0xde   :  { %1968 = vmatpush.bf16.msrb.mxu3 %v10100_v11  ;;  %1943 = vmatpush.bf16.msrb.mxu1 %v9556_v20  ;;  %v13839_v2 = vld [vmem:[#allocation5 + $0x494] sm:$0xf]  ;;  %v9428_v9 = vor.u32 %v13775_v63, %v9425_v1  ;;  %v13876_v63 = vld [vmem:[#allocation5 + $0x5b4] sm:$0xf0] }
  0xdf   :  { %v9681_v3 = vld [vmem:[#allocation5 + $0x4b0] sm:$0xf0]  ;;  %v10071_v1 = vld [vmem:[#allocation5 + $0x798] sm:$0xf] }
  0xe0   :  { %1956 = vmatpush.bf16.msrb.mxu2 %v9812_v21  ;;  %1931 = vmatpush.bf16.msrb.mxu0 %v9268_v30  ;;  %v13903_v4 = vld [vmem:[#allocation5 + $0x694] sm:$0xf]  ;;  %v9684_v10 = vor.u32 %v13839_v2, %v9681_v3  ;;  %v13940_v2 = vld [vmem:[#allocation5 + $0x7b4] sm:$0xf0] }
  0xe1   :  { %v9937_v5 = vld [vmem:[#allocation5 + $0x6b0] sm:$0xf0] }
  0xe2   :  { %1969 = vmatpush.bf16.msrb.mxu3 %v10068_v24  ;;  %1944 = vmatpush.bf16.msrb.mxu1 %v9524_v31  ;;  %v13703_v7 = vld [vmem:[#allocation5 + $0x54] sm:$0xf]  ;;  %v9940_v14 = vor.u32 %v13903_v4, %v9937_v5  ;;  %v9304_v4 = vor.u32 %v13748_v56, %v9303_v55  ;;  %v9560_v5 = vor.u32 %v13812_v61, %v9559_v57  ;;  %v9175_v55 = vld [vmem:[#allocation5 + $0x98] sm:$0xf] }
  0xe3   :  { %v9137_v8 = vld [vmem:[#allocation5 + $0x70] sm:$0xf0]  ;;  %v13716_v56 = vld [vmem:[#allocation5 + $0xb4] sm:$0xf0] }
  0xe4   :  { %1957 = vmatpush.bf16.msrb.mxu2 %v9780_v32  ;;  %1932 = vmatpush.bf16.msrb.mxu0 %v9236_v46  ;;  %v13767_v11 = vld [vmem:[#allocation5 + $0x254] sm:$0xf]  ;;  %v9140_v19 = vor.u32 %v13703_v7, %v9137_v8  ;;  %v9271_v7 = vld [vmem:[#allocation5 + $0x158] sm:$0xf] }
  0xe5   :  { %v9649_v15 = vld [vmem:[#allocation5 + $0x470] sm:$0xf0]  ;;  %v9396_v23 = vor.u32 %v13767_v11, %v9393_v12  ;;  %v13740_v8 = vld [vmem:[#allocation5 + $0x174] sm:$0xf0]  ;;  %v10072_v11 = vor.u32 %v13940_v2, %v10071_v1 }
  0xe6   :  { %1970 = vmatpush.bf16.msrb.mxu3 %v10036_v38  ;;  %1945 = vmatpush.bf16.msrb.mxu1 %v9492_v47  ;;  %v1653_v16 = vld.sshfl [vmem:[#allocation1] sm:$0xff pattern:$0x73625140]  ;;  %v9652_v24 = vor.u32 %v13831_v13, %v9649_v15  ;;  %v1691_v38 = vpop.f32.mrf.mxu1  ;;  %v13804_v12 = vld [vmem:[#allocation5 + $0x374] sm:$0xf0] }
  0xe7   :  { %v13895_v17 = vld [vmem:[#allocation5 + $0x654] sm:$0xf]  ;;  %v1679_v28 = vadd.f32 %v1678_v22, %v1653_v16  ;;  %v9783_v13 = vld [vmem:[#allocation5 + $0x558] sm:$0xf] }
  0xe8   :  { %1958 = vmatpush.bf16.msrb.mxu2 %v9748_v48  ;;  %1933 = vmatpush.bf16.msrb.mxu0 %v9204_v58  ;;  %v9905_v18 = vld [vmem:[#allocation5 + $0x670] sm:$0xf0]  ;;  %v10103_v48 = vld [vmem:[#allocation5 + $0x7d8] sm:$0xf] }
  0xe9   :  { %v13695_v20 = vld [vmem:[#allocation5 + $0x14] sm:$0xf]  ;;  %v9908_v29 = vor.u32 %v13895_v17, %v9905_v18  ;;  %v1692_v45 = vadd.f32 %v1691_v38, %v1679_v28  ;;  %v10039_v15 = vld [vmem:[#allocation5 + $0x758] sm:$0xf]  ;;  %v9272_v17 = vor.u32 %v13740_v8, %v9271_v7 }
  0xea   :  { %1971 = vmatpush.bf16.msrb.mxu3 %v10004_v52  ;;  %1946 = vmatpush.bf16.msrb.mxu1 %v9460_v59  ;;  %v9105_v21 = vld [vmem:[#allocation5 + $0x30] sm:$0xf0]  ;;  %v1704_v52 = vpop.f32.mrf.mxu2  ;;  %v1717_v59 = vpop.f32.mrf.mxu3  ;;  %v13932_v16 = vld [vmem:[#allocation5 + $0x774] sm:$0xf0] }
  0xeb   :  { %v13759_v25 = vld [vmem:[#allocation5 + $0x214] sm:$0xf]  ;;  %v9108_v39 = vor.u32 %v13695_v20, %v9105_v21  ;;  %v1705_v58 = vadd.f32 %v1704_v52, %v1692_v45  ;;  %v9239_v18 = vld [vmem:[#allocation5 + $0x118] sm:$0xf] }
  0xec   :  { %1959 = vmatpush.bf16.msrb.mxu2 %v9716_v60  ;;  %1934 = vmatpush.bf16.msrb.mxu0 %v9172_v6  ;;  %v9361_v26 = vld [vmem:[#allocation5 + $0x230] sm:$0xf0]  ;;  %v10104_v60 = vor.u32 %v13948_v49, %v10103_v48  ;;  %v9816_v6 = vor.u32 %v13876_v63, %v9815_v62  ;;  %v13860_v28 = vld [vmem:[#allocation5 + $0x534] sm:$0xf0] }
  0xed   :  { %v13823_v27 = vld [vmem:[#allocation5 + $0x414] sm:$0xf]  ;;  %v9364_v46 = vor.u32 %v13759_v25, %v9361_v26  ;;  %v15098_v3 = vadd.f32 %v1717_v59, %v1705_v58  ;;  %v9751_v25 = vld [vmem:[#allocation5 + $0x518] sm:$0xf] }
  0xee   :  { %1972 = vmatpush.bf16.msrb.mxu3 %v9972_v0  ;;  %1947 = vmatpush.bf16.msrb.mxu1 %v9428_v9  ;;  %v9617_v30 = vld [vmem:[#allocation5 + $0x430] sm:$0xf0]  ;;  %v1680_v0 = vpop.f32.mrf.mxu0  ;;  %v9527_v9 = vld [vmem:[#allocation5 + $0x358] sm:$0xf]  ;;  %v9752_v37 = vor.u32 %v13860_v28, %v9751_v25 }
  0xef   :  { %v13887_v31 = vld [vmem:[#allocation5 + $0x614] sm:$0xf]  ;;  %v9620_v47 = vor.u32 %v13823_v27, %v9617_v30  ;;  %v9528_v21 = vor.u32 %v13804_v12, %v9527_v9  ;;  %v10040_v27 = vor.u32 %v13932_v16, %v10039_v15  ;;  %v10007_v30 = vld [vmem:[#allocation5 + $0x718] sm:$0xf] }
  0xf0   :  { %1960 = vmatpush.bf16.msrb.mxu2 %v9684_v10  ;;  %v9873_v32 = vld [vmem:[#allocation5 + $0x630] sm:$0xf0]  ;;  %1935 = vmatpush.bf16.msrb.mxu0 %v9140_v19  ;;  %v1693_v10 = vpop.f32.mrf.mxu1  ;;  %v13732_v19 = vld [vmem:[#allocation5 + $0x134] sm:$0xf0] }
  0xf1   :  { %v9876_v50 = vor.u32 %v13887_v31, %v9873_v32  ;;  %v13924_v31 = vld [vmem:[#allocation5 + $0x734] sm:$0xf0]  ;;  %v9240_v32 = vor.u32 %v13732_v19, %v9239_v18 }
  0xf2   :  { %1973 = vmatpush.bf16.msrb.mxu3 %v9940_v14  ;;  %1948 = vmatpush.bf16.msrb.mxu1 %v9396_v23  ;;  %v13868_v14 = vld [vmem:[#allocation5 + $0x574] sm:$0xf0]  ;;  %v1706_v20 = vpop.f32.mrf.mxu2  ;;  %v1719_v26 = vpop.f32.mrf.mxu3  ;;  %v10008_v45 = vor.u32 %v13924_v31, %v10007_v30 }
  0xf3   :  { %v9784_v22 = vor.u32 %v13868_v14, %v9783_v13  ;;  %v9495_v23 = vld [vmem:[#allocation5 + $0x318] sm:$0xf] }
  0xf4   :  { %1961 = vmatpush.bf16.msrb.mxu2 %v9652_v24  ;;  %1936 = vmatpush.bf16.msrb.mxu0 %v9108_v39  ;;  %v13796_v24 = vld [vmem:[#allocation5 + $0x334] sm:$0xf0] }
  0xf5   :  { %v9496_v36 = vor.u32 %v13796_v24, %v9495_v23  ;;  %v9207_v38 = vld [vmem:[#allocation5 + $0xd8] sm:$0xf] }
  0xf6   :  { %1974 = vmatpush.bf16.msrb.mxu3 %v9908_v29  ;;  %1949 = vmatpush.bf16.msrb.mxu1 %v9364_v46  ;;  %v1654_v29 = vld.sshfl [vmem:[#allocation1 + $0x8] sm:$0xff pattern:$0x73625140]  ;;  %v1730_v35 = vpop.f32.mrf.mxu0 }
  0xf7   :  { %1937 = vmatmul.bf16.vlgmr.msrb.gmra.mxu0 %v15072_v34  ;;  %v13724_v39 = vld [vmem:[#allocation5 + $0xf4] sm:$0xf0]  ;;  %v1731_v43 = vadd.f32 %v1730_v35, %v1654_v29  ;;  %v13752_v35 = vld [vmem:[#allocation5 + $0x1dc] sm:$0xf] }
  0xf8   :  { %1962 = vmatpush.bf16.msrb.mxu2 %v9620_v47  ;;  %1981 = vmatpush.bf16.msra.mxu0 %v9336_v51  ;;  %v1743_v44 = vpop.f32.mrf.mxu1  ;;  %v13788_v46 = vld [vmem:[#allocation5 + $0x2f4] sm:$0xf0]  ;;  %v9208_v52 = vor.u32 %v13724_v39, %v9207_v38  ;;  %v9593_v39 = vld [vmem:[#allocation5 + $0x3f8] sm:$0xf0] }
  0xf9   :  { %1950 = vmatmul.bf16.vlgmr.msrb.gmra.mxu1 %v15076_v42  ;;  %v9719_v47 = vld [vmem:[#allocation5 + $0x4d8] sm:$0xf]  ;;  %v1744_v51 = vadd.f32 %v1743_v44, %v1731_v43  ;;  %v9849_v43 = vld [vmem:[#allocation5 + $0x5f8] sm:$0xf0] }
  0xfa   :  { %1975 = vmatpush.bf16.msrb.mxu3 %v9876_v50  ;;  %1994 = vmatpush.bf16.msra.mxu1 %v9592_v53  ;;  %v13852_v48 = vld [vmem:[#allocation5 + $0x4f4] sm:$0xf0]  ;;  %v9464_v53 = vor.u32 %v13788_v46, %v9463_v40  ;;  %v13880_v40 = vld [vmem:[#allocation5 + $0x5dc] sm:$0xf] }
  0xfb   :  { %1963 = vmatmul.bf16.vlgmr.msrb.gmra.mxu2 %v15070_v33  ;;  %v9975_v49 = vld [vmem:[#allocation5 + $0x6d8] sm:$0xf]  ;;  %v13944_v46 = vld [vmem:[#allocation5 + $0x7dc] sm:$0xf] }
  0xfc   :  { %2007 = vmatpush.bf16.msra.mxu2 %v9848_v54  ;;  %1982 = vmatpush.bf16.msra.mxu0 %v9304_v4  ;;  %v13916_v50 = vld [vmem:[#allocation5 + $0x6f4] sm:$0xf0]  ;;  %v9720_v54 = vor.u32 %v13852_v48, %v9719_v47  ;;  %v9176_v4 = vor.u32 %v13716_v56, %v9175_v55  ;;  %v10105_v47 = vld [vmem:[#allocation5 + $0x7f8] sm:$0xf0] }
  0xfd   :  { %1976 = vmatmul.bf16.vlgmr.msrb.gmra.mxu3 %v15074_v41  ;;  %v9431_v57 = vld [vmem:[#allocation5 + $0x298] sm:$0xf]  ;;  %v9976_v59 = vor.u32 %v13916_v50, %v9975_v49  ;;  %v10108_v55 = vor.u32 %v13944_v46, %v10105_v47  ;;  %v9561_v56 = vld [vmem:[#allocation5 + $0x3b8] sm:$0xf0] }
  0xfe   :  { %2020 = vmatpush.bf16.msra.mxu3 %v10104_v60  ;;  %1995 = vmatpush.bf16.msra.mxu1 %v9560_v5  ;;  %v1756_v58 = vpop.f32.mrf.mxu2  ;;  %v13780_v60 = vld [vmem:[#allocation5 + $0x2b4] sm:$0xf0]  ;;  %v13712_v47 = vld [vmem:[#allocation5 + $0x9c] sm:$0xf] }
  0xff   :  { %v9687_v61 = vld [vmem:[#allocation5 + $0x498] sm:$0xf]  ;;  %v1757_v63 = vadd.f32 %v1756_v58, %v1744_v51  ;;  %v9432_v7 = vor.u32 %v13780_v60, %v9431_v57  ;;  %v9852_v51 = vor.u32 %v13880_v40, %v9849_v43  ;;  %v13872_v57 = vld [vmem:[#allocation5 + $0x59c] sm:$0xf] }
 0x100   :  { %2008 = vmatpush.bf16.msra.mxu2 %v9816_v6  ;;  %1983 = vmatpush.bf16.msra.mxu0 %v9272_v17  ;;  %v13844_v62 = vld [vmem:[#allocation5 + $0x4b4] sm:$0xf0]  ;;  %v1769_v0 = vpop.f32.mrf.mxu3  ;;  %v1732_v6 = vpop.f32.mrf.mxu0  ;;  %v9817_v58 = vld [vmem:[#allocation5 + $0x5b8] sm:$0xf0] }
 0x101   :  { %v9943_v1 = vld [vmem:[#allocation5 + $0x698] sm:$0xf]  ;;  %v15104_v5 = vadd.f32 %v1769_v0, %v1757_v63  ;;  %v9688_v8 = vor.u32 %v13844_v62, %v9687_v61  ;;  %v1745_v12 = vpop.f32.mrf.mxu1  ;;  %v10073_v60 = vld [vmem:[#allocation5 + $0x7b8] sm:$0xf0]  ;;  %v9820_v63 = vor.u32 %v13872_v57, %v9817_v58 }
 0x102   :  { %2021 = vmatpush.bf16.msra.mxu3 %v10072_v11  ;;  %1996 = vmatpush.bf16.msra.mxu1 %v9528_v21  ;;  %v13908_v2 = vld [vmem:[#allocation5 + $0x6b4] sm:$0xf0]  ;;  %v13736_v0 = vld [vmem:[#allocation5 + $0x15c] sm:$0xf] }
 0x103   :  { %v9143_v9 = vld [vmem:[#allocation5 + $0x58] sm:$0xf]  ;;  %v9944_v13 = vor.u32 %v13908_v2, %v9943_v1  ;;  %v9273_v1 = vld [vmem:[#allocation5 + $0x178] sm:$0xf0] }
 0x104   :  { %2009 = vmatpush.bf16.msra.mxu2 %v9784_v22  ;;  %1984 = vmatpush.bf16.msra.mxu0 %v9240_v32  ;;  %v13708_v10 = vld [vmem:[#allocation5 + $0x74] sm:$0xf0]  ;;  %v13800_v2 = vld [vmem:[#allocation5 + $0x35c] sm:$0xf] }
 0x105   :  { %v9399_v11 = vld [vmem:[#allocation5 + $0x258] sm:$0xf]  ;;  %v9144_v19 = vor.u32 %v13708_v10, %v9143_v9  ;;  %v9529_v6 = vld [vmem:[#allocation5 + $0x378] sm:$0xf0] }
 0x106   :  { %2022 = vmatpush.bf16.msra.mxu3 %v10040_v27  ;;  %1997 = vmatpush.bf16.msra.mxu1 %v9496_v36  ;;  %v13772_v14 = vld [vmem:[#allocation5 + $0x274] sm:$0xf0]  ;;  %v1758_v27 = vpop.f32.mrf.mxu2  ;;  %v9337_v36 = vld [vmem:[#allocation5 + $0x1f8] sm:$0xf0] }
 0x107   :  { %v9655_v15 = vld [vmem:[#allocation5 + $0x458] sm:$0xf]  ;;  %v9400_v22 = vor.u32 %v13772_v14, %v9399_v11  ;;  %v9340_v49 = vor.u32 %v13752_v35, %v9337_v36  ;;  %v13928_v9 = vld [vmem:[#allocation5 + $0x75c] sm:$0xf]  ;;  %v9276_v11 = vor.u32 %v13736_v0, %v9273_v1  ;;  %v9532_v14 = vor.u32 %v13800_v2, %v9529_v6 }
 0x108   :  { %2010 = vmatpush.bf16.msra.mxu2 %v9752_v37  ;;  %1985 = vmatpush.bf16.msra.mxu0 %v9208_v52  ;;  %v13836_v16 = vld [vmem:[#allocation5 + $0x474] sm:$0xf0]  ;;  %v1771_v32 = vpop.f32.mrf.mxu3  ;;  %v13816_v37 = vld [vmem:[#allocation5 + $0x3dc] sm:$0xf] }
 0x109   :  { %v9911_v17 = vld [vmem:[#allocation5 + $0x658] sm:$0xf]  ;;  %v9656_v23 = vor.u32 %v13836_v16, %v9655_v15  ;;  %v9596_v50 = vor.u32 %v13816_v37, %v9593_v39  ;;  %v13744_v52 = vld [vmem:[#allocation5 + $0x19c] sm:$0xf] }
 0x10a   :  { %2023 = vmatpush.bf16.msra.mxu3 %v10008_v45  ;;  %1998 = vmatpush.bf16.msra.mxu1 %v9464_v53  ;;  %v13900_v18 = vld [vmem:[#allocation5 + $0x674] sm:$0xf0]  ;;  %v9305_v53 = vld [vmem:[#allocation5 + $0x1b8] sm:$0xf0] }
 0x10b   :  { %v9111_v20 = vld [vmem:[#allocation5 + $0x18] sm:$0xf]  ;;  %v9912_v28 = vor.u32 %v13900_v18, %v9911_v17  ;;  %v9308_v61 = vor.u32 %v13744_v52, %v9305_v53  ;;  %v10041_v10 = vld [vmem:[#allocation5 + $0x778] sm:$0xf0] }
 0x10c   :  { %2011 = vmatpush.bf16.msra.mxu2 %v9720_v54  ;;  %1986 = vmatpush.bf16.msra.mxu0 %v9176_v4  ;;  %v13700_v21 = vld [vmem:[#allocation5 + $0x34] sm:$0xf0]  ;;  %v13808_v54 = vld [vmem:[#allocation5 + $0x39c] sm:$0xf] }
 0x10d   :  { %v9367_v24 = vld [vmem:[#allocation5 + $0x218] sm:$0xf]  ;;  %v9112_v38 = vor.u32 %v13700_v21, %v9111_v20  ;;  %v9564_v62 = vor.u32 %v13808_v54, %v9561_v56  ;;  %v13728_v12 = vld [vmem:[#allocation5 + $0x11c] sm:$0xf] }
 0x10e   :  { %2024 = vmatpush.bf16.msra.mxu3 %v9976_v59  ;;  %1999 = vmatpush.bf16.msra.mxu1 %v9432_v7  ;;  %v13764_v25 = vld [vmem:[#allocation5 + $0x234] sm:$0xf0]  ;;  %v13936_v59 = vld [vmem:[#allocation5 + $0x79c] sm:$0xf] }
 0x10f   :  { %v9623_v26 = vld [vmem:[#allocation5 + $0x418] sm:$0xf]  ;;  %v9368_v44 = vor.u32 %v13764_v25, %v9367_v24  ;;  %v10076_v4 = vor.u32 %v13936_v59, %v10073_v60  ;;  %v13864_v7 = vld [vmem:[#allocation5 + $0x55c] sm:$0xf] }
 0x110   :  { %2012 = vmatpush.bf16.msra.mxu2 %v9688_v8  ;;  %v13828_v29 = vld [vmem:[#allocation5 + $0x434] sm:$0xf0]  ;;  %1987 = vmatpush.bf16.msra.mxu0 %v9144_v19  ;;  %v9785_v8 = vld [vmem:[#allocation5 + $0x578] sm:$0xf0]  ;;  %v10044_v19 = vor.u32 %v13928_v9, %v10041_v10 }
 0x111   :  { %v9879_v30 = vld [vmem:[#allocation5 + $0x618] sm:$0xf]  ;;  %v9624_v45 = vor.u32 %v13828_v29, %v9623_v26  ;;  %v9788_v15 = vor.u32 %v13864_v7, %v9785_v8  ;;  %v13792_v16 = vld [vmem:[#allocation5 + $0x31c] sm:$0xf] }
 0x112   :  { %2025 = vmatpush.bf16.msra.mxu3 %v9944_v13  ;;  %v13892_v31 = vld [vmem:[#allocation5 + $0x634] sm:$0xf0]  ;;  %2000 = vmatpush.bf16.msra.mxu1 %v9400_v22  ;;  %v9241_v13 = vld [vmem:[#allocation5 + $0x138] sm:$0xf0] }
 0x113   :  { %v9880_v48 = vor.u32 %v13892_v31, %v9879_v30  ;;  %v9497_v17 = vld [vmem:[#allocation5 + $0x338] sm:$0xf0]  ;;  %v1655_v21 = vld.sshfl [vmem:[#allocation1 + $0x10] sm:$0xff pattern:$0x73625140]  ;;  %v9244_v24 = vor.u32 %v13728_v12, %v9241_v13 }
 0x114   :  { %2013 = vmatpush.bf16.msra.mxu2 %v9656_v23  ;;  %1988 = vmatpush.bf16.msra.mxu0 %v9112_v38  ;;  %v13856_v18 = vld [vmem:[#allocation5 + $0x51c] sm:$0xf]  ;;  %v1782_v25 = vpop.f32.mrf.mxu0  ;;  %v9500_v26 = vor.u32 %v13792_v16, %v9497_v17 }
 0x115   :  { %v9753_v20 = vld [vmem:[#allocation5 + $0x538] sm:$0xf0]  ;;  %v1783_v31 = vadd.f32 %v1782_v25, %v1655_v21 }
 0x116   :  { %2026 = vmatpush.bf16.msra.mxu3 %v9912_v28  ;;  %2001 = vmatpush.bf16.msra.mxu1 %v9368_v44  ;;  %v13920_v22 = vld [vmem:[#allocation5 + $0x71c] sm:$0xf]  ;;  %v9756_v27 = vor.u32 %v13856_v18, %v9753_v20  ;;  %v1795_v32 = vpop.f32.mrf.mxu1 }
 0x117   :  { %1989 = vmatmul.bf16.vlgmr.msra.gmra.mxu0 %v15072_v34  ;;  %v10009_v23 = vld [vmem:[#allocation5 + $0x738] sm:$0xf0]  ;;  %v1796_v43 = vadd.f32 %v1795_v32, %v1783_v31 }
 0x118   :  { %2014 = vmatpush.bf16.msra.mxu2 %v9624_v45  ;;  %2033 = vmatpush.bf16.msrb.mxu0 %v9340_v49  ;;  %v13720_v28 = vld [vmem:[#allocation5 + $0xdc] sm:$0xf]  ;;  %v10012_v35 = vor.u32 %v13920_v22, %v10009_v23 }
 0x119   :  { %2002 = vmatmul.bf16.vlgmr.msra.gmra.mxu1 %v15076_v42  ;;  %v9209_v29 = vld [vmem:[#allocation5 + $0xf8] sm:$0xf0] }
 0x11a   :  { %2027 = vmatpush.bf16.msra.mxu3 %v9880_v48  ;;  %2046 = vmatpush.bf16.msrb.mxu1 %v9596_v50  ;;  %v13784_v30 = vld [vmem:[#allocation5 + $0x2dc] sm:$0xf]  ;;  %v9212_v44 = vor.u32 %v13720_v28, %v9209_v29  ;;  %v10591_v29 = vld [vmem:[#allocation5 + $0xbc0] sm:$0xf] }
 0x11b   :  { %2015 = vmatmul.bf16.vlgmr.msra.gmra.mxu2 %v15070_v33  ;;  %v9465_v36 = vld [vmem:[#allocation5 + $0x2f8] sm:$0xf0] }
 0x11c   :  { %2059 = vmatpush.bf16.msrb.mxu2 %v9852_v51  ;;  %2034 = vmatpush.bf16.msrb.mxu0 %v9308_v61  ;;  %v13848_v37 = vld [vmem:[#allocation5 + $0x4dc] sm:$0xf]  ;;  %v9468_v45 = vor.u32 %v13784_v30, %v9465_v36  ;;  %v1784_v61 = vpop.f32.mrf.mxu0  ;;  %v14073_v30 = vld [vmem:[#allocation5 + $0xbdc] sm:$0xf0] }
 0x11d   :  { %2028 = vmatmul.bf16.vlgmr.msra.gmra.mxu3 %v15074_v41  ;;  %v9721_v38 = vld [vmem:[#allocation5 + $0x4f8] sm:$0xf0] }
 0x11e   :  { %2072 = vmatpush.bf16.msrb.mxu3 %v10108_v55  ;;  %2047 = vmatpush.bf16.msrb.mxu1 %v9564_v62  ;;  %v13912_v39 = vld [vmem:[#allocation5 + $0x6dc] sm:$0xf]  ;;  %v9724_v46 = vor.u32 %v13848_v37, %v9721_v38  ;;  %v1808_v50 = vpop.f32.mrf.mxu2  ;;  %v10303_v37 = vld [vmem:[#allocation5 + $0x980] sm:$0xf] }
 0x11f   :  { %v9977_v40 = vld [vmem:[#allocation5 + $0x6f8] sm:$0xf0]  ;;  %v1809_v55 = vadd.f32 %v1808_v50, %v1796_v43  ;;  %v14001_v38 = vld [vmem:[#allocation5 + $0x99c] sm:$0xf0]  ;;  %v367_v50 = vld [vmem:[#allocation7 + $0x8] sm:$0xff] }
 0x120   :  { %2060 = vmatpush.bf16.msrb.mxu2 %v9820_v63  ;;  %2035 = vmatpush.bf16.msrb.mxu0 %v9276_v11  ;;  %v9177_v48 = vld [vmem:[#allocation5 + $0xb8] sm:$0xf0]  ;;  %v9980_v51 = vor.u32 %v13912_v39, %v9977_v40  ;;  %v1821_v56 = vpop.f32.mrf.mxu3  ;;  %v10592_v39 = vor.u32 %v14073_v30, %v10591_v29  ;;  %v10559_v40 = vld [vmem:[#allocation5 + $0xb80] sm:$0xf]  ;;  %1652 = vst [vmem:[#allocation1 + $0x20] ss:$4 sm:$0xff] %v367_v50 }
 0x121   :  { %v13776_v49 = vld [vmem:[#allocation5 + $0x29c] sm:$0xf]  ;;  %v9180_v59 = vor.u32 %v13712_v47, %v9177_v48  ;;  %v15110_v60 = vadd.f32 %v1821_v56, %v1809_v55  ;;  %v14065_v43 = vld [vmem:[#allocation5 + $0xb9c] sm:$0xf0]  ;;  %v10337_v29 = vld [vmem:[#allocation5 + $0x9e0] sm:$0xf0] }
 0x122   :  { %2073 = vmatpush.bf16.msrb.mxu3 %v10076_v4  ;;  %2048 = vmatpush.bf16.msrb.mxu1 %v9532_v14  ;;  %v9433_v52 = vld [vmem:[#allocation5 + $0x2b8] sm:$0xf0]  ;;  %v1797_v4 = vpop.f32.mrf.mxu1  ;;  %v10560_v47 = vor.u32 %v14065_v43, %v10559_v40  ;;  %v10527_v48 = vld [vmem:[#allocation5 + $0xb40] sm:$0xf]  ;;  %v10561_v50 = vld [vmem:[#allocation5 + $0xba0] sm:$0xf0] }
 0x123   :  { %v13840_v53 = vld [vmem:[#allocation5 + $0x49c] sm:$0xf]  ;;  %v9436_v62 = vor.u32 %v13776_v49, %v9433_v52  ;;  %v14057_v49 = vld [vmem:[#allocation5 + $0xb5c] sm:$0xf0] }
 0x124   :  { %2061 = vmatpush.bf16.msrb.mxu2 %v9788_v15  ;;  %2036 = vmatpush.bf16.msrb.mxu0 %v9244_v24  ;;  %v9689_v54 = vld [vmem:[#allocation5 + $0x4b8] sm:$0xf0]  ;;  %v10239_v52 = vld [vmem:[#allocation5 + $0x900] sm:$0xf] }
 0x125   :  { %v13904_v57 = vld [vmem:[#allocation5 + $0x69c] sm:$0xf]  ;;  %v9692_v63 = vor.u32 %v13840_v53, %v9689_v54  ;;  %v13985_v53 = vld [vmem:[#allocation5 + $0x91c] sm:$0xf0] }
 0x126   :  { %2074 = vmatpush.bf16.msrb.mxu3 %v10044_v19  ;;  %2049 = vmatpush.bf16.msrb.mxu1 %v9500_v26  ;;  %v9945_v58 = vld [vmem:[#allocation5 + $0x6b8] sm:$0xf0]  ;;  %v1810_v19 = vpop.f32.mrf.mxu2  ;;  %v10335_v26 = vld [vmem:[#allocation5 + $0x9c0] sm:$0xf] }
 0x127   :  { %v13704_v0 = vld [vmem:[#allocation5 + $0x5c] sm:$0xf]  ;;  %v9948_v6 = vor.u32 %v13904_v57, %v9945_v58  ;;  %v1656_v54 = vld.sshfl [vmem:[#allocation1 + $0x18] sm:$0xff pattern:$0x73625140]  ;;  %v10240_v57 = vor.u32 %v13985_v53, %v10239_v52 }
 0x128   :  { %2062 = vmatpush.bf16.msrb.mxu2 %v9756_v27  ;;  %2037 = vmatpush.bf16.msrb.mxu0 %v9212_v44  ;;  %v9145_v1 = vld [vmem:[#allocation5 + $0x78] sm:$0xf0]  ;;  %v1823_v24 = vpop.f32.mrf.mxu3  ;;  %v14009_v27 = vld [vmem:[#allocation5 + $0x9dc] sm:$0xf0]  ;;  %v10304_v44 = vor.u32 %v14001_v38, %v10303_v37  ;;  %v10593_v37 = vld [vmem:[#allocation5 + $0xbe0] sm:$0xf0] }
 0x129   :  { %v13768_v2 = vld [vmem:[#allocation5 + $0x25c] sm:$0xf]  ;;  %v9148_v12 = vor.u32 %v13704_v0, %v9145_v1  ;;  %v10336_v36 = vor.u32 %v14009_v27, %v10335_v26  ;;  %v10495_v55 = vld [vmem:[#allocation5 + $0xb00] sm:$0xf]  ;;  %v14005_v24 = vld [vmem:[#allocation5 + $0x9c4] sm:$0xf] }
 0x12a   :  { %2075 = vmatpush.bf16.msrb.mxu3 %v10012_v35  ;;  %2050 = vmatpush.bf16.msrb.mxu1 %v9468_v45  ;;  %v9401_v7 = vld [vmem:[#allocation5 + $0x278] sm:$0xf0]  ;;  %v10271_v45 = vld [vmem:[#allocation5 + $0x940] sm:$0xf] }
 0x12b   :  { %v13832_v8 = vld [vmem:[#allocation5 + $0x45c] sm:$0xf]  ;;  %v9404_v14 = vor.u32 %v13768_v2, %v9401_v7  ;;  %v14049_v56 = vld [vmem:[#allocation5 + $0xb1c] sm:$0xf0] }
 0x12c   :  { %2063 = vmatpush.bf16.msrb.mxu2 %v9724_v46  ;;  %v9657_v9 = vld [vmem:[#allocation5 + $0x478] sm:$0xf0]  ;;  %2038 = vmatpush.bf16.msrb.mxu0 %v9180_v59  ;;  %v13993_v46 = vld [vmem:[#allocation5 + $0x95c] sm:$0xf0] }
 0x12d   :  { %v13896_v10 = vld [vmem:[#allocation5 + $0x65c] sm:$0xf]  ;;  %v9660_v15 = vor.u32 %v13832_v8, %v9657_v9  ;;  %v10207_v58 = vld [vmem:[#allocation5 + $0x8c0] sm:$0xf] }
 0x12e   :  { %2076 = vmatpush.bf16.msrb.mxu3 %v9980_v51  ;;  %v9913_v11 = vld [vmem:[#allocation5 + $0x678] sm:$0xf0]  ;;  %2051 = vmatpush.bf16.msrb.mxu1 %v9436_v62  ;;  %v10272_v51 = vor.u32 %v13993_v46, %v10271_v45  ;;  %v10463_v62 = vld [vmem:[#allocation5 + $0xac0] sm:$0xf]  ;;  %v13997_v45 = vld [vmem:[#allocation5 + $0x984] sm:$0xf] }
 0x12f   :  { %v13696_v13 = vld [vmem:[#allocation5 + $0x1c] sm:$0xf]  ;;  %v9916_v20 = vor.u32 %v13896_v10, %v9913_v11  ;;  %v10175_v2 = vld [vmem:[#allocation5 + $0x880] sm:$0xf]  ;;  %v10305_v46 = vld [vmem:[#allocation5 + $0x9a0] sm:$0xf0] }
 0x130   :  { %2064 = vmatpush.bf16.msrb.mxu2 %v9692_v63  ;;  %v9113_v16 = vld [vmem:[#allocation5 + $0x38] sm:$0xf0]  ;;  %2039 = vmatpush.bf16.msrb.mxu0 %v9148_v12  ;;  %v14041_v63 = vld [vmem:[#allocation5 + $0xadc] sm:$0xf0] }
 0x131   :  { %v13760_v17 = vld [vmem:[#allocation5 + $0x21c] sm:$0xf]  ;;  %v9116_v28 = vor.u32 %v13696_v13, %v9113_v16  ;;  %v13969_v4 = vld [vmem:[#allocation5 + $0x89c] sm:$0xf0]  ;;  %v10464_v7 = vor.u32 %v14041_v63, %v10463_v62 }
 0x132   :  { %v9369_v18 = vld [vmem:[#allocation5 + $0x238] sm:$0xf0]  ;;  %2077 = vmatpush.bf16.msrb.mxu3 %v9948_v6  ;;  %2052 = vmatpush.bf16.msrb.mxu1 %v9404_v14  ;;  %v10431_v10 = vld [vmem:[#allocation5 + $0xa80] sm:$0xf]  ;;  %v10176_v12 = vor.u32 %v13969_v4, %v10175_v2 }
 0x133   :  { %v13824_v21 = vld [vmem:[#allocation5 + $0x41c] sm:$0xf]  ;;  %v9372_v31 = vor.u32 %v13760_v17, %v9369_v18  ;;  %v14033_v11 = vld [vmem:[#allocation5 + $0xa9c] sm:$0xf0] }
 0x134   :  { %v9625_v22 = vld [vmem:[#allocation5 + $0x438] sm:$0xf0]  ;;  %2065 = vmatpush.bf16.msrb.mxu2 %v9660_v15  ;;  %2040 = vmatpush.bf16.msrb.mxu0 %v9116_v28  ;;  %v10143_v15 = vld [vmem:[#allocation5 + $0x840] sm:$0xf]  ;;  %v10432_v18 = vor.u32 %v14033_v11, %v10431_v10  ;;  %v10209_v10 = vld [vmem:[#allocation5 + $0x8e0] sm:$0xf0] }
 0x135   :  { %v13888_v23 = vld [vmem:[#allocation5 + $0x61c] sm:$0xf]  ;;  %v9628_v32 = vor.u32 %v13824_v21, %v9625_v22  ;;  %v13961_v16 = vld [vmem:[#allocation5 + $0x85c] sm:$0xf0] }
 0x136   :  { %v9881_v25 = vld [vmem:[#allocation5 + $0x638] sm:$0xf0]  ;;  %2078 = vmatpush.bf16.msrb.mxu3 %v9916_v20  ;;  %2053 = vmatpush.bf16.msrb.mxu1 %v9372_v31  ;;  %v1847_v61 = vpop.f32.mrf.mxu1  ;;  %v10399_v19 = vld [vmem:[#allocation5 + $0xa40] sm:$0xf]  ;;  %v10144_v21 = vor.u32 %v13961_v16, %v10143_v15  ;;  %v14037_v16 = vld [vmem:[#allocation5 + $0xac4] sm:$0xf] }
 0x137   :  { %v9884_v35 = vor.u32 %v13888_v23, %v9881_v25  ;;  %2041 = vmatmul.bf16.vlgmr.msrb.gmra.mxu0 %v15072_v34  ;;  %v10528_v34 = vor.u32 %v14057_v49, %v10527_v48  ;;  %v14025_v20 = vld [vmem:[#allocation5 + $0xa5c] sm:$0xf0]  ;;  %v14061_v49 = vld [vmem:[#allocation5 + $0xb84] sm:$0xf] }
 0x138   :  { %2066 = vmatpush.bf16.msrb.mxu2 %v9628_v32  ;;  %3658 = vmatpush.bf16.msra.mxu0 %v10336_v36  ;;  %v10111_v22 = vld [vmem:[#allocation5 + $0x800] sm:$0xf]  ;;  %v10400_v26 = vor.u32 %v14025_v20, %v10399_v19  ;;  %v14069_v36 = vld [vmem:[#allocation5 + $0xbc4] sm:$0xf] }
 0x139   :  { %2054 = vmatmul.bf16.vlgmr.msrb.gmra.mxu1 %v15076_v42  ;;  %v1834_v42 = vpop.f32.mrf.mxu0  ;;  %v13953_v23 = vld [vmem:[#allocation5 + $0x81c] sm:$0xf0]  ;;  %v1657_v2 = vld.sshfl [vmem:[#allocation1 + $0x20] sm:$0xff pattern:$0x73625140] }
 0x13a   :  { %2079 = vmatpush.bf16.msrb.mxu3 %v9884_v35  ;;  %3671 = vmatpush.bf16.msra.mxu1 %v10592_v39  ;;  %v1835_v59 = vadd.f32 %v1834_v42, %v1656_v54  ;;  %v10847_v27 = vld [vmem:[#allocation5 + $0xdc0] sm:$0xf]  ;;  %v10112_v38 = vor.u32 %v13953_v23, %v10111_v22  ;;  %v10340_v39 = vor.u32 %v14005_v24, %v10337_v29  ;;  %v13989_v54 = vld [vmem:[#allocation5 + $0x944] sm:$0xf] }
 0x13b   :  { %2067 = vmatmul.bf16.vlgmr.msrb.gmra.mxu2 %v15070_v33  ;;  %v13977_v33 = vld [vmem:[#allocation5 + $0x8dc] sm:$0xf0]  ;;  %v10529_v42 = vld [vmem:[#allocation5 + $0xb60] sm:$0xf0] }
 0x13c   :  { %3659 = vmatpush.bf16.msra.mxu0 %v10304_v44  ;;  %v1848_v0 = vadd.f32 %v1847_v61, %v1835_v59  ;;  %v10208_v1 = vor.u32 %v13977_v33, %v10207_v58  ;;  %v14137_v28 = vld [vmem:[#allocation5 + $0xddc] sm:$0xf0]  ;;  %v13981_v61 = vld [vmem:[#allocation5 + $0x904] sm:$0xf] }
 0x13d   :  { %2080 = vmatmul.bf16.vlgmr.msrb.gmra.mxu3 %v15074_v41  ;;  %v10496_v41 = vor.u32 %v14049_v56, %v10495_v55  ;;  %v10367_v31 = vld [vmem:[#allocation5 + $0xa00] sm:$0xf]  ;;  %v10848_v35 = vor.u32 %v14137_v28, %v10847_v27  ;;  %v10564_v55 = vor.u32 %v14061_v49, %v10561_v50  ;;  %v13965_v22 = vld [vmem:[#allocation5 + $0x884] sm:$0xf] }
 0x13e   :  { %3672 = vmatpush.bf16.msra.mxu1 %v10560_v47  ;;  %v1860_v6 = vpop.f32.mrf.mxu2  ;;  %v1849_v17 = vpop.f32.mrf.mxu1  ;;  %v14017_v32 = vld [vmem:[#allocation5 + $0xa1c] sm:$0xf0]  ;;  %v10596_v47 = vor.u32 %v14069_v36, %v10593_v37  ;;  %v10177_v23 = vld [vmem:[#allocation5 + $0x8a0] sm:$0xf0]  ;;  %v2085_v36 = vmax.f32 %v15098_v3, 0.0 }
 0x13f   :  { %v1861_v8 = vadd.f32 %v1860_v6, %v1848_v0  ;;  %3684 = vmatpush.bf16.msra.mxu2 %v10848_v35  ;;  %v10368_v40 = vor.u32 %v14017_v32, %v10367_v31  ;;  %v10815_v43 = vld [vmem:[#allocation5 + $0xd80] sm:$0xf]  ;;  %v14045_v0 = vld [vmem:[#allocation5 + $0xb04] sm:$0xf]  ;;  %v10180_v31 = vor.u32 %v13965_v22, %v10177_v23 }
 0x140   :  { %3660 = vmatpush.bf16.msra.mxu0 %v10272_v51  ;;  %v1873_v9 = vpop.f32.mrf.mxu3  ;;  %v14129_v44 = vld [vmem:[#allocation5 + $0xd9c] sm:$0xf0]  ;;  %v10308_v51 = vor.u32 %v13997_v45, %v10305_v46  ;;  %v10465_v17 = vld [vmem:[#allocation5 + $0xae0] sm:$0xf0] }
 0x141   :  { %v15116_v13 = vadd.f32 %v1873_v9, %v1861_v8  ;;  %v1836_v14 = vpop.f32.mrf.mxu0  ;;  %v10816_v48 = vor.u32 %v14129_v44, %v10815_v43  ;;  %v10783_v52 = vld [vmem:[#allocation5 + $0xd40] sm:$0xf]  ;;  %v13973_v9 = vld [vmem:[#allocation5 + $0x8c4] sm:$0xf]  ;;  %v10468_v24 = vor.u32 %v14037_v16, %v10465_v17 }
 0x142   :  { %3673 = vmatpush.bf16.msra.mxu1 %v10528_v34  ;;  %v14121_v53 = vld [vmem:[#allocation5 + $0xd5c] sm:$0xf0]  ;;  %v10273_v34 = vld [vmem:[#allocation5 + $0x960] sm:$0xf0]  ;;  %v10212_v19 = vor.u32 %v13973_v9, %v10209_v10  ;;  %v10311_v9 = vld [vmem:[#allocation5 + $0x988] sm:$0xf] }
 0x143   :  { %3685 = vmatpush.bf16.msra.mxu2 %v10816_v48  ;;  %v10784_v56 = vor.u32 %v14121_v53, %v10783_v52  ;;  %v10276_v58 = vor.u32 %v13989_v54, %v10273_v34  ;;  %v10751_v33 = vld [vmem:[#allocation5 + $0xd00] sm:$0xf]  ;;  %v14029_v27 = vld [vmem:[#allocation5 + $0xa84] sm:$0xf]  ;;  %v10343_v52 = vld [vmem:[#allocation5 + $0x9c8] sm:$0xf] }
 0x144   :  { %3661 = vmatpush.bf16.msra.mxu0 %v10240_v57  ;;  %v14053_v57 = vld [vmem:[#allocation5 + $0xb44] sm:$0xf]  ;;  %v14113_v59 = vld [vmem:[#allocation5 + $0xd1c] sm:$0xf0]  ;;  %v14010_v53 = vld [vmem:[#allocation5 + $0x9e4] sm:$0xf0] }
 0x145   :  { %v10532_v62 = vor.u32 %v14053_v57, %v10529_v42  ;;  %v10752_v63 = vor.u32 %v14113_v59, %v10751_v33  ;;  %v10719_v6 = vld [vmem:[#allocation5 + $0xcc0] sm:$0xf]  ;;  %v10433_v28 = vld [vmem:[#allocation5 + $0xaa0] sm:$0xf0]  ;;  %v14002_v10 = vld [vmem:[#allocation5 + $0x9a4] sm:$0xf0] }
 0x146   :  { %3674 = vmatpush.bf16.msra.mxu1 %v10496_v41  ;;  %v1862_v25 = vpop.f32.mrf.mxu2  ;;  %v10241_v41 = vld [vmem:[#allocation5 + $0x920] sm:$0xf0]  ;;  %v10687_v20 = vld [vmem:[#allocation5 + $0xc80] sm:$0xf]  ;;  %v10436_v43 = vor.u32 %v14029_v27, %v10433_v28  ;;  %v10247_v28 = vld [vmem:[#allocation5 + $0x908] sm:$0xf] }
 0x147   :  { %3686 = vmatpush.bf16.msra.mxu2 %v10784_v56  ;;  %v10244_v4 = vor.u32 %v13981_v61, %v10241_v41  ;;  %v10655_v32 = vld [vmem:[#allocation5 + $0xc40] sm:$0xf]  ;;  %v14021_v46 = vld [vmem:[#allocation5 + $0xa44] sm:$0xf] }
 0x148   :  { %3662 = vmatpush.bf16.msra.mxu0 %v10208_v1  ;;  %v1875_v30 = vpop.f32.mrf.mxu3  ;;  %v10497_v1 = vld [vmem:[#allocation5 + $0xb20] sm:$0xf0]  ;;  %v14089_v35 = vld [vmem:[#allocation5 + $0xc5c] sm:$0xf0] }
 0x149   :  { %v10500_v11 = vor.u32 %v14045_v0, %v10497_v1  ;;  %v10656_v44 = vor.u32 %v14089_v35, %v10655_v32  ;;  %v13949_v49 = vld [vmem:[#allocation5 + $0x804] sm:$0xf]  ;;  %v10623_v54 = vld [vmem:[#allocation5 + $0xc00] sm:$0xf] }
 0x14a   :  { %3675 = vmatpush.bf16.msra.mxu1 %v10464_v7  ;;  %v14105_v7 = vld [vmem:[#allocation5 + $0xcdc] sm:$0xf0]  ;;  %v10113_v50 = vld [vmem:[#allocation5 + $0x820] sm:$0xf0] }
 0x14b   :  { %3687 = vmatpush.bf16.msra.mxu2 %v10752_v63  ;;  %v14081_v3 = vld [vmem:[#allocation5 + $0xc1c] sm:$0xf0]  ;;  %v14013_v57 = vld [vmem:[#allocation5 + $0xa04] sm:$0xf]  ;;  %v10116_v1 = vor.u32 %v13949_v49, %v10113_v50 }
 0x14c   :  { %3663 = vmatpush.bf16.msra.mxu0 %v10176_v12  ;;  %v10720_v12 = vor.u32 %v14105_v7, %v10719_v6  ;;  %v10624_v56 = vor.u32 %v14081_v3, %v10623_v54  ;;  %v11103_v42 = vld [vmem:[#allocation5 + $0xfc0] sm:$0xf]  ;;  %v10369_v59 = vld [vmem:[#allocation5 + $0xa20] sm:$0xf0]  ;;  %v10183_v3 = vld [vmem:[#allocation5 + $0x888] sm:$0xf] }
 0x14d   :  { %v14133_v41 = vld [vmem:[#allocation5 + $0xdc4] sm:$0xf]  ;;  %v11071_v6 = vld [vmem:[#allocation5 + $0xf80] sm:$0xf] }
 0x14e   :  { %3676 = vmatpush.bf16.msra.mxu1 %v10432_v18  ;;  %v14193_v7 = vld [vmem:[#allocation5 + $0xf9c] sm:$0xf0]  ;;  %v10785_v22 = vld [vmem:[#allocation5 + $0xd60] sm:$0xf0] }
 0x14f   :  { %3688 = vmatpush.bf16.msra.mxu2 %v10720_v12  ;;  %v10817_v12 = vld [vmem:[#allocation5 + $0xda0] sm:$0xf0]  ;;  %v11039_v16 = vld [vmem:[#allocation5 + $0xf40] sm:$0xf] }
 0x150   :  { %3664 = vmatpush.bf16.msra.mxu0 %v10144_v21  ;;  %v14097_v21 = vld [vmem:[#allocation5 + $0xc9c] sm:$0xf0]  ;;  %v14109_v27 = vld [vmem:[#allocation5 + $0xd04] sm:$0xf] }
 0x151   :  { %v10688_v25 = vor.u32 %v14097_v21, %v10687_v20  ;;  %v14185_v17 = vld [vmem:[#allocation5 + $0xf5c] sm:$0xf0]  ;;  %v13994_v20 = vld [vmem:[#allocation5 + $0x964] sm:$0xf0] }
 0x152   :  { %3677 = vmatpush.bf16.msra.mxu1 %v10400_v26  ;;  %v11040_v21 = vor.u32 %v14185_v17, %v11039_v16  ;;  %v1658_v35 = vld.sshfl [vmem:[#allocation1 + $0x28] sm:$0xff pattern:$0x73625140] }
 0x153   :  { %3689 = vmatpush.bf16.msra.mxu2 %v10688_v25  ;;  %v11007_v25 = vld [vmem:[#allocation5 + $0xf00] sm:$0xf] }
 0x154   :  { %3665 = vmatpush.bf16.msra.mxu0 %v10112_v38  ;;  %v1886_v8 = vpop.f32.mrf.mxu0  ;;  %v13957_v38 = vld [vmem:[#allocation5 + $0x844] sm:$0xf] }
 0x155   :  { %v1887_v14 = vadd.f32 %v1886_v8, %v1657_v2  ;;  %v10344_v2 = vor.u32 %v14010_v53, %v10343_v52  ;;  %v14125_v8 = vld [vmem:[#allocation5 + $0xd84] sm:$0xf]  ;;  %v14161_v52 = vld [vmem:[#allocation5 + $0xe9c] sm:$0xf0] }
 0x156   :  { %3678 = vmatpush.bf16.msra.mxu1 %v10368_v40  ;;  %v1899_v15 = vpop.f32.mrf.mxu1  ;;  %v14093_v53 = vld [vmem:[#allocation5 + $0xc84] sm:$0xf] }
 0x157   :  { %v1900_v18 = vadd.f32 %v1899_v15, %v1887_v14  ;;  %3690 = vmatpush.bf16.msra.mxu2 %v10656_v44  ;;  %v10820_v14 = vor.u32 %v14125_v8, %v10817_v12  ;;  %v10312_v15 = vor.u32 %v14002_v10, %v10311_v9  ;;  %v10599_v8 = vld [vmem:[#allocation5 + $0xbc8] sm:$0xf] }
 0x158   :  { %3710 = vmatpush.bf16.msrb.mxu0 %v10340_v39  ;;  %v10145_v39 = vld [vmem:[#allocation5 + $0x860] sm:$0xf0]  ;;  %v14074_v9 = vld [vmem:[#allocation5 + $0xbe4] sm:$0xf0] }
 0x159   :  { %v10119_v12 = vld [vmem:[#allocation5 + $0x808] sm:$0xf] }
 0x15a   :  { %3723 = vmatpush.bf16.msrb.mxu1 %v10596_v47  ;;  %v10401_v47 = vld [vmem:[#allocation5 + $0xa60] sm:$0xf0] }
 0x15b   :  { %3691 = vmatpush.bf16.msra.mxu2 %v10624_v56 }
 0x15c   :  { %3711 = vmatpush.bf16.msrb.mxu0 %v10308_v51  ;;  %v1888_v40 = vpop.f32.mrf.mxu0  ;;  %v10148_v51 = vor.u32 %v13957_v38, %v10145_v39  ;;  %v14169_v38 = vld [vmem:[#allocation5 + $0xedc] sm:$0xf0]  ;;  %v14101_v39 = vld [vmem:[#allocation5 + $0xcc4] sm:$0xf] }
 0x15d   :  { %v10215_v40 = vld [vmem:[#allocation5 + $0x8c8] sm:$0xf] }
 0x15e   :  { %3724 = vmatpush.bf16.msrb.mxu1 %v10564_v55  ;;  %v1912_v26 = vpop.f32.mrf.mxu2  ;;  %v1901_v45 = vpop.f32.mrf.mxu1  ;;  %v10404_v55 = vor.u32 %v14021_v46, %v10401_v47 }
 0x15f   :  { %v1913_v29 = vadd.f32 %v1912_v26, %v1900_v18  ;;  %v14117_v18 = vld [vmem:[#allocation5 + $0xd44] sm:$0xf]  ;;  %v14177_v26 = vld [vmem:[#allocation5 + $0xf1c] sm:$0xf0] }
 0x160   :  { %3712 = vmatpush.bf16.msrb.mxu0 %v10276_v58  ;;  %v1925_v30 = vpop.f32.mrf.mxu3  ;;  %v14201_v58 = vld [vmem:[#allocation5 + $0xfdc] sm:$0xf0]  ;;  %v10788_v23 = vor.u32 %v14117_v18, %v10785_v22  ;;  %v10721_v45 = vld [vmem:[#allocation5 + $0xce0] sm:$0xf0]  ;;  %v14006_v18 = vld [vmem:[#allocation5 + $0x9cc] sm:$0xf]  ;;  %v10600_v22 = vor.u32 %v14074_v9, %v10599_v8 }
 0x161   :  { %v1926_v37 = vadd.f32 %v1925_v30, %v1913_v29  ;;  %v11104_v61 = vor.u32 %v14201_v58, %v11103_v42  ;;  %v13986_v29 = vld [vmem:[#allocation5 + $0x924] sm:$0xf0]  ;;  %v11008_v30 = vor.u32 %v14177_v26, %v11007_v25  ;;  %v10724_v47 = vor.u32 %v14101_v39, %v10721_v45  ;;  %v10625_v25 = vld [vmem:[#allocation5 + $0xc20] sm:$0xf0]  ;;  %v13998_v39 = vld [vmem:[#allocation5 + $0x98c] sm:$0xf] }
 0x162   :  { %3725 = vmatpush.bf16.msrb.mxu1 %v10532_v62  ;;  %v10849_v62 = vld [vmem:[#allocation5 + $0xde0] sm:$0xf0]  ;;  %v10535_v45 = vld [vmem:[#allocation5 + $0xb48] sm:$0xf] }
 0x163   :  { %v2089_v48 = vadd.f32 %v2085_v36, %v1926_v37  ;;  %v10852_v0 = vor.u32 %v14133_v41, %v10849_v62  ;;  %3697 = vmatpush.bf16.msra.mxu3 %v11104_v61  ;;  %v10248_v36 = vor.u32 %v13986_v29, %v10247_v28  ;;  %v10975_v37 = vld [vmem:[#allocation5 + $0xec0] sm:$0xf]  ;;  %v14197_v29 = vld [vmem:[#allocation5 + $0xfc4] sm:$0xf] }
 0x164   :  { %3713 = vmatpush.bf16.msrb.mxu0 %v10244_v4  ;;  %v10372_v4 = vor.u32 %v14013_v57, %v10369_v59  ;;  %v10976_v44 = vor.u32 %v14169_v38, %v10975_v37  ;;  %v10689_v57 = vld [vmem:[#allocation5 + $0xca0] sm:$0xf0]  ;;  %v10911_v41 = vld [vmem:[#allocation5 + $0xe40] sm:$0xf] }
 0x165   :  { %v15119_v34 = vpack.c.bf16 %v2089_v48, %v2089_v48  ;;  %3736 = vmatpush.bf16.msrb.mxu2 %v10852_v0  ;;  %v10692_v42 = vor.u32 %v14093_v53, %v10689_v57  ;;  %v14153_v62 = vld [vmem:[#allocation5 + $0xe5c] sm:$0xf0]  ;;  %v10151_v0 = vld [vmem:[#allocation5 + $0x848] sm:$0xf]  ;;  %v10281_v53 = vld [vmem:[#allocation5 + $0x968] sm:$0xf0] }
 0x166   :  { %3726 = vmatpush.bf16.msrb.mxu1 %v10500_v11  ;;  %v1914_v33 = vpop.f32.mrf.mxu2  ;;  %v11072_v11 = vor.u32 %v14193_v7, %v11071_v6  ;;  %v2086_v6 = vmax.f32 %v15104_v5, 0.0  ;;  %v14165_v8 = vld [vmem:[#allocation5 + $0xec4] sm:$0xf] }
 0x167   :  { %3666 = vmatmul.bf16.vlgmr.msra.gmra.mxu0 %v15119_v34  ;;  %v10977_v9 = vld [vmem:[#allocation5 + $0xee0] sm:$0xf0] }
 0x168   :  { %3714 = vmatpush.bf16.msrb.mxu0 %v10212_v19  ;;  %v1927_v63 = vpop.f32.mrf.mxu3  ;;  %3698 = vmatpush.bf16.msra.mxu3 %v11072_v11  ;;  %v10279_v19 = vld [vmem:[#allocation5 + $0x948] sm:$0xf] }
 0x169   :  { %3737 = vmatpush.bf16.msrb.mxu2 %v10820_v14  ;;  %v14085_v63 = vld [vmem:[#allocation5 + $0xc44] sm:$0xf]  ;;  %v13954_v14 = vld [vmem:[#allocation5 + $0x824] sm:$0xf0] }
 0x16a   :  { %3727 = vmatpush.bf16.msrb.mxu1 %v10468_v24  ;;  %v10280_v24 = vor.u32 %v13994_v20, %v10279_v19  ;;  %v10879_v19 = vld [vmem:[#allocation5 + $0xe00] sm:$0xf] }
 0x16b   :  { %v14145_v20 = vld [vmem:[#allocation5 + $0xe1c] sm:$0xf0] }
 0x16c   :  { %3715 = vmatpush.bf16.msrb.mxu0 %v10180_v31  ;;  %3699 = vmatpush.bf16.msra.mxu3 %v11040_v21  ;;  %v10753_v31 = vld [vmem:[#allocation5 + $0xd20] sm:$0xf0]  ;;  %v10880_v5 = vor.u32 %v14145_v20, %v10879_v19  ;;  %v13966_v19 = vld [vmem:[#allocation5 + $0x88c] sm:$0xf] }
 0x16d   :  { %3738 = vmatpush.bf16.msrb.mxu2 %v10788_v23  ;;  %v10756_v32 = vor.u32 %v14109_v27, %v10753_v31  ;;  %v14077_v21 = vld [vmem:[#allocation5 + $0xc04] sm:$0xf]  ;;  %v10345_v23 = vld [vmem:[#allocation5 + $0x9e8] sm:$0xf0]  ;;  %v14066_v27 = vld [vmem:[#allocation5 + $0xba4] sm:$0xf0] }
 0x16e   :  { %3728 = vmatpush.bf16.msrb.mxu1 %v10436_v43  ;;  %v13978_v43 = vld [vmem:[#allocation5 + $0x8e4] sm:$0xf0]  ;;  %v10628_v28 = vor.u32 %v14077_v21, %v10625_v25  ;;  %v10348_v37 = vor.u32 %v14006_v18, %v10345_v23  ;;  %v14157_v20 = vld [vmem:[#allocation5 + $0xe84] sm:$0xf] }
 0x16f   :  { %v10216_v50 = vor.u32 %v13978_v43, %v10215_v40  ;;  %v14189_v40 = vld [vmem:[#allocation5 + $0xf84] sm:$0xf]  ;;  %v10407_v23 = vld [vmem:[#allocation5 + $0xa48] sm:$0xf] }
 0x170   :  { %3716 = vmatpush.bf16.msrb.mxu0 %v10148_v51  ;;  %3700 = vmatpush.bf16.msra.mxu3 %v11008_v30  ;;  %v10943_v51 = vld [vmem:[#allocation5 + $0xe80] sm:$0xf]  ;;  %v11105_v30 = vld [vmem:[#allocation5 + $0xfe0] sm:$0xf0] }
 0x171   :  { %3739 = vmatpush.bf16.msrb.mxu2 %v10756_v32  ;;  %v10944_v56 = vor.u32 %v14161_v52, %v10943_v51  ;;  %v11108_v32 = vor.u32 %v14197_v29, %v11105_v30  ;;  %v11073_v43 = vld [vmem:[#allocation5 + $0xfa0] sm:$0xf0]  ;;  %v13958_v30 = vld [vmem:[#allocation5 + $0x84c] sm:$0xf] }
 0x172   :  { %3729 = vmatpush.bf16.msrb.mxu1 %v10404_v55  ;;  %v13970_v55 = vld [vmem:[#allocation5 + $0x8a4] sm:$0xf0]  ;;  %v14181_v51 = vld [vmem:[#allocation5 + $0xf44] sm:$0xf] }
 0x173   :  { %v10184_v61 = vor.u32 %v13970_v55, %v10183_v3  ;;  %v11041_v52 = vld [vmem:[#allocation5 + $0xf60] sm:$0xf0]  ;;  %v14050_v3 = vld [vmem:[#allocation5 + $0xb24] sm:$0xf0] }
 0x174   :  { %3717 = vmatpush.bf16.msrb.mxu0 %v10116_v1  ;;  %v1938_v46 = vpop.f32.mrf.mxu0  ;;  %3701 = vmatpush.bf16.msra.mxu3 %v10976_v44  ;;  %v13962_v1 = vld [vmem:[#allocation5 + $0x864] sm:$0xf0]  ;;  %v10313_v44 = vld [vmem:[#allocation5 + $0x9a8] sm:$0xf0]  ;;  %v11044_v55 = vor.u32 %v14181_v51, %v11041_v52  ;;  %v10945_v21 = vld [vmem:[#allocation5 + $0xea0] sm:$0xf0] }
 0x175   :  { %v1939_v48 = vadd.f32 %v1938_v46, %v1658_v35  ;;  %3740 = vmatpush.bf16.msrb.mxu2 %v10724_v47  ;;  %v10152_v17 = vor.u32 %v13962_v1, %v10151_v0  ;;  %v10120_v35 = vor.u32 %v13954_v14, %v10119_v12  ;;  %v14058_v46 = vld [vmem:[#allocation5 + $0xb64] sm:$0xf0]  ;;  %v11076_v47 = vor.u32 %v14189_v40, %v11073_v43  ;;  %v13974_v0 = vld [vmem:[#allocation5 + $0x8cc] sm:$0xf] }
 0x176   :  { %3730 = vmatpush.bf16.msrb.mxu1 %v10372_v4  ;;  %v1951_v49 = vpop.f32.mrf.mxu1  ;;  %v10657_v4 = vld [vmem:[#allocation5 + $0xc60] sm:$0xf0]  ;;  %v10217_v1 = vld [vmem:[#allocation5 + $0x8e8] sm:$0xf0]  ;;  %v10980_v12 = vor.u32 %v14165_v8, %v10977_v9  ;;  %v10319_v8 = vld [vmem:[#allocation5 + $0x990] sm:$0xf] }
 0x177   :  { %3718 = vmatmul.bf16.vlgmr.msrb.gmra.mxu0 %v15119_v34  ;;  %v1952_v54 = vadd.f32 %v1951_v49, %v1939_v48  ;;  %v10660_v11 = vor.u32 %v14085_v63, %v10657_v4  ;;  %v10316_v48 = vor.u32 %v13998_v39, %v10313_v44  ;;  %v10536_v49 = vor.u32 %v14058_v46, %v10535_v45  ;;  %v1659_v63 = vld.sshfl [vmem:[#allocation1 + $0x30] sm:$0xff pattern:$0x73625140]  ;;  %v14018_v39 = vld [vmem:[#allocation5 + $0xa24] sm:$0xf0] }
 0x178   :  { %3762 = vmatpush.bf16.msra.mxu0 %v10344_v2  ;;  %3702 = vmatpush.bf16.msra.mxu3 %v10944_v56  ;;  %v10912_v2 = vor.u32 %v14153_v62, %v10911_v41  ;;  %v14042_v41 = vld [vmem:[#allocation5 + $0xae4] sm:$0xf0]  ;;  %v14070_v43 = vld [vmem:[#allocation5 + $0xbcc] sm:$0xf]  ;;  %v2087_v45 = vmax.f32 %v15110_v60, 0.0 }
 0x179   :  { %3741 = vmatpush.bf16.msrb.mxu2 %v10692_v42  ;;  %v13982_v42 = vld [vmem:[#allocation5 + $0x90c] sm:$0xf] }
 0x17a   :  { %v10601_v44 = vld [vmem:[#allocation5 + $0xbe8] sm:$0xf0] }
 0x17b   :  { %v14062_v60 = vld [vmem:[#allocation5 + $0xb8c] sm:$0xf] }
 0x17c   :  { %3763 = vmatpush.bf16.msra.mxu0 %v10312_v15  ;;  %v1940_v10 = vpop.f32.mrf.mxu0  ;;  %3703 = vmatpush.bf16.msra.mxu3 %v10912_v2  ;;  %v15128_v2 = vld.sshfl [vmem:[#allocation1 + $0x38] sm:$0xff pattern:$0x73625140] }
 0x17d   :  { %3742 = vmatpush.bf16.msrb.mxu2 %v10660_v11  ;;  %v10439_v10 = vld [vmem:[#allocation5 + $0xa88] sm:$0xf] }
 0x17e   :  { %v1964_v58 = vpop.f32.mrf.mxu2  ;;  %v1953_v15 = vpop.f32.mrf.mxu1  ;;  %v14034_v11 = vld [vmem:[#allocation5 + $0xaa4] sm:$0xf0] }
 0x17f   :  { %v1965_v33 = vadd.f32 %v1964_v58, %v1952_v54  ;;  %v10503_v54 = vld [vmem:[#allocation5 + $0xb08] sm:$0xf]  ;;  %v14173_v58 = vld [vmem:[#allocation5 + $0xf04] sm:$0xf]  ;;  %v10440_v18 = vor.u32 %v14034_v11, %v10439_v10  ;;  %v14003_v10 = vld [vmem:[#allocation5 + $0x9ac] sm:$0xf0] }
 0x180   :  { %3764 = vmatpush.bf16.msra.mxu0 %v10280_v24  ;;  %v1977_v59 = vpop.f32.mrf.mxu3  ;;  %v10567_v24 = vld [vmem:[#allocation5 + $0xb88] sm:$0xf]  ;;  %3704 = vmatpush.bf16.msra.mxu3 %v10880_v5  ;;  %v10504_v57 = vor.u32 %v14050_v3, %v10503_v54  ;;  %v10948_v5 = vor.u32 %v14157_v20, %v10945_v21  ;;  %v10881_v54 = vld [vmem:[#allocation5 + $0xe20] sm:$0xf0]  ;;  %v14054_v11 = vld [vmem:[#allocation5 + $0xb4c] sm:$0xf] }
 0x181   :  { %v1978_v7 = vadd.f32 %v1977_v59, %v1965_v33  ;;  %v10568_v38 = vor.u32 %v14066_v27, %v10567_v24  ;;  %3743 = vmatpush.bf16.msrb.mxu2 %v10628_v28  ;;  %v11009_v33 = vld [vmem:[#allocation5 + $0xf20] sm:$0xf0]  ;;  %v10249_v59 = vld [vmem:[#allocation5 + $0x928] sm:$0xf0]  ;;  %v14026_v24 = vld [vmem:[#allocation5 + $0xa64] sm:$0xf0] }
 0x182   :  { %v11012_v62 = vor.u32 %v14173_v58, %v11009_v33  ;;  %v10252_v4 = vor.u32 %v13982_v42, %v10249_v59  ;;  %v10408_v29 = vor.u32 %v14026_v24, %v10407_v23  ;;  %v10351_v42 = vld [vmem:[#allocation5 + $0x9d0] sm:$0xf]  ;;  %v10569_v59 = vld [vmem:[#allocation5 + $0xba8] sm:$0xf0]  ;;  %v10759_v23 = vld [vmem:[#allocation5 + $0xd08] sm:$0xf] }
 0x183   :  { %v2090_v16 = vadd.f32 %v2086_v6, %v1978_v7  ;;  %v2356_v7 = vld [vmem:[#allocation7 + $0x18] sm:$0xff]  ;;  %v14011_v33 = vld [vmem:[#allocation5 + $0x9ec] sm:$0xf0]  ;;  %v14046_v21 = vld [vmem:[#allocation5 + $0xb0c] sm:$0xf] }
 0x184   :  { %3765 = vmatpush.bf16.msra.mxu0 %v10248_v36  ;;  %3749 = vmatpush.bf16.msrb.mxu3 %v11108_v32  ;;  %3641 = vst [vmem:[#allocation1 + $0x20] ss:$4 sm:$0xff] %v2356_v7  ;;  %v10913_v32 = vld [vmem:[#allocation5 + $0xe60] sm:$0xf0]  ;;  %v13995_v20 = vld [vmem:[#allocation5 + $0x96c] sm:$0xf0] }
 0x185   :  { %v15124_v26 = vpack.c.bf16 %v2090_v16, %v2090_v16  ;;  %v14114_v24 = vld [vmem:[#allocation5 + $0xd24] sm:$0xf0] }
 0x186   :  { %v1966_v31 = vpop.f32.mrf.mxu2 }
 0x187   :  { %3679 = vmatmul.bf16.vlgmr.msra.gmra.mxu1 %v15124_v26  ;;  %v14149_v31 = vld [vmem:[#allocation5 + $0xe44] sm:$0xf] }
 0x188   :  { %3766 = vmatpush.bf16.msra.mxu0 %v10216_v50  ;;  %v1979_v36 = vpop.f32.mrf.mxu3  ;;  %3775 = vmatpush.bf16.msra.mxu1 %v10600_v22  ;;  %v13990_v50 = vld [vmem:[#allocation5 + $0x94c] sm:$0xf]  ;;  %v10916_v40 = vor.u32 %v14149_v31, %v10913_v32  ;;  %v14106_v31 = vld [vmem:[#allocation5 + $0xce4] sm:$0xf0] }
 0x189   :  { %3750 = vmatpush.bf16.msrb.mxu3 %v11076_v47  ;;  %v10284_v56 = vor.u32 %v13990_v50, %v10281_v53  ;;  %v10185_v22 = vld [vmem:[#allocation5 + $0x8a8] sm:$0xf0]  ;;  %v14141_v53 = vld [vmem:[#allocation5 + $0xe04] sm:$0xf] }
 0x18a   :  { %v10188_v28 = vor.u32 %v13966_v19, %v10185_v22  ;;  %v10505_v22 = vld [vmem:[#allocation5 + $0xb28] sm:$0xf0] }
 0x18b   :  { %v14038_v32 = vld [vmem:[#allocation5 + $0xacc] sm:$0xf] }
 0x18c   :  { %3767 = vmatpush.bf16.msra.mxu0 %v10184_v61  ;;  %3776 = vmatpush.bf16.msra.mxu1 %v10568_v38  ;;  %v10471_v61 = vld [vmem:[#allocation5 + $0xac8] sm:$0xf] }
 0x18d   :  { %3751 = vmatpush.bf16.msrb.mxu3 %v11044_v55  ;;  %v10472_v6 = vor.u32 %v14042_v41, %v10471_v61  ;;  %v10375_v38 = vld [vmem:[#allocation5 + $0xa08] sm:$0xf]  ;;  %v10604_v55 = vor.u32 %v14070_v43, %v10601_v44  ;;  %v10884_v61 = vor.u32 %v14141_v53, %v10881_v54  ;;  %v10191_v53 = vld [vmem:[#allocation5 + $0x890] sm:$0xf] }
 0x18e   :  { %v10376_v51 = vor.u32 %v14018_v39, %v10375_v38  ;;  %v10223_v39 = vld [vmem:[#allocation5 + $0x8d0] sm:$0xf]  ;;  %v10695_v43 = vld [vmem:[#allocation5 + $0xc88] sm:$0xf] }
 0x18f   :  { %v13971_v54 = vld [vmem:[#allocation5 + $0x8ac] sm:$0xf0] }
 0x190   :  { %3768 = vmatpush.bf16.msra.mxu0 %v10152_v17  ;;  %3777 = vmatpush.bf16.msra.mxu1 %v10536_v49  ;;  %v10220_v17 = vor.u32 %v13974_v0, %v10217_v1  ;;  %v14138_v49 = vld [vmem:[#allocation5 + $0xde4] sm:$0xf0] }
 0x191   :  { %3752 = vmatpush.bf16.msrb.mxu3 %v11012_v62  ;;  %v10823_v62 = vld [vmem:[#allocation5 + $0xd88] sm:$0xf] }
 0x194   :  { %3769 = vmatpush.bf16.msra.mxu0 %v10120_v35  ;;  %3778 = vmatpush.bf16.msra.mxu1 %v10504_v57  ;;  %v1990_v14 = vpop.f32.mrf.mxu0  ;;  %v10121_v57 = vld [vmem:[#allocation5 + $0x828] sm:$0xf0] }
 0x195   :  { %v1991_v15 = vadd.f32 %v1990_v14, %v1659_v63  ;;  %3753 = vmatpush.bf16.msrb.mxu3 %v10980_v12  ;;  %v14130_v63 = vld [vmem:[#allocation5 + $0xda4] sm:$0xf0]  ;;  %v10537_v12 = vld [vmem:[#allocation5 + $0xb68] sm:$0xf0] }
 0x196   :  { %v2003_v16 = vpop.f32.mrf.mxu1  ;;  %v10824_v9 = vor.u32 %v14130_v63, %v10823_v62  ;;  %v10791_v14 = vld [vmem:[#allocation5 + $0xd48] sm:$0xf]  ;;  %v13963_v62 = vld [vmem:[#allocation5 + $0x86c] sm:$0xf0] }
 0x197   :  { %3770 = vmatmul.bf16.vlgmr.msra.gmra.mxu0 %v15119_v34  ;;  %3731 = vmatmul.bf16.vlgmr.msrb.gmra.mxu1 %v15124_v26  ;;  %v2004_v25 = vadd.f32 %v2003_v16, %v1991_v15  ;;  %v14122_v15 = vld [vmem:[#allocation5 + $0xd64] sm:$0xf0]  ;;  %v10320_v16 = vor.u32 %v14003_v10, %v10319_v8  ;;  %v10377_v8 = vld [vmem:[#allocation5 + $0xa28] sm:$0xf0] }
 0x198   :  { %3814 = vmatpush.bf16.msrb.mxu0 %v10348_v37  ;;  %3779 = vmatpush.bf16.msra.mxu1 %v10472_v6  ;;  %v10153_v37 = vld [vmem:[#allocation5 + $0x868] sm:$0xf0]  ;;  %v10572_v6 = vor.u32 %v14062_v60, %v10569_v59  ;;  %v10792_v19 = vor.u32 %v14122_v15, %v10791_v14  ;;  %v10631_v63 = vld [vmem:[#allocation5 + $0xc08] sm:$0xf] }
 0x199   :  { %3754 = vmatpush.bf16.msrb.mxu3 %v10948_v5  ;;  %v10156_v50 = vor.u32 %v13958_v30, %v10153_v37  ;;  %v10727_v30 = vld [vmem:[#allocation5 + $0xcc8] sm:$0xf] }
 0x19a   :  { %v10728_v37 = vor.u32 %v14106_v31, %v10727_v30  ;;  %v11111_v10 = vld [vmem:[#allocation5 + $0xfc8] sm:$0xf]  ;;  %v10825_v30 = vld [vmem:[#allocation5 + $0xda8] sm:$0xf0] }
 0x19b   :  { %v14202_v15 = vld [vmem:[#allocation5 + $0xfe4] sm:$0xf0] }
 0x19c   :  { %3815 = vmatpush.bf16.msrb.mxu0 %v10316_v48  ;;  %3780 = vmatpush.bf16.msra.mxu1 %v10440_v18  ;;  %v1992_v47 = vpop.f32.mrf.mxu0  ;;  %v10855_v48 = vld [vmem:[#allocation5 + $0xdc8] sm:$0xf]  ;;  %v10287_v18 = vld [vmem:[#allocation5 + $0x950] sm:$0xf] }
 0x19d   :  { %3755 = vmatpush.bf16.msrb.mxu3 %v10916_v40  ;;  %v10856_v58 = vor.u32 %v14138_v49, %v10855_v48  ;;  %v10288_v5 = vor.u32 %v13995_v20, %v10287_v18  ;;  %v13979_v40 = vld [vmem:[#allocation5 + $0x8ec] sm:$0xf0]  ;;  %v10441_v47 = vld [vmem:[#allocation5 + $0xaa8] sm:$0xf0] }
 0x19e   :  { %v2016_v27 = vpop.f32.mrf.mxu2  ;;  %v2005_v52 = vpop.f32.mrf.mxu1  ;;  %v10127_v20 = vld [vmem:[#allocation5 + $0x810] sm:$0xf] }
 0x19f   :  { %v2017_v35 = vadd.f32 %v2016_v27, %v2004_v25  ;;  %v10508_v25 = vor.u32 %v14046_v21, %v10505_v22  ;;  %v10760_v27 = vor.u32 %v14114_v24, %v10759_v23  ;;  %v13955_v21 = vld [vmem:[#allocation5 + $0x82c] sm:$0xf0]  ;;  %v14007_v24 = vld [vmem:[#allocation5 + $0x9d4] sm:$0xf] }
 0x1a0   :  { %3816 = vmatpush.bf16.msrb.mxu0 %v10284_v56  ;;  %v2029_v36 = vpop.f32.mrf.mxu3  ;;  %3781 = vmatpush.bf16.msra.mxu1 %v10408_v29  ;;  %v13950_v56 = vld [vmem:[#allocation5 + $0x80c] sm:$0xf]  ;;  %v13987_v29 = vld [vmem:[#allocation5 + $0x92c] sm:$0xf0] }
 0x1a1   :  { %v2030_v46 = vadd.f32 %v2029_v36, %v2017_v35  ;;  %v10124_v0 = vor.u32 %v13950_v56, %v10121_v57  ;;  %3756 = vmatpush.bf16.msrb.mxu3 %v10884_v61  ;;  %v10473_v35 = vld [vmem:[#allocation5 + $0xae8] sm:$0xf0]  ;;  %v14090_v56 = vld [vmem:[#allocation5 + $0xc64] sm:$0xf0]  ;;  %v10159_v61 = vld [vmem:[#allocation5 + $0x850] sm:$0xf] }
 0x1a2   :  { %v10476_v38 = vor.u32 %v14038_v32, %v10473_v35  ;;  %v14022_v57 = vld [vmem:[#allocation5 + $0xa4c] sm:$0xf]  ;;  %v10160_v14 = vor.u32 %v13963_v62, %v10159_v61  ;;  %v10128_v32 = vor.u32 %v13955_v21, %v10127_v20  ;;  %v14194_v35 = vld [vmem:[#allocation5 + $0xfa4] sm:$0xf0]  ;;  %v10511_v61 = vld [vmem:[#allocation5 + $0xb10] sm:$0xf] }
 0x1a3   :  { %v2091_v3 = vadd.f32 %v2087_v45, %v2030_v46  ;;  %v14098_v45 = vld [vmem:[#allocation5 + $0xca4] sm:$0xf0]  ;;  %v14030_v46 = vld [vmem:[#allocation5 + $0xa8c] sm:$0xf]  ;;  %v14051_v62 = vld [vmem:[#allocation5 + $0xb2c] sm:$0xf0] }
 0x1a4   :  { %3817 = vmatpush.bf16.msrb.mxu0 %v10252_v4  ;;  %3782 = vmatpush.bf16.msra.mxu1 %v10376_v51  ;;  %v10352_v4 = vor.u32 %v14011_v33, %v10351_v42  ;;  %v10696_v51 = vor.u32 %v14098_v45, %v10695_v43  ;;  %v10444_v52 = vor.u32 %v14030_v46, %v10441_v47  ;;  %v10409_v42 = vld [vmem:[#allocation5 + $0xa68] sm:$0xf0]  ;;  %v10321_v45 = vld [vmem:[#allocation5 + $0x9b0] sm:$0xf0]  ;;  %v11047_v46 = vld [vmem:[#allocation5 + $0xf48] sm:$0xf] }
 0x1a5   :  { %v15132_v41 = vpack.c.bf16 %v2091_v3, %v2091_v3  ;;  %v10663_v3 = vld [vmem:[#allocation5 + $0xc48] sm:$0xf]  ;;  %v10412_v59 = vor.u32 %v14022_v57, %v10409_v42  ;;  %v10289_v57 = vld [vmem:[#allocation5 + $0x970] sm:$0xf0]  ;;  %v14094_v21 = vld [vmem:[#allocation5 + $0xc8c] sm:$0xf] }
 0x1a6   :  { %v2018_v1 = vpop.f32.mrf.mxu2  ;;  %v10664_v60 = vor.u32 %v14090_v56, %v10663_v3  ;;  %v13991_v56 = vld [vmem:[#allocation5 + $0x954] sm:$0xf]  ;;  %v10951_v20 = vld [vmem:[#allocation5 + $0xe88] sm:$0xf] }
 0x1a7   :  { %3692 = vmatmul.bf16.vlgmr.msra.gmra.mxu2 %v15132_v41  ;;  %3783 = vmatmul.bf16.vlgmr.msra.gmra.mxu1 %v15124_v26 }
 0x1a8   :  { %3818 = vmatpush.bf16.msrb.mxu0 %v10220_v17  ;;  %3827 = vmatpush.bf16.msrb.mxu1 %v10604_v55  ;;  %v2031_v7 = vpop.f32.mrf.mxu3  ;;  %v10540_v17 = vor.u32 %v14054_v11, %v10537_v12  ;;  %v14134_v11 = vld [vmem:[#allocation5 + $0xdcc] sm:$0xf] }
 0x1a9   :  { %3788 = vmatpush.bf16.msra.mxu2 %v10856_v58  ;;  %v2088_v58 = vmax.f32 %v15116_v13, 0.0  ;;  %v14014_v7 = vld [vmem:[#allocation5 + $0xa0c] sm:$0xf] }
 0x1aa   :  { %v10857_v13 = vld [vmem:[#allocation5 + $0xde8] sm:$0xf0] }
 0x1ab   :  { %v10860_v23 = vor.u32 %v14134_v11, %v10857_v13  ;;  %v14170_v11 = vld [vmem:[#allocation5 + $0xee4] sm:$0xf0]  ;;  %v10479_v13 = vld [vmem:[#allocation5 + $0xad0] sm:$0xf] }
 0x1ac   :  { %3819 = vmatpush.bf16.msrb.mxu0 %v10188_v28  ;;  %3828 = vmatpush.bf16.msrb.mxu1 %v10572_v6  ;;  %v10255_v28 = vld [vmem:[#allocation5 + $0x910] sm:$0xf]  ;;  %v14082_v6 = vld [vmem:[#allocation5 + $0xc24] sm:$0xf0] }
 0x1ad   :  { %3789 = vmatpush.bf16.msra.mxu2 %v10824_v9  ;;  %v10256_v36 = vor.u32 %v13987_v29, %v10255_v28  ;;  %v10632_v18 = vor.u32 %v14082_v6, %v10631_v63  ;;  %v11079_v28 = vld [vmem:[#allocation5 + $0xf88] sm:$0xf]  ;;  %v14126_v29 = vld [vmem:[#allocation5 + $0xd8c] sm:$0xf]  ;;  %v10292_v63 = vor.u32 %v13991_v56, %v10289_v57  ;;  %v10863_v57 = vld [vmem:[#allocation5 + $0xdd0] sm:$0xf] }
 0x1ae   :  { %v10828_v43 = vor.u32 %v14126_v29, %v10825_v30  ;;  %v11080_v47 = vor.u32 %v14194_v35, %v11079_v28  ;;  %v13967_v28 = vld [vmem:[#allocation5 + $0x894] sm:$0xf]  ;;  %v10919_v35 = vld [vmem:[#allocation5 + $0xe48] sm:$0xf]  ;;  %v11113_v56 = vld [vmem:[#allocation5 + $0xfe8] sm:$0xf0] }
 0x1af   :  { %v10193_v29 = vld [vmem:[#allocation5 + $0x8b0] sm:$0xf0] }
 0x1b0   :  { %3820 = vmatpush.bf16.msrb.mxu0 %v10156_v50  ;;  %3829 = vmatpush.bf16.msrb.mxu1 %v10540_v17  ;;  %v10224_v50 = vor.u32 %v13979_v40, %v10223_v39  ;;  %v14075_v17 = vld [vmem:[#allocation5 + $0xbec] sm:$0xf0] }
 0x1b1   :  { %3790 = vmatpush.bf16.msra.mxu2 %v10792_v19  ;;  %v10380_v19 = vor.u32 %v14014_v7, %v10377_v8  ;;  %v10512_v7 = vor.u32 %v14051_v62, %v10511_v61  ;;  %v10983_v8 = vld [vmem:[#allocation5 + $0xec8] sm:$0xf]  ;;  %v13951_v61 = vld [vmem:[#allocation5 + $0x814] sm:$0xf] }
 0x1b2   :  { %v10129_v62 = vld [vmem:[#allocation5 + $0x830] sm:$0xf0] }
 0x1b4   :  { %3821 = vmatpush.bf16.msrb.mxu0 %v10124_v0  ;;  %3830 = vmatpush.bf16.msrb.mxu1 %v10508_v25  ;;  %v2042_v44 = vpop.f32.mrf.mxu0  ;;  %v11112_v25 = vor.u32 %v14202_v15, %v11111_v10  ;;  %v10729_v10 = vld [vmem:[#allocation5 + $0xce8] sm:$0xf0] }
 0x1b5   :  { %3791 = vmatpush.bf16.msra.mxu2 %v10760_v27  ;;  %v2043_v48 = vadd.f32 %v2042_v44, %v15128_v2  ;;  %v10192_v2 = vor.u32 %v13971_v54, %v10191_v53  ;;  %v13999_v44 = vld [vmem:[#allocation5 + $0x994] sm:$0xf]  ;;  %v14059_v53 = vld [vmem:[#allocation5 + $0xb6c] sm:$0xf0] }
 0x1b6   :  { %v2055_v49 = vpop.f32.mrf.mxu1  ;;  %v2355_v54 = vld [vmem:[#allocation7 + $0x10] sm:$0xff]  ;;  %v10324_v3 = vor.u32 %v13999_v44, %v10321_v45 }
 0x1b7   :  { %3822 = vmatmul.bf16.vlgmr.msrb.gmra.mxu0 %v15119_v34  ;;  %3744 = vmatmul.bf16.vlgmr.msrb.gmra.mxu2 %v15132_v41  ;;  %v2056_v55 = vadd.f32 %v2055_v49, %v2043_v48  ;;  %v14186_v49 = vld [vmem:[#allocation5 + $0xf64] sm:$0xf0]  ;;  %3639 = vst [vmem:[#allocation1] ss:$4 sm:$0xff] %v2355_v54  ;;  %v13959_v45 = vld [vmem:[#allocation5 + $0x854] sm:$0xf] }
 0x1b8   :  { %3866 = vmatpush.bf16.msra.mxu0 %v10352_v4  ;;  %3831 = vmatpush.bf16.msrb.mxu1 %v10476_v38  ;;  %v11048_v42 = vor.u32 %v14186_v49, %v11047_v46  ;;  %v10161_v46 = vld [vmem:[#allocation5 + $0x870] sm:$0xf0]  ;;  %v14019_v54 = vld [vmem:[#allocation5 + $0xa2c] sm:$0xf0] }
 0x1b9   :  { %3792 = vmatpush.bf16.msra.mxu2 %v10728_v37  ;;  %v14067_v37 = vld [vmem:[#allocation5 + $0xbac] sm:$0xf0] }
 0x1bc   :  { %3867 = vmatpush.bf16.msra.mxu0 %v10320_v16  ;;  %3832 = vmatpush.bf16.msrb.mxu1 %v10444_v52  ;;  %v2044_v4 = vpop.f32.mrf.mxu0  ;;  %v10607_v16 = vld [vmem:[#allocation5 + $0xbd0] sm:$0xf] }
 0x1bd   :  { %3793 = vmatpush.bf16.msra.mxu2 %v10696_v51  ;;  %v10608_v27 = vor.u32 %v14075_v17, %v10607_v16  ;;  %v10793_v51 = vld [vmem:[#allocation5 + $0xd68] sm:$0xf0]  ;;  %v10543_v52 = vld [vmem:[#allocation5 + $0xb50] sm:$0xf]  ;;  %v10257_v4 = vld [vmem:[#allocation5 + $0x930] sm:$0xf0] }
 0x1be   :  { %v2068_v33 = vpop.f32.mrf.mxu2  ;;  %v2057_v9 = vpop.f32.mrf.mxu1  ;;  %v13975_v16 = vld [vmem:[#allocation5 + $0x8d4] sm:$0xf] }
 0x1bf   :  { %v2069_v0 = vadd.f32 %v2068_v33, %v2056_v55  ;;  %v14110_v33 = vld [vmem:[#allocation5 + $0xd0c] sm:$0xf]  ;;  %v10225_v17 = vld [vmem:[#allocation5 + $0x8f0] sm:$0xf0] }
 0x1c0   :  { %3868 = vmatpush.bf16.msra.mxu0 %v10288_v5  ;;  %v2081_v1 = vpop.f32.mrf.mxu3  ;;  %3833 = vmatpush.bf16.msrb.mxu1 %v10412_v59  ;;  %v10353_v5 = vld [vmem:[#allocation5 + $0x9f0] sm:$0xf0]  ;;  %v14178_v59 = vld [vmem:[#allocation5 + $0xf24] sm:$0xf0]  ;;  %v14102_v9 = vld [vmem:[#allocation5 + $0xccc] sm:$0xf] }
 0x1c1   :  { %v2082_v12 = vadd.f32 %v2081_v1, %v2069_v0  ;;  %3794 = vmatpush.bf16.msra.mxu2 %v10664_v60  ;;  %v10356_v39 = vor.u32 %v14007_v24, %v10353_v5  ;;  %v10761_v60 = vld [vmem:[#allocation5 + $0xd28] sm:$0xf0]  ;;  %v13983_v1 = vld [vmem:[#allocation5 + $0x914] sm:$0xf]  ;;  %v10732_v15 = vor.u32 %v14102_v9, %v10729_v10  ;;  %v10447_v24 = vld [vmem:[#allocation5 + $0xa90] sm:$0xf] }
 0x1c2   :  { %v10764_v0 = vor.u32 %v14110_v33, %v10761_v60  ;;  %v14035_v5 = vld [vmem:[#allocation5 + $0xaac] sm:$0xf0]  ;;  %v10609_v33 = vld [vmem:[#allocation5 + $0xbf0] sm:$0xf0] }
 0x1c3   :  { %v2092_v22 = vadd.f32 %v2088_v58, %v2082_v12  ;;  %v10544_v58 = vor.u32 %v14059_v53, %v10543_v52  ;;  %v14043_v12 = vld [vmem:[#allocation5 + $0xaec] sm:$0xf0]  ;;  %v10633_v52 = vld [vmem:[#allocation5 + $0xc28] sm:$0xf0] }
 0x1c4   :  { %3869 = vmatpush.bf16.msra.mxu0 %v10256_v36  ;;  %v10575_v36 = vld [vmem:[#allocation5 + $0xb90] sm:$0xf]  ;;  %3834 = vmatpush.bf16.msrb.mxu1 %v10380_v19  ;;  %v10480_v19 = vor.u32 %v14043_v12, %v10479_v13  ;;  %v14063_v13 = vld [vmem:[#allocation5 + $0xb94] sm:$0xf] }
 0x1c5   :  { %v15140_v31 = vpack.c.bf16 %v2092_v22, %v2092_v22  ;;  %3795 = vmatpush.bf16.msra.mxu2 %v10632_v18  ;;  %v10576_v48 = vor.u32 %v14067_v37, %v10575_v36  ;;  %v10984_v18 = vor.u32 %v14170_v11, %v10983_v8  ;;  %v10697_v22 = vld [vmem:[#allocation5 + $0xca8] sm:$0xf0]  ;;  %v10383_v53 = vld [vmem:[#allocation5 + $0xa10] sm:$0xf]  ;;  %v10132_v11 = vor.u32 %v13951_v61, %v10129_v62  ;;  %v10577_v12 = vld [vmem:[#allocation5 + $0xbb0] sm:$0xf0] }
 0x1c6   :  { %v2070_v38 = vpop.f32.mrf.mxu2  ;;  %v14086_v36 = vld [vmem:[#allocation5 + $0xc4c] sm:$0xf]  ;;  %v10831_v9 = vld [vmem:[#allocation5 + $0xd90] sm:$0xf] }
 0x1c7   :  { %3705 = vmatmul.bf16.vlgmr.msra.gmra.mxu3 %v15140_v31  ;;  %3835 = vmatmul.bf16.vlgmr.msrb.gmra.mxu1 %v15124_v26  ;;  %v10665_v37 = vld [vmem:[#allocation5 + $0xc68] sm:$0xf0]  ;;  %v14154_v38 = vld [vmem:[#allocation5 + $0xe64] sm:$0xf0]  ;;  %v14131_v10 = vld [vmem:[#allocation5 + $0xdac] sm:$0xf0] }
 0x1c8   :  { %3870 = vmatpush.bf16.msra.mxu0 %v10224_v50  ;;  %v2083_v40 = vpop.f32.mrf.mxu3  ;;  %3801 = vmatpush.bf16.msra.mxu3 %v11112_v25  ;;  %v14118_v50 = vld [vmem:[#allocation5 + $0xd4c] sm:$0xf]  ;;  %v10228_v25 = vor.u32 %v13975_v16, %v10225_v17  ;;  %v10668_v44 = vor.u32 %v14086_v36, %v10665_v37  ;;  %v10832_v16 = vor.u32 %v14131_v10, %v10831_v9  ;;  %v10327_v17 = vld [vmem:[#allocation5 + $0x998] sm:$0xf]  ;;  %v10703_v61 = vld [vmem:[#allocation5 + $0xc90] sm:$0xf] }
 0x1c9   :  { %3840 = vmatpush.bf16.msrb.mxu2 %v10860_v23  ;;  %3879 = vmatpush.bf16.msra.mxu1 %v10608_v27  ;;  %v10796_v55 = vor.u32 %v14118_v50, %v10793_v51  ;;  %v14162_v23 = vld [vmem:[#allocation5 + $0xea4] sm:$0xf0]  ;;  %v10700_v27 = vor.u32 %v14094_v21, %v10697_v22  ;;  %v14027_v40 = vld [vmem:[#allocation5 + $0xa6c] sm:$0xf0]  ;;  %v14078_v51 = vld [vmem:[#allocation5 + $0xc0c] sm:$0xf] }
 0x1ca   :  { %3796 = vmatmul.bf16.vlgmr.msra.gmra.mxu2 %v15132_v41  ;;  %v10952_v30 = vor.u32 %v14162_v23, %v10951_v20  ;;  %v14146_v50 = vld [vmem:[#allocation5 + $0xe24] sm:$0xf0]  ;;  %v11081_v8 = vld [vmem:[#allocation5 + $0xfa8] sm:$0xf0]  ;;  %v10580_v20 = vor.u32 %v14063_v13, %v10577_v12  ;;  %v10799_v22 = vld [vmem:[#allocation5 + $0xd50] sm:$0xf] }
 0x1cb   :  { %v11049_v21 = vld [vmem:[#allocation5 + $0xf68] sm:$0xf0]  ;;  %v14123_v23 = vld [vmem:[#allocation5 + $0xd6c] sm:$0xf0] }
 0x1cc   :  { %3871 = vmatpush.bf16.msra.mxu0 %v10192_v2  ;;  %3802 = vmatpush.bf16.msra.mxu3 %v11080_v47  ;;  %v11015_v2 = vld [vmem:[#allocation5 + $0xf08] sm:$0xf]  ;;  %v11017_v37 = vld [vmem:[#allocation5 + $0xf28] sm:$0xf0]  ;;  %v14099_v62 = vld [vmem:[#allocation5 + $0xcac] sm:$0xf0] }
 0x1cd   :  { %3841 = vmatpush.bf16.msrb.mxu2 %v10828_v43  ;;  %3880 = vmatpush.bf16.msra.mxu1 %v10576_v48  ;;  %v11016_v6 = vor.u32 %v14178_v59, %v11015_v2  ;;  %v10196_v43 = vor.u32 %v13967_v28, %v10193_v29  ;;  %v10887_v47 = vld [vmem:[#allocation5 + $0xe08] sm:$0xf]  ;;  %v10920_v48 = vor.u32 %v14154_v38, %v10919_v35  ;;  %v14071_v2 = vld [vmem:[#allocation5 + $0xbd4] sm:$0xf]  ;;  %v10295_v29 = vld [vmem:[#allocation5 + $0x958] sm:$0xf] }
 0x1ce   :  { %v10888_v60 = vor.u32 %v14146_v50, %v10887_v47  ;;  %v10384_v59 = vor.u32 %v14019_v54, %v10383_v53  ;;  %v10800_v28 = vor.u32 %v14123_v23, %v10799_v22  ;;  %v10767_v38 = vld [vmem:[#allocation5 + $0xd10] sm:$0xf]  ;;  %v10263_v47 = vld [vmem:[#allocation5 + $0x918] sm:$0xf]  ;;  %v14039_v54 = vld [vmem:[#allocation5 + $0xad4] sm:$0xf] }
 0x1cf   :  { %v14107_v53 = vld [vmem:[#allocation5 + $0xcec] sm:$0xf0]  ;;  %v14150_v9 = vld [vmem:[#allocation5 + $0xe4c] sm:$0xf] }
 0x1d0   :  { %3872 = vmatpush.bf16.msra.mxu0 %v10160_v14  ;;  %3803 = vmatpush.bf16.msra.mxu3 %v11048_v42  ;;  %v10260_v14 = vor.u32 %v13983_v1, %v10257_v4  ;;  %v14139_v42 = vld [vmem:[#allocation5 + $0xdec] sm:$0xf0]  ;;  %v10359_v1 = vld [vmem:[#allocation5 + $0x9d8] sm:$0xf]  ;;  %v10889_v22 = vld [vmem:[#allocation5 + $0xe28] sm:$0xf0] }
 0x1d1   :  { %3842 = vmatpush.bf16.msrb.mxu2 %v10796_v55  ;;  %3881 = vmatpush.bf16.msra.mxu1 %v10544_v58  ;;  %v10164_v55 = vor.u32 %v13959_v45, %v10161_v46  ;;  %v10636_v58 = vor.u32 %v14078_v51, %v10633_v52  ;;  %v14012_v4 = vld [vmem:[#allocation5 + $0x9f4] sm:$0xf0]  ;;  %v10985_v51 = vld [vmem:[#allocation5 + $0xee8] sm:$0xf0]  ;;  %v10735_v52 = vld [vmem:[#allocation5 + $0xcd0] sm:$0xf] }
 0x1d2   :  { %v10671_v13 = vld [vmem:[#allocation5 + $0xc50] sm:$0xf] }
 0x1d3   :  { %v14091_v12 = vld [vmem:[#allocation5 + $0xc6c] sm:$0xf0] }
 0x1d4   :  { %3873 = vmatpush.bf16.msra.mxu0 %v10128_v32  ;;  %3804 = vmatpush.bf16.msra.mxu3 %v11016_v6  ;;  %v10448_v32 = vor.u32 %v14035_v5, %v10447_v24  ;;  %v14190_v6 = vld [vmem:[#allocation5 + $0xf8c] sm:$0xf]  ;;  %v14055_v24 = vld [vmem:[#allocation5 + $0xb54] sm:$0xf]  ;;  %v10639_v23 = vld [vmem:[#allocation5 + $0xc10] sm:$0xf] }
 0x1d5   :  { %3843 = vmatpush.bf16.msrb.mxu2 %v10764_v0  ;;  %3882 = vmatpush.bf16.msra.mxu1 %v10512_v7  ;;  %v10864_v0 = vor.u32 %v14139_v42, %v10863_v57  ;;  %v10612_v7 = vor.u32 %v14071_v2, %v10609_v33  ;;  %v10545_v5 = vld [vmem:[#allocation5 + $0xb70] sm:$0xf0]  ;;  %v10736_v57 = vor.u32 %v14107_v53, %v10735_v52  ;;  %v10231_v42 = vld [vmem:[#allocation5 + $0x8d8] sm:$0xf]  ;;  %v14158_v2 = vld [vmem:[#allocation5 + $0xe8c] sm:$0xf] }
 0x1d6   :  { %v10548_v35 = vor.u32 %v14055_v24, %v10545_v5  ;;  %v11087_v52 = vld [vmem:[#allocation5 + $0xf90] sm:$0xf] }
 0x1d7   :  { %3874 = vmatmul.bf16.vlgmr.msra.gmra.mxu0 %v15119_v34  ;;  %3757 = vmatmul.bf16.vlgmr.msrb.gmra.mxu3 %v15140_v31  ;;  %v14195_v53 = vld [vmem:[#allocation5 + $0xfac] sm:$0xf0] }
 0x1d8   :  { %3918 = vmatpush.bf16.msrb.mxu0 %v10356_v39  ;;  %3805 = vmatpush.bf16.msra.mxu3 %v10984_v18  ;;  %v10415_v39 = vld [vmem:[#allocation5 + $0xa50] sm:$0xf]  ;;  %v14004_v18 = vld [vmem:[#allocation5 + $0x9b4] sm:$0xf0] }
 0x1d9   :  { %3844 = vmatpush.bf16.msrb.mxu2 %v10732_v15  ;;  %3883 = vmatpush.bf16.msra.mxu1 %v10480_v19  ;;  %v10416_v49 = vor.u32 %v14027_v40, %v10415_v39  ;;  %v11084_v15 = vor.u32 %v14190_v6, %v11081_v8  ;;  %v14182_v19 = vld [vmem:[#allocation5 + $0xf4c] sm:$0xf]  ;;  %v14115_v39 = vld [vmem:[#allocation5 + $0xd2c] sm:$0xf0]  ;;  %v14047_v40 = vld [vmem:[#allocation5 + $0xb14] sm:$0xf]  ;;  %v10704_v6 = vor.u32 %v14099_v62, %v10703_v61 }
 0x1da   :  { %v10768_v46 = vor.u32 %v14115_v39, %v10767_v38  ;;  %v13972_v8 = vld [vmem:[#allocation5 + $0x8b4] sm:$0xf0] }
 0x1db   :  { %v10615_v38 = vld [vmem:[#allocation5 + $0xbd8] sm:$0xf] }
 0x1dc   :  { %3919 = vmatpush.bf16.msrb.mxu0 %v10324_v3  ;;  %3806 = vmatpush.bf16.msra.mxu3 %v10952_v30  ;;  %v14198_v3 = vld [vmem:[#allocation5 + $0xfcc] sm:$0xf]  ;;  %v13996_v30 = vld [vmem:[#allocation5 + $0x974] sm:$0xf0] }
 0x1dd   :  { %3845 = vmatpush.bf16.msrb.mxu2 %v10700_v27  ;;  %3884 = vmatpush.bf16.msra.mxu1 %v10448_v32  ;;  %v11052_v27 = vor.u32 %v14182_v19, %v11049_v21  ;;  %v14174_v32 = vld [vmem:[#allocation5 + $0xf0c] sm:$0xf]  ;;  %v14076_v39 = vld [vmem:[#allocation5 + $0xbf4] sm:$0xf0] }
 0x1de   :  { %v11020_v45 = vor.u32 %v14174_v32, %v11017_v37  ;;  %v14142_v21 = vld [vmem:[#allocation5 + $0xe0c] sm:$0xf]  ;;  %v14135_v32 = vld [vmem:[#allocation5 + $0xdd4] sm:$0xf] }
 0x1df   :  { %v10865_v37 = vld [vmem:[#allocation5 + $0xdf0] sm:$0xf0] }
 0x1e0   :  { %3920 = vmatpush.bf16.msrb.mxu0 %v10292_v63  ;;  %3807 = vmatpush.bf16.msra.mxu3 %v10920_v48  ;;  %v11116_v63 = vor.u32 %v14198_v3, %v11113_v56  ;;  %v13988_v48 = vld [vmem:[#allocation5 + $0x934] sm:$0xf0]  ;;  %v10481_v3 = vld [vmem:[#allocation5 + $0xaf0] sm:$0xf0] }
 0x1e1   :  { %3846 = vmatpush.bf16.msrb.mxu2 %v10668_v44  ;;  %3885 = vmatpush.bf16.msra.mxu1 %v10416_v49  ;;  %v10296_v44 = vor.u32 %v13996_v30, %v10295_v29  ;;  %v14166_v49 = vld [vmem:[#allocation5 + $0xecc] sm:$0xf]  ;;  %v10484_v33 = vor.u32 %v14039_v54, %v10481_v3  ;;  %v11119_v29 = vld [vmem:[#allocation5 + $0xfd0] sm:$0xf]  ;;  %v14127_v54 = vld [vmem:[#allocation5 + $0xd94] sm:$0xf] }
 0x1e2   :  { %v10988_v56 = vor.u32 %v14166_v49, %v10985_v51  ;;  %v14203_v30 = vld [vmem:[#allocation5 + $0xfec] sm:$0xf0]  ;;  %v10361_v49 = vld [vmem:[#allocation5 + $0x9f8] sm:$0xf0]  ;;  %v10616_v51 = vor.u32 %v14076_v39, %v10615_v38  ;;  %v10833_v3 = vld [vmem:[#allocation5 + $0xdb0] sm:$0xf0] }
 0x1e3   :  { %v10836_v61 = vor.u32 %v14127_v54, %v10833_v3  ;;  %v14044_v38 = vld [vmem:[#allocation5 + $0xaf4] sm:$0xf0] }
 0x1e4   :  { %3921 = vmatpush.bf16.msrb.mxu0 %v10260_v14  ;;  %3808 = vmatpush.bf16.msra.mxu3 %v10888_v60  ;;  %v10360_v14 = vor.u32 %v14012_v4, %v10359_v1  ;;  %v15151_v36 = vpop.f32.mrf.mxu0  ;;  %v14036_v54 = vld [vmem:[#allocation5 + $0xab4] sm:$0xf0] }
 0x1e5   :  { %3847 = vmatpush.bf16.msrb.mxu2 %v10636_v58  ;;  %3886 = vmatpush.bf16.msra.mxu1 %v10384_v59  ;;  %v13980_v58 = vld [vmem:[#allocation5 + $0x8f4] sm:$0xf0]  ;;  %v10953_v59 = vld [vmem:[#allocation5 + $0xea8] sm:$0xf0] }
 0x1e6   :  { %v10232_v1 = vor.u32 %v13980_v58, %v10231_v42  ;;  %v10956_v4 = vor.u32 %v14158_v2, %v10953_v59  ;;  %v3642_v42 = vld.sshfl [vmem:[#allocation1] sm:$0xff pattern:$0x73625140]  ;;  %v10329_v59 = vld [vmem:[#allocation5 + $0x9b8] sm:$0xf0] }
 0x1e7   :  { %3809 = vmatmul.bf16.vlgmr.msra.gmra.mxu3 %v15140_v31  ;;  %v3643_v3 = vld.sshfl [vmem:[#allocation1 + $0x8] sm:$0xff pattern:$0x73625140] }
 0x1e8   :  { %3922 = vmatpush.bf16.msrb.mxu0 %v10228_v25  ;;  %3853 = vmatpush.bf16.msrb.mxu3 %v11116_v63  ;;  %v10328_v25 = vor.u32 %v14004_v18, %v10327_v17  ;;  %v14031_v63 = vld [vmem:[#allocation5 + $0xa94] sm:$0xf]  ;;  %v10167_v17 = vld [vmem:[#allocation5 + $0x858] sm:$0xf] }
 0x1e9   :  { %3892 = vmatpush.bf16.msra.mxu2 %v10864_v0  ;;  %3931 = vmatpush.bf16.msrb.mxu1 %v10612_v7  ;;  %v10449_v0 = vld [vmem:[#allocation5 + $0xab0] sm:$0xf0]  ;;  %v10199_v7 = vld [vmem:[#allocation5 + $0x898] sm:$0xf] }
 0x1ea   :  { %3848 = vmatmul.bf16.vlgmr.msrb.gmra.mxu2 %v15132_v41  ;;  %3887 = vmatmul.bf16.vlgmr.msra.gmra.mxu1 %v15124_v26  ;;  %v10452_v10 = vor.u32 %v14031_v63, %v10449_v0  ;;  %v13964_v18 = vld [vmem:[#allocation5 + $0x874] sm:$0xf0]  ;;  %v11055_v63 = vld [vmem:[#allocation5 + $0xf50] sm:$0xf] }
 0x1eb   :  { %v14187_v0 = vld [vmem:[#allocation5 + $0xf6c] sm:$0xf0] }
 0x1ec   :  { %3923 = vmatpush.bf16.msrb.mxu0 %v10196_v43  ;;  %3854 = vmatpush.bf16.msrb.mxu3 %v11084_v15  ;;  %v10513_v43 = vld [vmem:[#allocation5 + $0xb30] sm:$0xf0]  ;;  %v3669_v60 = vpop.f32.mrf.mxu0 }
 0x1ed   :  { %3893 = vmatpush.bf16.msra.mxu2 %v10832_v16  ;;  %3932 = vmatpush.bf16.msrb.mxu1 %v10580_v20  ;;  %v10516_v50 = vor.u32 %v14047_v40, %v10513_v43  ;;  %v10417_v15 = vld [vmem:[#allocation5 + $0xa70] sm:$0xf0]  ;;  %v10200_v16 = vor.u32 %v13972_v8, %v10199_v7  ;;  %v10672_v20 = vor.u32 %v14091_v12, %v10671_v13  ;;  %v14000_v60 = vld [vmem:[#allocation5 + $0x99c] sm:$0xf]  ;;  %v14060_v7 = vld [vmem:[#allocation5 + $0xb74] sm:$0xf0] }
 0x1ee   :  { %v10892_v40 = vor.u32 %v14142_v21, %v10889_v22  ;;  %v10332_v8 = vor.u32 %v14000_v60, %v10329_v59  ;;  %v3668_v13 = vadd.f32 %v15151_v36, %v3642_v42  ;;  %v14052_v21 = vld [vmem:[#allocation5 + $0xb34] sm:$0xf0]  ;;  %v13984_v36 = vld [vmem:[#allocation5 + $0x91c] sm:$0xf]  ;;  %v14155_v60 = vld [vmem:[#allocation5 + $0xe6c] sm:$0xf0] }
 0x1ef   :  { %v10201_v42 = vld [vmem:[#allocation5 + $0x8b8] sm:$0xf0]  ;;  %v14087_v59 = vld [vmem:[#allocation5 + $0xc54] sm:$0xf] }
 0x1f0   :  { %3924 = vmatpush.bf16.msrb.mxu0 %v10164_v55  ;;  %3855 = vmatpush.bf16.msrb.mxu3 %v11052_v27  ;;  %v10264_v55 = vor.u32 %v13988_v48, %v10263_v47  ;;  %v14015_v27 = vld [vmem:[#allocation5 + $0xa14] sm:$0xf]  ;;  %v13956_v47 = vld [vmem:[#allocation5 + $0x834] sm:$0xf0]  ;;  %v14008_v48 = vld [vmem:[#allocation5 + $0x9dc] sm:$0xf] }
 0x1f1   :  { %3894 = vmatpush.bf16.msra.mxu2 %v10800_v28  ;;  %3933 = vmatpush.bf16.msrb.mxu1 %v10548_v35  ;;  %v10385_v28 = vld [vmem:[#allocation5 + $0xa30] sm:$0xf0]  ;;  %v10168_v35 = vor.u32 %v13964_v18, %v10167_v17  ;;  %v10364_v58 = vor.u32 %v14008_v48, %v10361_v49  ;;  %v10959_v48 = vld [vmem:[#allocation5 + $0xe90] sm:$0xf] }
 0x1f2   :  { %v14111_v17 = vld [vmem:[#allocation5 + $0xd14] sm:$0xf]  ;;  %v14163_v49 = vld [vmem:[#allocation5 + $0xeac] sm:$0xf0] }
 0x1f4   :  { %3925 = vmatpush.bf16.msrb.mxu0 %v10132_v11  ;;  %3856 = vmatpush.bf16.msrb.mxu3 %v11020_v45  ;;  %v10921_v11 = vld [vmem:[#allocation5 + $0xe68] sm:$0xf0]  ;;  %v15153_v5 = vpop.f32.mrf.mxu0  ;;  %v10388_v45 = vor.u32 %v14015_v27, %v10385_v28 }
 0x1f5   :  { %3895 = vmatpush.bf16.msra.mxu2 %v10768_v46  ;;  %3934 = vmatpush.bf16.msrb.mxu1 %v10516_v50  ;;  %v10924_v19 = vor.u32 %v14150_v9, %v10921_v11  ;;  %v11120_v46 = vor.u32 %v14203_v30, %v11119_v29  ;;  %v10868_v50 = vor.u32 %v14135_v32, %v10865_v37  ;;  %v10297_v11 = vld [vmem:[#allocation5 + $0x978] sm:$0xf0]  ;;  %v10991_v29 = vld [vmem:[#allocation5 + $0xed0] sm:$0xf]  ;;  %v14103_v32 = vld [vmem:[#allocation5 + $0xcd4] sm:$0xf] }
 0x1f6   :  { %v11056_v9 = vor.u32 %v14187_v0, %v11055_v63  ;;  %v14171_v30 = vld [vmem:[#allocation5 + $0xeec] sm:$0xf0]  ;;  %v10487_v37 = vld [vmem:[#allocation5 + $0xad8] sm:$0xf] }
 0x1f7   :  { %3926 = vmatmul.bf16.vlgmr.msrb.gmra.mxu0 %v15119_v34  ;;  %v14028_v63 = vld [vmem:[#allocation5 + $0xa74] sm:$0xf0] }
 0x1f8   :  { %3970 = vmatpush.bf16.msra.mxu0 %v10360_v14  ;;  %3857 = vmatpush.bf16.msrb.mxu3 %v10988_v56  ;;  %v14023_v14 = vld [vmem:[#allocation5 + $0xa54] sm:$0xf]  ;;  %v14068_v56 = vld [vmem:[#allocation5 + $0xbb4] sm:$0xf0] }
 0x1f9   :  { %3896 = vmatpush.bf16.msra.mxu2 %v10736_v57  ;;  %3935 = vmatpush.bf16.msrb.mxu1 %v10484_v33  ;;  %v10420_v24 = vor.u32 %v14023_v14, %v10417_v15  ;;  %v11088_v33 = vor.u32 %v14195_v53, %v11087_v52  ;;  %v11023_v15 = vld [vmem:[#allocation5 + $0xf10] sm:$0xf]  ;;  %v10705_v52 = vld [vmem:[#allocation5 + $0xcb0] sm:$0xf0]  ;;  %v10455_v53 = vld [vmem:[#allocation5 + $0xa98] sm:$0xf] }
 0x1fc   :  { %3971 = vmatpush.bf16.msra.mxu0 %v10328_v25  ;;  %3858 = vmatpush.bf16.msrb.mxu3 %v10956_v4  ;;  %v14083_v25 = vld [vmem:[#allocation5 + $0xc2c] sm:$0xf0]  ;;  %v3721_v2 = vpop.f32.mrf.mxu0  ;;  %v10801_v4 = vld [vmem:[#allocation5 + $0xd70] sm:$0xf0] }
 0x1fd   :  { %3897 = vmatpush.bf16.msra.mxu2 %v10704_v6  ;;  %3936 = vmatpush.bf16.msrb.mxu1 %v10452_v10  ;;  %v10640_v43 = vor.u32 %v14083_v25, %v10639_v23  ;;  %v10551_v6 = vld [vmem:[#allocation5 + $0xb58] sm:$0xf]  ;;  %v13992_v10 = vld [vmem:[#allocation5 + $0x95c] sm:$0xf]  ;;  %v10456_v2 = vor.u32 %v14036_v54, %v10455_v53  ;;  %v11057_v53 = vld [vmem:[#allocation5 + $0xf70] sm:$0xf0] }
 0x1fe   :  { %v10552_v14 = vor.u32 %v14060_v7, %v10551_v6  ;;  %v10300_v23 = vor.u32 %v13992_v10, %v10297_v11  ;;  %v10265_v25 = vld [vmem:[#allocation5 + $0x938] sm:$0xf0]  ;;  %v10895_v7 = vld [vmem:[#allocation5 + $0xe10] sm:$0xf]  ;;  %v10807_v54 = vld [vmem:[#allocation5 + $0xd58] sm:$0xf] }
 0x1ff   :  { %v10268_v39 = vor.u32 %v13984_v36, %v10265_v25  ;;  %v10169_v6 = vld [vmem:[#allocation5 + $0x878] sm:$0xf0] }
 0x200   :  { %3972 = vmatpush.bf16.msra.mxu0 %v10296_v44  ;;  %3859 = vmatpush.bf16.msrb.mxu3 %v10924_v19  ;;  %v10135_v44 = vld [vmem:[#allocation5 + $0x818] sm:$0xf]  ;;  %v10769_v19 = vld [vmem:[#allocation5 + $0xd30] sm:$0xf0]  ;;  %v14072_v36 = vld [vmem:[#allocation5 + $0xbdc] sm:$0xf] }
 0x201   :  { %3898 = vmatpush.bf16.msra.mxu2 %v10672_v20  ;;  %3937 = vmatpush.bf16.msrb.mxu1 %v10420_v24  ;;  %v10136_v57 = vor.u32 %v13956_v47, %v10135_v44  ;;  %v10519_v20 = vld [vmem:[#allocation5 + $0xb18] sm:$0xf]  ;;  %v10772_v27 = vor.u32 %v14111_v17, %v10769_v19  ;;  %v10233_v44 = vld [vmem:[#allocation5 + $0x8f8] sm:$0xf0]  ;;  %v10488_v47 = vor.u32 %v14044_v38, %v10487_v37  ;;  %v14191_v37 = vld [vmem:[#allocation5 + $0xf94] sm:$0xf] }
 0x202   :  { %v10520_v28 = vor.u32 %v14052_v21, %v10519_v20  ;;  %v14020_v17 = vld [vmem:[#allocation5 + $0xa34] sm:$0xf0]  ;;  %v11121_v20 = vld [vmem:[#allocation5 + $0xff0] sm:$0xf0]  ;;  %v10617_v25 = vld [vmem:[#allocation5 + $0xbf8] sm:$0xf0] }
 0x203   :  { %v10871_v21 = vld [vmem:[#allocation5 + $0xdd8] sm:$0xf]  ;;  %v10620_v38 = vor.u32 %v14072_v36, %v10617_v25  ;;  %v10457_v36 = vld [vmem:[#allocation5 + $0xab8] sm:$0xf0] }
 0x204   :  { %3973 = vmatpush.bf16.msra.mxu0 %v10264_v55  ;;  %v10583_v55 = vld [vmem:[#allocation5 + $0xb98] sm:$0xf]  ;;  %3860 = vmatpush.bf16.msrb.mxu3 %v10892_v40  ;;  %v3680_v18 = vpop.f32.mrf.mxu1  ;;  %v10992_v40 = vor.u32 %v14171_v30, %v10991_v29 }
 0x205   :  { %3899 = vmatpush.bf16.msra.mxu2 %v10640_v43  ;;  %3938 = vmatpush.bf16.msrb.mxu1 %v10388_v45  ;;  %v10584_v62 = vor.u32 %v14068_v56, %v10583_v55  ;;  %v15160_v22 = vadd.f32 %v3680_v18, %v3668_v13  ;;  %v13976_v43 = vld [vmem:[#allocation5 + $0x8dc] sm:$0xf]  ;;  %v10960_v56 = vor.u32 %v14163_v49, %v10959_v48  ;;  %v14147_v13 = vld [vmem:[#allocation5 + $0xe2c] sm:$0xf0]  ;;  %v14199_v18 = vld [vmem:[#allocation5 + $0xfd4] sm:$0xf] }
 0x206   :  { %v10236_v55 = vor.u32 %v13976_v43, %v10233_v44  ;;  %v11124_v29 = vor.u32 %v14199_v18, %v11121_v20  ;;  %v14132_v43 = vld [vmem:[#allocation5 + $0xdb4] sm:$0xf0]  ;;  %v14064_v44 = vld [vmem:[#allocation5 + $0xb9c] sm:$0xf] }
 0x207   :  { %3861 = vmatmul.bf16.vlgmr.msrb.gmra.mxu3 %v15140_v31 }
 0x208   :  { %3974 = vmatpush.bf16.msra.mxu0 %v10232_v1  ;;  %3905 = vmatpush.bf16.msra.mxu3 %v11120_v46  ;;  %v14119_v1 = vld [vmem:[#allocation5 + $0xd54] sm:$0xf] }
 0x209   :  { %3944 = vmatpush.bf16.msrb.mxu2 %v10868_v50  ;;  %3983 = vmatpush.bf16.msra.mxu1 %v10616_v51  ;;  %v10804_v12 = vor.u32 %v14119_v1, %v10801_v4  ;;  %v14095_v50 = vld [vmem:[#allocation5 + $0xc94] sm:$0xf]  ;;  %v13960_v4 = vld [vmem:[#allocation5 + $0x85c] sm:$0xf] }
 0x20a   :  { %3900 = vmatmul.bf16.vlgmr.msra.gmra.mxu2 %v15132_v41  ;;  %3939 = vmatmul.bf16.vlgmr.msrb.gmra.mxu1 %v15124_v26 }
 0x20c   :  { %3975 = vmatpush.bf16.msra.mxu0 %v10200_v16  ;;  %3906 = vmatpush.bf16.msra.mxu3 %v11088_v33  ;;  %v14179_v16 = vld [vmem:[#allocation5 + $0xf2c] sm:$0xf0]  ;;  %v3682_v51 = vpop.f32.mrf.mxu1 }
 0x20d   :  { %3945 = vmatpush.bf16.msrb.mxu2 %v10836_v61  ;;  %3984 = vmatpush.bf16.msra.mxu1 %v10584_v62  ;;  %v11024_v24 = vor.u32 %v14179_v16, %v11023_v15  ;;  %v10927_v33 = vld [vmem:[#allocation5 + $0xe50] sm:$0xf]  ;;  %v10673_v61 = vld [vmem:[#allocation5 + $0xc70] sm:$0xf0]  ;;  %v10423_v62 = vld [vmem:[#allocation5 + $0xa58] sm:$0xf] }
 0x20e   :  { %v10928_v1 = vor.u32 %v14155_v60, %v10927_v33  ;;  %v10676_v10 = vor.u32 %v14087_v59, %v10673_v61  ;;  %v10424_v11 = vor.u32 %v14028_v63, %v10423_v62  ;;  %v10391_v16 = vld [vmem:[#allocation5 + $0xa18] sm:$0xf]  ;;  %v14183_v51 = vld [vmem:[#allocation5 + $0xf54] sm:$0xf]  ;;  %v14048_v62 = vld [vmem:[#allocation5 + $0xb1c] sm:$0xf] }
 0x20f   :  { %v11025_v60 = vld [vmem:[#allocation5 + $0xf30] sm:$0xf0]  ;;  %v10775_v59 = vld [vmem:[#allocation5 + $0xd18] sm:$0xf]  ;;  %v10521_v63 = vld [vmem:[#allocation5 + $0xb38] sm:$0xf0] }
 0x210   :  { %3976 = vmatpush.bf16.msra.mxu0 %v10168_v35  ;;  %3907 = vmatpush.bf16.msra.mxu3 %v11056_v9  ;;  %v10737_v35 = vld [vmem:[#allocation5 + $0xcf0] sm:$0xf0]  ;;  %v14116_v61 = vld [vmem:[#allocation5 + $0xd34] sm:$0xf0] }
 0x211   :  { %3946 = vmatpush.bf16.msrb.mxu2 %v10804_v12  ;;  %3985 = vmatpush.bf16.msra.mxu1 %v10552_v14  ;;  %v10740_v46 = vor.u32 %v14103_v32, %v10737_v35  ;;  %v14079_v12 = vld [vmem:[#allocation5 + $0xc14] sm:$0xf]  ;;  %v13952_v32 = vld [vmem:[#allocation5 + $0x81c] sm:$0xf] }
 0x212   :  { %v10641_v14 = vld [vmem:[#allocation5 + $0xc30] sm:$0xf0]  ;;  %v10137_v35 = vld [vmem:[#allocation5 + $0x838] sm:$0xf0] }
 0x214   :  { %3977 = vmatpush.bf16.msra.mxu0 %v10136_v57  ;;  %3908 = vmatpush.bf16.msra.mxu3 %v11024_v24  ;;  %v15162_v45 = vpop.f32.mrf.mxu0  ;;  %v13968_v57 = vld [vmem:[#allocation5 + $0x89c] sm:$0xf]  ;;  %v3732_v15 = vpop.f32.mrf.mxu1  ;;  %v10896_v24 = vor.u32 %v14147_v13, %v10895_v7  ;;  %v14167_v7 = vld [vmem:[#allocation5 + $0xed4] sm:$0xf]  ;;  %v14108_v13 = vld [vmem:[#allocation5 + $0xcf4] sm:$0xf0] }
 0x215   :  { %3947 = vmatpush.bf16.msrb.mxu2 %v10772_v27  ;;  %3986 = vmatpush.bf16.msra.mxu1 %v10520_v28  ;;  %v10204_v0 = vor.u32 %v13968_v57, %v10201_v42  ;;  %v10644_v27 = vor.u32 %v14079_v12, %v10641_v14  ;;  %v10392_v28 = vor.u32 %v14020_v17, %v10391_v16  ;;  %v3644_v57 = vld.sshfl [vmem:[#allocation1 + $0x10] sm:$0xff pattern:$0x73625140]  ;;  %v14040_v12 = vld [vmem:[#allocation5 + $0xadc] sm:$0xf] }
 0x216   :  { %v11060_v42 = vor.u32 %v14183_v51, %v11057_v53  ;;  %v10489_v14 = vld [vmem:[#allocation5 + $0xaf8] sm:$0xf0]  ;;  %v14159_v17 = vld [vmem:[#allocation5 + $0xe94] sm:$0xf]  ;;  %v11127_v53 = vld [vmem:[#allocation5 + $0xfd8] sm:$0xf] }
 0x217   :  { %3978 = vmatmul.bf16.vlgmr.msra.gmra.mxu0 %v15119_v34  ;;  %v10492_v20 = vor.u32 %v14040_v12, %v10489_v14  ;;  %v14016_v51 = vld [vmem:[#allocation5 + $0xa1c] sm:$0xf]  ;;  %v14180_v12 = vld [vmem:[#allocation5 + $0xf34] sm:$0xf0] }
 0x218   :  { %4022 = vmatpush.bf16.msrb.mxu0 %v10364_v58  ;;  %3909 = vmatpush.bf16.msra.mxu3 %v10992_v40  ;;  %v10708_v58 = vor.u32 %v14095_v50, %v10705_v52  ;;  %v10839_v40 = vld [vmem:[#allocation5 + $0xd98] sm:$0xf]  ;;  %v14112_v14 = vld [vmem:[#allocation5 + $0xd1c] sm:$0xf] }
 0x219   :  { %3948 = vmatpush.bf16.msrb.mxu2 %v10740_v46  ;;  %3987 = vmatpush.bf16.msra.mxu1 %v10488_v47  ;;  %v10585_v46 = vld [vmem:[#allocation5 + $0xbb8] sm:$0xf0]  ;;  %v10140_v47 = vor.u32 %v13952_v32, %v10137_v35  ;;  %v10840_v50 = vor.u32 %v14132_v43, %v10839_v40  ;;  %v10929_v32 = vld [vmem:[#allocation5 + $0xe70] sm:$0xf0]  ;;  %v10679_v35 = vld [vmem:[#allocation5 + $0xc58] sm:$0xf] }
 0x21a   :  { %v10588_v52 = vor.u32 %v14064_v44, %v10585_v46  ;;  %v14143_v46 = vld [vmem:[#allocation5 + $0xe14] sm:$0xf] }
 0x21c   :  { %4023 = vmatpush.bf16.msrb.mxu0 %v10332_v8  ;;  %3910 = vmatpush.bf16.msra.mxu3 %v10960_v56  ;;  %v3720_v8 = vadd.f32 %v15153_v5, %v3643_v3  ;;  %v3773_v9 = vpop.f32.mrf.mxu0  ;;  %v10172_v5 = vor.u32 %v13960_v4, %v10169_v6  ;;  %v3734_v48 = vpop.f32.mrf.mxu1  ;;  %v14124_v3 = vld [vmem:[#allocation5 + $0xd74] sm:$0xf0]  ;;  %v10553_v56 = vld [vmem:[#allocation5 + $0xb78] sm:$0xf0]  ;;  %v10776_v6 = vor.u32 %v14116_v61, %v10775_v59 }
 0x21d   :  { %3949 = vmatpush.bf16.msrb.mxu2 %v10708_v58  ;;  %3988 = vmatpush.bf16.msra.mxu1 %v10456_v2  ;;  %v10808_v58 = vor.u32 %v14124_v3, %v10807_v54  ;;  %v14175_v2 = vld [vmem:[#allocation5 + $0xf14] sm:$0xf]  ;;  %v10524_v9 = vor.u32 %v14048_v62, %v10521_v63  ;;  %v14204_v54 = vld [vmem:[#allocation5 + $0xff4] sm:$0xf0]  ;;  %v14136_v3 = vld [vmem:[#allocation5 + $0xddc] sm:$0xf] }
 0x21e   :  { %v15165_v19 = vadd.f32 %v3732_v15, %v3720_v8  ;;  %v11028_v4 = vor.u32 %v14175_v2, %v11025_v60  ;;  %v14196_v60 = vld [vmem:[#allocation5 + $0xfb4] sm:$0xf0]  ;;  %v14128_v59 = vld [vmem:[#allocation5 + $0xd9c] sm:$0xf] }
 0x21f   :  { %v10841_v61 = vld [vmem:[#allocation5 + $0xdb8] sm:$0xf0] }
 0x220   :  { %4024 = vmatpush.bf16.msrb.mxu0 %v10300_v23  ;;  %v14140_v23 = vld [vmem:[#allocation5 + $0xdf4] sm:$0xf0]  ;;  %3911 = vmatpush.bf16.msra.mxu3 %v10928_v1 }
 0x221   :  { %3950 = vmatpush.bf16.msrb.mxu2 %v10676_v10  ;;  %3989 = vmatpush.bf16.msra.mxu1 %v10424_v11  ;;  %v10872_v30 = vor.u32 %v14140_v23, %v10871_v21  ;;  %v10993_v10 = vld [vmem:[#allocation5 + $0xef0] sm:$0xf0]  ;;  %v10743_v11 = vld [vmem:[#allocation5 + $0xcd8] sm:$0xf] }
 0x222   :  { %v10996_v15 = vor.u32 %v14167_v7, %v10993_v10  ;;  %v10744_v16 = vor.u32 %v14108_v13, %v10743_v11  ;;  %v10961_v21 = vld [vmem:[#allocation5 + $0xeb0] sm:$0xf0]  ;;  %v10711_v23 = vld [vmem:[#allocation5 + $0xc98] sm:$0xf]  ;;  %v14120_v7 = vld [vmem:[#allocation5 + $0xd5c] sm:$0xf] }
 0x223   :  { %v3645_v10 = vld.sshfl [vmem:[#allocation1 + $0x18] sm:$0xff pattern:$0x73625140] }
 0x224   :  { %4025 = vmatpush.bf16.msrb.mxu0 %v10268_v39  ;;  %v11089_v39 = vld [vmem:[#allocation5 + $0xfb0] sm:$0xf0]  ;;  %3912 = vmatpush.bf16.msra.mxu3 %v10896_v24  ;;  %v3784_v1 = vpop.f32.mrf.mxu1  ;;  %v14032_v24 = vld [vmem:[#allocation5 + $0xa9c] sm:$0xf] }
 0x225   :  { %3951 = vmatpush.bf16.msrb.mxu2 %v10644_v27  ;;  %3990 = vmatpush.bf16.msra.mxu1 %v10392_v28  ;;  %v11092_v49 = vor.u32 %v14191_v37, %v11089_v39  ;;  %v10964_v27 = vor.u32 %v14159_v17, %v10961_v21  ;;  %v14092_v37 = vld [vmem:[#allocation5 + $0xc74] sm:$0xf0] }
 0x226   :  { %v10680_v44 = vor.u32 %v14092_v37, %v10679_v35  ;;  %v14096_v35 = vld [vmem:[#allocation5 + $0xc9c] sm:$0xf] }
 0x227   :  { %3913 = vmatmul.bf16.vlgmr.msra.gmra.mxu3 %v15140_v31  ;;  %v10713_v37 = vld [vmem:[#allocation5 + $0xcb8] sm:$0xf0] }
 0x228   :  { %4026 = vmatpush.bf16.msrb.mxu0 %v10236_v55  ;;  %3957 = vmatpush.bf16.msrb.mxu3 %v11124_v29  ;;  %v14056_v55 = vld [vmem:[#allocation5 + $0xb5c] sm:$0xf]  ;;  %v14151_v29 = vld [vmem:[#allocation5 + $0xe54] sm:$0xf] }
 0x229   :  { %3996 = vmatpush.bf16.msra.mxu2 %v10872_v30  ;;  %4035 = vmatpush.bf16.msrb.mxu1 %v10620_v38  ;;  %v10556_v33 = vor.u32 %v14056_v55, %v10553_v56  ;;  %v10460_v30 = vor.u32 %v14032_v24, %v10457_v36  ;;  %v14024_v38 = vld [vmem:[#allocation5 + $0xa5c] sm:$0xf]  ;;  %v10932_v43 = vor.u32 %v14151_v29, %v10929_v32 }
 0x22a   :  { %3952 = vmatmul.bf16.vlgmr.msrb.gmra.mxu2 %v15132_v41  ;;  %3991 = vmatmul.bf16.vlgmr.msra.gmra.mxu1 %v15124_v26  ;;  %v10873_v55 = vld [vmem:[#allocation5 + $0xdf8] sm:$0xf0] }
 0x22b   :  { %v10876_v2 = vor.u32 %v14136_v3, %v10873_v55  ;;  %v14104_v24 = vld [vmem:[#allocation5 + $0xcdc] sm:$0xf]  ;;  %v10903_v3 = vld [vmem:[#allocation5 + $0xe18] sm:$0xf] }
 0x22c   :  { %4027 = vmatpush.bf16.msrb.mxu0 %v10204_v0  ;;  %3958 = vmatpush.bf16.msrb.mxu3 %v11092_v49  ;;  %v3772_v0 = vadd.f32 %v15162_v45, %v3644_v57  ;;  %v3693_v45 = vpop.f32.mrf.mxu2  ;;  %v3786_v25 = vpop.f32.mrf.mxu1  ;;  %v10647_v49 = vld [vmem:[#allocation5 + $0xc18] sm:$0xf]  ;;  %v10745_v36 = vld [vmem:[#allocation5 + $0xcf8] sm:$0xf0] }
 0x22d   :  { %3997 = vmatpush.bf16.msra.mxu2 %v10840_v50  ;;  %4036 = vmatpush.bf16.msrb.mxu1 %v10588_v52  ;;  %v15177_v18 = vadd.f32 %v3693_v45, %v15160_v22  ;;  %v10425_v22 = vld [vmem:[#allocation5 + $0xa78] sm:$0xf0]  ;;  %v14084_v50 = vld [vmem:[#allocation5 + $0xc34] sm:$0xf0]  ;;  %v10748_v29 = vor.u32 %v14104_v24, %v10745_v36 }
 0x22e   :  { %v15172_v8 = vadd.f32 %v3784_v1, %v3772_v0  ;;  %v10428_v48 = vor.u32 %v14024_v38, %v10425_v22  ;;  %v10393_v52 = vld [vmem:[#allocation5 + $0xa38] sm:$0xf0]  ;;  %v10648_v57 = vor.u32 %v14084_v50, %v10647_v49  ;;  %v10844_v1 = vor.u32 %v14128_v59, %v10841_v61  ;;  %v11191_v49 = vld [vmem:[#allocation8 + $0x70] sm:$0xf]  ;;  %v14220_v50 = vld [vmem:[#allocation8 + $0x74] sm:$0xf0] }
 0x22f   :  { %v10777_v45 = vld [vmem:[#allocation5 + $0xd38] sm:$0xf0]  ;;  %v14148_v55 = vld [vmem:[#allocation5 + $0xe34] sm:$0xf0] }
 0x230   :  { %4028 = vmatpush.bf16.msrb.mxu0 %v10172_v5  ;;  %3959 = vmatpush.bf16.msrb.mxu3 %v11060_v42  ;;  %v14100_v5 = vld [vmem:[#allocation5 + $0xcb4] sm:$0xf0]  ;;  %v10396_v42 = vor.u32 %v14016_v51, %v10393_v52  ;;  %v10780_v21 = vor.u32 %v14112_v14, %v10777_v45  ;;  %v11192_v51 = vor.u32 %v14220_v50, %v11191_v49  ;;  %v11065_v14 = vld [vmem:[#allocation5 + $0xf78] sm:$0xf0] }
 0x231   :  { %3998 = vmatpush.bf16.msra.mxu2 %v10808_v58  ;;  %4037 = vmatpush.bf16.msrb.mxu1 %v10556_v33  ;;  %v10712_v28 = vor.u32 %v14100_v5, %v10711_v23  ;;  %v11128_v58 = vor.u32 %v14204_v54, %v11127_v53  ;;  %v11095_v33 = vld [vmem:[#allocation5 + $0xf98] sm:$0xf]  ;;  %v14168_v24 = vld [vmem:[#allocation5 + $0xedc] sm:$0xf] }
 0x232   :  { %v11096_v0 = vor.u32 %v14196_v60, %v11095_v33  ;;  %v10999_v23 = vld [vmem:[#allocation5 + $0xed8] sm:$0xf]  ;;  %v10904_v60 = vor.u32 %v14148_v55, %v10903_v3  ;;  %v11001_v36 = vld [vmem:[#allocation5 + $0xef8] sm:$0xf0]  ;;  %v14219_v55 = vld [vmem:[#allocation8 + $0x74] sm:$0xf] }
 0x233   :  { %v14172_v5 = vld [vmem:[#allocation5 + $0xef4] sm:$0xf0]  ;;  %v10937_v49 = vld [vmem:[#allocation5 + $0xe78] sm:$0xf0] }
 0x234   :  { %4029 = vmatpush.bf16.msrb.mxu0 %v10140_v47  ;;  %3960 = vmatpush.bf16.msrb.mxu3 %v11028_v4  ;;  %v3695_v40 = vpop.f32.mrf.mxu2  ;;  %v10897_v47 = vld [vmem:[#allocation5 + $0xe30] sm:$0xf0]  ;;  %v11063_v4 = vld [vmem:[#allocation5 + $0xf58] sm:$0xf]  ;;  %v11000_v25 = vor.u32 %v14172_v5, %v10999_v23 }
 0x235   :  { %3999 = vmatpush.bf16.msra.mxu2 %v10776_v6  ;;  %4038 = vmatpush.bf16.msrb.mxu1 %v10524_v9  ;;  %v10900_v56 = vor.u32 %v14143_v46, %v10897_v47  ;;  %v14188_v6 = vld [vmem:[#allocation5 + $0xf74] sm:$0xf0]  ;;  %v10809_v9 = vld [vmem:[#allocation5 + $0xd78] sm:$0xf0] }
 0x236   :  { %v11064_v11 = vor.u32 %v14188_v6, %v11063_v4  ;;  %v10812_v13 = vor.u32 %v14120_v7, %v10809_v9  ;;  %v14156_v46 = vld [vmem:[#allocation5 + $0xe74] sm:$0xf0]  ;;  %v14088_v47 = vld [vmem:[#allocation5 + $0xc5c] sm:$0xf]  ;;  %v11175_v4 = vld [vmem:[#allocation8 + $0x50] sm:$0xf] }
 0x237   :  { %4030 = vmatmul.bf16.vlgmr.msrb.gmra.mxu0 %v15119_v34  ;;  %v15174_v34 = vpop.f32.mrf.mxu0  ;;  %v14216_v6 = vld [vmem:[#allocation8 + $0x54] sm:$0xf0]  ;;  %v11167_v9 = vld [vmem:[#allocation8 + $0x40] sm:$0xf] }
 0x238   :  { %3961 = vmatpush.bf16.msrb.mxu3 %v10996_v15  ;;  %4477 = vmatpush.bf16.msra.mxu0 %v11192_v51  ;;  %v11176_v7 = vor.u32 %v14216_v6, %v11175_v4  ;;  %v11135_v51 = vld [vmem:[#allocation8] sm:$0xf]  ;;  %v14236_v3 = vld [vmem:[#allocation8 + $0xf4] sm:$0xf0] }
 0x239   :  { %4000 = vmatpush.bf16.msra.mxu2 %v10744_v16  ;;  %4039 = vmatpush.bf16.msrb.mxu1 %v10492_v20  ;;  %v3824_v16 = vadd.f32 %v15174_v34, %v3645_v10  ;;  %v14164_v34 = vld [vmem:[#allocation5 + $0xeb4] sm:$0xf0]  ;;  %v14214_v10 = vld [vmem:[#allocation8 + $0x44] sm:$0xf0] }
 0x23a   :  { %v11168_v45 = vor.u32 %v14214_v10, %v11167_v9  ;;  %v14232_v4 = vld [vmem:[#allocation8 + $0xd4] sm:$0xf0]  ;;  %v11177_v9 = vld [vmem:[#allocation8 + $0x58] sm:$0xf0] }
 0x23c   :  { %3962 = vmatpush.bf16.msrb.mxu3 %v10964_v27  ;;  %v3745_v62 = vpop.f32.mrf.mxu2 }
 0x23d   :  { %4001 = vmatpush.bf16.msra.mxu2 %v10712_v28  ;;  %4040 = vmatpush.bf16.msrb.mxu1 %v10460_v30  ;;  %v15180_v63 = vadd.f32 %v3745_v62, %v15165_v19  ;;  %v11031_v19 = vld [vmem:[#allocation5 + $0xf18] sm:$0xf] }
 0x23e   :  { %v11032_v17 = vor.u32 %v14180_v12, %v11031_v19  ;;  %v10967_v30 = vld [vmem:[#allocation5 + $0xe98] sm:$0xf]  ;;  %v14184_v12 = vld [vmem:[#allocation5 + $0xf5c] sm:$0xf] }
 0x23f   :  { %v3825_v39 = vpop.f32.mrf.mxu0  ;;  %v10968_v22 = vor.u32 %v14164_v34, %v10967_v30 }
 0x240   :  { %3963 = vmatpush.bf16.msrb.mxu3 %v10932_v43  ;;  %v10716_v43 = vor.u32 %v14096_v35, %v10713_v37  ;;  %v14160_v35 = vld [vmem:[#allocation5 + $0xe9c] sm:$0xf] }
 0x241   :  { %4002 = vmatpush.bf16.msra.mxu2 %v10680_v44  ;;  %4041 = vmatpush.bf16.msrb.mxu1 %v10428_v48  ;;  %v10935_v44 = vld [vmem:[#allocation5 + $0xe58] sm:$0xf]  ;;  %v10681_v48 = vld [vmem:[#allocation5 + $0xc78] sm:$0xf0] }
 0x242   :  { %v10684_v54 = vor.u32 %v14088_v47, %v10681_v48  ;;  %v10969_v37 = vld [vmem:[#allocation5 + $0xeb8] sm:$0xf0] }
 0x243   :  { %v14152_v48 = vld [vmem:[#allocation5 + $0xe5c] sm:$0xf] }
 0x244   :  { %3964 = vmatpush.bf16.msrb.mxu3 %v10900_v56  ;;  %v3747_v15 = vpop.f32.mrf.mxu2  ;;  %v3836_v20 = vpop.f32.mrf.mxu1  ;;  %v14080_v56 = vld [vmem:[#allocation5 + $0xc1c] sm:$0xf] }
 0x245   :  { %4003 = vmatpush.bf16.msra.mxu2 %v10648_v57  ;;  %4042 = vmatpush.bf16.msrb.mxu1 %v10396_v42  ;;  %v14200_v57 = vld [vmem:[#allocation5 + $0xfdc] sm:$0xf]  ;;  %v11068_v15 = vor.u32 %v14184_v12, %v11065_v14  ;;  %v11231_v12 = vld [vmem:[#allocation8 + $0xc0] sm:$0xf]  ;;  %v14230_v14 = vld [vmem:[#allocation8 + $0xc4] sm:$0xf0] }
 0x246   :  { %v11129_v42 = vld [vmem:[#allocation5 + $0xff8] sm:$0xf0] }
 0x247   :  { %3965 = vmatmul.bf16.vlgmr.msrb.gmra.mxu3 %v15140_v31  ;;  %v11132_v62 = vor.u32 %v14200_v57, %v11129_v42  ;;  %v11193_v42 = vld [vmem:[#allocation8 + $0x78] sm:$0xf0] }
 0x248   :  { %4009 = vmatpush.bf16.msra.mxu3 %v11128_v58  ;;  %4004 = vmatmul.bf16.vlgmr.msra.gmra.mxu2 %v15132_v41  ;;  %v11183_v58 = vld [vmem:[#allocation8 + $0x60] sm:$0xf] }
 0x249   :  { %4048 = vmatpush.bf16.msrb.mxu2 %v10876_v2  ;;  %4043 = vmatmul.bf16.vlgmr.msrb.gmra.mxu1 %v15124_v26  ;;  %v15186_v26 = vadd.f32 %v3836_v20, %v3824_v16  ;;  %v14218_v2 = vld [vmem:[#allocation8 + $0x64] sm:$0xf0]  ;;  %v14176_v16 = vld [vmem:[#allocation5 + $0xf1c] sm:$0xf]  ;;  %v11159_v20 = vld [vmem:[#allocation8 + $0x30] sm:$0xf] }
 0x24a   :  { %v3706_v28 = vpop.f32.mrf.mxu3  ;;  %v11184_v59 = vor.u32 %v14218_v2, %v11183_v58  ;;  %v11196_v2 = vor.u32 %v14219_v55, %v11193_v42  ;;  %v11199_v55 = vld [vmem:[#allocation8 + $0x80] sm:$0xf]  ;;  %v11137_v42 = vld [vmem:[#allocation8 + $0x8] sm:$0xf0] }
 0x24b   :  { %v15191_v32 = vadd.f32 %v3706_v28, %v15177_v18  ;;  %v10936_v18 = vor.u32 %v14156_v46, %v10935_v44  ;;  %v11151_v28 = vld [vmem:[#allocation8 + $0x20] sm:$0xf]  ;;  %v10972_v46 = vor.u32 %v14160_v35, %v10969_v37  ;;  %v11153_v35 = vld [vmem:[#allocation8 + $0x28] sm:$0xf0] }
 0x24c   :  { %4010 = vmatpush.bf16.msra.mxu3 %v11096_v0  ;;  %v3838_v40 = vpop.f32.mrf.mxu1  ;;  %v14192_v0 = vld [vmem:[#allocation5 + $0xf9c] sm:$0xf]  ;;  %4478 = vmatpush.bf16.msra.mxu0 %v11184_v59 }
 0x24d   :  { %4049 = vmatpush.bf16.msrb.mxu2 %v10844_v1  ;;  %v3797_v38 = vpop.f32.mrf.mxu2  ;;  %v11097_v1 = vld [vmem:[#allocation5 + $0xfb8] sm:$0xf0] }
 0x24e   :  { %v15194_v39 = vadd.f32 %v3797_v38, %v15172_v8  ;;  %v10649_v8 = vld [vmem:[#allocation5 + $0xc38] sm:$0xf0]  ;;  %v11143_v38 = vld [vmem:[#allocation8 + $0x10] sm:$0xf] }
 0x24f   :  { %v10652_v61 = vor.u32 %v14080_v56, %v10649_v8  ;;  %v10940_v56 = vor.u32 %v14152_v48, %v10937_v49  ;;  %v14144_v8 = vld [vmem:[#allocation5 + $0xe1c] sm:$0xf]  ;;  %v14224_v48 = vld [vmem:[#allocation8 + $0x94] sm:$0xf0] }
 0x250   :  { %4011 = vmatpush.bf16.msra.mxu3 %v11064_v11  ;;  %4479 = vmatpush.bf16.msra.mxu0 %v11176_v7  ;;  %v14215_v7 = vld [vmem:[#allocation8 + $0x54] sm:$0xf]  ;;  %v15216_v37 = vld.sshfl [vmem:[#allocation1 + $0x28] sm:$0xff pattern:$0x73625140] }
 0x251   :  { %4050 = vmatpush.bf16.msrb.mxu2 %v10812_v13  ;;  %v11100_v13 = vor.u32 %v14192_v0, %v11097_v1  ;;  %v11239_v1 = vld [vmem:[#allocation8 + $0xd0] sm:$0xf] }
 0x252   :  { %v3708_v53 = vpop.f32.mrf.mxu3 }
 0x254   :  { %4012 = vmatpush.bf16.msra.mxu3 %v11032_v17  ;;  %v15188_v27 = vpop.f32.mrf.mxu0  ;;  %v11033_v17 = vld [vmem:[#allocation5 + $0xf38] sm:$0xf0]  ;;  %4480 = vmatpush.bf16.msra.mxu0 %v11168_v45  ;;  %v14213_v45 = vld [vmem:[#allocation8 + $0x44] sm:$0xf] }
 0x255   :  { %4051 = vmatpush.bf16.msrb.mxu2 %v10780_v21  ;;  %v3799_v33 = vpop.f32.mrf.mxu2  ;;  %v14212_v21 = vld [vmem:[#allocation8 + $0x34] sm:$0xf0] }
 0x256   :  { %v11160_v23 = vor.u32 %v14212_v21, %v11159_v20  ;;  %v11247_v33 = vld [vmem:[#allocation8 + $0xe0] sm:$0xf]  ;;  %v11223_v20 = vld [vmem:[#allocation8 + $0xb0] sm:$0xf]  ;;  %v14228_v21 = vld [vmem:[#allocation8 + $0xb4] sm:$0xf0] }
 0x258   :  { %4013 = vmatpush.bf16.msra.mxu3 %v11000_v25  ;;  %4481 = vmatpush.bf16.msra.mxu0 %v11160_v23  ;;  %v14211_v23 = vld [vmem:[#allocation8 + $0x34] sm:$0xf] }
 0x259   :  { %4052 = vmatpush.bf16.msrb.mxu2 %v10748_v29  ;;  %v14210_v29 = vld [vmem:[#allocation8 + $0x24] sm:$0xf0] }
 0x25a   :  { %v3758_v11 = vpop.f32.mrf.mxu3  ;;  %v11152_v30 = vor.u32 %v14210_v29, %v11151_v28  ;;  %v14226_v28 = vld [vmem:[#allocation8 + $0xa4] sm:$0xf0]  ;;  %v14209_v29 = vld [vmem:[#allocation8 + $0x24] sm:$0xf] }
 0x25b   :  { %v15197_v19 = vadd.f32 %v3758_v11, %v15180_v63  ;;  %v11036_v63 = vor.u32 %v14176_v16, %v11033_v17  ;;  %v11240_v11 = vor.u32 %v14232_v4, %v11239_v1  ;;  %v11232_v16 = vor.u32 %v14230_v14, %v11231_v12  ;;  %v14233_v1 = vld [vmem:[#allocation8 + $0xe4] sm:$0xf]  ;;  %v14231_v12 = vld [vmem:[#allocation8 + $0xd4] sm:$0xf]  ;;  %v11241_v14 = vld [vmem:[#allocation8 + $0xd8] sm:$0xf0] }
 0x25c   :  { %4014 = vmatpush.bf16.msra.mxu3 %v10968_v22  ;;  %v3877_v52 = vpop.f32.mrf.mxu0  ;;  %4482 = vmatpush.bf16.msra.mxu0 %v11152_v30  ;;  %v14208_v22 = vld [vmem:[#allocation8 + $0x14] sm:$0xf0]  ;;  %v15212_v30 = vld.sshfl [vmem:[#allocation1 + $0x20] sm:$0xff pattern:$0x73625140] }
 0x25d   :  { %4053 = vmatpush.bf16.msrb.mxu2 %v10716_v43  ;;  %v11144_v43 = vor.u32 %v14208_v22, %v11143_v38  ;;  %v14206_v52 = vld [vmem:[#allocation8 + $0x4] sm:$0xf0]  ;;  %v15218_v38 = vld.sshfl [vmem:[#allocation1 + $0x30] sm:$0xff pattern:$0x73625140]  ;;  %v11156_v22 = vor.u32 %v14209_v29, %v11153_v35 }
 0x25e   :  { %v11136_v53 = vor.u32 %v14206_v52, %v11135_v51  ;;  %v11145_v51 = vld [vmem:[#allocation8 + $0x18] sm:$0xf0]  ;;  %v11279_v35 = vld [vmem:[#allocation8 + $0x120] sm:$0xf] }
 0x25f   :  { %v11225_v29 = vld [vmem:[#allocation8 + $0xb8] sm:$0xf0] }
 0x260   :  { %4015 = vmatpush.bf16.msra.mxu3 %v10936_v18  ;;  %4483 = vmatpush.bf16.msra.mxu0 %v11144_v43  ;;  %v4845_v43 = vld [vmem:[#allocation7 + $0x8] sm:$0xff] }
 0x261   :  { %4054 = vmatpush.bf16.msrb.mxu2 %v10684_v54  ;;  %v11255_v54 = vld [vmem:[#allocation8 + $0xf0] sm:$0xf] }
 0x262   :  { %v3760_v5 = vpop.f32.mrf.mxu3  ;;  %v11256_v57 = vor.u32 %v14236_v3, %v11255_v54 }
 0x263   :  { %v11224_v5 = vor.u32 %v14228_v21, %v11223_v20  ;;  %v14229_v20 = vld [vmem:[#allocation8 + $0xc4] sm:$0xf]  ;;  %v11233_v21 = vld [vmem:[#allocation8 + $0xc8] sm:$0xf0] }
 0x264   :  { %4016 = vmatpush.bf16.msra.mxu3 %v10904_v60  ;;  %4484 = vmatpush.bf16.msra.mxu0 %v11136_v53  ;;  %v14234_v60 = vld [vmem:[#allocation8 + $0xe4] sm:$0xf0] }
 0x265   :  { %4055 = vmatpush.bf16.msrb.mxu2 %v10652_v61  ;;  %4490 = vmatpush.bf16.msra.mxu1 %v11256_v57  ;;  %v11248_v59 = vor.u32 %v14234_v60, %v11247_v33  ;;  %v11185_v61 = vld [vmem:[#allocation8 + $0x68] sm:$0xf0]  ;;  %v14252_v33 = vld [vmem:[#allocation8 + $0x174] sm:$0xf0]  ;;  %v14235_v60 = vld [vmem:[#allocation8 + $0xf4] sm:$0xf] }
 0x267   :  { %4017 = vmatmul.bf16.vlgmr.msra.gmra.mxu3 %v15140_v31  ;;  %v15201_v25 = vpop.f32.mrf.mxu1 }
 0x268   :  { %4061 = vmatpush.bf16.msrb.mxu3 %v11132_v62  ;;  %4056 = vmatmul.bf16.vlgmr.msrb.gmra.mxu2 %v15132_v41  ;;  %v11004_v41 = vor.u32 %v14168_v24, %v11001_v36  ;;  %v11215_v36 = vld [vmem:[#allocation8 + $0xa0] sm:$0xf] }
 0x269   :  { %4529 = vmatpush.bf16.msrb.mxu0 %v11196_v2  ;;  %4491 = vmatpush.bf16.msra.mxu1 %v11248_v59 }
 0x26a   :  { %v3810_v47 = vpop.f32.mrf.mxu3 }
 0x26b   :  { %v15209_v50 = vadd.f32 %v3810_v47, %v15194_v39  ;;  %v14217_v39 = vld [vmem:[#allocation8 + $0x64] sm:$0xf]  ;;  %v11207_v47 = vld [vmem:[#allocation8 + $0x90] sm:$0xf] }
 0x26c   :  { %4062 = vmatpush.bf16.msrb.mxu3 %v11100_v13  ;;  %v11188_v0 = vor.u32 %v14217_v39, %v11185_v61  ;;  %v11180_v13 = vor.u32 %v14215_v7, %v11177_v9  ;;  %v11208_v49 = vor.u32 %v14224_v48, %v11207_v47  ;;  %v11257_v39 = vld [vmem:[#allocation8 + $0xf8] sm:$0xf0]  ;;  %v3876_v47 = vadd.f32 %v15188_v27, %v15212_v30 }
 0x26d   :  { %v3849_v40 = vpop.f32.mrf.mxu2  ;;  %4492 = vmatpush.bf16.msra.mxu1 %v11240_v11  ;;  %v11260_v61 = vor.u32 %v14235_v60, %v11257_v39  ;;  %v11303_v11 = vld [vmem:[#allocation8 + $0x150] sm:$0xf]  ;;  %v4074_v30 = vmax.f32 %v15191_v32, 0.0  ;;  %v11615_v60 = vld [vmem:[#allocation5 + $0x1c0] sm:$0xf] }
 0x26e   :  { %v15206_v44 = vadd.f32 %v3849_v40, %v15186_v26  ;;  %v10905_v26 = vld [vmem:[#allocation5 + $0xe38] sm:$0xf0]  ;;  %4530 = vmatpush.bf16.msrb.mxu0 %v11188_v0  ;;  %v15220_v40 = vld.sshfl [vmem:[#allocation1 + $0x38] sm:$0xff pattern:$0x73625140] }
 0x26f   :  { %v3890_v18 = vpop.f32.mrf.mxu1  ;;  %v10908_v6 = vor.u32 %v14144_v8, %v10905_v26  ;;  %6130 = vst [vmem:[#allocation1 + $0x20] ss:$4 sm:$0xff] %v4845_v43  ;;  %v14205_v8 = vld [vmem:[#allocation8 + $0x4] sm:$0xf]  ;;  %v14250_v0 = vld [vmem:[#allocation8 + $0x164] sm:$0xf0] }
 0x270   :  { %4063 = vmatpush.bf16.msrb.mxu3 %v11068_v15  ;;  %v11169_v15 = vld [vmem:[#allocation8 + $0x48] sm:$0xf0]  ;;  %v14207_v18 = vld [vmem:[#allocation8 + $0x14] sm:$0xf]  ;;  %v11140_v2 = vor.u32 %v14205_v8, %v11137_v42  ;;  %v14225_v43 = vld [vmem:[#allocation8 + $0xa4] sm:$0xf] }
 0x271   :  { %v11172_v17 = vor.u32 %v14213_v45, %v11169_v15  ;;  %4493 = vmatpush.bf16.msra.mxu1 %v11232_v16  ;;  %v11148_v54 = vor.u32 %v14207_v18, %v11145_v51  ;;  %v11244_v15 = vor.u32 %v14231_v12, %v11241_v14  ;;  %v11295_v16 = vld [vmem:[#allocation8 + $0x140] sm:$0xf]  ;;  %v11217_v18 = vld [vmem:[#allocation8 + $0xa8] sm:$0xf0]  ;;  %v11209_v42 = vld [vmem:[#allocation8 + $0x98] sm:$0xf0] }
 0x272   :  { %v3812_v10 = vpop.f32.mrf.mxu3  ;;  %4531 = vmatpush.bf16.msrb.mxu0 %v11180_v13  ;;  %v14248_v13 = vld [vmem:[#allocation8 + $0x154] sm:$0xf0]  ;;  %v11220_v51 = vor.u32 %v14225_v43, %v11217_v18  ;;  %v11263_v39 = vld [vmem:[#allocation8 + $0x100] sm:$0xf]  ;;  %v11321_v12 = vld [vmem:[#allocation8 + $0x178] sm:$0xf0] }
 0x273   :  { %v11304_v45 = vor.u32 %v14248_v13, %v11303_v11  ;;  %v14321_v11 = vld [vmem:[#allocation5 + $0x19c] sm:$0xf0]  ;;  %v11305_v43 = vld [vmem:[#allocation8 + $0x158] sm:$0xf0] }
 0x274   :  { %4064 = vmatpush.bf16.msrb.mxu3 %v11036_v63  ;;  %v15203_v34 = vpop.f32.mrf.mxu0  ;;  %v11161_v63 = vld [vmem:[#allocation8 + $0x38] sm:$0xf0]  ;;  %v11519_v18 = vld [vmem:[#allocation5 + $0x100] sm:$0xf] }
 0x275   :  { %v3851_v62 = vpop.f32.mrf.mxu2  ;;  %v11164_v24 = vor.u32 %v14211_v23, %v11161_v63  ;;  %4494 = vmatpush.bf16.msra.mxu1 %v11224_v5  ;;  %v11236_v5 = vor.u32 %v14229_v20, %v11233_v21  ;;  %v11287_v63 = vld [vmem:[#allocation8 + $0x130] sm:$0xf] }
 0x276   :  { %4532 = vmatpush.bf16.msrb.mxu0 %v11172_v17  ;;  %v14246_v17 = vld [vmem:[#allocation8 + $0x144] sm:$0xf0] }
 0x277   :  { %v11296_v23 = vor.u32 %v14246_v17, %v11295_v16  ;;  %v14266_v16 = vld [vmem:[#allocation8 + $0x1e4] sm:$0xf0]  ;;  %v14249_v17 = vld [vmem:[#allocation8 + $0x164] sm:$0xf] }
 0x278   :  { %4065 = vmatpush.bf16.msrb.mxu3 %v11004_v41 }
 0x27a   :  { %4533 = vmatpush.bf16.msrb.mxu0 %v11164_v24  ;;  %v14244_v24 = vld [vmem:[#allocation8 + $0x134] sm:$0xf0] }
 0x27c   :  { %4066 = vmatpush.bf16.msrb.mxu3 %v10972_v46  ;;  %v3929_v58 = vpop.f32.mrf.mxu0 }
 0x27d   :  { %v11319_v58 = vld [vmem:[#allocation8 + $0x170] sm:$0xf] }
 0x27e   :  { %4534 = vmatpush.bf16.msrb.mxu0 %v11156_v22  ;;  %v11320_v59 = vor.u32 %v14252_v33, %v11319_v58  ;;  %v14242_v22 = vld [vmem:[#allocation8 + $0x124] sm:$0xf0] }
 0x280   :  { %4067 = vmatpush.bf16.msrb.mxu3 %v10940_v56  ;;  %v14222_v56 = vld [vmem:[#allocation8 + $0x84] sm:$0xf0]  ;;  %4503 = vmatpush.bf16.msra.mxu2 %v11320_v59 }
 0x281   :  { %v11200_v57 = vor.u32 %v14222_v56, %v11199_v55  ;;  %v14240_v55 = vld [vmem:[#allocation8 + $0x114] sm:$0xf0]  ;;  %v14223_v56 = vld [vmem:[#allocation8 + $0x94] sm:$0xf]  ;;  %v14238_v59 = vld [vmem:[#allocation8 + $0x104] sm:$0xf0] }
 0x282   :  { %4535 = vmatpush.bf16.msrb.mxu0 %v11148_v54  ;;  %v11271_v54 = vld [vmem:[#allocation8 + $0x110] sm:$0xf]  ;;  %v11212_v27 = vor.u32 %v14223_v56, %v11209_v42 }
 0x284   :  { %4068 = vmatpush.bf16.msrb.mxu3 %v10908_v6  ;;  %v11249_v6 = vld [vmem:[#allocation8 + $0xe8] sm:$0xf0] }
 0x285   :  { %v11252_v10 = vor.u32 %v14233_v1, %v11249_v6  ;;  %v11383_v6 = vld [vmem:[#allocation8 + $0x1f0] sm:$0xf] }
 0x286   :  { %4536 = vmatpush.bf16.msrb.mxu0 %v11140_v2 }
 0x287   :  { %4069 = vmatmul.bf16.vlgmr.msrb.gmra.mxu3 %v15140_v31  ;;  %v15214_v41 = vpop.f32.mrf.mxu1  ;;  %v11216_v31 = vor.u32 %v14226_v28, %v11215_v36  ;;  %v14227_v36 = vld [vmem:[#allocation8 + $0xb4] sm:$0xf]  ;;  %v11288_v28 = vor.u32 %v14244_v24, %v11287_v63  ;;  %v11551_v24 = vld [vmem:[#allocation5 + $0x140] sm:$0xf] }
 0x289   :  { %4495 = vmatpush.bf16.msra.mxu1 %v11216_v31  ;;  %v11228_v31 = vor.u32 %v14227_v36, %v11225_v29  ;;  %v14313_v36 = vld [vmem:[#allocation5 + $0x15c] sm:$0xf0]  ;;  %v11367_v29 = vld [vmem:[#allocation8 + $0x1d0] sm:$0xf] }
 0x28a   :  { %v3862_v52 = vpop.f32.mrf.mxu3 }
 0x28b   :  { %v15227_v3 = vadd.f32 %v3862_v52, %v15206_v44  ;;  %v11311_v44 = vld [vmem:[#allocation8 + $0x160] sm:$0xf]  ;;  %v3889_v52 = vadd.f32 %v15201_v25, %v3876_v47  ;;  %v11552_v47 = vor.u32 %v14313_v36, %v11551_v24 }
 0x28c   :  { %v11312_v4 = vor.u32 %v14250_v0, %v11311_v44  ;;  %v14329_v25 = vld [vmem:[#allocation5 + $0x1dc] sm:$0xf0]  ;;  %v11264_v44 = vor.u32 %v14238_v59, %v11263_v39  ;;  %v11201_v0 = vld [vmem:[#allocation8 + $0x88] sm:$0xf0]  ;;  %v11289_v39 = vld [vmem:[#allocation8 + $0x138] sm:$0xf0] }
 0x28d   :  { %v15224_v53 = vpop.f32.mrf.mxu2  ;;  %4496 = vmatpush.bf16.msra.mxu1 %v11208_v49  ;;  %v11280_v49 = vor.u32 %v14242_v22, %v11279_v35  ;;  %v11616_v1 = vor.u32 %v14329_v25, %v11615_v60  ;;  %v14247_v35 = vld [vmem:[#allocation8 + $0x154] sm:$0xf] }
 0x28e   :  { %4504 = vmatpush.bf16.msra.mxu2 %v11312_v4  ;;  %v3902_v8 = vadd.f32 %v15224_v53, %v3889_v52  ;;  %v11359_v52 = vld [vmem:[#allocation8 + $0x1c0] sm:$0xf]  ;;  %v14243_v25 = vld [vmem:[#allocation8 + $0x134] sm:$0xf] }
 0x28f   :  { %v3942_v26 = vpop.f32.mrf.mxu1 }
 0x291   :  { %4497 = vmatpush.bf16.msra.mxu1 %v11200_v57  ;;  %v11272_v57 = vor.u32 %v14240_v55, %v11271_v54  ;;  %v14262_v54 = vld [vmem:[#allocation8 + $0x1c4] sm:$0xf0]  ;;  %v14245_v55 = vld [vmem:[#allocation8 + $0x144] sm:$0xf] }
 0x292   :  { %v3864_v7 = vpop.f32.mrf.mxu3  ;;  %4505 = vmatpush.bf16.msra.mxu2 %v11304_v45  ;;  %v11360_v56 = vor.u32 %v14262_v54, %v11359_v52 }
 0x293   :  { %v14268_v7 = vld [vmem:[#allocation8 + $0x1f4] sm:$0xf0] }
 0x294   :  { %v15222_v46 = vpop.f32.mrf.mxu0  ;;  %v11384_v13 = vor.u32 %v14268_v7, %v11383_v6  ;;  %v11281_v6 = vld [vmem:[#allocation8 + $0x128] sm:$0xf0] }
 0x295   :  { %4542 = vmatpush.bf16.msrb.mxu1 %v11260_v61  ;;  %v3903_v9 = vpop.f32.mrf.mxu2  ;;  %v14221_v61 = vld [vmem:[#allocation8 + $0x84] sm:$0xf] }
 0x296   :  { %4506 = vmatpush.bf16.msra.mxu2 %v11296_v23  ;;  %v11204_v4 = vor.u32 %v14221_v61, %v11201_v0  ;;  %v14251_v9 = vld [vmem:[#allocation8 + $0x174] sm:$0xf]  ;;  %4516 = vmatpush.bf16.msra.mxu3 %v11384_v13  ;;  %v11292_v61 = vor.u32 %v14243_v25, %v11289_v39  ;;  %v14258_v0 = vld [vmem:[#allocation8 + $0x1a4] sm:$0xf0]  ;;  %v11423_v13 = vld [vmem:[#allocation5 + $0x40] sm:$0xf] }
 0x297   :  { %v11324_v14 = vor.u32 %v14251_v9, %v11321_v12  ;;  %v14281_v12 = vld [vmem:[#allocation5 + $0x5c] sm:$0xf0]  ;;  %v14265_v25 = vld [vmem:[#allocation8 + $0x1e4] sm:$0xf]  ;;  %v11377_v39 = vld [vmem:[#allocation8 + $0x1e8] sm:$0xf0] }
 0x299   :  { %4543 = vmatpush.bf16.msrb.mxu1 %v11252_v10  ;;  %v11583_v10 = vld [vmem:[#allocation5 + $0x180] sm:$0xf] }
 0x29a   :  { %4507 = vmatpush.bf16.msra.mxu2 %v11288_v28  ;;  %v11584_v21 = vor.u32 %v14321_v11, %v11583_v10  ;;  %v3928_v10 = vadd.f32 %v15203_v34, %v15216_v37  ;;  %v11391_v34 = vld [vmem:[#allocation5] sm:$0xf] }
 0x29b   :  { %v14273_v37 = vld [vmem:[#allocation5 + $0x1c] sm:$0xf0] }
 0x29c   :  { %v3981_v62 = vpop.f32.mrf.mxu0 }
 0x29d   :  { %4544 = vmatpush.bf16.msrb.mxu1 %v11244_v15  ;;  %v11375_v15 = vld [vmem:[#allocation8 + $0x1e0] sm:$0xf] }
 0x29e   :  { %4508 = vmatpush.bf16.msra.mxu2 %v11280_v49  ;;  %v11376_v23 = vor.u32 %v14266_v16, %v11375_v15  ;;  %v11308_v49 = vor.u32 %v14247_v35, %v11305_v43  ;;  %v14256_v15 = vld [vmem:[#allocation8 + $0x194] sm:$0xf0]  ;;  %v14239_v16 = vld [vmem:[#allocation8 + $0x114] sm:$0xf]  ;;  %v14237_v43 = vld [vmem:[#allocation8 + $0x104] sm:$0xf] }
 0x2a0   :  { %4517 = vmatpush.bf16.msra.mxu3 %v11376_v23  ;;  %v11273_v23 = vld [vmem:[#allocation8 + $0x118] sm:$0xf0] }
 0x2a1   :  { %4545 = vmatpush.bf16.msrb.mxu1 %v11236_v5  ;;  %v11313_v5 = vld [vmem:[#allocation8 + $0x168] sm:$0xf0]  ;;  %v11276_v24 = vor.u32 %v14239_v16, %v11273_v23  ;;  %v14261_v16 = vld [vmem:[#allocation8 + $0x1c4] sm:$0xf] }
 0x2a2   :  { %4509 = vmatpush.bf16.msra.mxu2 %v11272_v57  ;;  %v11316_v28 = vor.u32 %v14249_v17, %v11313_v5  ;;  %v4075_v17 = vmax.f32 %v15197_v19, 0.0  ;;  %v11327_v19 = vld [vmem:[#allocation8 + $0x180] sm:$0xf]  ;;  %v14293_v23 = vld [vmem:[#allocation5 + $0xc4] sm:$0xf] }
 0x2a5   :  { %4546 = vmatpush.bf16.msrb.mxu1 %v11228_v31  ;;  %v14264_v31 = vld [vmem:[#allocation8 + $0x1d4] sm:$0xf0] }
 0x2a6   :  { %4510 = vmatpush.bf16.msra.mxu2 %v11264_v44  ;;  %v11368_v22 = vor.u32 %v14264_v31, %v11367_v29  ;;  %v11343_v44 = vld [vmem:[#allocation8 + $0x1a0] sm:$0xf]  ;;  %v14325_v29 = vld [vmem:[#allocation5 + $0x1c4] sm:$0xf] }
 0x2a7   :  { %v15231_v48 = vpop.f32.mrf.mxu1  ;;  %v11617_v31 = vld [vmem:[#allocation5 + $0x1e0] sm:$0xf0] }
 0x2a8   :  { %4518 = vmatpush.bf16.msra.mxu3 %v11368_v22  ;;  %v14254_v22 = vld [vmem:[#allocation8 + $0x184] sm:$0xf0]  ;;  %v11620_v52 = vor.u32 %v14325_v29, %v11617_v31  ;;  %v14285_v31 = vld [vmem:[#allocation5 + $0x84] sm:$0xf] }
 0x2a9   :  { %4547 = vmatpush.bf16.msrb.mxu1 %v11220_v51  ;;  %v14305_v51 = vld [vmem:[#allocation5 + $0x11c] sm:$0xf0] }
 0x2aa   :  { %v3914_v58 = vpop.f32.mrf.mxu3  ;;  %4555 = vmatpush.bf16.msrb.mxu2 %v11324_v14  ;;  %v11520_v57 = vor.u32 %v14305_v51, %v11519_v18  ;;  %v3941_v14 = vadd.f32 %v15214_v41, %v3928_v10  ;;  %v14393_v41 = vld [vmem:[#allocation5 + $0x3dc] sm:$0xf0] }
 0x2ab   :  { %v3915_v2 = vadd.f32 %v3914_v58, %v3902_v8  ;;  %v11297_v8 = vld [vmem:[#allocation8 + $0x148] sm:$0xf0]  ;;  %v11487_v58 = vld [vmem:[#allocation5 + $0xc0] sm:$0xf] }
 0x2ac   :  { %v11300_v42 = vor.u32 %v14245_v55, %v11297_v8  ;;  %4519 = vmatpush.bf16.msra.mxu3 %v11360_v56  ;;  %v14267_v55 = vld [vmem:[#allocation8 + $0x1f4] sm:$0xf]  ;;  %v14317_v8 = vld [vmem:[#allocation5 + $0x184] sm:$0xf] }
 0x2ad   :  { %v15238_v33 = vpop.f32.mrf.mxu2  ;;  %4548 = vmatpush.bf16.msrb.mxu1 %v11212_v27  ;;  %v4078_v62 = vadd.f32 %v4074_v30, %v3915_v2  ;;  %v14297_v27 = vld [vmem:[#allocation5 + $0xdc] sm:$0xf0]  ;;  %v11351_v30 = vld [vmem:[#allocation8 + $0x1b0] sm:$0xf]  ;;  %v14260_v2 = vld [vmem:[#allocation8 + $0x1b4] sm:$0xf0] }
 0x2ae   :  { %4556 = vmatpush.bf16.msrb.mxu2 %v11316_v28  ;;  %v11352_v60 = vor.u32 %v14260_v2, %v11351_v30  ;;  %v11488_v59 = vor.u32 %v14297_v27, %v11487_v58  ;;  %v3954_v5 = vadd.f32 %v15238_v33, %v3941_v14  ;;  %v11265_v33 = vld [vmem:[#allocation8 + $0x108] sm:$0xf0]  ;;  %v11839_v27 = vld [vmem:[#allocation5 + $0x380] sm:$0xf] }
 0x2af   :  { %v3994_v53 = vpop.f32.mrf.mxu1  ;;  %v15240_v32 = vpack.c.bf16 %v4078_v62, %v4078_v62  ;;  %v11455_v62 = vld [vmem:[#allocation5 + $0x80] sm:$0xf]  ;;  %v11268_v54 = vor.u32 %v14237_v43, %v11265_v33 }
 0x2b0   :  { %v14289_v53 = vld [vmem:[#allocation5 + $0x9c] sm:$0xf0]  ;;  %4520 = vmatpush.bf16.msra.mxu3 %v11352_v60 }
 0x2b1   :  { %4549 = vmatpush.bf16.msrb.mxu1 %v11204_v4  ;;  %4485 = vmatmul.bf16.vlgmr.msra.gmra.mxu0 %v15240_v32  ;;  %v11344_v4 = vor.u32 %v14258_v0, %v11343_v44  ;;  %v11456_v7 = vor.u32 %v14289_v53, %v11455_v62  ;;  %v14385_v30 = vld [vmem:[#allocation5 + $0x39c] sm:$0xf0]  ;;  %v14309_v53 = vld [vmem:[#allocation5 + $0x144] sm:$0xf]  ;;  %v11380_v0 = vor.u32 %v14265_v25, %v11377_v39 }
 0x2b2   :  { %6147 = vmatpush.bf16.msra.mxu0 %v11616_v1  ;;  %v3916_v20 = vpop.f32.mrf.mxu3  ;;  %4557 = vmatpush.bf16.msrb.mxu2 %v11308_v49  ;;  %v14241_v1 = vld [vmem:[#allocation8 + $0x124] sm:$0xf]  ;;  %v11328_v49 = vor.u32 %v14254_v22, %v11327_v19  ;;  %v11840_v62 = vor.u32 %v14385_v30, %v11839_v27  ;;  %v11711_v22 = vld [vmem:[#allocation5 + $0x280] sm:$0xf]  ;;  %v14255_v30 = vld [vmem:[#allocation8 + $0x194] sm:$0xf] }
 0x2b3   :  { %v11284_v9 = vor.u32 %v14241_v1, %v11281_v6  ;;  %v11424_v20 = vor.u32 %v14281_v12, %v11423_v13  ;;  %v11553_v44 = vld [vmem:[#allocation5 + $0x160] sm:$0xf0]  ;;  %v11807_v1 = vld [vmem:[#allocation5 + $0x340] sm:$0xf]  ;;  %v14263_v6 = vld [vmem:[#allocation8 + $0x1d4] sm:$0xf] }
 0x2b4   :  { %v15235_v26 = vpop.f32.mrf.mxu0  ;;  %4521 = vmatpush.bf16.msra.mxu3 %v11344_v4  ;;  %v14377_v4 = vld [vmem:[#allocation5 + $0x35c] sm:$0xf0]  ;;  %v14301_v13 = vld [vmem:[#allocation5 + $0x104] sm:$0xf] }
 0x2b5   :  { %v3955_v63 = vpop.f32.mrf.mxu2  ;;  %v11808_v10 = vor.u32 %v14377_v4, %v11807_v1  ;;  %v11521_v12 = vld [vmem:[#allocation5 + $0x120] sm:$0xf0]  ;;  %v14353_v43 = vld [vmem:[#allocation5 + $0x29c] sm:$0xf0]  ;;  %v11623_v4 = vld [vmem:[#allocation5 + $0x1c8] sm:$0xf] }
 0x2b6   :  { %6148 = vmatpush.bf16.msra.mxu0 %v11584_v21  ;;  %4558 = vmatpush.bf16.msrb.mxu2 %v11300_v42  ;;  %v11871_v63 = vld [vmem:[#allocation5 + $0x3c0] sm:$0xf]  ;;  %v11385_v42 = vld [vmem:[#allocation8 + $0x1f8] sm:$0xf0]  ;;  %v14269_v25 = vld [vmem:[#allocation5 + $0x4] sm:$0xf] }
 0x2b7   :  { %v11872_v56 = vor.u32 %v14393_v41, %v11871_v63  ;;  %v11388_v2 = vor.u32 %v14267_v55, %v11385_v42  ;;  %v14361_v63 = vld [vmem:[#allocation5 + $0x2dc] sm:$0xf0]  ;;  %v11353_v41 = vld [vmem:[#allocation8 + $0x1b8] sm:$0xf0]  ;;  %v4076_v42 = vmax.f32 %v15209_v50, 0.0 }
 0x2b8   :  { %v11393_v39 = vld [vmem:[#allocation5 + $0x20] sm:$0xf0] }
 0x2b9   :  { %v14389_v50 = vld [vmem:[#allocation5 + $0x3c4] sm:$0xf] }
 0x2ba   :  { %6149 = vmatpush.bf16.msra.mxu0 %v11552_v47  ;;  %4559 = vmatpush.bf16.msrb.mxu2 %v11292_v61  ;;  %v11392_v47 = vor.u32 %v14273_v37, %v11391_v34  ;;  %v11743_v37 = vld [vmem:[#allocation5 + $0x2c0] sm:$0xf]  ;;  %v11873_v1 = vld [vmem:[#allocation5 + $0x3e0] sm:$0xf0] }
 0x2bb   :  { %v11744_v29 = vor.u32 %v14361_v63, %v11743_v37 }
 0x2bc   :  { %v4033_v45 = vpop.f32.mrf.mxu0 }
 0x2bd   :  { %v11335_v45 = vld [vmem:[#allocation8 + $0x190] sm:$0xf] }
 0x2be   :  { %6150 = vmatpush.bf16.msra.mxu0 %v11520_v57  ;;  %4560 = vmatpush.bf16.msrb.mxu2 %v11284_v9  ;;  %v11336_v21 = vor.u32 %v14256_v15, %v11335_v45  ;;  %v11585_v57 = vld [vmem:[#allocation5 + $0x1a0] sm:$0xf0]  ;;  %v11556_v9 = vor.u32 %v14309_v53, %v11553_v44  ;;  %v11775_v45 = vld [vmem:[#allocation5 + $0x300] sm:$0xf] }
 0x2bf   :  { %v11588_v60 = vor.u32 %v14317_v8, %v11585_v57  ;;  %v14369_v15 = vld [vmem:[#allocation5 + $0x31c] sm:$0xf0] }
 0x2c0   :  { %4522 = vmatpush.bf16.msra.mxu3 %v11336_v21  ;;  %v11776_v21 = vor.u32 %v14369_v15, %v11775_v45  ;;  %v14345_v8 = vld [vmem:[#allocation5 + $0x25c] sm:$0xf0] }
 0x2c1   :  { %4537 = vmatmul.bf16.vlgmr.msrb.gmra.mxu0 %v15240_v32  ;;  %v12127_v53 = vld [vmem:[#allocation5 + $0x5c0] sm:$0xf] }
 0x2c2   :  { %6151 = vmatpush.bf16.msra.mxu0 %v11488_v59  ;;  %4561 = vmatpush.bf16.msrb.mxu2 %v11276_v24  ;;  %v14457_v44 = vld [vmem:[#allocation5 + $0x5dc] sm:$0xf0] }
 0x2c3   :  { %v12095_v45 = vld [vmem:[#allocation5 + $0x580] sm:$0xf] }
 0x2c4   :  { %4523 = vmatpush.bf16.msra.mxu3 %v11328_v49  ;;  %v11345_v49 = vld [vmem:[#allocation8 + $0x1a8] sm:$0xf0] }
 0x2c6   :  { %v15246_v11 = vpop.f32.mrf.mxu1  ;;  %6152 = vmatpush.bf16.msra.mxu0 %v11456_v7  ;;  %4562 = vmatpush.bf16.msrb.mxu2 %v11268_v54  ;;  %v11369_v7 = vld [vmem:[#allocation8 + $0x1d8] sm:$0xf0]  ;;  %v11425_v54 = vld [vmem:[#allocation5 + $0x60] sm:$0xf0] }
 0x2c7   :  { %v11372_v14 = vor.u32 %v14263_v6, %v11369_v7  ;;  %v11396_v6 = vor.u32 %v14269_v25, %v11393_v39  ;;  %v14253_v7 = vld [vmem:[#allocation8 + $0x184] sm:$0xf] }
 0x2c8   :  { %4568 = vmatpush.bf16.msrb.mxu3 %v11388_v2  ;;  %v11337_v2 = vld [vmem:[#allocation8 + $0x198] sm:$0xf0] }
 0x2ca   :  { %v3966_v36 = vpop.f32.mrf.mxu3  ;;  %6153 = vmatpush.bf16.msra.mxu0 %v11424_v20  ;;  %v11524_v20 = vor.u32 %v14301_v13, %v11521_v12  ;;  %v12128_v12 = vor.u32 %v14457_v44, %v12127_v53  ;;  %v14349_v53 = vld [vmem:[#allocation5 + $0x284] sm:$0xf] }
 0x2cb   :  { %v15251_v28 = vpop.f32.mrf.mxu2  ;;  %v3967_v35 = vadd.f32 %v3966_v36, %v3954_v5  ;;  %v11489_v5 = vld [vmem:[#allocation5 + $0xe0] sm:$0xf0]  ;;  %v14259_v36 = vld [vmem:[#allocation8 + $0x1b4] sm:$0xf] }
 0x2cc   :  { %4569 = vmatpush.bf16.msrb.mxu3 %v11380_v0  ;;  %v11492_v24 = vor.u32 %v14293_v23, %v11489_v5  ;;  %v11356_v19 = vor.u32 %v14259_v36, %v11353_v41  ;;  %v11591_v5 = vld [vmem:[#allocation5 + $0x188] sm:$0xf]  ;;  %v12063_v36 = vld [vmem:[#allocation5 + $0x540] sm:$0xf]  ;;  %v11713_v44 = vld [vmem:[#allocation5 + $0x2a0] sm:$0xf0] }
 0x2cd   :  { %v4079_v18 = vadd.f32 %v4075_v17, %v3967_v35  ;;  %v11361_v17 = vld [vmem:[#allocation8 + $0x1c8] sm:$0xf0]  ;;  %v11457_v35 = vld [vmem:[#allocation5 + $0xa0] sm:$0xf0] }
 0x2ce   :  { %v4046_v51 = vpop.f32.mrf.mxu1  ;;  %6154 = vmatpush.bf16.msra.mxu0 %v11392_v47  ;;  %v11364_v34 = vor.u32 %v14261_v16, %v11361_v17  ;;  %v14257_v47 = vld [vmem:[#allocation8 + $0x1a4] sm:$0xf]  ;;  %v11460_v33 = vor.u32 %v14285_v31, %v11457_v35  ;;  %v14449_v17 = vld [vmem:[#allocation5 + $0x59c] sm:$0xf0] }
 0x2cf   :  { %v15253_v58 = vpack.c.bf16 %v4079_v18, %v4079_v18  ;;  %v3980_v18 = vadd.f32 %v15222_v46, %v15218_v38  ;;  %v11712_v51 = vor.u32 %v14353_v43, %v11711_v22  ;;  %v11348_v55 = vor.u32 %v14257_v47, %v11345_v49  ;;  %v11647_v46 = vld [vmem:[#allocation5 + $0x200] sm:$0xf]  ;;  %v14373_v35 = vld [vmem:[#allocation5 + $0x344] sm:$0xf]  ;;  %v11559_v22 = vld [vmem:[#allocation5 + $0x148] sm:$0xf] }
 0x2d0   :  { %4570 = vmatpush.bf16.msrb.mxu3 %v11372_v14  ;;  %v11876_v14 = vor.u32 %v14389_v50, %v11873_v1  ;;  %v12096_v63 = vor.u32 %v14449_v17, %v12095_v45  ;;  %v14441_v31 = vld [vmem:[#allocation5 + $0x55c] sm:$0xf0]  ;;  %v14314_v43 = vld [vmem:[#allocation5 + $0x164] sm:$0xf0]  ;;  %v4032_v1 = vadd.f32 %v15235_v26, %v15220_v40 }
 0x2d1   :  { %4498 = vmatmul.bf16.vlgmr.msra.gmra.mxu1 %v15253_v58  ;;  %6155 = vmatmul.bf16.vlgmr.msra.gmra.mxu0 %v15240_v32  ;;  %v3993_v57 = vadd.f32 %v15231_v48, %v3980_v18  ;;  %v12064_v47 = vor.u32 %v14441_v31, %v12063_v36  ;;  %v11560_v18 = vor.u32 %v14314_v43, %v11559_v22  ;;  %v14290_v50 = vld [vmem:[#allocation5 + $0xa4] sm:$0xf0]  ;;  %v12383_v36 = vld [vmem:[#allocation5 + $0x7c0] sm:$0xf]  ;;  %v14326_v43 = vld [vmem:[#allocation5 + $0x1cc] sm:$0xf] }
 0x2d2   :  { %6199 = vmatpush.bf16.msrb.mxu0 %v11620_v52  ;;  %6160 = vmatpush.bf16.msra.mxu1 %v11872_v56  ;;  %v3968_v59 = vpop.f32.mrf.mxu3  ;;  %v14277_v52 = vld [vmem:[#allocation5 + $0x44] sm:$0xf]  ;;  %v11679_v56 = vld [vmem:[#allocation5 + $0x240] sm:$0xf]  ;;  %v14282_v45 = vld [vmem:[#allocation5 + $0x64] sm:$0xf0] }
 0x2d3   :  { %v4007_v61 = vpop.f32.mrf.mxu2  ;;  %v11428_v27 = vor.u32 %v14277_v52, %v11425_v54  ;;  %v11680_v38 = vor.u32 %v14345_v8, %v11679_v56  ;;  %v11340_v59 = vor.u32 %v14255_v30, %v11337_v2  ;;  %v14365_v52 = vld [vmem:[#allocation5 + $0x304] sm:$0xf]  ;;  %v14306_v56 = vld [vmem:[#allocation5 + $0x124] sm:$0xf0]  ;;  %v14425_v30 = vld [vmem:[#allocation5 + $0x4dc] sm:$0xf0] }
 0x2d4   :  { %4571 = vmatpush.bf16.msrb.mxu3 %v11364_v34  ;;  %v14322_v34 = vld [vmem:[#allocation5 + $0x1a4] sm:$0xf0]  ;;  %v11777_v54 = vld [vmem:[#allocation5 + $0x320] sm:$0xf0] }
 0x2d5   :  { %v14357_v2 = vld [vmem:[#allocation5 + $0x2c4] sm:$0xf]  ;;  %v11879_v31 = vld [vmem:[#allocation5 + $0x3c8] sm:$0xf] }
 0x2d6   :  { %6200 = vmatpush.bf16.msrb.mxu0 %v11588_v60  ;;  %6161 = vmatpush.bf16.msra.mxu1 %v11840_v62  ;;  %v4006_v60 = vadd.f32 %v15251_v28, %v3993_v57  ;;  %v14337_v62 = vld [vmem:[#allocation5 + $0x21c] sm:$0xf0]  ;;  %v14330_v28 = vld [vmem:[#allocation5 + $0x1e4] sm:$0xf0]  ;;  %v11780_v57 = vor.u32 %v14365_v52, %v11777_v54 }
 0x2d7   :  { %v11648_v13 = vor.u32 %v14337_v62, %v11647_v46  ;;  %v11624_v16 = vor.u32 %v14330_v28, %v11623_v4  ;;  %v14298_v46 = vld [vmem:[#allocation5 + $0xe4] sm:$0xf0]  ;;  %v14417_v62 = vld [vmem:[#allocation5 + $0x49c] sm:$0xf0] }
 0x2d8   :  { %4572 = vmatpush.bf16.msrb.mxu3 %v11356_v19  ;;  %v11809_v19 = vld [vmem:[#allocation5 + $0x360] sm:$0xf0]  ;;  %v11935_v28 = vld [vmem:[#allocation5 + $0x440] sm:$0xf]  ;;  %v14394_v22 = vld [vmem:[#allocation5 + $0x3e4] sm:$0xf0] }
 0x2d9   :  { %v11812_v49 = vor.u32 %v14373_v35, %v11809_v19  ;;  %v12351_v52 = vld [vmem:[#allocation5 + $0x780] sm:$0xf] }
 0x2da   :  { %6201 = vmatpush.bf16.msrb.mxu0 %v11556_v9  ;;  %6162 = vmatpush.bf16.msra.mxu1 %v11808_v10  ;;  %v11329_v9 = vld [vmem:[#allocation8 + $0x188] sm:$0xf0]  ;;  %v14513_v54 = vld [vmem:[#allocation5 + $0x79c] sm:$0xf0] }
 0x2db   :  { %v11332_v23 = vor.u32 %v14253_v7, %v11329_v9  ;;  %v14409_v9 = vld [vmem:[#allocation5 + $0x45c] sm:$0xf0] }
 0x2dc   :  { %4573 = vmatpush.bf16.msrb.mxu3 %v11348_v55  ;;  %v11527_v55 = vld [vmem:[#allocation5 + $0x108] sm:$0xf]  ;;  %v11936_v40 = vor.u32 %v14409_v9, %v11935_v28  ;;  %v14497_v9 = vld [vmem:[#allocation5 + $0x71c] sm:$0xf0] }
 0x2de   :  { %6202 = vmatpush.bf16.msrb.mxu0 %v11524_v20  ;;  %6163 = vmatpush.bf16.msra.mxu1 %v11776_v21  ;;  %v14381_v20 = vld [vmem:[#allocation5 + $0x384] sm:$0xf] }
 0x2df   :  { %v11841_v21 = vld [vmem:[#allocation5 + $0x3a0] sm:$0xf0] }
 0x2e0   :  { %4574 = vmatpush.bf16.msrb.mxu3 %v11340_v59  ;;  %v11967_v59 = vld [vmem:[#allocation5 + $0x480] sm:$0xf] }
 0x2e1   :  { %4550 = vmatmul.bf16.vlgmr.msrb.gmra.mxu1 %v15253_v58  ;;  %v11968_v4 = vor.u32 %v14417_v62, %v11967_v59  ;;  %v14437_v59 = vld [vmem:[#allocation5 + $0x544] sm:$0xf] }
 0x2e2   :  { %6203 = vmatpush.bf16.msrb.mxu0 %v11492_v24  ;;  %6164 = vmatpush.bf16.msra.mxu1 %v11744_v29  ;;  %v11844_v24 = vor.u32 %v14381_v20, %v11841_v21  ;;  %v11592_v29 = vor.u32 %v14322_v34, %v11591_v5  ;;  %v11903_v20 = vld [vmem:[#allocation5 + $0x400] sm:$0xf]  ;;  %v14333_v34 = vld [vmem:[#allocation5 + $0x204] sm:$0xf] }
 0x2e3   :  { %v14401_v21 = vld [vmem:[#allocation5 + $0x41c] sm:$0xf0] }
 0x2e4   :  { %4575 = vmatpush.bf16.msrb.mxu3 %v11332_v23  ;;  %v11904_v35 = vor.u32 %v14401_v21, %v11903_v20  ;;  %v12255_v21 = vld [vmem:[#allocation5 + $0x6c0] sm:$0xf] }
 0x2e6   :  { %6204 = vmatpush.bf16.msrb.mxu0 %v11460_v33  ;;  %6165 = vmatpush.bf16.msra.mxu1 %v11712_v51  ;;  %v12031_v33 = vld [vmem:[#allocation5 + $0x500] sm:$0xf] }
 0x2e7   :  { %v14433_v51 = vld [vmem:[#allocation5 + $0x51c] sm:$0xf0] }
 0x2e8   :  { %v12032_v8 = vor.u32 %v14433_v51, %v12031_v33 }
 0x2ea   :  { %v4018_v61 = vpop.f32.mrf.mxu3  ;;  %6205 = vmatpush.bf16.msrb.mxu0 %v11428_v27  ;;  %6166 = vmatpush.bf16.msra.mxu1 %v11680_v38  ;;  %v11528_v27 = vor.u32 %v14306_v56, %v11527_v55  ;;  %v11495_v38 = vld [vmem:[#allocation5 + $0xc8] sm:$0xf]  ;;  %v11880_v55 = vor.u32 %v14394_v22, %v11879_v31  ;;  %v12223_v31 = vld [vmem:[#allocation5 + $0x680] sm:$0xf]  ;;  %v14413_v22 = vld [vmem:[#allocation5 + $0x484] sm:$0xf] }
 0x2eb   :  { %v4019_v48 = vadd.f32 %v4018_v61, %v4006_v60  ;;  %v15263_v0 = vpop.f32.mrf.mxu2  ;;  %v11745_v60 = vld [vmem:[#allocation5 + $0x2e0] sm:$0xf0]  ;;  %v11496_v61 = vor.u32 %v14298_v46, %v11495_v38  ;;  %v12352_v38 = vor.u32 %v14513_v54, %v12351_v52 }
 0x2ec   :  { %v11748_v39 = vor.u32 %v14357_v2, %v11745_v60  ;;  %v11593_v2 = vld [vmem:[#allocation5 + $0x1a8] sm:$0xf0] }
 0x2ed   :  { %v4080_v10 = vadd.f32 %v4076_v42, %v4019_v48  ;;  %v11999_v42 = vld [vmem:[#allocation5 + $0x4c0] sm:$0xf]  ;;  %v11463_v48 = vld [vmem:[#allocation5 + $0x88] sm:$0xf] }
 0x2ee   :  { %6206 = vmatpush.bf16.msrb.mxu0 %v11396_v6  ;;  %6167 = vmatpush.bf16.msra.mxu1 %v11648_v13  ;;  %v12000_v25 = vor.u32 %v14425_v30, %v11999_v42  ;;  %v11716_v6 = vor.u32 %v14349_v53, %v11713_v44  ;;  %v11464_v7 = vor.u32 %v14290_v50, %v11463_v48  ;;  %v11681_v13 = vld [vmem:[#allocation5 + $0x260] sm:$0xf0]  ;;  %v11847_v42 = vld [vmem:[#allocation5 + $0x388] sm:$0xf]  ;;  %v14318_v30 = vld [vmem:[#allocation5 + $0x18c] sm:$0xf] }
 0x2ef   :  { %v15265_v15 = vpack.c.bf16 %v4080_v10, %v4080_v10  ;;  %v14341_v10 = vld [vmem:[#allocation5 + $0x244] sm:$0xf]  ;;  %v11596_v62 = vor.u32 %v14318_v30, %v11593_v2  ;;  %v11815_v44 = vld [vmem:[#allocation5 + $0x348] sm:$0xf]  ;;  %v14310_v50 = vld [vmem:[#allocation5 + $0x14c] sm:$0xf] }
 0x2f0   :  { %v11684_v26 = vor.u32 %v14341_v10, %v11681_v13  ;;  %v12065_v53 = vld [vmem:[#allocation5 + $0x560] sm:$0xf0]  ;;  %v14378_v48 = vld [vmem:[#allocation5 + $0x364] sm:$0xf0] }
 0x2f1   :  { %4511 = vmatmul.bf16.vlgmr.msra.gmra.mxu2 %v15265_v15  ;;  %6207 = vmatmul.bf16.vlgmr.msrb.gmra.mxu0 %v15240_v32  ;;  %v12068_v28 = vor.u32 %v14437_v59, %v12065_v53  ;;  %v11816_v10 = vor.u32 %v14378_v48, %v11815_v44  ;;  %v11687_v30 = vld [vmem:[#allocation5 + $0x248] sm:$0xf]  ;;  %v14465_v59 = vld [vmem:[#allocation5 + $0x61c] sm:$0xf0] }
 0x2f2   :  { %6173 = vmatpush.bf16.msra.mxu2 %v12128_v12  ;;  %6212 = vmatpush.bf16.msrb.mxu1 %v11876_v14  ;;  %v4020_v37 = vpop.f32.mrf.mxu3  ;;  %v4045_v12 = vadd.f32 %v15246_v11, %v4032_v1  ;;  %v11431_v14 = vld [vmem:[#allocation5 + $0x48] sm:$0xf]  ;;  %v11561_v1 = vld [vmem:[#allocation5 + $0x168] sm:$0xf0] }
 0x2f3   :  { %6251 = vmatpush.bf16.msra.mxu0 %v11624_v16  ;;  %v4059_v41 = vpop.f32.mrf.mxu2  ;;  %6168 = vmatmul.bf16.vlgmr.msra.gmra.mxu1 %v15253_v58  ;;  %v4077_v16 = vmax.f32 %v15227_v3, 0.0  ;;  %v11432_v5 = vor.u32 %v14282_v45, %v11431_v14  ;;  %v11649_v37 = vld [vmem:[#allocation5 + $0x220] sm:$0xf0]  ;;  %v14274_v11 = vld [vmem:[#allocation5 + $0x24] sm:$0xf0]  ;;  %v11564_v13 = vor.u32 %v14310_v50, %v11561_v1 }
 0x2f4   :  { %v4058_v17 = vadd.f32 %v15263_v0, %v4045_v12  ;;  %v14521_v41 = vld [vmem:[#allocation5 + $0x7dc] sm:$0xf0]  ;;  %v12129_v3 = vld [vmem:[#allocation5 + $0x5e0] sm:$0xf0]  ;;  %v11652_v19 = vor.u32 %v14333_v34, %v11649_v37  ;;  %v11783_v45 = vld [vmem:[#allocation5 + $0x308] sm:$0xf] }
 0x2f5   :  { %v14429_v12 = vld [vmem:[#allocation5 + $0x504] sm:$0xf]  ;;  %v14346_v2 = vld [vmem:[#allocation5 + $0x264] sm:$0xf0]  ;;  %v14270_v1 = vld [vmem:[#allocation5 + $0xc] sm:$0xf] }
 0x2f6   :  { %6174 = vmatpush.bf16.msra.mxu2 %v12096_v63  ;;  %6213 = vmatpush.bf16.msrb.mxu1 %v11844_v24  ;;  %v11399_v63 = vld [vmem:[#allocation5 + $0x8] sm:$0xf]  ;;  %v12033_v14 = vld [vmem:[#allocation5 + $0x520] sm:$0xf0]  ;;  %v11688_v53 = vor.u32 %v14346_v2, %v11687_v30  ;;  %v11785_v30 = vld [vmem:[#allocation5 + $0x328] sm:$0xf0] }
 0x2f7   :  { %6252 = vmatpush.bf16.msra.mxu0 %v11592_v29  ;;  %v14453_v29 = vld [vmem:[#allocation5 + $0x5c4] sm:$0xf]  ;;  %v12036_v20 = vor.u32 %v14429_v12, %v12033_v14  ;;  %v11655_v48 = vld [vmem:[#allocation5 + $0x208] sm:$0xf]  ;;  %v11881_v14 = vld [vmem:[#allocation5 + $0x3e8] sm:$0xf0] }
 0x2f8   :  { %v12132_v51 = vor.u32 %v14453_v29, %v12129_v3  ;;  %v14421_v37 = vld [vmem:[#allocation5 + $0x4c4] sm:$0xf]  ;;  %v14338_v50 = vld [vmem:[#allocation5 + $0x224] sm:$0xf0] }
 0x2fa   :  { %6175 = vmatpush.bf16.msra.mxu2 %v12064_v47  ;;  %6214 = vmatpush.bf16.msrb.mxu1 %v11812_v49  ;;  %v11625_v47 = vld [vmem:[#allocation5 + $0x1e8] sm:$0xf0]  ;;  %v11400_v49 = vor.u32 %v14274_v11, %v11399_v63  ;;  %v12001_v63 = vld [vmem:[#allocation5 + $0x4e0] sm:$0xf0]  ;;  %v14362_v11 = vld [vmem:[#allocation5 + $0x2e4] sm:$0xf0] }
 0x2fb   :  { %6253 = vmatpush.bf16.msra.mxu0 %v11560_v18  ;;  %v12384_v18 = vor.u32 %v14521_v41, %v12383_v36  ;;  %v11628_v56 = vor.u32 %v14326_v43, %v11625_v47  ;;  %v14294_v36 = vld [vmem:[#allocation5 + $0xcc] sm:$0xf]  ;;  %v12004_v3 = vor.u32 %v14421_v37, %v12001_v63  ;;  %v11969_v43 = vld [vmem:[#allocation5 + $0x4a0] sm:$0xf0]  ;;  %v11719_v47 = vld [vmem:[#allocation5 + $0x288] sm:$0xf] }
 0x2fc   :  { %v11497_v41 = vld [vmem:[#allocation5 + $0xe8] sm:$0xf0]  ;;  %v11972_v54 = vor.u32 %v14413_v22, %v11969_v43  ;;  %v12103_v37 = vld [vmem:[#allocation5 + $0x588] sm:$0xf] }
 0x2fd   :  { %v14450_v63 = vld [vmem:[#allocation5 + $0x5a4] sm:$0xf0] }
 0x2fe   :  { %6176 = vmatpush.bf16.msra.mxu2 %v12032_v8  ;;  %6215 = vmatpush.bf16.msrb.mxu1 %v11780_v57  ;;  %v14445_v8 = vld [vmem:[#allocation5 + $0x584] sm:$0xf]  ;;  %v12071_v22 = vld [vmem:[#allocation5 + $0x548] sm:$0xf] }
 0x2ff   :  { %6254 = vmatpush.bf16.msra.mxu0 %v11528_v27  ;;  %v12097_v57 = vld [vmem:[#allocation5 + $0x5a0] sm:$0xf0]  ;;  %v14386_v27 = vld [vmem:[#allocation5 + $0x3a4] sm:$0xf0] }
 0x300   :  { %v12100_v46 = vor.u32 %v14445_v8, %v12097_v57  ;;  %v14442_v43 = vld [vmem:[#allocation5 + $0x564] sm:$0xf0] }
 0x301   :  { %4563 = vmatmul.bf16.vlgmr.msrb.gmra.mxu2 %v15265_v15 }
 0x302   :  { %6177 = vmatpush.bf16.msra.mxu2 %v12000_v25  ;;  %6216 = vmatpush.bf16.msrb.mxu1 %v11748_v39  ;;  %v12319_v25 = vld [vmem:[#allocation5 + $0x740] sm:$0xf] }
 0x303   :  { %6255 = vmatpush.bf16.msra.mxu0 %v11496_v61  ;;  %v14505_v39 = vld [vmem:[#allocation5 + $0x75c] sm:$0xf0]  ;;  %v11848_v61 = vor.u32 %v14386_v27, %v11847_v42  ;;  %v14405_v42 = vld [vmem:[#allocation5 + $0x444] sm:$0xf] }
 0x304   :  { %v11937_v27 = vld [vmem:[#allocation5 + $0x460] sm:$0xf0] }
 0x306   :  { %6178 = vmatpush.bf16.msra.mxu2 %v11968_v4  ;;  %6217 = vmatpush.bf16.msrb.mxu1 %v11716_v6  ;;  %v4150_v4 = vld [vmem:[#allocation10] sm:$0xf]  ;;  %v12320_v6 = vor.u32 %v14505_v39, %v12319_v25  ;;  %v11940_v39 = vor.u32 %v14405_v42, %v11937_v27  ;;  %v14434_v42 = vld [vmem:[#allocation5 + $0x524] sm:$0xf0]  ;;  %v14366_v27 = vld [vmem:[#allocation5 + $0x30c] sm:$0xf] }
 0x307   :  { %6256 = vmatpush.bf16.msra.mxu0 %v11464_v7  ;;  %4472 = vst [vmem:[#allocation1] ss:$4 sm:$0xff] %v4150_v4  ;;  %v12287_v7 = vld [vmem:[#allocation5 + $0x700] sm:$0xf]  ;;  %v11401_v4 = vld [vmem:[#allocation5 + $0x28] sm:$0xf0] }
 0x30a   :  { %v4070_v23 = vpop.f32.mrf.mxu3  ;;  %6179 = vmatpush.bf16.msra.mxu2 %v11936_v40  ;;  %6218 = vmatpush.bf16.msrb.mxu1 %v11684_v26  ;;  %v11529_v40 = vld [vmem:[#allocation5 + $0x128] sm:$0xf0]  ;;  %v12288_v26 = vor.u32 %v14497_v9, %v12287_v7  ;;  %v12135_v7 = vld [vmem:[#allocation5 + $0x5c8] sm:$0xf] }
 0x30b   :  { %v4071_v24 = vadd.f32 %v4070_v23, %v4058_v17  ;;  %6257 = vmatpush.bf16.msra.mxu0 %v11432_v5  ;;  %v14302_v17 = vld [vmem:[#allocation5 + $0x10c] sm:$0xf]  ;;  %v14489_v23 = vld [vmem:[#allocation5 + $0x6dc] sm:$0xf0]  ;;  %v14458_v9 = vld [vmem:[#allocation5 + $0x5e4] sm:$0xf0] }
 0x30c   :  { %v11532_v34 = vor.u32 %v14302_v17, %v11529_v40  ;;  %v12256_v29 = vor.u32 %v14489_v23, %v12255_v21  ;;  %v11656_v17 = vor.u32 %v14338_v50, %v11655_v48  ;;  %v11404_v40 = vor.u32 %v14270_v1, %v11401_v4  ;;  %v14509_v21 = vld [vmem:[#allocation5 + $0x784] sm:$0xf]  ;;  %v12007_v1 = vld [vmem:[#allocation5 + $0x4c8] sm:$0xf] }
 0x30d   :  { %v4081_v0 = vadd.f32 %v4077_v16, %v4071_v24  ;;  %v14370_v16 = vld [vmem:[#allocation5 + $0x324] sm:$0xf0]  ;;  %v12353_v23 = vld [vmem:[#allocation5 + $0x7a0] sm:$0xf0]  ;;  %v11788_v48 = vor.u32 %v14366_v27, %v11785_v30  ;;  %v14454_v30 = vld [vmem:[#allocation5 + $0x5cc] sm:$0xf] }
 0x30e   :  { %6180 = vmatpush.bf16.msra.mxu2 %v11904_v35  ;;  %6219 = vmatpush.bf16.msrb.mxu1 %v11652_v19  ;;  %v11784_v5 = vor.u32 %v14370_v16, %v11783_v45  ;;  %v11751_v24 = vld [vmem:[#allocation5 + $0x2c8] sm:$0xf]  ;;  %v11500_v19 = vor.u32 %v14294_v36, %v11497_v41  ;;  %v11631_v45 = vld [vmem:[#allocation5 + $0x1d0] sm:$0xf] }
 0x30f   :  { %v15276_v33 = vpack.c.bf16 %v4081_v0, %v4081_v0  ;;  %6258 = vmatpush.bf16.msra.mxu0 %v11400_v49  ;;  %v14481_v0 = vld [vmem:[#allocation5 + $0x69c] sm:$0xf0]  ;;  %v11752_v35 = vor.u32 %v14362_v11, %v11751_v24  ;;  %v14354_v49 = vld [vmem:[#allocation5 + $0x2a4] sm:$0xf0]  ;;  %v14331_v16 = vld [vmem:[#allocation5 + $0x1ec] sm:$0xf0] }
 0x310   :  { %v12224_v52 = vor.u32 %v14481_v0, %v12223_v31  ;;  %v11720_v8 = vor.u32 %v14354_v49, %v11719_v47  ;;  %v14382_v24 = vld [vmem:[#allocation5 + $0x38c] sm:$0xf]  ;;  %v11599_v36 = vld [vmem:[#allocation5 + $0x190] sm:$0xf]  ;;  %v14501_v31 = vld [vmem:[#allocation5 + $0x744] sm:$0xf] }
 0x311   :  { %4524 = vmatmul.bf16.vlgmr.msra.gmra.mxu3 %v15276_v33  ;;  %6220 = vmatmul.bf16.vlgmr.msrb.gmra.mxu1 %v15253_v58  ;;  %v11849_v11 = vld [vmem:[#allocation5 + $0x3a8] sm:$0xf0]  ;;  %v14323_v41 = vld [vmem:[#allocation5 + $0x1ac] sm:$0xf0]  ;;  %v12321_v0 = vld [vmem:[#allocation5 + $0x760] sm:$0xf0] }
 0x312   :  { %v4072_v60 = vpop.f32.mrf.mxu3  ;;  %6186 = vmatpush.bf16.msra.mxu3 %v12384_v18  ;;  %6225 = vmatpush.bf16.msrb.mxu2 %v12132_v51  ;;  %v14286_v18 = vld [vmem:[#allocation5 + $0x8c] sm:$0xf]  ;;  %v14426_v4 = vld [vmem:[#allocation5 + $0x4e4] sm:$0xf0] }
 0x313   :  { %6264 = vmatpush.bf16.msra.mxu1 %v11880_v55  ;;  %6303 = vmatpush.bf16.msrb.mxu0 %v11628_v56  ;;  %v11465_v51 = vld [vmem:[#allocation5 + $0xa8] sm:$0xf0]  ;;  %v12191_v55 = vld [vmem:[#allocation5 + $0x640] sm:$0xf]  ;;  %v14522_v27 = vld [vmem:[#allocation5 + $0x7e4] sm:$0xf0] }
 0x314   :  { %6259 = vmatmul.bf16.vlgmr.msra.gmra.mxu0 %v15240_v32  ;;  %6181 = vmatmul.bf16.vlgmr.msra.gmra.mxu2 %v15265_v15  ;;  %v14473_v56 = vld [vmem:[#allocation5 + $0x65c] sm:$0xf0]  ;;  %v11468_v57 = vor.u32 %v14286_v18, %v11465_v51  ;;  %v14278_v60 = vld [vmem:[#allocation5 + $0x4c] sm:$0xf]  ;;  %v11567_v18 = vld [vmem:[#allocation5 + $0x150] sm:$0xf] }
 0x315   :  { %v12192_v25 = vor.u32 %v14473_v56, %v12191_v55  ;;  %v14374_v47 = vld [vmem:[#allocation5 + $0x34c] sm:$0xf]  ;;  %v14315_v51 = vld [vmem:[#allocation5 + $0x16c] sm:$0xf0]  ;;  %v12039_v55 = vld [vmem:[#allocation5 + $0x508] sm:$0xf] }
 0x316   :  { %6187 = vmatpush.bf16.msra.mxu3 %v12352_v38  ;;  %6226 = vmatpush.bf16.msrb.mxu2 %v12100_v46  ;;  %v11433_v38 = vld [vmem:[#allocation5 + $0x68] sm:$0xf0]  ;;  %v12159_v46 = vld [vmem:[#allocation5 + $0x600] sm:$0xf] }
 0x317   :  { %6265 = vmatpush.bf16.msra.mxu1 %v11848_v61  ;;  %6304 = vmatpush.bf16.msrb.mxu0 %v11596_v62  ;;  %v14397_v61 = vld [vmem:[#allocation5 + $0x404] sm:$0xf]  ;;  %v11436_v44 = vor.u32 %v14278_v60, %v11433_v38  ;;  %v11817_v49 = vld [vmem:[#allocation5 + $0x368] sm:$0xf0]  ;;  %v11568_v60 = vor.u32 %v14315_v51, %v11567_v18  ;;  %v14402_v18 = vld [vmem:[#allocation5 + $0x424] sm:$0xf0] }
 0x318   :  { %v11905_v62 = vld [vmem:[#allocation5 + $0x420] sm:$0xf0]  ;;  %v11820_v2 = vor.u32 %v14374_v47, %v11817_v49  ;;  %v15287_v38 = vld.sshfl [vmem:[#allocation1] sm:$0xff pattern:$0x73625140] }
 0x319   :  { %v11908_v12 = vor.u32 %v14397_v61, %v11905_v62  ;;  %v4844_v56 = vld [vmem:[#allocation7] sm:$0xff]  ;;  %v12040_v62 = vor.u32 %v14434_v42, %v12039_v55  ;;  %v11911_v49 = vld [vmem:[#allocation5 + $0x408] sm:$0xf]  ;;  %v14334_v55 = vld [vmem:[#allocation5 + $0x20c] sm:$0xf] }
 0x31a   :  { %6188 = vmatpush.bf16.msra.mxu3 %v12320_v6  ;;  %6227 = vmatpush.bf16.msrb.mxu2 %v12068_v28  ;;  %v14517_v6 = vld [vmem:[#allocation5 + $0x7c4] sm:$0xf]  ;;  %v12391_v42 = vld [vmem:[#allocation5 + $0x7c8] sm:$0xf] }
 0x31b   :  { %6266 = vmatpush.bf16.msra.mxu1 %v11816_v10  ;;  %6305 = vmatpush.bf16.msrb.mxu0 %v11564_v13  ;;  %v12385_v28 = vld [vmem:[#allocation5 + $0x7e0] sm:$0xf0]  ;;  %v14390_v10 = vld [vmem:[#allocation5 + $0x3cc] sm:$0xf]  ;;  %v12160_v13 = vor.u32 %v14465_v59, %v12159_v46  ;;  %v14307_v59 = vld [vmem:[#allocation5 + $0x12c] sm:$0xf0] }
 0x31c   :  { %v12161_v47 = vld [vmem:[#allocation5 + $0x620] sm:$0xf0] }
 0x31e   :  { %6189 = vmatpush.bf16.msra.mxu3 %v12288_v26  ;;  %6228 = vmatpush.bf16.msrb.mxu2 %v12036_v20  ;;  %v12388_v26 = vor.u32 %v14517_v6, %v12385_v28  ;;  %v12136_v20 = vor.u32 %v14458_v9, %v12135_v7  ;;  %v14358_v6 = vld [vmem:[#allocation5 + $0x2cc] sm:$0xf]  ;;  %v11503_v7 = vld [vmem:[#allocation5 + $0xd0] sm:$0xf] }
 0x31f   :  { %6267 = vmatpush.bf16.msra.mxu1 %v11784_v5  ;;  %6306 = vmatpush.bf16.msrb.mxu0 %v11532_v34  ;;  %v11884_v5 = vor.u32 %v14390_v10, %v11881_v14  ;;  %v11632_v34 = vor.u32 %v14331_v16, %v11631_v45  ;;  %v11753_v28 = vld [vmem:[#allocation5 + $0x2e8] sm:$0xf0]  ;;  %v14299_v9 = vld [vmem:[#allocation5 + $0xec] sm:$0xf0]  ;;  %v12225_v14 = vld [vmem:[#allocation5 + $0x6a0] sm:$0xf0] }
 0x320   :  { %v11756_v45 = vor.u32 %v14358_v6, %v11753_v28  ;;  %v11504_v16 = vor.u32 %v14299_v9, %v11503_v7  ;;  %v14514_v6 = vld [vmem:[#allocation5 + $0x7a4] sm:$0xf0]  ;;  %v14446_v9 = vld [vmem:[#allocation5 + $0x58c] sm:$0xf] }
 0x321   :  { %4576 = vmatmul.bf16.vlgmr.msrb.gmra.mxu3 %v15276_v33 }
 0x322   :  { %6190 = vmatpush.bf16.msra.mxu3 %v12256_v29  ;;  %6229 = vmatpush.bf16.msrb.mxu2 %v12004_v3  ;;  %v12356_v29 = vor.u32 %v14509_v21, %v12353_v23  ;;  %v12104_v3 = vor.u32 %v14450_v63, %v12103_v37  ;;  %v11721_v21 = vld [vmem:[#allocation5 + $0x2a8] sm:$0xf0]  ;;  %v11471_v23 = vld [vmem:[#allocation5 + $0x90] sm:$0xf]  ;;  %v14469_v63 = vld [vmem:[#allocation5 + $0x644] sm:$0xf] }
 0x323   :  { %6268 = vmatpush.bf16.msra.mxu1 %v11752_v35  ;;  %6307 = vmatpush.bf16.msrb.mxu0 %v11500_v19  ;;  %v11852_v35 = vor.u32 %v14382_v24, %v11849_v11  ;;  %v11600_v19 = vor.u32 %v14323_v41, %v11599_v36  ;;  %v12193_v24 = vld [vmem:[#allocation5 + $0x660] sm:$0xf0]  ;;  %v11943_v41 = vld [vmem:[#allocation5 + $0x448] sm:$0xf] }
 0x326   :  { %6191 = vmatpush.bf16.msra.mxu3 %v12224_v52  ;;  %6230 = vmatpush.bf16.msrb.mxu2 %v11972_v54  ;;  %v14493_v52 = vld [vmem:[#allocation5 + $0x704] sm:$0xf] }
 0x327   :  { %6269 = vmatpush.bf16.msra.mxu1 %v11720_v8  ;;  %6308 = vmatpush.bf16.msrb.mxu0 %v11468_v57  ;;  %v12289_v54 = vld [vmem:[#allocation5 + $0x720] sm:$0xf0]  ;;  %v12324_v8 = vor.u32 %v14501_v31, %v12321_v0  ;;  %v12072_v57 = vor.u32 %v14442_v43, %v12071_v22  ;;  %v11689_v31 = vld [vmem:[#allocation5 + $0x268] sm:$0xf0]  ;;  %v11439_v0 = vld [vmem:[#allocation5 + $0x50] sm:$0xf]  ;;  %v12196_v22 = vor.u32 %v14469_v63, %v12193_v24 }
 0x328   :  { %v12292_v61 = vor.u32 %v14493_v52, %v12289_v54  ;;  %v14379_v63 = vld [vmem:[#allocation5 + $0x36c] sm:$0xf0]  ;;  %v14311_v24 = vld [vmem:[#allocation5 + $0x154] sm:$0xf] }
 0x32a   :  { %6192 = vmatpush.bf16.msra.mxu3 %v12192_v25  ;;  %6231 = vmatpush.bf16.msrb.mxu2 %v11940_v39  ;;  %v15291_v25 = vld.sshfl [vmem:[#allocation1 + $0x8] sm:$0xff pattern:$0x73625140]  ;;  %v11535_v39 = vld [vmem:[#allocation5 + $0x110] sm:$0xf] }
 0x32b   :  { %6270 = vmatpush.bf16.msra.mxu1 %v11688_v53  ;;  %6309 = vmatpush.bf16.msrb.mxu0 %v11436_v44  ;;  %6128 = vst [vmem:[#allocation1] ss:$4 sm:$0xff] %v4844_v56  ;;  %v14485_v53 = vld [vmem:[#allocation5 + $0x6c4] sm:$0xf]  ;;  %v11536_v50 = vor.u32 %v14307_v59, %v11535_v39  ;;  %v11657_v56 = vld [vmem:[#allocation5 + $0x228] sm:$0xf0]  ;;  %v11912_v59 = vor.u32 %v14402_v18, %v11911_v49 }
 0x32c   :  { %v12257_v44 = vld [vmem:[#allocation5 + $0x6e0] sm:$0xf0]  ;;  %v14371_v18 = vld [vmem:[#allocation5 + $0x32c] sm:$0xf0] }
 0x32d   :  { %v12260_v10 = vor.u32 %v14485_v53, %v12257_v44  ;;  %v11633_v53 = vld [vmem:[#allocation5 + $0x1f0] sm:$0xf0]  ;;  %v11660_v44 = vor.u32 %v14334_v55, %v11657_v56  ;;  %v12263_v56 = vld [vmem:[#allocation5 + $0x6c8] sm:$0xf] }
 0x32e   :  { %6193 = vmatpush.bf16.msra.mxu3 %v12160_v13  ;;  %6232 = vmatpush.bf16.msrb.mxu2 %v11908_v12  ;;  %v15289_v46 = vpop.f32.mrf.mxu0  ;;  %v12008_v13 = vor.u32 %v14426_v4, %v12007_v1  ;;  %v14477_v12 = vld [vmem:[#allocation5 + $0x684] sm:$0xf]  ;;  %v12359_v4 = vld [vmem:[#allocation5 + $0x788] sm:$0xf] }
 0x32f   :  { %6271 = vmatpush.bf16.msra.mxu1 %v11656_v17  ;;  %6310 = vmatpush.bf16.msrb.mxu0 %v11404_v40  ;;  %v11975_v40 = vld [vmem:[#allocation5 + $0x488] sm:$0xf] }
 0x331   :  { %6233 = vmatmul.bf16.vlgmr.msrb.gmra.mxu2 %v15265_v15  ;;  %6194 = vmatmul.bf16.vlgmr.msra.gmra.mxu3 %v15276_v33 }
 0x332   :  { %6238 = vmatpush.bf16.msrb.mxu3 %v12388_v26  ;;  %6277 = vmatpush.bf16.msra.mxu2 %v12136_v20  ;;  %v14418_v26 = vld [vmem:[#allocation5 + $0x4a4] sm:$0xf0]  ;;  %v14350_v20 = vld [vmem:[#allocation5 + $0x28c] sm:$0xf] }
 0x333   :  { %6316 = vmatpush.bf16.msrb.mxu1 %v11884_v5  ;;  %6355 = vmatpush.bf16.msra.mxu0 %v11632_v34  ;;  %v14291_v5 = vld [vmem:[#allocation5 + $0xac] sm:$0xf0]  ;;  %v12228_v34 = vor.u32 %v14477_v12, %v12225_v14  ;;  %v11976_v37 = vor.u32 %v14418_v26, %v11975_v40  ;;  %v11724_v11 = vor.u32 %v14350_v20, %v11721_v21  ;;  %v14319_v14 = vld [vmem:[#allocation5 + $0x194] sm:$0xf]  ;;  %v12327_v26 = vld [vmem:[#allocation5 + $0x748] sm:$0xf] }
 0x334   :  { %6272 = vmatmul.bf16.vlgmr.msra.gmra.mxu1 %v15253_v58  ;;  %6311 = vmatmul.bf16.vlgmr.msrb.gmra.mxu0 %v15240_v32  ;;  %v11472_v36 = vor.u32 %v14291_v5, %v11471_v23  ;;  %v14387_v12 = vld [vmem:[#allocation5 + $0x3ac] sm:$0xf0]  ;;  %v14506_v20 = vld [vmem:[#allocation5 + $0x764] sm:$0xf0]  ;;  %v14438_v5 = vld [vmem:[#allocation5 + $0x54c] sm:$0xf] }
 0x336   :  { %6239 = vmatpush.bf16.msrb.mxu3 %v12356_v29  ;;  %6278 = vmatpush.bf16.msra.mxu2 %v12104_v3  ;;  %v4488_v17 = vpop.f32.mrf.mxu0  ;;  %v14410_v29 = vld [vmem:[#allocation5 + $0x464] sm:$0xf0]  ;;  %v14342_v3 = vld [vmem:[#allocation5 + $0x24c] sm:$0xf] }
 0x337   :  { %6317 = vmatpush.bf16.msrb.mxu1 %v11852_v35  ;;  %6356 = vmatpush.bf16.msra.mxu0 %v11600_v19  ;;  %v14283_v35 = vld [vmem:[#allocation5 + $0x6c] sm:$0xf0]  ;;  %v14461_v19 = vld [vmem:[#allocation5 + $0x604] sm:$0xf]  ;;  %v11944_v43 = vor.u32 %v14410_v29, %v11943_v41  ;;  %v11692_v51 = vor.u32 %v14342_v3, %v11689_v31  ;;  %v12360_v17 = vor.u32 %v14514_v6, %v12359_v4  ;;  %v12295_v3 = vld [vmem:[#allocation5 + $0x708] sm:$0xf] }
 0x338   :  { %v11440_v52 = vor.u32 %v14283_v35, %v11439_v0  ;;  %v12164_v39 = vor.u32 %v14461_v19, %v12161_v47  ;;  %v12328_v41 = vor.u32 %v14506_v20, %v12327_v26  ;;  %v14498_v31 = vld [vmem:[#allocation5 + $0x724] sm:$0xf0]  ;;  %v11791_v47 = vld [vmem:[#allocation5 + $0x310] sm:$0xf]  ;;  %v14414_v4 = vld [vmem:[#allocation5 + $0x48c] sm:$0xf] }
 0x339   :  { %v11977_v6 = vld [vmem:[#allocation5 + $0x4a8] sm:$0xf0] }
 0x33a   :  { %6240 = vmatpush.bf16.msrb.mxu3 %v12324_v8  ;;  %6279 = vmatpush.bf16.msra.mxu2 %v12072_v57  ;;  %v11407_v8 = vld [vmem:[#allocation5 + $0x10] sm:$0xf]  ;;  %v14406_v26 = vld [vmem:[#allocation5 + $0x44c] sm:$0xf] }
 0x33b   :  { %6318 = vmatpush.bf16.msrb.mxu1 %v11820_v2  ;;  %6357 = vmatpush.bf16.msra.mxu0 %v11568_v60  ;;  %v14275_v57 = vld [vmem:[#allocation5 + $0x2c] sm:$0xf0]  ;;  %v12137_v2 = vld [vmem:[#allocation5 + $0x5e8] sm:$0xf0] }
 0x33c   :  { %v11887_v60 = vld [vmem:[#allocation5 + $0x3d0] sm:$0xf]  ;;  %v12140_v1 = vor.u32 %v14454_v30, %v12137_v2  ;;  %v12009_v30 = vld [vmem:[#allocation5 + $0x4e8] sm:$0xf0] }
 0x33d   :  { %v11759_v2 = vld [vmem:[#allocation5 + $0x2d0] sm:$0xf]  ;;  %v11945_v20 = vld [vmem:[#allocation5 + $0x468] sm:$0xf0] }
 0x33e   :  { %6241 = vmatpush.bf16.msrb.mxu3 %v12292_v61  ;;  %6280 = vmatpush.bf16.msra.mxu2 %v12040_v62  ;;  %v15293_v54 = vpop.f32.mrf.mxu0  ;;  %v14395_v61 = vld [vmem:[#allocation5 + $0x3ec] sm:$0xf0]  ;;  %v14327_v62 = vld [vmem:[#allocation5 + $0x1d4] sm:$0xf] }
 0x33f   :  { %6319 = vmatpush.bf16.msrb.mxu1 %v11788_v48  ;;  %6358 = vmatpush.bf16.msra.mxu0 %v11536_v50  ;;  %v11408_v48 = vor.u32 %v14275_v57, %v11407_v8  ;;  %v12392_v50 = vor.u32 %v14522_v27, %v12391_v42  ;;  %v11888_v28 = vor.u32 %v14395_v61, %v11887_v60  ;;  %v14490_v8 = vld [vmem:[#allocation5 + $0x6e4] sm:$0xf0]  ;;  %v14422_v27 = vld [vmem:[#allocation5 + $0x4cc] sm:$0xf]  ;;  %v14363_v60 = vld [vmem:[#allocation5 + $0x2ec] sm:$0xf0] }
 0x340   :  { %v11636_v7 = vor.u32 %v14327_v62, %v11633_v53  ;;  %v11792_v57 = vor.u32 %v14371_v18, %v11791_v47  ;;  %v12264_v61 = vor.u32 %v14490_v8, %v12263_v56  ;;  %v12012_v62 = vor.u32 %v14422_v27, %v12009_v30  ;;  %v12231_v53 = vld [vmem:[#allocation5 + $0x688] sm:$0xf]  ;;  %v12393_v47 = vld [vmem:[#allocation5 + $0x7e8] sm:$0xf0]  ;;  %v12143_v18 = vld [vmem:[#allocation5 + $0x5d0] sm:$0xf] }
 0x341   :  { %v11889_v56 = vld [vmem:[#allocation5 + $0x3f0] sm:$0xf0]  ;;  %v11639_v8 = vld [vmem:[#allocation5 + $0x1d8] sm:$0xf] }
 0x342   :  { %6242 = vmatpush.bf16.msrb.mxu3 %v12260_v10  ;;  %6281 = vmatpush.bf16.msra.mxu2 %v12008_v13  ;;  %v12105_v10 = vld [vmem:[#allocation5 + $0x5a8] sm:$0xf0]  ;;  %v11855_v13 = vld [vmem:[#allocation5 + $0x390] sm:$0xf] }
 0x343   :  { %6320 = vmatpush.bf16.msrb.mxu1 %v11756_v45  ;;  %6359 = vmatpush.bf16.msra.mxu0 %v11504_v16  ;;  %v11601_v45 = vld [vmem:[#allocation5 + $0x1b0] sm:$0xf0]  ;;  %v12108_v40 = vor.u32 %v14446_v9, %v12105_v10  ;;  %v11856_v21 = vor.u32 %v14387_v12, %v11855_v13 }
 0x344   :  { %v11604_v23 = vor.u32 %v14319_v14, %v11601_v45  ;;  %v14287_v9 = vld [vmem:[#allocation5 + $0x94] sm:$0xf]  ;;  %v11980_v14 = vor.u32 %v14414_v4, %v11977_v6  ;;  %v12199_v45 = vld [vmem:[#allocation5 + $0x648] sm:$0xf] }
 0x345   :  { %v11473_v10 = vld [vmem:[#allocation5 + $0xb0] sm:$0xf0] }
 0x346   :  { %6243 = vmatpush.bf16.msrb.mxu3 %v12228_v34  ;;  %6282 = vmatpush.bf16.msra.mxu2 %v11976_v37  ;;  %v4540_v16 = vpop.f32.mrf.mxu0  ;;  %v12073_v34 = vld [vmem:[#allocation5 + $0x568] sm:$0xf0]  ;;  %v11823_v37 = vld [vmem:[#allocation5 + $0x350] sm:$0xf] }
 0x347   :  { %6321 = vmatpush.bf16.msrb.mxu1 %v11724_v11  ;;  %6360 = vmatpush.bf16.msra.mxu0 %v11472_v36  ;;  %v11569_v11 = vld [vmem:[#allocation5 + $0x170] sm:$0xf0]  ;;  %v4487_v36 = vadd.f32 %v15289_v46, %v15287_v38  ;;  %v12076_v29 = vor.u32 %v14438_v5, %v12073_v34  ;;  %v11824_v0 = vor.u32 %v14379_v63, %v11823_v37  ;;  %v14474_v16 = vld [vmem:[#allocation5 + $0x664] sm:$0xf0] }
 0x348   :  { %v11572_v35 = vor.u32 %v14311_v24, %v11569_v11  ;;  %v12296_v46 = vor.u32 %v14498_v31, %v12295_v3  ;;  %v14279_v5 = vld [vmem:[#allocation5 + $0x54] sm:$0xf]  ;;  %v12167_v37 = vld [vmem:[#allocation5 + $0x608] sm:$0xf]  ;;  %v12200_v63 = vor.u32 %v14474_v16, %v12199_v45  ;;  %v11948_v24 = vor.u32 %v14406_v26, %v11945_v20 }
 0x349   :  { %v11441_v34 = vld [vmem:[#allocation5 + $0x70] sm:$0xf0]  ;;  %v14466_v11 = vld [vmem:[#allocation5 + $0x624] sm:$0xf0] }
 0x34a   :  { %6244 = vmatpush.bf16.msrb.mxu3 %v12196_v22  ;;  %6283 = vmatpush.bf16.msra.mxu2 %v11944_v43  ;;  %v14430_v22 = vld [vmem:[#allocation5 + $0x50c] sm:$0xf]  ;;  %v11444_v3 = vor.u32 %v14279_v5, %v11441_v34  ;;  %v14375_v45 = vld [vmem:[#allocation5 + $0x354] sm:$0xf] }
 0x34b   :  { %6322 = vmatpush.bf16.msrb.mxu1 %v11692_v51  ;;  %6361 = vmatpush.bf16.msra.mxu0 %v11440_v52  ;;  %v12041_v43 = vld [vmem:[#allocation5 + $0x528] sm:$0xf0]  ;;  %v14303_v51 = vld [vmem:[#allocation5 + $0x114] sm:$0xf] }
 0x34c   :  { %v11537_v52 = vld [vmem:[#allocation5 + $0x130] sm:$0xf0]  ;;  %v12044_v55 = vor.u32 %v14430_v22, %v12041_v43  ;;  %v14518_v43 = vld [vmem:[#allocation5 + $0x7cc] sm:$0xf] }
 0x34d   :  { %v11540_v42 = vor.u32 %v14303_v51, %v11537_v52  ;;  %v11409_v22 = vld [vmem:[#allocation5 + $0x30] sm:$0xf0]  ;;  %v14459_v51 = vld [vmem:[#allocation5 + $0x5ec] sm:$0xf0]  ;;  %v12396_v30 = vor.u32 %v14518_v43, %v12393_v47  ;;  %v12297_v5 = vld [vmem:[#allocation5 + $0x728] sm:$0xf0] }
 0x34e   :  { %6245 = vmatpush.bf16.msrb.mxu3 %v12164_v39  ;;  %6284 = vmatpush.bf16.msra.mxu2 %v11912_v59  ;;  %v4499_v19 = vpop.f32.mrf.mxu1  ;;  %v15303_v38 = vpop.f32.mrf.mxu0  ;;  %v14295_v39 = vld [vmem:[#allocation5 + $0xd4] sm:$0xf]  ;;  %v14486_v47 = vld [vmem:[#allocation5 + $0x6cc] sm:$0xf] }
 0x34f   :  { %6323 = vmatpush.bf16.msrb.mxu1 %v11660_v44  ;;  %6362 = vmatpush.bf16.msra.mxu0 %v11408_v48  ;;  %v15301_v49 = vadd.f32 %v4499_v19, %v4487_v36  ;;  %v11505_v59 = vld [vmem:[#allocation5 + $0xf0] sm:$0xf0]  ;;  %v14482_v44 = vld [vmem:[#allocation5 + $0x6a4] sm:$0xf0]  ;;  %v11760_v48 = vor.u32 %v14363_v60, %v11759_v2  ;;  %v14398_v36 = vld [vmem:[#allocation5 + $0x40c] sm:$0xf]  ;;  %v12144_v2 = vor.u32 %v14459_v51, %v12143_v18 }
 0x350   :  { %v12232_v12 = vor.u32 %v14482_v44, %v12231_v53  ;;  %v14271_v19 = vld [vmem:[#allocation5 + $0x14] sm:$0xf]  ;;  %v14510_v60 = vld [vmem:[#allocation5 + $0x78c] sm:$0xf]  ;;  %v14451_v53 = vld [vmem:[#allocation5 + $0x5ac] sm:$0xf0] }
 0x351   :  { %6246 = vmatmul.bf16.vlgmr.msrb.gmra.mxu3 %v15276_v33  ;;  %6285 = vmatmul.bf16.vlgmr.msra.gmra.mxu2 %v15265_v15  ;;  %v14391_v52 = vld [vmem:[#allocation5 + $0x3d4] sm:$0xf]  ;;  %v11412_v27 = vor.u32 %v14271_v19, %v11409_v22  ;;  %v12265_v18 = vld [vmem:[#allocation5 + $0x6e8] sm:$0xf0] }
 0x352   :  { %6290 = vmatpush.bf16.msra.mxu3 %v12392_v50  ;;  %6329 = vmatpush.bf16.msrb.mxu2 %v12140_v1  ;;  %v11508_v50 = vor.u32 %v14295_v39, %v11505_v59  ;;  %v12361_v39 = vld [vmem:[#allocation5 + $0x7a8] sm:$0xf0]  ;;  %v11892_v59 = vor.u32 %v14391_v52, %v11889_v56  ;;  %v14383_v44 = vld [vmem:[#allocation5 + $0x394] sm:$0xf] }
 0x353   :  { %6368 = vmatpush.bf16.msra.mxu1 %v11888_v28  ;;  %6407 = vmatpush.bf16.msrb.mxu0 %v11636_v7  ;;  %v11727_v28 = vld [vmem:[#allocation5 + $0x290] sm:$0xf]  ;;  %v12364_v6 = vor.u32 %v14510_v60, %v12361_v39  ;;  %v11825_v16 = vld [vmem:[#allocation5 + $0x370] sm:$0xf0]  ;;  %v12233_v60 = vld [vmem:[#allocation5 + $0x6a8] sm:$0xf0] }
 0x354   :  { %6324 = vmatmul.bf16.vlgmr.msrb.gmra.mxu1 %v15253_v58  ;;  %6363 = vmatmul.bf16.vlgmr.msra.gmra.mxu0 %v15240_v32  ;;  %v14355_v7 = vld [vmem:[#allocation5 + $0x2ac] sm:$0xf0]  ;;  %v11828_v34 = vor.u32 %v14375_v45, %v11825_v16  ;;  %v14343_v45 = vld [vmem:[#allocation5 + $0x254] sm:$0xf] }
 0x355   :  { %v6131_v26 = vld.sshfl [vmem:[#allocation1] sm:$0xff pattern:$0x73625140] }
 0x356   :  { %6291 = vmatpush.bf16.msra.mxu3 %v12360_v17  ;;  %6330 = vmatpush.bf16.msrb.mxu2 %v12108_v40  ;;  %v4501_v1 = vpop.f32.mrf.mxu1  ;;  %v6158_v13 = vpop.f32.mrf.mxu0  ;;  %v11728_v17 = vor.u32 %v14355_v7, %v11727_v28  ;;  %v11476_v40 = vor.u32 %v14287_v9, %v11473_v10  ;;  %v14502_v7 = vld [vmem:[#allocation5 + $0x74c] sm:$0xf] }
 0x357   :  { %6369 = vmatpush.bf16.msra.mxu1 %v11856_v21  ;;  %6408 = vmatpush.bf16.msrb.mxu0 %v11604_v23  ;;  %v11695_v21 = vld [vmem:[#allocation5 + $0x250] sm:$0xf]  ;;  %v14324_v1 = vld [vmem:[#allocation5 + $0x1b4] sm:$0xf0]  ;;  %v12329_v9 = vld [vmem:[#allocation5 + $0x768] sm:$0xf0] }
 0x358   :  { %v14347_v23 = vld [vmem:[#allocation5 + $0x26c] sm:$0xf0]  ;;  %v12332_v20 = vor.u32 %v14502_v7, %v12329_v9  ;;  %v14470_v7 = vld [vmem:[#allocation5 + $0x64c] sm:$0xf] }
 0x359   :  { %v12201_v9 = vld [vmem:[#allocation5 + $0x668] sm:$0xf0] }
 0x35a   :  { %6292 = vmatpush.bf16.msra.mxu3 %v12328_v41  ;;  %6331 = vmatpush.bf16.msrb.mxu2 %v12076_v29  ;;  %v11913_v41 = vld [vmem:[#allocation5 + $0x428] sm:$0xf0]  ;;  %v11696_v29 = vor.u32 %v14347_v23, %v11695_v21 }
 0x35b   :  { %6370 = vmatpush.bf16.msra.mxu1 %v11824_v0  ;;  %6409 = vmatpush.bf16.msrb.mxu0 %v11572_v35  ;;  %v11663_v0 = vld [vmem:[#allocation5 + $0x210] sm:$0xf]  ;;  %v14494_v23 = vld [vmem:[#allocation5 + $0x70c] sm:$0xf] }
 0x35c   :  { %v14339_v35 = vld [vmem:[#allocation5 + $0x22c] sm:$0xf0]  ;;  %v12300_v22 = vor.u32 %v14494_v23, %v12297_v5  ;;  %v12169_v5 = vld [vmem:[#allocation5 + $0x628] sm:$0xf0] }
 0x35e   :  { %6293 = vmatpush.bf16.msra.mxu3 %v12296_v46  ;;  %6332 = vmatpush.bf16.msrb.mxu2 %v12044_v55  ;;  %v15305_v31 = vpop.f32.mrf.mxu1  ;;  %v12168_v46 = vor.u32 %v14466_v11, %v12167_v37  ;;  %v11916_v55 = vor.u32 %v14398_v36, %v11913_v41  ;;  %v14367_v11 = vld [vmem:[#allocation5 + $0x314] sm:$0xf]  ;;  %v6157_v36 = vadd.f32 %v15303_v38, %v6131_v26  ;;  %v14427_v38 = vld [vmem:[#allocation5 + $0x4ec] sm:$0xf0]  ;;  %v14284_v26 = vld [vmem:[#allocation5 + $0x74] sm:$0xf0] }
 0x35f   :  { %6371 = vmatpush.bf16.msra.mxu1 %v11792_v57  ;;  %6410 = vmatpush.bf16.msrb.mxu0 %v11540_v42  ;;  %v14332_v57 = vld [vmem:[#allocation5 + $0x1f4] sm:$0xf0]  ;;  %v11664_v42 = vor.u32 %v14339_v35, %v11663_v0  ;;  %v11793_v41 = vld [vmem:[#allocation5 + $0x330] sm:$0xf0] }
 0x360   :  { %v11796_v51 = vor.u32 %v14367_v11, %v11793_v41  ;;  %v14335_v11 = vld [vmem:[#allocation5 + $0x214] sm:$0xf]  ;;  %v11415_v41 = vld [vmem:[#allocation5 + $0x18] sm:$0xf] }
 0x362   :  { %6294 = vmatpush.bf16.msra.mxu3 %v12264_v61  ;;  %6333 = vmatpush.bf16.msrb.mxu2 %v12012_v62  ;;  %v11640_v61 = vor.u32 %v14332_v57, %v11639_v8  ;;  %v12111_v62 = vld [vmem:[#allocation5 + $0x590] sm:$0xf]  ;;  %v11761_v8 = vld [vmem:[#allocation5 + $0x2f0] sm:$0xf0]  ;;  %v11511_v57 = vld [vmem:[#allocation5 + $0xd8] sm:$0xf] }
 0x363   :  { %6372 = vmatpush.bf16.msra.mxu1 %v11760_v48  ;;  %6411 = vmatpush.bf16.msrb.mxu0 %v11508_v50  ;;  %v11857_v48 = vld [vmem:[#allocation5 + $0x3b0] sm:$0xf0]  ;;  %v11607_v50 = vld [vmem:[#allocation5 + $0x198] sm:$0xf]  ;;  %v12112_v28 = vor.u32 %v14451_v53, %v12111_v62  ;;  %v14419_v62 = vld [vmem:[#allocation5 + $0x4ac] sm:$0xf0] }
 0x364   :  { %v11860_v10 = vor.u32 %v14383_v44, %v11857_v48  ;;  %v11608_v13 = vor.u32 %v14324_v1, %v11607_v50  ;;  %v14351_v53 = vld [vmem:[#allocation5 + $0x294] sm:$0xf]  ;;  %v11479_v48 = vld [vmem:[#allocation5 + $0x98] sm:$0xf] }
 0x365   :  { %v11729_v44 = vld [vmem:[#allocation5 + $0x2b0] sm:$0xf0]  ;;  %v14292_v50 = vld [vmem:[#allocation5 + $0xb4] sm:$0xf0] }
 0x366   :  { %6295 = vmatpush.bf16.msra.mxu3 %v12232_v12  ;;  %6334 = vmatpush.bf16.msrb.mxu2 %v11980_v14  ;;  %v4553_v4 = vpop.f32.mrf.mxu1  ;;  %v12079_v12 = vld [vmem:[#allocation5 + $0x550] sm:$0xf] }
 0x367   :  { %6373 = vmatpush.bf16.msra.mxu1 %v11728_v17  ;;  %6412 = vmatpush.bf16.msrb.mxu0 %v11476_v40  ;;  %v14443_v14 = vld [vmem:[#allocation5 + $0x56c] sm:$0xf0]  ;;  %v11575_v17 = vld [vmem:[#allocation5 + $0x158] sm:$0xf] }
 0x368   :  { %v14316_v40 = vld [vmem:[#allocation5 + $0x174] sm:$0xf0]  ;;  %v12080_v21 = vor.u32 %v14443_v14, %v12079_v12  ;;  %v11951_v12 = vld [vmem:[#allocation5 + $0x450] sm:$0xf] }
 0x369   :  { %v11576_v37 = vor.u32 %v14316_v40, %v11575_v17  ;;  %v14411_v14 = vld [vmem:[#allocation5 + $0x46c] sm:$0xf0]  ;;  %v11697_v17 = vld [vmem:[#allocation5 + $0x270] sm:$0xf0]  ;;  %v11447_v40 = vld [vmem:[#allocation5 + $0x58] sm:$0xf] }
 0x36a   :  { %6296 = vmatpush.bf16.msra.mxu3 %v12200_v63  ;;  %6335 = vmatpush.bf16.msrb.mxu2 %v11948_v24  ;;  %v12047_v63 = vld [vmem:[#allocation5 + $0x510] sm:$0xf]  ;;  %v11952_v23 = vor.u32 %v14411_v14, %v11951_v12  ;;  %v14380_v12 = vld [vmem:[#allocation5 + $0x374] sm:$0xf0]  ;;  %v14312_v14 = vld [vmem:[#allocation5 + $0x15c] sm:$0xf] }
 0x36b   :  { %6374 = vmatpush.bf16.msra.mxu1 %v11696_v29  ;;  %6413 = vmatpush.bf16.msrb.mxu0 %v11444_v3  ;;  %v14435_v24 = vld [vmem:[#allocation5 + $0x52c] sm:$0xf0]  ;;  %v11543_v29 = vld [vmem:[#allocation5 + $0x118] sm:$0xf] }
 0x36c   :  { %v14308_v3 = vld [vmem:[#allocation5 + $0x134] sm:$0xf0]  ;;  %v12048_v43 = vor.u32 %v14435_v24, %v12047_v63  ;;  %v11700_v63 = vor.u32 %v14343_v45, %v11697_v17  ;;  %v11448_v24 = vor.u32 %v14284_v26, %v11447_v40  ;;  %v11577_v45 = vld [vmem:[#allocation5 + $0x178] sm:$0xf0] }
 0x36d   :  { %v11544_v52 = vor.u32 %v14308_v3, %v11543_v29  ;;  %v14276_v29 = vld [vmem:[#allocation5 + $0x34] sm:$0xf0]  ;;  %v12399_v3 = vld [vmem:[#allocation5 + $0x7d0] sm:$0xf] }
 0x36e   :  { %6297 = vmatpush.bf16.msra.mxu3 %v12168_v46  ;;  %6336 = vmatpush.bf16.msrb.mxu2 %v11916_v55  ;;  %v15312_v0 = vpop.f32.mrf.mxu0  ;;  %v12015_v46 = vld [vmem:[#allocation5 + $0x4d0] sm:$0xf]  ;;  %v14359_v55 = vld [vmem:[#allocation5 + $0x2d4] sm:$0xf] }
 0x36f   :  { %6375 = vmatpush.bf16.msra.mxu1 %v11664_v42  ;;  %6414 = vmatpush.bf16.msrb.mxu0 %v11412_v27  ;;  %v14300_v42 = vld [vmem:[#allocation5 + $0xf4] sm:$0xf0]  ;;  %v12268_v27 = vor.u32 %v14486_v47, %v12265_v18  ;;  %v11764_v39 = vor.u32 %v14359_v55, %v11761_v8  ;;  %v11416_v8 = vor.u32 %v14276_v29, %v11415_v41  ;;  %v11545_v41 = vld [vmem:[#allocation5 + $0x138] sm:$0xf0] }
 0x370   :  { %v6169_v35 = vpop.f32.mrf.mxu1  ;;  %v11895_v47 = vld [vmem:[#allocation5 + $0x3d8] sm:$0xf] }
 0x371   :  { %6298 = vmatmul.bf16.vlgmr.msra.gmra.mxu3 %v15276_v33  ;;  %6337 = vmatmul.bf16.vlgmr.msrb.gmra.mxu2 %v15265_v15  ;;  %v15314_v19 = vadd.f32 %v6169_v35, %v6157_v36  ;;  %v11665_v36 = vld [vmem:[#allocation5 + $0x230] sm:$0xf0]  ;;  %v14523_v35 = vld [vmem:[#allocation5 + $0x7ec] sm:$0xf0] }
 0x372   :  { %6342 = vmatpush.bf16.msrb.mxu3 %v12396_v30  ;;  %6381 = vmatpush.bf16.msra.mxu2 %v12144_v2  ;;  %v12016_v30 = vor.u32 %v14427_v38, %v12015_v46  ;;  %v14478_v2 = vld [vmem:[#allocation5 + $0x68c] sm:$0xf]  ;;  %v14328_v46 = vld [vmem:[#allocation5 + $0x1dc] sm:$0xf]  ;;  %v11668_v55 = vor.u32 %v14335_v11, %v11665_v36  ;;  %v14372_v11 = vld [vmem:[#allocation5 + $0x334] sm:$0xf0] }
 0x373   :  { %6420 = vmatpush.bf16.msrb.mxu1 %v11892_v59  ;;  %6459 = vmatpush.bf16.msra.mxu0 %v11640_v61  ;;  %v11512_v59 = vor.u32 %v14300_v42, %v11511_v57  ;;  %v11983_v61 = vld [vmem:[#allocation5 + $0x490] sm:$0xf]  ;;  %v11641_v38 = vld [vmem:[#allocation5 + $0x1f8] sm:$0xf0]  ;;  %v12400_v57 = vor.u32 %v14523_v35, %v12399_v3 }
 0x374   :  { %6376 = vmatmul.bf16.vlgmr.msra.gmra.mxu1 %v15253_v58  ;;  %6415 = vmatmul.bf16.vlgmr.msrb.gmra.mxu0 %v15240_v32  ;;  %v15316_v56 = vpop.f32.mrf.mxu2  ;;  %v14304_v36 = vld [vmem:[#allocation5 + $0x11c] sm:$0xf] }
 0x376   :  { %6343 = vmatpush.bf16.msrb.mxu3 %v12364_v6  ;;  %6382 = vmatpush.bf16.msra.mxu2 %v12112_v28  ;;  %v6210_v1 = vpop.f32.mrf.mxu0  ;;  %v12236_v6 = vor.u32 %v14478_v2, %v12233_v60  ;;  %v11984_v28 = vor.u32 %v14419_v62, %v11983_v61  ;;  %v14515_v2 = vld [vmem:[#allocation5 + $0x7ac] sm:$0xf0]  ;;  %v12113_v61 = vld [vmem:[#allocation5 + $0x5b0] sm:$0xf0]  ;;  %v11863_v62 = vld [vmem:[#allocation5 + $0x398] sm:$0xf] }
 0x377   :  { %6421 = vmatpush.bf16.msrb.mxu1 %v11860_v10  ;;  %6460 = vmatpush.bf16.msra.mxu0 %v11608_v13  ;;  %v11732_v10 = vor.u32 %v14351_v53, %v11729_v44  ;;  %v11480_v13 = vor.u32 %v14292_v50, %v11479_v48  ;;  %v14388_v53 = vld [vmem:[#allocation5 + $0x3b4] sm:$0xf0]  ;;  %v14320_v44 = vld [vmem:[#allocation5 + $0x19c] sm:$0xf] }
 0x378   :  { %v6171_v4 = vpop.f32.mrf.mxu1  ;;  %v11609_v48 = vld [vmem:[#allocation5 + $0x1b8] sm:$0xf0] }
 0x379   :  { %v12335_v4 = vld [vmem:[#allocation5 + $0x750] sm:$0xf] }
 0x37a   :  { %6344 = vmatpush.bf16.msrb.mxu3 %v12332_v20  ;;  %6383 = vmatpush.bf16.msra.mxu2 %v12080_v21  ;;  %v14462_v20 = vld [vmem:[#allocation5 + $0x60c] sm:$0xf]  ;;  %v12204_v21 = vor.u32 %v14470_v7, %v12201_v9  ;;  %v11612_v7 = vor.u32 %v14320_v44, %v11609_v48  ;;  %v14439_v9 = vld [vmem:[#allocation5 + $0x554] sm:$0xf]  ;;  %v11735_v44 = vld [vmem:[#allocation5 + $0x298] sm:$0xf] }
 0x37b   :  { %6422 = vmatpush.bf16.msrb.mxu1 %v11828_v34  ;;  %6461 = vmatpush.bf16.msra.mxu0 %v11576_v37  ;;  %v11919_v34 = vld [vmem:[#allocation5 + $0x410] sm:$0xf]  ;;  %v12172_v18 = vor.u32 %v14462_v20, %v12169_v5  ;;  %v11580_v5 = vor.u32 %v14312_v14, %v11577_v45 }
 0x37c   :  { %v4514_v16 = vpop.f32.mrf.mxu2  ;;  %v14403_v37 = vld [vmem:[#allocation5 + $0x42c] sm:$0xf0] }
 0x37d   :  { %v6132_v16 = vld.sshfl [vmem:[#allocation1 + $0x8] sm:$0xff pattern:$0x73625140]  ;;  %v12303_v20 = vld [vmem:[#allocation5 + $0x710] sm:$0xf] }
 0x37e   :  { %6345 = vmatpush.bf16.msrb.mxu3 %v12300_v22  ;;  %6384 = vmatpush.bf16.msra.mxu2 %v12048_v43  ;;  %v14455_v22 = vld [vmem:[#allocation5 + $0x5d4] sm:$0xf] }
 0x37f   :  { %6423 = vmatpush.bf16.msrb.mxu1 %v11796_v51  ;;  %6462 = vmatpush.bf16.msra.mxu0 %v11544_v52  ;;  %v12145_v43 = vld [vmem:[#allocation5 + $0x5f0] sm:$0xf0]  ;;  %v11920_v51 = vor.u32 %v14403_v37, %v11919_v34  ;;  %v14396_v52 = vld [vmem:[#allocation5 + $0x3f4] sm:$0xf0] }
 0x380   :  { %v12148_v42 = vor.u32 %v14455_v22, %v12145_v43  ;;  %v11896_v60 = vor.u32 %v14396_v52, %v11895_v47  ;;  %v14431_v34 = vld [vmem:[#allocation5 + $0x514] sm:$0xf]  ;;  %v12271_v47 = vld [vmem:[#allocation5 + $0x6d0] sm:$0xf]  ;;  %v11548_v52 = vor.u32 %v14304_v36, %v11545_v41 }
 0x381   :  { %v12049_v37 = vld [vmem:[#allocation5 + $0x530] sm:$0xf0] }
 0x382   :  { %6346 = vmatpush.bf16.msrb.mxu3 %v12268_v27  ;;  %6385 = vmatpush.bf16.msra.mxu2 %v12016_v30  ;;  %v12367_v30 = vld [vmem:[#allocation5 + $0x790] sm:$0xf]  ;;  %v12052_v43 = vor.u32 %v14431_v34, %v12049_v37  ;;  %v11921_v41 = vld [vmem:[#allocation5 + $0x430] sm:$0xf0] }
 0x383   :  { %6424 = vmatpush.bf16.msrb.mxu1 %v11764_v39  ;;  %6463 = vmatpush.bf16.msra.mxu0 %v11512_v59  ;;  %v11644_v39 = vor.u32 %v14328_v46, %v11641_v38  ;;  %v14447_v59 = vld [vmem:[#allocation5 + $0x594] sm:$0xf]  ;;  %v12368_v50 = vor.u32 %v14515_v2, %v12367_v30  ;;  %v11767_v38 = vld [vmem:[#allocation5 + $0x2d8] sm:$0xf]  ;;  %v12175_v34 = vld [vmem:[#allocation5 + $0x610] sm:$0xf] }
 0x384   :  { %v15318_v27 = vpop.f32.mrf.mxu2  ;;  %v12116_v1 = vor.u32 %v14447_v59, %v12113_v61  ;;  %v14423_v46 = vld [vmem:[#allocation5 + $0x4d4] sm:$0xf]  ;;  %v14467_v37 = vld [vmem:[#allocation5 + $0x62c] sm:$0xf0] }
 0x386   :  { %6347 = vmatpush.bf16.msrb.mxu3 %v12236_v6  ;;  %6386 = vmatpush.bf16.msra.mxu2 %v11984_v28  ;;  %v14507_v6 = vld [vmem:[#allocation5 + $0x76c] sm:$0xf0]  ;;  %v11864_v28 = vor.u32 %v14388_v53, %v11863_v62  ;;  %v14415_v62 = vld [vmem:[#allocation5 + $0x494] sm:$0xf] }
 0x387   :  { %6425 = vmatpush.bf16.msrb.mxu1 %v11732_v10  ;;  %6464 = vmatpush.bf16.msra.mxu0 %v11480_v13  ;;  %v12081_v10 = vld [vmem:[#allocation5 + $0x570] sm:$0xf0]  ;;  %v11831_v13 = vld [vmem:[#allocation5 + $0x358] sm:$0xf]  ;;  %v12336_v17 = vor.u32 %v14507_v6, %v12335_v4  ;;  %v11481_v4 = vld [vmem:[#allocation5 + $0xb8] sm:$0xf0] }
 0x388   :  { %v12084_v40 = vor.u32 %v14439_v9, %v12081_v10  ;;  %v11985_v53 = vld [vmem:[#allocation5 + $0x4b0] sm:$0xf0] }
 0x389   :  { %v11988_v10 = vor.u32 %v14415_v62, %v11985_v53 }
 0x38a   :  { %6348 = vmatpush.bf16.msrb.mxu3 %v12204_v21  ;;  %6387 = vmatpush.bf16.msra.mxu2 %v11952_v23  ;;  %v14499_v21 = vld [vmem:[#allocation5 + $0x72c] sm:$0xf0]  ;;  %v11832_v23 = vor.u32 %v14380_v12, %v11831_v13 }
 0x38b   :  { %6426 = vmatpush.bf16.msrb.mxu1 %v11700_v63  ;;  %6465 = vmatpush.bf16.msra.mxu0 %v11448_v24  ;;  %v11799_v63 = vld [vmem:[#allocation5 + $0x318] sm:$0xf]  ;;  %v6209_v24 = vadd.f32 %v15312_v0, %v6132_v16  ;;  %v12304_v22 = vor.u32 %v14499_v21, %v12303_v20  ;;  %v12017_v0 = vld [vmem:[#allocation5 + $0x4f0] sm:$0xf0]  ;;  %v12207_v13 = vld [vmem:[#allocation5 + $0x650] sm:$0xf] }
 0x38c   :  { %v4566_v26 = vpop.f32.mrf.mxu2  ;;  %v12020_v2 = vor.u32 %v14423_v46, %v12017_v0  ;;  %v14475_v12 = vld [vmem:[#allocation5 + $0x66c] sm:$0xf0]  ;;  %v14407_v16 = vld [vmem:[#allocation5 + $0x454] sm:$0xf]  ;;  %v14348_v20 = vld [vmem:[#allocation5 + $0x274] sm:$0xf0] }
 0x38d   :  { %v14280_v21 = vld [vmem:[#allocation5 + $0x5c] sm:$0xf]  ;;  %v12401_v46 = vld [vmem:[#allocation5 + $0x7f0] sm:$0xf0]  ;;  %v12151_v0 = vld [vmem:[#allocation5 + $0x5d8] sm:$0xf] }
 0x38e   :  { %6349 = vmatpush.bf16.msrb.mxu3 %v12172_v18  ;;  %6388 = vmatpush.bf16.msra.mxu2 %v11920_v51  ;;  %v6221_v29 = vpop.f32.mrf.mxu1  ;;  %v14491_v18 = vld [vmem:[#allocation5 + $0x6ec] sm:$0xf0]  ;;  %v11800_v51 = vor.u32 %v14372_v11, %v11799_v63  ;;  %v14399_v63 = vld [vmem:[#allocation5 + $0x414] sm:$0xf] }
 0x38f   :  { %6427 = vmatpush.bf16.msrb.mxu1 %v11668_v55  ;;  %6466 = vmatpush.bf16.msra.mxu0 %v11416_v8  ;;  %v15327_v35 = vadd.f32 %v6221_v29, %v6209_v24  ;;  %v14364_v8 = vld [vmem:[#allocation5 + $0x2f4] sm:$0xf0]  ;;  %v12272_v30 = vor.u32 %v14491_v18, %v12271_v47  ;;  %v4539_v24 = vadd.f32 %v15293_v54, %v15291_v25  ;;  %v14272_v47 = vld [vmem:[#allocation5 + $0x1c] sm:$0xf] }
 0x390   :  { %v11768_v59 = vor.u32 %v14364_v8, %v11767_v38  ;;  %v11671_v29 = vld [vmem:[#allocation5 + $0x218] sm:$0xf]  ;;  %v11417_v18 = vld [vmem:[#allocation5 + $0x38] sm:$0xf0]  ;;  %v12176_v8 = vor.u32 %v14467_v37, %v12175_v34  ;;  %v11924_v25 = vor.u32 %v14399_v63, %v11921_v41 }
 0x391   :  { %6350 = vmatmul.bf16.vlgmr.msrb.gmra.mxu3 %v15276_v33  ;;  %6389 = vmatmul.bf16.vlgmr.msra.gmra.mxu2 %v15265_v15  ;;  %v15325_v3 = vpop.f32.mrf.mxu0  ;;  %v14460_v38 = vld [vmem:[#allocation5 + $0x5f4] sm:$0xf0]  ;;  %v14392_v54 = vld [vmem:[#allocation5 + $0x3dc] sm:$0xf] }
 0x392   :  { %6394 = vmatpush.bf16.msra.mxu3 %v12400_v57  ;;  %6433 = vmatpush.bf16.msrb.mxu2 %v12148_v42  ;;  %v14296_v57 = vld [vmem:[#allocation5 + $0xdc] sm:$0xf] }
 0x393   :  { %6472 = vmatpush.bf16.msra.mxu1 %v11896_v60  ;;  %6511 = vmatpush.bf16.msrb.mxu0 %v11644_v39  ;;  %v11513_v42 = vld [vmem:[#allocation5 + $0xf8] sm:$0xf0]  ;;  %v12239_v60 = vld [vmem:[#allocation5 + $0x690] sm:$0xf] }
 0x394   :  { %6428 = vmatmul.bf16.vlgmr.msrb.gmra.mxu1 %v15253_v58  ;;  %6467 = vmatmul.bf16.vlgmr.msra.gmra.mxu0 %v15240_v32  ;;  %v15329_v55 = vpop.f32.mrf.mxu3  ;;  %v14483_v39 = vld [vmem:[#allocation5 + $0x6ac] sm:$0xf0]  ;;  %v11516_v61 = vor.u32 %v14296_v57, %v11513_v42  ;;  %v11897_v57 = vld [vmem:[#allocation5 + $0x3f8] sm:$0xf0] }
 0x395   :  { %v12240_v9 = vor.u32 %v14483_v39, %v12239_v60  ;;  %v12152_v39 = vor.u32 %v14460_v38, %v12151_v0  ;;  %v11900_v62 = vor.u32 %v14392_v54, %v11897_v57  ;;  %v14368_v37 = vld [vmem:[#allocation5 + $0x31c] sm:$0xf]  ;;  %v14479_v0 = vld [vmem:[#allocation5 + $0x694] sm:$0xf]  ;;  %v11991_v54 = vld [vmem:[#allocation5 + $0x498] sm:$0xf] }
 0x396   :  { %6395 = vmatpush.bf16.msra.mxu3 %v12368_v50  ;;  %6434 = vmatpush.bf16.msrb.mxu2 %v12116_v1  ;;  %v14356_v50 = vld [vmem:[#allocation5 + $0x2b4] sm:$0xf0]  ;;  %v14288_v1 = vld [vmem:[#allocation5 + $0x9c] sm:$0xf] }
 0x397   :  { %6473 = vmatpush.bf16.msra.mxu1 %v11864_v28  ;;  %6512 = vmatpush.bf16.msrb.mxu0 %v11612_v7  ;;  %v6182_v48 = vpop.f32.mrf.mxu2  ;;  %v6223_v28 = vpop.f32.mrf.mxu1  ;;  %v11736_v14 = vor.u32 %v14356_v50, %v11735_v44  ;;  %v11484_v45 = vor.u32 %v14288_v1, %v11481_v4  ;;  %v12369_v44 = vld [vmem:[#allocation5 + $0x7b0] sm:$0xf0]  ;;  %v14452_v50 = vld [vmem:[#allocation5 + $0x5b4] sm:$0xf0]  ;;  %v11865_v1 = vld [vmem:[#allocation5 + $0x3b8] sm:$0xf0] }
 0x398   :  { %v15332_v6 = vadd.f32 %v6182_v48, %v15314_v19  ;;  %v11449_v19 = vld [vmem:[#allocation5 + $0x78] sm:$0xf0]  ;;  %v12119_v48 = vld [vmem:[#allocation5 + $0x598] sm:$0xf] }
 0x399   :  { %v6262_v7 = vpop.f32.mrf.mxu0  ;;  %v11452_v36 = vor.u32 %v14280_v21, %v11449_v19  ;;  %v12305_v19 = vld [vmem:[#allocation5 + $0x730] sm:$0xf0]  ;;  %v11801_v63 = vld [vmem:[#allocation5 + $0x338] sm:$0xf0]  ;;  %v14420_v57 = vld [vmem:[#allocation5 + $0x4b4] sm:$0xf0] }
 0x39a   :  { %6396 = vmatpush.bf16.msra.mxu3 %v12336_v17  ;;  %6435 = vmatpush.bf16.msrb.mxu2 %v12084_v40  ;;  %v11953_v17 = vld [vmem:[#allocation5 + $0x470] sm:$0xf0]  ;;  %v11703_v40 = vld [vmem:[#allocation5 + $0x258] sm:$0xf] }
 0x39b   :  { %6474 = vmatpush.bf16.msra.mxu1 %v11832_v23  ;;  %6513 = vmatpush.bf16.msrb.mxu0 %v11580_v5  ;;  %v12208_v23 = vor.u32 %v14475_v12, %v12207_v13  ;;  %v11956_v5 = vor.u32 %v14407_v16, %v11953_v17  ;;  %v11704_v11 = vor.u32 %v14348_v20, %v11703_v40  ;;  %v12337_v13 = vld [vmem:[#allocation5 + $0x770] sm:$0xf0]  ;;  %v12087_v12 = vld [vmem:[#allocation5 + $0x558] sm:$0xf] }
 0x39c   :  { %v4527_v26 = vpop.f32.mrf.mxu3  ;;  %v6133_v16 = vld.sshfl [vmem:[#allocation1 + $0x10] sm:$0xff pattern:$0x73625140]  ;;  %v14495_v20 = vld [vmem:[#allocation5 + $0x714] sm:$0xf] }
 0x39d   :  { %v6261_v34 = vadd.f32 %v15325_v3, %v6133_v16  ;;  %v14456_v16 = vld [vmem:[#allocation5 + $0x5dc] sm:$0xf] }
 0x39e   :  { %6397 = vmatpush.bf16.msra.mxu3 %v12304_v22  ;;  %6436 = vmatpush.bf16.msrb.mxu2 %v12052_v43  ;;  %v14340_v22 = vld [vmem:[#allocation5 + $0x234] sm:$0xf0] }
 0x39f   :  { %6475 = vmatpush.bf16.msra.mxu1 %v11800_v51  ;;  %6514 = vmatpush.bf16.msrb.mxu0 %v11548_v52  ;;  %v6184_v43 = vpop.f32.mrf.mxu2  ;;  %v14519_v51 = vld [vmem:[#allocation5 + $0x7d4] sm:$0xf]  ;;  %v4552_v52 = vadd.f32 %v15305_v31, %v4539_v24  ;;  %v4513_v31 = vadd.f32 %v15316_v56, %v15301_v49 }
 0x3a0   :  { %v12404_v60 = vor.u32 %v14519_v51, %v12401_v46  ;;  %v14503_v49 = vld [vmem:[#allocation5 + $0x754] sm:$0xf]  ;;  %v14360_v51 = vld [vmem:[#allocation5 + $0x2dc] sm:$0xf] }
 0x3a1   :  { %v4565_v42 = vadd.f32 %v15318_v27, %v4552_v52  ;;  %v14384_v27 = vld [vmem:[#allocation5 + $0x39c] sm:$0xf]  ;;  %v4526_v4 = vadd.f32 %v15329_v55, %v4513_v31  ;;  %v12340_v17 = vor.u32 %v14503_v49, %v12337_v13  ;;  %v12273_v43 = vld [vmem:[#allocation5 + $0x6f0] sm:$0xf0] }
 0x3a2   :  { %6398 = vmatpush.bf16.msra.mxu3 %v12272_v30  ;;  %6437 = vmatpush.bf16.msrb.mxu2 %v12020_v2  ;;  %v11672_v30 = vor.u32 %v14340_v22, %v11671_v29  ;;  %v11420_v2 = vor.u32 %v14272_v47, %v11417_v18  ;;  %v14376_v55 = vld [vmem:[#allocation5 + $0x35c] sm:$0xf]  ;;  %v14487_v29 = vld [vmem:[#allocation5 + $0x6d4] sm:$0xf]  ;;  %v11804_v22 = vor.u32 %v14368_v37, %v11801_v63  ;;  %v12023_v47 = vld [vmem:[#allocation5 + $0x4d8] sm:$0xf] }
 0x3a3   :  { %6476 = vmatpush.bf16.msra.mxu1 %v11768_v59  ;;  %6515 = vmatpush.bf16.msrb.mxu0 %v11516_v61  ;;  %v14511_v61 = vld [vmem:[#allocation5 + $0x794] sm:$0xf]  ;;  %v14428_v18 = vld [vmem:[#allocation5 + $0x4f4] sm:$0xf0]  ;;  %v11769_v52 = vld [vmem:[#allocation5 + $0x2f8] sm:$0xf0]  ;;  %v12276_v3 = vor.u32 %v14487_v29, %v12273_v43 }
 0x3a4   :  { %v4577_v59 = vpop.f32.mrf.mxu3  ;;  %v12372_v7 = vor.u32 %v14511_v61, %v12369_v44  ;;  %v12024_v46 = vor.u32 %v14428_v18, %v12023_v47  ;;  %v11772_v38 = vor.u32 %v14360_v51, %v11769_v52  ;;  %v14336_v13 = vld [vmem:[#allocation5 + $0x21c] sm:$0xf]  ;;  %v6134_v43 = vld.sshfl [vmem:[#allocation1 + $0x18] sm:$0xff pattern:$0x73625140] }
 0x3a5   :  { %v4578_v53 = vadd.f32 %v4577_v59, %v4565_v42  ;;  %v12121_v37 = vld [vmem:[#allocation5 + $0x5b8] sm:$0xf0]  ;;  %v12311_v51 = vld [vmem:[#allocation5 + $0x718] sm:$0xf] }
 0x3a6   :  { %6399 = vmatpush.bf16.msra.mxu3 %v12240_v9  ;;  %6438 = vmatpush.bf16.msrb.mxu2 %v11988_v10  ;;  %v12120_v9 = vor.u32 %v14452_v50, %v12119_v48  ;;  %v11868_v10 = vor.u32 %v14384_v27, %v11865_v1  ;;  %v12209_v48 = vld [vmem:[#allocation5 + $0x670] sm:$0xf0]  ;;  %v11959_v50 = vld [vmem:[#allocation5 + $0x458] sm:$0xf]  ;;  %v11705_v1 = vld [vmem:[#allocation5 + $0x278] sm:$0xf0] }
 0x3a7   :  { %6477 = vmatpush.bf16.msra.mxu1 %v11736_v14  ;;  %6516 = vmatpush.bf16.msrb.mxu0 %v11484_v45  ;;  %v4583_v28 = vrot.slane %v4578_v53, 6  ;;  %v14444_v14 = vld [vmem:[#allocation5 + $0x574] sm:$0xf0]  ;;  %v11833_v45 = vld [vmem:[#allocation5 + $0x378] sm:$0xf0] }
 0x3a8   :  { %v12088_v40 = vor.u32 %v14444_v14, %v12087_v12  ;;  %v11836_v21 = vor.u32 %v14376_v55, %v11833_v45  ;;  %v14471_v53 = vld [vmem:[#allocation5 + $0x654] sm:$0xf]  ;;  %v14412_v27 = vld [vmem:[#allocation5 + $0x474] sm:$0xf0]  ;;  %v11673_v14 = vld [vmem:[#allocation5 + $0x238] sm:$0xf0] }
 0x3a9   :  { %v4585_v56 = vsel %vm4584_vm0, %v4526_v4, %v4583_v28  ;;  %v12212_v4 = vor.u32 %v14471_v53, %v12209_v48  ;;  %v11960_v28 = vor.u32 %v14412_v27, %v11959_v50  ;;  %v12407_v55 = vld [vmem:[#allocation5 + $0x7d8] sm:$0xf]  ;;  %v14440_v29 = vld [vmem:[#allocation5 + $0x55c] sm:$0xf] }
 0x3aa   :  { %6400 = vmatpush.bf16.msra.mxu3 %v12208_v23  ;;  %6439 = vmatpush.bf16.msrb.mxu2 %v11956_v5  ;;  %4587 = vst [vmem:[#allocation11] sm:$0xf] %v4585_v56  ;;  %v12055_v23 = vld [vmem:[#allocation5 + $0x518] sm:$0xf]  ;;  %v11993_v48 = vld [vmem:[#allocation5 + $0x4b8] sm:$0xf0] }
 0x3ab   :  { %6478 = vmatpush.bf16.msra.mxu1 %v11704_v11  ;;  %6517 = vmatpush.bf16.msrb.mxu0 %v11452_v36  ;;  %v14436_v5 = vld [vmem:[#allocation5 + $0x534] sm:$0xf0]  ;;  %v12308_v36 = vor.u32 %v14495_v20, %v12305_v19  ;;  %v11676_v20 = vor.u32 %v14336_v13, %v11673_v14 }
 0x3ac   :  { %v4579_v26 = vpop.f32.mrf.mxu3  ;;  %v12056_v41 = vor.u32 %v14436_v5, %v12055_v23  ;;  %v11927_v56 = vld [vmem:[#allocation5 + $0x418] sm:$0xf] }
 0x3ad   :  { %v14524_v45 = vld [vmem:[#allocation5 + $0x7f4] sm:$0xf0] }
 0x3ae   :  { %6401 = vmatpush.bf16.msra.mxu3 %v12176_v8  ;;  %6440 = vmatpush.bf16.msrb.mxu2 %v11924_v25  ;;  %v12241_v25 = vld [vmem:[#allocation5 + $0x6b0] sm:$0xf0]  ;;  %v12375_v23 = vld [vmem:[#allocation5 + $0x798] sm:$0xf] }
 0x3af   :  { %6479 = vmatpush.bf16.msra.mxu1 %v11672_v30  ;;  %6518 = vmatpush.bf16.msrb.mxu0 %v11420_v2  ;;  %v14352_v2 = vld [vmem:[#allocation5 + $0x29c] sm:$0xf]  ;;  %v12244_v31 = vor.u32 %v14479_v0, %v12241_v25  ;;  %v14516_v5 = vld [vmem:[#allocation5 + $0x7b4] sm:$0xf0] }
 0x3b0   :  { %v12376_v63 = vor.u32 %v14516_v5, %v12375_v23  ;;  %v14500_v52 = vld [vmem:[#allocation5 + $0x734] sm:$0xf0] }
 0x3b1   :  { %6402 = vmatmul.bf16.vlgmr.msra.gmra.mxu3 %v15276_v33  ;;  %6441 = vmatmul.bf16.vlgmr.msrb.gmra.mxu2 %v15265_v15  ;;  %v6273_v24 = vpop.f32.mrf.mxu1  ;;  %v12183_v14 = vld [vmem:[#allocation5 + $0x618] sm:$0xf] }
 0x3b2   :  { %6446 = vmatpush.bf16.msrb.mxu3 %v12404_v60  ;;  %6485 = vmatpush.bf16.msra.mxu2 %v12152_v39  ;;  %v15347_v11 = vadd.f32 %v6273_v24, %v6261_v34  ;;  %v11737_v60 = vld [vmem:[#allocation5 + $0x2b8] sm:$0xf0] }
 0x3b3   :  { %6524 = vmatpush.bf16.msrb.mxu1 %v11900_v62  ;;  %6519 = vmatmul.bf16.vlgmr.msrb.gmra.mxu0 %v15240_v32  ;;  %v15349_v32 = vpop.f32.mrf.mxu0  ;;  %v11992_v62 = vor.u32 %v14420_v57, %v11991_v54  ;;  %v11740_v44 = vor.u32 %v14352_v2, %v11737_v60  ;;  %v14448_v34 = vld [vmem:[#allocation5 + $0x59c] sm:$0xf]  ;;  %v12279_v57 = vld [vmem:[#allocation5 + $0x6d8] sm:$0xf] }
 0x3b4   :  { %6480 = vmatmul.bf16.vlgmr.msra.gmra.mxu1 %v15253_v58  ;;  %v6234_v8 = vpop.f32.mrf.mxu2  ;;  %v6195_v30 = vpop.f32.mrf.mxu3  ;;  %v12124_v24 = vor.u32 %v14448_v34, %v12121_v37  ;;  %v6313_v0 = vadd.f32 %v15349_v32, %v6134_v43  ;;  %v14424_v2 = vld [vmem:[#allocation5 + $0x4dc] sm:$0xf] }
 0x3b5   :  { %v15352_v42 = vadd.f32 %v6234_v8, %v15327_v35  ;;  %v15355_v39 = vadd.f32 %v6195_v30, %v15332_v6  ;;  %v14344_v35 = vld [vmem:[#allocation5 + $0x25c] sm:$0xf]  ;;  %v14463_v6 = vld [vmem:[#allocation5 + $0x614] sm:$0xf] }
 0x3b6   :  { %6447 = vmatpush.bf16.msrb.mxu3 %v12372_v7  ;;  %6486 = vmatpush.bf16.msra.mxu2 %v12120_v9  ;;  %v12177_v7 = vld [vmem:[#allocation5 + $0x630] sm:$0xf0]  ;;  %v11708_v9 = vor.u32 %v14344_v35, %v11705_v1  ;;  %v12025_v60 = vld [vmem:[#allocation5 + $0x4f8] sm:$0xf0] }
 0x3b7   :  { %6525 = vmatpush.bf16.msrb.mxu1 %v11868_v10  ;;  %v14404_v10 = vld [vmem:[#allocation5 + $0x434] sm:$0xf0]  ;;  %v14512_v37 = vld [vmem:[#allocation5 + $0x79c] sm:$0xf] }
 0x3b8   :  { %v11928_v26 = vor.u32 %v14404_v10, %v11927_v56  ;;  %v12639_v56 = vld [vmem:[#allocation5 + $0x9c0] sm:$0xf] }
 0x3b9   :  { %v6275_v59 = vpop.f32.mrf.mxu1  ;;  %v14585_v10 = vld [vmem:[#allocation5 + $0x9dc] sm:$0xf0] }
 0x3ba   :  { %6448 = vmatpush.bf16.msrb.mxu3 %v12340_v17  ;;  %6487 = vmatpush.bf16.msra.mxu2 %v12088_v40  ;;  %v12153_v17 = vld [vmem:[#allocation5 + $0x5f8] sm:$0xf0]  ;;  %v12180_v40 = vor.u32 %v14463_v6, %v12177_v7  ;;  %v12215_v6 = vld [vmem:[#allocation5 + $0x658] sm:$0xf] }
 0x3bb   :  { %6526 = vmatpush.bf16.msrb.mxu1 %v11836_v21  ;;  %v6314_v61 = vpop.f32.mrf.mxu0  ;;  %v12408_v21 = vor.u32 %v14524_v45, %v12407_v55  ;;  %v12156_v19 = vor.u32 %v14456_v16, %v12153_v17  ;;  %v14476_v7 = vld [vmem:[#allocation5 + $0x674] sm:$0xf0]  ;;  %v14400_v55 = vld [vmem:[#allocation5 + $0x41c] sm:$0xf] }
 0x3bc   :  { %v6236_v49 = vpop.f32.mrf.mxu2  ;;  %v6197_v12 = vpop.f32.mrf.mxu3  ;;  %v12028_v61 = vor.u32 %v14424_v2, %v12025_v60  ;;  %v12216_v13 = vor.u32 %v14476_v7, %v12215_v6  ;;  %v11929_v17 = vld [vmem:[#allocation5 + $0x438] sm:$0xf0]  ;;  %v12479_v2 = vld [vmem:[#allocation5 + $0x880] sm:$0xf] }
 0x3bd   :  { %v11961_v49 = vld [vmem:[#allocation5 + $0x478] sm:$0xf0]  ;;  %v12640_v12 = vor.u32 %v14585_v10, %v12639_v56  ;;  %v11932_v5 = vor.u32 %v14400_v55, %v11929_v17  ;;  %v14529_v56 = vld [vmem:[#allocation5 + $0x81c] sm:$0xf0] }
 0x3be   :  { %6449 = vmatpush.bf16.msrb.mxu3 %v12308_v36  ;;  %6488 = vmatpush.bf16.msra.mxu2 %v12056_v41  ;;  %v12343_v36 = vld [vmem:[#allocation5 + $0x758] sm:$0xf]  ;;  %v12895_v10 = vld [vmem:[#allocation5 + $0xbc0] sm:$0xf] }
 0x3bf   :  { %6527 = vmatpush.bf16.msrb.mxu1 %v11804_v22  ;;  %v14508_v41 = vld [vmem:[#allocation5 + $0x774] sm:$0xf0]  ;;  %v12089_v22 = vld [vmem:[#allocation5 + $0x578] sm:$0xf0]  ;;  %8134 = vmatpush.bf16.msra.mxu0 %v12640_v12  ;;  %v14649_v12 = vld [vmem:[#allocation5 + $0xbdc] sm:$0xf0] }
 0x3c0   :  { %v12344_v47 = vor.u32 %v14508_v41, %v12343_v36  ;;  %v12092_v18 = vor.u32 %v14440_v29, %v12089_v22  ;;  %v14569_v36 = vld [vmem:[#allocation5 + $0x95c] sm:$0xf0] }
 0x3c1   :  { %v12543_v29 = vld [vmem:[#allocation5 + $0x900] sm:$0xf] }
 0x3c2   :  { %6450 = vmatpush.bf16.msrb.mxu3 %v12276_v3  ;;  %6489 = vmatpush.bf16.msra.mxu2 %v12024_v46  ;;  %v14432_v3 = vld [vmem:[#allocation5 + $0x51c] sm:$0xf]  ;;  %v14561_v22 = vld [vmem:[#allocation5 + $0x91c] sm:$0xf0] }
 0x3c3   :  { %6528 = vmatpush.bf16.msrb.mxu1 %v11772_v38  ;;  %v12057_v46 = vld [vmem:[#allocation5 + $0x538] sm:$0xf0]  ;;  %v12312_v38 = vor.u32 %v14500_v52, %v12311_v51  ;;  %v12544_v51 = vor.u32 %v14561_v22, %v12543_v29  ;;  %v12799_v22 = vld [vmem:[#allocation5 + $0xb00] sm:$0xf] }
 0x3c4   :  { %v12060_v54 = vor.u32 %v14432_v3, %v12057_v46  ;;  %v14496_v3 = vld [vmem:[#allocation5 + $0x71c] sm:$0xf] }
 0x3c5   :  { %v12313_v46 = vld [vmem:[#allocation5 + $0x738] sm:$0xf0] }
 0x3c6   :  { %6451 = vmatpush.bf16.msrb.mxu3 %v12244_v31  ;;  %6490 = vmatpush.bf16.msra.mxu2 %v11992_v62  ;;  %v12247_v31 = vld [vmem:[#allocation5 + $0x698] sm:$0xf] }
 0x3c7   :  { %6529 = vmatpush.bf16.msrb.mxu1 %v11740_v44  ;;  %v14484_v62 = vld [vmem:[#allocation5 + $0x6b4] sm:$0xf0]  ;;  %v14416_v44 = vld [vmem:[#allocation5 + $0x49c] sm:$0xf] }
 0x3c8   :  { %v12248_v35 = vor.u32 %v14484_v62, %v12247_v31  ;;  %v14480_v62 = vld [vmem:[#allocation5 + $0x69c] sm:$0xf] }
 0x3ca   :  { %6452 = vmatpush.bf16.msrb.mxu3 %v12212_v4  ;;  %6491 = vmatpush.bf16.msra.mxu2 %v11960_v28  ;;  %v11996_v28 = vor.u32 %v14416_v44, %v11993_v48  ;;  %v14537_v44 = vld [vmem:[#allocation5 + $0x85c] sm:$0xf0] }
 0x3cb   :  { %6530 = vmatpush.bf16.msrb.mxu1 %v11708_v9  ;;  %v14408_v9 = vld [vmem:[#allocation5 + $0x45c] sm:$0xf] }
 0x3ce   :  { %6453 = vmatpush.bf16.msrb.mxu3 %v12180_v40  ;;  %6492 = vmatpush.bf16.msra.mxu2 %v11928_v26  ;;  %v14520_v40 = vld [vmem:[#allocation5 + $0x7dc] sm:$0xf] }
 0x3cf   :  { %6531 = vmatpush.bf16.msrb.mxu1 %v11676_v20  ;;  %v12409_v26 = vld [vmem:[#allocation5 + $0x7f8] sm:$0xf0]  ;;  %v12607_v20 = vld [vmem:[#allocation5 + $0x980] sm:$0xf] }
 0x3d0   :  { %v12412_v34 = vor.u32 %v14520_v40, %v12409_v26  ;;  %v12185_v40 = vld [vmem:[#allocation5 + $0x638] sm:$0xf0]  ;;  %v14641_v26 = vld [vmem:[#allocation5 + $0xb9c] sm:$0xf0] }
 0x3d1   :  { %6454 = vmatmul.bf16.vlgmr.msrb.gmra.mxu3 %v15276_v33  ;;  %6493 = vmatmul.bf16.vlgmr.msra.gmra.mxu2 %v15265_v15  ;;  %v6325_v8 = vpop.f32.mrf.mxu1  ;;  %v15361_v25 = vpop.f32.mrf.mxu0 }
 0x3d2   :  { %6498 = vmatpush.bf16.msra.mxu3 %v12408_v21  ;;  %6537 = vmatpush.bf16.msrb.mxu2 %v12156_v19  ;;  %v15363_v30 = vadd.f32 %v6325_v8, %v6313_v0  ;;  %v14577_v21 = vld [vmem:[#allocation5 + $0x99c] sm:$0xf0] }
 0x3d3   :  { %6532 = vmatmul.bf16.vlgmr.msrb.gmra.mxu1 %v15253_v58  ;;  %v14492_v58 = vld [vmem:[#allocation5 + $0x6f4] sm:$0xf0]  ;;  %v12608_v23 = vor.u32 %v14577_v21, %v12607_v20  ;;  %v12511_v0 = vld [vmem:[#allocation5 + $0x8c0] sm:$0xf]  ;;  %v14573_v20 = vld [vmem:[#allocation5 + $0x984] sm:$0xf] }
 0x3d4   :  { %v12280_v59 = vor.u32 %v14492_v58, %v12279_v57  ;;  %v6247_v32 = vpop.f32.mrf.mxu3  ;;  %v6286_v53 = vpop.f32.mrf.mxu2  ;;  %v14488_v57 = vld [vmem:[#allocation5 + $0x6dc] sm:$0xf] }
 0x3d5   :  { %v15366_v50 = vadd.f32 %v6247_v32, %v15352_v42  ;;  %v15369_v27 = vadd.f32 %v6286_v53, %v15347_v11  ;;  %v11964_v42 = vor.u32 %v14408_v9, %v11961_v49  ;;  %v14468_v11 = vld [vmem:[#allocation5 + $0x634] sm:$0xf0]  ;;  %8135 = vmatpush.bf16.msra.mxu0 %v12608_v23  ;;  %v12281_v58 = vld [vmem:[#allocation5 + $0x6f8] sm:$0xf0]  ;;  %v12447_v53 = vld [vmem:[#allocation5 + $0x840] sm:$0xf] }
 0x3d6   :  { %6499 = vmatpush.bf16.msra.mxu3 %v12376_v63  ;;  %6538 = vmatpush.bf16.msrb.mxu2 %v12124_v24  ;;  %v12184_v19 = vor.u32 %v14468_v11, %v12183_v14  ;;  %v12377_v63 = vld [vmem:[#allocation5 + $0x7b8] sm:$0xf0]  ;;  %v12575_v24 = vld [vmem:[#allocation5 + $0x940] sm:$0xf]  ;;  %v12284_v31 = vor.u32 %v14488_v57, %v12281_v58  ;;  %v12641_v14 = vld [vmem:[#allocation5 + $0x9e0] sm:$0xf0] }
 0x3d7   :  { %v12576_v41 = vor.u32 %v14569_v36, %v12575_v24  ;;  %v12380_v43 = vor.u32 %v14512_v37, %v12377_v63  ;;  %v12249_v32 = vld [vmem:[#allocation5 + $0x6b8] sm:$0xf0]  ;;  %v12415_v49 = vld [vmem:[#allocation5 + $0x800] sm:$0xf]  ;;  %v14565_v24 = vld [vmem:[#allocation5 + $0x944] sm:$0xf] }
 0x3d8   :  { %v12252_v9 = vor.u32 %v14480_v62, %v12249_v32  ;;  %v12831_v23 = vld [vmem:[#allocation5 + $0xb40] sm:$0xf]  ;;  %v12577_v36 = vld [vmem:[#allocation5 + $0x960] sm:$0xf0] }
 0x3d9   :  { %v6327_v1 = vpop.f32.mrf.mxu1  ;;  %v6366_v4 = vpop.f32.mrf.mxu0  ;;  %8136 = vmatpush.bf16.msra.mxu0 %v12576_v41  ;;  %v12735_v58 = vld [vmem:[#allocation5 + $0xa80] sm:$0xf]  ;;  %v12481_v32 = vld [vmem:[#allocation5 + $0x8a0] sm:$0xf0] }
 0x3da   :  { %6500 = vmatpush.bf16.msra.mxu3 %v12344_v47  ;;  %6539 = vmatpush.bf16.msrb.mxu2 %v12092_v18  ;;  %v14504_v47 = vld [vmem:[#allocation5 + $0x75c] sm:$0xf] }
 0x3db   :  { %v12345_v18 = vld [vmem:[#allocation5 + $0x778] sm:$0xf0] }
 0x3dc   :  { %v6249_v45 = vpop.f32.mrf.mxu3  ;;  %v6288_v16 = vpop.f32.mrf.mxu2  ;;  %v12348_v52 = vor.u32 %v14504_v47, %v12345_v18  ;;  %v14472_v1 = vld [vmem:[#allocation5 + $0x65c] sm:$0xf]  ;;  %v12580_v47 = vor.u32 %v14565_v24, %v12577_v36  ;;  %v14557_v18 = vld [vmem:[#allocation5 + $0x904] sm:$0xf] }
 0x3dd   :  { %8137 = vmatpush.bf16.msra.mxu0 %v12544_v51  ;;  %v12217_v4 = vld [vmem:[#allocation5 + $0x678] sm:$0xf0]  ;;  %v12896_v45 = vor.u32 %v14649_v12, %v12895_v10  ;;  %v12545_v51 = vld [vmem:[#allocation5 + $0x920] sm:$0xf0]  ;;  %v14593_v10 = vld [vmem:[#allocation5 + $0xa1c] sm:$0xf0] }
 0x3de   :  { %6501 = vmatpush.bf16.msra.mxu3 %v12312_v38  ;;  %6540 = vmatpush.bf16.msrb.mxu2 %v12060_v54  ;;  %v14553_v38 = vld [vmem:[#allocation5 + $0x8dc] sm:$0xf0]  ;;  %v12316_v54 = vor.u32 %v14496_v3, %v12313_v46  ;;  %v12220_v17 = vor.u32 %v14472_v1, %v12217_v4  ;;  %v12548_v3 = vor.u32 %v14557_v18, %v12545_v51  ;;  %v12449_v1 = vld [vmem:[#allocation5 + $0x860] sm:$0xf0] }
 0x3df   :  { %v12512_v8 = vor.u32 %v14553_v38, %v12511_v0  ;;  %8147 = vmatpush.bf16.msra.mxu1 %v12896_v45  ;;  %v12767_v46 = vld [vmem:[#allocation5 + $0xac0] sm:$0xf]  ;;  %v14549_v38 = vld [vmem:[#allocation5 + $0x8c4] sm:$0xf] }
 0x3e0   :  { %v14617_v0 = vld [vmem:[#allocation5 + $0xadc] sm:$0xf0]  ;;  %v14629_v24 = vld [vmem:[#allocation5 + $0xb44] sm:$0xf] }
 0x3e1   :  { %8138 = vmatpush.bf16.msra.mxu0 %v12512_v8  ;;  %v12768_v8 = vor.u32 %v14617_v0, %v12767_v46  ;;  %v12833_v36 = vld [vmem:[#allocation5 + $0xb60] sm:$0xf0]  ;;  %v14681_v46 = vld [vmem:[#allocation5 + $0xcdc] sm:$0xf0] }
 0x3e2   :  { %6502 = vmatpush.bf16.msra.mxu3 %v12280_v59  ;;  %6541 = vmatpush.bf16.msrb.mxu2 %v12028_v61  ;;  %v14545_v61 = vld [vmem:[#allocation5 + $0x89c] sm:$0xf0]  ;;  %v12801_v18 = vld [vmem:[#allocation5 + $0xb20] sm:$0xf0] }
 0x3e3   :  { %v14613_v0 = vld [vmem:[#allocation5 + $0xac4] sm:$0xf] }
 0x3e6   :  { %6503 = vmatpush.bf16.msra.mxu3 %v12248_v35  ;;  %6542 = vmatpush.bf16.msrb.mxu2 %v11996_v28  ;;  %v12448_v28 = vor.u32 %v14537_v44, %v12447_v53  ;;  %v12703_v53 = vld [vmem:[#allocation5 + $0xa40] sm:$0xf] }
 0x3e7   :  { %v14601_v44 = vld [vmem:[#allocation5 + $0xa5c] sm:$0xf0] }
 0x3ea   :  { %6504 = vmatpush.bf16.msra.mxu3 %v12216_v13  ;;  %6543 = vmatpush.bf16.msrb.mxu2 %v11964_v42  ;;  %v12416_v13 = vor.u32 %v14529_v56, %v12415_v49  ;;  %v14581_v42 = vld [vmem:[#allocation5 + $0x9c4] sm:$0xf]  ;;  %v12671_v56 = vld [vmem:[#allocation5 + $0xa00] sm:$0xf] }
 0x3eb   :  { %v12644_v16 = vor.u32 %v14581_v42, %v12641_v14  ;;  %v12672_v14 = vor.u32 %v14593_v10, %v12671_v56 }
 0x3ee   :  { %6505 = vmatpush.bf16.msra.mxu3 %v12184_v19  ;;  %6544 = vmatpush.bf16.msrb.mxu2 %v11932_v5  ;;  %v12609_v19 = vld [vmem:[#allocation5 + $0x9a0] sm:$0xf0]  ;;  %v14633_v5 = vld [vmem:[#allocation5 + $0xb5c] sm:$0xf0] }
 0x3ef   :  { %v12612_v63 = vor.u32 %v14573_v20, %v12609_v19  ;;  %v12832_v29 = vor.u32 %v14633_v5, %v12831_v23  ;;  %v14637_v20 = vld [vmem:[#allocation5 + $0xb84] sm:$0xf] }
 0x3f0   :  { %v12865_v19 = vld [vmem:[#allocation5 + $0xba0] sm:$0xf0] }
 0x3f1   :  { %6506 = vmatmul.bf16.vlgmr.msra.gmra.mxu3 %v15276_v33  ;;  %6545 = vmatmul.bf16.vlgmr.msrb.gmra.mxu2 %v15265_v15  ;;  %v15373_v60 = vpop.f32.mrf.mxu1  ;;  %v15375_v59 = vpop.f32.mrf.mxu0  ;;  %v12480_v15 = vor.u32 %v14545_v61, %v12479_v2  ;;  %v14609_v2 = vld [vmem:[#allocation5 + $0xa9c] sm:$0xf0]  ;;  %v14541_v61 = vld [vmem:[#allocation5 + $0x884] sm:$0xf] }
 0x3f2   :  { %6550 = vmatpush.bf16.msrb.mxu3 %v12412_v34  ;;  %v12736_v62 = vor.u32 %v14609_v2, %v12735_v58  ;;  %v12991_v58 = vld [vmem:[#allocation5 + $0xc80] sm:$0xf] }
 0x3f3   :  { %8139 = vmatpush.bf16.msra.mxu0 %v12480_v15  ;;  %v14673_v2 = vld [vmem:[#allocation5 + $0xc9c] sm:$0xf0] }
 0x3f4   :  { %v6299_v48 = vpop.f32.mrf.mxu3  ;;  %v6338_v35 = vpop.f32.mrf.mxu2 }
 0x3f5   :  { %v15378_v6 = vadd.f32 %v6299_v48, %v15369_v27  ;;  %v15381_v7 = vadd.f32 %v6338_v35, %v15363_v30  ;;  %v14464_v27 = vld [vmem:[#allocation5 + $0x61c] sm:$0xf]  ;;  %v12863_v30 = vld [vmem:[#allocation5 + $0xb80] sm:$0xf]  ;;  %v14533_v48 = vld [vmem:[#allocation5 + $0x844] sm:$0xf]  ;;  %v12704_v35 = vor.u32 %v14601_v44, %v12703_v53 }
 0x3f6   :  { %6551 = vmatpush.bf16.msrb.mxu3 %v12380_v43  ;;  %v12864_v21 = vor.u32 %v14641_v26, %v12863_v30  ;;  %v12188_v41 = vor.u32 %v14464_v27, %v12185_v40  ;;  %v14625_v43 = vld [vmem:[#allocation5 + $0xb1c] sm:$0xf0]  ;;  %v12897_v27 = vld [vmem:[#allocation5 + $0xbe0] sm:$0xf0] }
 0x3f7   :  { %8140 = vmatpush.bf16.msra.mxu0 %v12448_v28  ;;  %v14705_v26 = vld [vmem:[#allocation5 + $0xd9c] sm:$0xf0]  ;;  %v12737_v53 = vld [vmem:[#allocation5 + $0xaa0] sm:$0xf0] }
 0x3f8   :  { %8148 = vmatpush.bf16.msra.mxu1 %v12864_v21 }
 0x3f9   :  { %v6379_v11 = vpop.f32.mrf.mxu1  ;;  %v6418_v55 = vpop.f32.mrf.mxu0 }
 0x3fa   :  { %6552 = vmatpush.bf16.msrb.mxu3 %v12348_v52  ;;  %v12800_v52 = vor.u32 %v14625_v43, %v12799_v22  ;;  %v12417_v11 = vld [vmem:[#allocation5 + $0x820] sm:$0xf0]  ;;  %v13151_v55 = vld [vmem:[#allocation5 + $0xdc0] sm:$0xf] }
 0x3fb   :  { %8141 = vmatpush.bf16.msra.mxu0 %v12416_v13  ;;  %v14525_v13 = vld [vmem:[#allocation5 + $0x804] sm:$0xf]  ;;  %v13055_v22 = vld [vmem:[#allocation5 + $0xd00] sm:$0xf] }
 0x3fc   :  { %v6301_v34 = vpop.f32.mrf.mxu3  ;;  %v6340_v37 = vpop.f32.mrf.mxu2  ;;  %8149 = vmatpush.bf16.msra.mxu1 %v12832_v29  ;;  %v12420_v45 = vor.u32 %v14525_v13, %v12417_v11  ;;  %v12836_v29 = vor.u32 %v14629_v24, %v12833_v36  ;;  %v14689_v43 = vld [vmem:[#allocation5 + $0xd1c] sm:$0xf0]  ;;  %v12705_v13 = vld [vmem:[#allocation5 + $0xa60] sm:$0xf0] }
 0x3fd   :  { %v12868_v34 = vor.u32 %v14637_v20, %v12865_v19  ;;  %v13087_v37 = vld [vmem:[#allocation5 + $0xd40] sm:$0xf]  ;;  %v13056_v51 = vor.u32 %v14689_v43, %v13055_v22 }
 0x3fe   :  { %6553 = vmatpush.bf16.msrb.mxu3 %v12316_v54  ;;  %v12513_v54 = vld [vmem:[#allocation5 + $0x8e0] sm:$0xf0]  ;;  %v14777_v19 = vld [vmem:[#allocation5 + $0xfdc] sm:$0xf0] }
 0x3ff   :  { %8186 = vmatpush.bf16.msrb.mxu0 %v12644_v16  ;;  %v12516_v57 = vor.u32 %v14549_v38, %v12513_v54  ;;  %v14713_v16 = vld [vmem:[#allocation5 + $0xddc] sm:$0xf0]  ;;  %v6135_v54 = vld.sshfl [vmem:[#allocation1 + $0x20] sm:$0xff pattern:$0x73625140] }
 0x400   :  { %8150 = vmatpush.bf16.msra.mxu1 %v12800_v52  ;;  %v13152_v40 = vor.u32 %v14713_v16, %v13151_v55  ;;  %v12647_v55 = vld [vmem:[#allocation5 + $0x9c8] sm:$0xf]  ;;  %v14657_v16 = vld [vmem:[#allocation5 + $0xc1c] sm:$0xf0] }
 0x401   :  { %v13375_v36 = vld [vmem:[#allocation5 + $0xf80] sm:$0xf] }
 0x402   :  { %6554 = vmatpush.bf16.msrb.mxu3 %v12284_v31  ;;  %8160 = vmatpush.bf16.msra.mxu2 %v13152_v40 }
 0x403   :  { %8187 = vmatpush.bf16.msrb.mxu0 %v12612_v63  ;;  %v14697_v63 = vld [vmem:[#allocation5 + $0xd5c] sm:$0xf0] }
 0x404   :  { %8151 = vmatpush.bf16.msra.mxu1 %v12768_v8  ;;  %v12769_v8 = vld [vmem:[#allocation5 + $0xae0] sm:$0xf0] }
 0x406   :  { %6555 = vmatpush.bf16.msrb.mxu3 %v12252_v9  ;;  %v12452_v9 = vor.u32 %v14533_v48, %v12449_v1  ;;  %v12959_v1 = vld [vmem:[#allocation5 + $0xc40] sm:$0xf] }
 0x407   :  { %8188 = vmatpush.bf16.msrb.mxu0 %v12580_v47  ;;  %v14621_v47 = vld [vmem:[#allocation5 + $0xb04] sm:$0xf] }
 0x408   :  { %8152 = vmatpush.bf16.msra.mxu1 %v12736_v62  ;;  %v12804_v52 = vor.u32 %v14621_v47, %v12801_v18  ;;  %v6365_v62 = vadd.f32 %v15361_v25, %v6135_v54  ;;  %v13121_v18 = vld [vmem:[#allocation5 + $0xda0] sm:$0xf0] }
 0x40a   :  { %6556 = vmatpush.bf16.msrb.mxu3 %v12220_v17  ;;  %v14645_v17 = vld [vmem:[#allocation5 + $0xbc4] sm:$0xf] }
 0x40b   :  { %8189 = vmatpush.bf16.msrb.mxu0 %v12548_v3  ;;  %v12900_v30 = vor.u32 %v14645_v17, %v12897_v27  ;;  %v13023_v3 = vld [vmem:[#allocation5 + $0xcc0] sm:$0xf]  ;;  %v14589_v17 = vld [vmem:[#allocation5 + $0xa04] sm:$0xf] }
 0x40c   :  { %8153 = vmatpush.bf16.msra.mxu1 %v12704_v35  ;;  %v13024_v38 = vor.u32 %v14681_v46, %v13023_v3  ;;  %v6378_v35 = vadd.f32 %v15373_v60, %v6365_v62  ;;  %v12927_v60 = vld [vmem:[#allocation5 + $0xc00] sm:$0xf]  ;;  %v14570_v3 = vld [vmem:[#allocation5 + $0x964] sm:$0xf0] }
 0x40d   :  { %v14562_v62 = vld [vmem:[#allocation5 + $0x924] sm:$0xf0] }
 0x40e   :  { %6557 = vmatpush.bf16.msrb.mxu3 %v12188_v41  ;;  %v13088_v41 = vor.u32 %v14697_v63, %v13087_v37  ;;  %v13153_v63 = vld [vmem:[#allocation5 + $0xde0] sm:$0xf0] }
 0x40f   :  { %8190 = vmatpush.bf16.msrb.mxu0 %v12516_v57  ;;  %v12772_v57 = vor.u32 %v14613_v0, %v12769_v8  ;;  %v13343_v0 = vld [vmem:[#allocation5 + $0xf40] sm:$0xf]  ;;  %v14693_v8 = vld [vmem:[#allocation5 + $0xd44] sm:$0xf] }
 0x410   :  { %8154 = vmatpush.bf16.msra.mxu1 %v12672_v14 }
 0x411   :  { %6558 = vmatmul.bf16.vlgmr.msrb.gmra.mxu3 %v15276_v33  ;;  %v15384_v15 = vpop.f32.mrf.mxu1  ;;  %v15386_v31 = vpop.f32.mrf.mxu0  ;;  %v12484_v33 = vor.u32 %v14541_v61, %v12481_v32  ;;  %v14605_v61 = vld [vmem:[#allocation5 + $0xa84] sm:$0xf] }
 0x412   :  { %v12740_v48 = vor.u32 %v14605_v61, %v12737_v53  ;;  %v12551_v61 = vld [vmem:[#allocation5 + $0x908] sm:$0xf]  ;;  %v14753_v53 = vld [vmem:[#allocation5 + $0xf1c] sm:$0xf0] }
 0x413   :  { %8191 = vmatpush.bf16.msrb.mxu0 %v12484_v33  ;;  %v12992_v33 = vor.u32 %v14673_v2, %v12991_v58 }
 0x414   :  { %v6351_v4 = vpop.f32.mrf.mxu3  ;;  %v15388_v28 = vpop.f32.mrf.mxu2  ;;  %8199 = vmatpush.bf16.msrb.mxu1 %v12900_v30  ;;  %v12928_v30 = vor.u32 %v14657_v16, %v12927_v60  ;;  %v12487_v16 = vld [vmem:[#allocation5 + $0x888] sm:$0xf] }
 0x415   :  { %v15391_v49 = vadd.f32 %v6351_v4, %v15381_v7  ;;  %v13119_v7 = vld [vmem:[#allocation5 + $0xd80] sm:$0xf]  ;;  %v6391_v56 = vadd.f32 %v15388_v28, %v6378_v35  ;;  %v12673_v28 = vld [vmem:[#allocation5 + $0xa20] sm:$0xf0] }
 0x416   :  { %v13120_v21 = vor.u32 %v14705_v26, %v13119_v7  ;;  %v14665_v4 = vld [vmem:[#allocation5 + $0xc5c] sm:$0xf0]  ;;  %v12676_v20 = vor.u32 %v14589_v17, %v12673_v28  ;;  %v14546_v17 = vld [vmem:[#allocation5 + $0x8a4] sm:$0xf0] }
 0x417   :  { %8192 = vmatpush.bf16.msrb.mxu0 %v12452_v9  ;;  %v14597_v9 = vld [vmem:[#allocation5 + $0xa44] sm:$0xf]  ;;  %v12960_v10 = vor.u32 %v14665_v4, %v12959_v1  ;;  %v12552_v4 = vor.u32 %v14562_v62, %v12551_v61 }
 0x418   :  { %8161 = vmatpush.bf16.msra.mxu2 %v13120_v21  ;;  %8200 = vmatpush.bf16.msrb.mxu1 %v12868_v34  ;;  %v12708_v25 = vor.u32 %v14597_v9, %v12705_v13  ;;  %v13407_v21 = vld [vmem:[#allocation5 + $0xfc0] sm:$0xf]  ;;  %v14578_v34 = vld [vmem:[#allocation5 + $0x9a4] sm:$0xf0]  ;;  %v13057_v1 = vld [vmem:[#allocation5 + $0xd20] sm:$0xf0] }
 0x419   :  { %v6431_v12 = vpop.f32.mrf.mxu1  ;;  %v6470_v42 = vpop.f32.mrf.mxu0  ;;  %v13408_v37 = vor.u32 %v14777_v19, %v13407_v21  ;;  %v13279_v13 = vld [vmem:[#allocation5 + $0xec0] sm:$0xf] }
 0x41a   :  { %v6563_v42 = vmax.f32 %v15355_v39, 0.0  ;;  %v14709_v39 = vld [vmem:[#allocation5 + $0xdc4] sm:$0xf] }
 0x41b   :  { %8193 = vmatpush.bf16.msrb.mxu0 %v12420_v45  ;;  %v14586_v45 = vld [vmem:[#allocation5 + $0x9e4] sm:$0xf0]  ;;  %v13156_v24 = vor.u32 %v14709_v39, %v13153_v63  ;;  %8173 = vmatpush.bf16.msra.mxu3 %v13408_v37  ;;  %v13215_v37 = vld [vmem:[#allocation5 + $0xe40] sm:$0xf] }
 0x41c   :  { %v6353_v23 = vpop.f32.mrf.mxu3  ;;  %v6392_v5 = vpop.f32.mrf.mxu2  ;;  %8162 = vmatpush.bf16.msra.mxu2 %v13088_v41  ;;  %8201 = vmatpush.bf16.msrb.mxu1 %v12836_v29  ;;  %v12648_v26 = vor.u32 %v14586_v45, %v12647_v55  ;;  %v14769_v41 = vld [vmem:[#allocation5 + $0xf9c] sm:$0xf0]  ;;  %v14701_v29 = vld [vmem:[#allocation5 + $0xd84] sm:$0xf]  ;;  %v12455_v39 = vld [vmem:[#allocation5 + $0x848] sm:$0xf] }
 0x41d   :  { %v12615_v5 = vld [vmem:[#allocation5 + $0x988] sm:$0xf]  ;;  %v13376_v47 = vor.u32 %v14769_v41, %v13375_v36  ;;  %v13124_v46 = vor.u32 %v14701_v29, %v13121_v18  ;;  %v6136_v55 = vld.sshfl [vmem:[#allocation1 + $0x28] sm:$0xff pattern:$0x73625140]  ;;  %v6564_v36 = vmax.f32 %v15366_v50, 0.0 }
 0x41e   :  { %v12616_v43 = vor.u32 %v14578_v34, %v12615_v5  ;;  %v6417_v21 = vadd.f32 %v15375_v59, %v6136_v55  ;;  %v14538_v5 = vld [vmem:[#allocation5 + $0x864] sm:$0xf0]  ;;  %v14729_v63 = vld [vmem:[#allocation5 + $0xe5c] sm:$0xf0] }
 0x41f   :  { %8174 = vmatpush.bf16.msra.mxu3 %v13376_v47  ;;  %v12456_v41 = vor.u32 %v14538_v5, %v12455_v39  ;;  %v13216_v29 = vor.u32 %v14729_v63, %v13215_v37  ;;  %v12423_v59 = vld [vmem:[#allocation5 + $0x808] sm:$0xf]  ;;  %v13183_v50 = vld [vmem:[#allocation5 + $0xe00] sm:$0xf]  ;;  %v14749_v37 = vld [vmem:[#allocation5 + $0xf04] sm:$0xf] }
 0x420   :  { %8163 = vmatpush.bf16.msra.mxu2 %v13056_v51  ;;  %8202 = vmatpush.bf16.msrb.mxu1 %v12804_v52  ;;  %v12583_v52 = vld [vmem:[#allocation5 + $0x948] sm:$0xf]  ;;  %v6430_v34 = vadd.f32 %v15384_v15, %v6417_v21  ;;  %v12553_v21 = vld [vmem:[#allocation5 + $0x928] sm:$0xf0]  ;;  %v13313_v63 = vld [vmem:[#allocation5 + $0xf20] sm:$0xf0] }
 0x421   :  { %v12584_v58 = vor.u32 %v14570_v3, %v12583_v52  ;;  %v14530_v47 = vld [vmem:[#allocation5 + $0x824] sm:$0xf0] }
 0x422   :  { %v12903_v18 = vld [vmem:[#allocation5 + $0xbc8] sm:$0xf] }
 0x423   :  { %v14650_v15 = vld [vmem:[#allocation5 + $0xbe4] sm:$0xf0] }
 0x424   :  { %8164 = vmatpush.bf16.msra.mxu2 %v13024_v38  ;;  %8203 = vmatpush.bf16.msrb.mxu1 %v12772_v57  ;;  %v14761_v38 = vld [vmem:[#allocation5 + $0xf5c] sm:$0xf0]  ;;  %v13089_v57 = vld [vmem:[#allocation5 + $0xd60] sm:$0xf0]  ;;  %v12807_v5 = vld [vmem:[#allocation5 + $0xb08] sm:$0xf] }
 0x425   :  { %v13344_v54 = vor.u32 %v14761_v38, %v13343_v0  ;;  %v13092_v2 = vor.u32 %v14693_v8, %v13089_v57  ;;  %v12649_v0 = vld [vmem:[#allocation5 + $0x9e8] sm:$0xf0]  ;;  %v14721_v8 = vld [vmem:[#allocation5 + $0xe1c] sm:$0xf0]  ;;  %v12424_v57 = vor.u32 %v14530_v47, %v12423_v59  ;;  %v14618_v59 = vld [vmem:[#allocation5 + $0xae4] sm:$0xf0] }
 0x426   :  { %v6137_v47 = vld.sshfl [vmem:[#allocation1 + $0x30] sm:$0xff pattern:$0x73625140] }
 0x427   :  { %8175 = vmatpush.bf16.msra.mxu3 %v13344_v54  ;;  %v14653_v54 = vld [vmem:[#allocation5 + $0xc04] sm:$0xf] }
 0x428   :  { %8165 = vmatpush.bf16.msra.mxu2 %v12992_v33  ;;  %8204 = vmatpush.bf16.msrb.mxu1 %v12740_v48  ;;  %v13311_v33 = vld [vmem:[#allocation5 + $0xf00] sm:$0xf]  ;;  %v14685_v48 = vld [vmem:[#allocation5 + $0xd04] sm:$0xf] }
 0x429   :  { %v13312_v35 = vor.u32 %v14753_v53, %v13311_v33  ;;  %v13060_v9 = vor.u32 %v14685_v48, %v13057_v1  ;;  %v14773_v53 = vld [vmem:[#allocation5 + $0xfc4] sm:$0xf]  ;;  %v12904_v48 = vor.u32 %v14650_v15, %v12903_v18  ;;  %v12617_v1 = vld [vmem:[#allocation5 + $0x9a8] sm:$0xf0] }
 0x42b   :  { %8176 = vmatpush.bf16.msra.mxu3 %v13312_v35  ;;  %v14574_v35 = vld [vmem:[#allocation5 + $0x98c] sm:$0xf] }
 0x42c   :  { %8166 = vmatpush.bf16.msra.mxu2 %v12960_v10  ;;  %8205 = vmatpush.bf16.msrb.mxu1 %v12708_v25  ;;  %v14554_v10 = vld [vmem:[#allocation5 + $0x8e4] sm:$0xf0] }
 0x430   :  { %v15396_v44 = vpop.f32.mrf.mxu0  ;;  %8167 = vmatpush.bf16.msra.mxu2 %v12928_v30  ;;  %8206 = vmatpush.bf16.msrb.mxu1 %v12676_v20  ;;  %v14669_v30 = vld [vmem:[#allocation5 + $0xc84] sm:$0xf] }
 0x431   :  { %v15394_v32 = vpop.f32.mrf.mxu1 }
 0x434   :  { %v6403_v12 = vpop.f32.mrf.mxu3  ;;  %v15401_v11 = vpop.f32.mrf.mxu2  ;;  %8212 = vmatpush.bf16.msrb.mxu2 %v13156_v24  ;;  %v14661_v24 = vld [vmem:[#allocation5 + $0xc44] sm:$0xf] }
 0x435   :  { %v6404_v14 = vadd.f32 %v6403_v12, %v6391_v56  ;;  %v12519_v56 = vld [vmem:[#allocation5 + $0x8c8] sm:$0xf]  ;;  %v14745_v12 = vld [vmem:[#allocation5 + $0xedc] sm:$0xf0] }
 0x436   :  { %v13280_v25 = vor.u32 %v14745_v12, %v13279_v13  ;;  %v12520_v45 = vor.u32 %v14554_v10, %v12519_v56  ;;  %v12871_v56 = vld [vmem:[#allocation5 + $0xb88] sm:$0xf]  ;;  %v12620_v12 = vor.u32 %v14574_v35, %v12617_v1  ;;  %v6565_v1 = vmax.f32 %v15378_v6, 0.0  ;;  %v14646_v6 = vld [vmem:[#allocation5 + $0xbcc] sm:$0xf] }
 0x437   :  { %v6567_v27 = vadd.f32 %v6563_v42, %v6404_v14  ;;  %v14677_v42 = vld [vmem:[#allocation5 + $0xcc4] sm:$0xf]  ;;  %v14642_v10 = vld [vmem:[#allocation5 + $0xba4] sm:$0xf0] }
 0x438   :  { %v6522_v7 = vpop.f32.mrf.mxu0  ;;  %8213 = vmatpush.bf16.msrb.mxu2 %v13124_v46  ;;  %v13025_v14 = vld [vmem:[#allocation5 + $0xce0] sm:$0xf0]  ;;  %8177 = vmatpush.bf16.msra.mxu3 %v13280_v25  ;;  %v14582_v46 = vld [vmem:[#allocation5 + $0x9cc] sm:$0xf] }
 0x439   :  { %v6483_v40 = vpop.f32.mrf.mxu1  ;;  %v15403_v23 = vpack.c.bf16 %v6567_v27, %v6567_v27  ;;  %v13028_v60 = vor.u32 %v14677_v42, %v13025_v14  ;;  %v13247_v27 = vld [vmem:[#allocation5 + $0xe80] sm:$0xf]  ;;  %v12993_v7 = vld [vmem:[#allocation5 + $0xca0] sm:$0xf0]  ;;  %v12652_v62 = vor.u32 %v14582_v46, %v12649_v0  ;;  %v14542_v46 = vld [vmem:[#allocation5 + $0x88c] sm:$0xf] }
 0x43a   :  { %v14737_v40 = vld [vmem:[#allocation5 + $0xe9c] sm:$0xf0]  ;;  %v12996_v20 = vor.u32 %v14669_v30, %v12993_v7  ;;  %v14765_v25 = vld [vmem:[#allocation5 + $0xf84] sm:$0xf]  ;;  %v12489_v0 = vld [vmem:[#allocation5 + $0x8a8] sm:$0xf0] }
 0x43b   :  { %8142 = vmatmul.bf16.vlgmr.msra.gmra.mxu0 %v15403_v23  ;;  %v13248_v28 = vor.u32 %v14737_v40, %v13247_v27  ;;  %v13377_v42 = vld [vmem:[#allocation5 + $0xfa0] sm:$0xf0]  ;;  %v12839_v27 = vld [vmem:[#allocation5 + $0xb48] sm:$0xf] }
 0x43c   :  { %8238 = vmatpush.bf16.msra.mxu0 %v12648_v26  ;;  %v6405_v22 = vpop.f32.mrf.mxu3  ;;  %v6444_v51 = vpop.f32.mrf.mxu2  ;;  %8214 = vmatpush.bf16.msrb.mxu2 %v13092_v2  ;;  %v12488_v26 = vor.u32 %v14546_v17, %v12487_v16  ;;  %v12585_v16 = vld [vmem:[#allocation5 + $0x968] sm:$0xf0]  ;;  %v13380_v17 = vor.u32 %v14765_v25, %v13377_v42  ;;  %v14634_v40 = vld [vmem:[#allocation5 + $0xb64] sm:$0xf0]  ;;  %v14757_v30 = vld [vmem:[#allocation5 + $0xf44] sm:$0xf] }
 0x43d   :  { %8178 = vmatpush.bf16.msra.mxu3 %v13248_v28  ;;  %v12961_v22 = vld [vmem:[#allocation5 + $0xc60] sm:$0xf0]  ;;  %v14526_v25 = vld [vmem:[#allocation5 + $0x80c] sm:$0xf] }
 0x43e   :  { %v12964_v51 = vor.u32 %v14661_v24, %v12961_v22  ;;  %v13345_v28 = vld [vmem:[#allocation5 + $0xf60] sm:$0xf0]  ;;  %v13316_v22 = vor.u32 %v14749_v37, %v13313_v63  ;;  %v12425_v42 = vld [vmem:[#allocation5 + $0x828] sm:$0xf0]  ;;  %v14706_v63 = vld [vmem:[#allocation5 + $0xda4] sm:$0xf0] }
 0x43f   :  { %v13348_v39 = vor.u32 %v14757_v30, %v13345_v28  ;;  %v12428_v30 = vor.u32 %v14526_v25, %v12425_v42  ;;  %v14717_v28 = vld [vmem:[#allocation5 + $0xe04] sm:$0xf] }
 0x440   :  { %8239 = vmatpush.bf16.msra.mxu0 %v12616_v43  ;;  %8215 = vmatpush.bf16.msrb.mxu2 %v13060_v9  ;;  %v6443_v43 = vadd.f32 %v15401_v11, %v6430_v34  ;;  %v12929_v11 = vld [vmem:[#allocation5 + $0xc20] sm:$0xf0]  ;;  %v14626_v34 = vld [vmem:[#allocation5 + $0xb24] sm:$0xf0] }
 0x441   :  { %8179 = vmatpush.bf16.msra.mxu3 %v13216_v29  ;;  %v12932_v33 = vor.u32 %v14653_v54, %v12929_v11  ;;  %v12521_v29 = vld [vmem:[#allocation5 + $0x8e8] sm:$0xf0]  ;;  %v14733_v54 = vld [vmem:[#allocation5 + $0xe84] sm:$0xf]  ;;  %v6469_v11 = vadd.f32 %v15386_v31, %v6137_v47 }
 0x443   :  { %v6482_v35 = vadd.f32 %v15394_v32, %v6469_v11  ;;  %v14690_v11 = vld [vmem:[#allocation5 + $0xd24] sm:$0xf0] }
 0x444   :  { %8240 = vmatpush.bf16.msra.mxu0 %v12584_v58  ;;  %8216 = vmatpush.bf16.msrb.mxu2 %v13028_v60  ;;  %v13184_v58 = vor.u32 %v14721_v8, %v13183_v50  ;;  %v14566_v60 = vld [vmem:[#allocation5 + $0x94c] sm:$0xf]  ;;  %v12743_v50 = vld [vmem:[#allocation5 + $0xa88] sm:$0xf] }
 0x445   :  { %v12588_v7 = vor.u32 %v14566_v60, %v12585_v16  ;;  %v14610_v8 = vld [vmem:[#allocation5 + $0xaa4] sm:$0xf0] }
 0x446   :  { %8180 = vmatpush.bf16.msra.mxu3 %v13184_v58  ;;  %v12492_v58 = vor.u32 %v14542_v46, %v12489_v0  ;;  %v13159_v60 = vld [vmem:[#allocation5 + $0xdc8] sm:$0xf]  ;;  %v14630_v46 = vld [vmem:[#allocation5 + $0xb4c] sm:$0xf] }
 0x447   :  { %v14714_v16 = vld [vmem:[#allocation5 + $0xde4] sm:$0xf0]  ;;  %v12841_v0 = vld [vmem:[#allocation5 + $0xb68] sm:$0xf0] }
 0x448   :  { %8241 = vmatpush.bf16.msra.mxu0 %v12552_v4  ;;  %8217 = vmatpush.bf16.msrb.mxu2 %v12996_v20  ;;  %v13409_v4 = vld [vmem:[#allocation5 + $0xfe0] sm:$0xf0]  ;;  %v14558_v20 = vld [vmem:[#allocation5 + $0x90c] sm:$0xf] }
 0x449   :  { %v13412_v13 = vor.u32 %v14773_v53, %v13409_v4  ;;  %v12556_v24 = vor.u32 %v14558_v20, %v12553_v21  ;;  %v12711_v53 = vld [vmem:[#allocation5 + $0xa48] sm:$0xf]  ;;  %v13160_v21 = vor.u32 %v14714_v16, %v13159_v60  ;;  %v14606_v60 = vld [vmem:[#allocation5 + $0xa8c] sm:$0xf] }
 0x44a   :  { %v12745_v16 = vld [vmem:[#allocation5 + $0xaa8] sm:$0xf0] }
 0x44b   :  { %8194 = vmatmul.bf16.vlgmr.msrb.gmra.mxu0 %v15403_v23  ;;  %8225 = vmatpush.bf16.msrb.mxu3 %v13412_v13 }
 0x44c   :  { %8242 = vmatpush.bf16.msra.mxu0 %v12520_v45  ;;  %8218 = vmatpush.bf16.msrb.mxu2 %v12964_v51  ;;  %v12872_v45 = vor.u32 %v14642_v10, %v12871_v56  ;;  %v14741_v51 = vld [vmem:[#allocation5 + $0xec4] sm:$0xf] }
 0x44d   :  { %v14725_v56 = vld [vmem:[#allocation5 + $0xe44] sm:$0xf] }
 0x44e   :  { %v13217_v10 = vld [vmem:[#allocation5 + $0xe60] sm:$0xf0] }
 0x44f   :  { %8226 = vmatpush.bf16.msrb.mxu3 %v13380_v17 }
 0x450   :  { %v15408_v19 = vpop.f32.mrf.mxu1  ;;  %8243 = vmatpush.bf16.msra.mxu0 %v12488_v26  ;;  %8219 = vmatpush.bf16.msrb.mxu2 %v12932_v33  ;;  %v12840_v26 = vor.u32 %v14634_v40, %v12839_v27  ;;  %v12905_v27 = vld [vmem:[#allocation5 + $0xbe8] sm:$0xf0]  ;;  %v12655_v40 = vld [vmem:[#allocation5 + $0x9d0] sm:$0xf] }
 0x453   :  { %8227 = vmatpush.bf16.msrb.mxu3 %v13348_v39  ;;  %v12908_v39 = vor.u32 %v14646_v6, %v12905_v27  ;;  %v14547_v6 = vld [vmem:[#allocation5 + $0x8ac] sm:$0xf0] }
 0x454   :  { %v6455_v52 = vpop.f32.mrf.mxu3  ;;  %v15413_v3 = vpop.f32.mrf.mxu2  ;;  %8244 = vmatpush.bf16.msra.mxu0 %v12456_v41  ;;  %v14550_v41 = vld [vmem:[#allocation5 + $0x8cc] sm:$0xf] }
 0x455   :  { %v6456_v38 = vadd.f32 %v6455_v52, %v6443_v43  ;;  %v12775_v43 = vld [vmem:[#allocation5 + $0xac8] sm:$0xf]  ;;  %v12524_v18 = vor.u32 %v14550_v41, %v12521_v29  ;;  %v13281_v52 = vld [vmem:[#allocation5 + $0xee0] sm:$0xf0]  ;;  %v6495_v13 = vadd.f32 %v15413_v3, %v6482_v35  ;;  %v14587_v3 = vld [vmem:[#allocation5 + $0x9ec] sm:$0xf0] }
 0x456   :  { %v12776_v15 = vor.u32 %v14618_v59, %v12775_v43  ;;  %v12656_v37 = vor.u32 %v14587_v3, %v12655_v40  ;;  %v12623_v29 = vld [vmem:[#allocation5 + $0x990] sm:$0xf]  ;;  %v13031_v35 = vld [vmem:[#allocation5 + $0xcc8] sm:$0xf] }
 0x457   :  { %v6568_v2 = vadd.f32 %v6564_v36, %v6456_v38  ;;  %v12808_v36 = vor.u32 %v14626_v34, %v12807_v5  ;;  %8228 = vmatpush.bf16.msrb.mxu3 %v13316_v22  ;;  %v13284_v38 = vor.u32 %v14741_v51, %v13281_v52  ;;  %v13127_v5 = vld [vmem:[#allocation5 + $0xd88] sm:$0xf]  ;;  %v14579_v22 = vld [vmem:[#allocation5 + $0x9ac] sm:$0xf0] }
 0x458   :  { %v6535_v61 = vpop.f32.mrf.mxu1  ;;  %8245 = vmatpush.bf16.msra.mxu0 %v12424_v57  ;;  %v13249_v57 = vld [vmem:[#allocation5 + $0xea0] sm:$0xf0]  ;;  %v13128_v59 = vor.u32 %v14706_v63, %v13127_v5  ;;  %v12624_v52 = vor.u32 %v14579_v22, %v12623_v29  ;;  %v12967_v3 = vld [vmem:[#allocation5 + $0xc48] sm:$0xf]  ;;  %v14539_v5 = vld [vmem:[#allocation5 + $0x86c] sm:$0xf0] }
 0x459   :  { %v15415_v9 = vpack.c.bf16 %v6568_v2, %v6568_v2  ;;  %v12744_v2 = vor.u32 %v14610_v8, %v12743_v50  ;;  %v14534_v61 = vld [vmem:[#allocation5 + $0x84c] sm:$0xf]  ;;  %v13252_v33 = vor.u32 %v14733_v54, %v13249_v57  ;;  %v14571_v50 = vld [vmem:[#allocation5 + $0x96c] sm:$0xf0]  ;;  %v12844_v54 = vor.u32 %v14630_v46, %v12841_v0  ;;  %v13063_v57 = vld [vmem:[#allocation5 + $0xd08] sm:$0xf] }
 0x45a   :  { %v12911_v46 = vld [vmem:[#allocation5 + $0xbd0] sm:$0xf] }
 0x45b   :  { %8155 = vmatmul.bf16.vlgmr.msra.gmra.mxu1 %v15415_v9  ;;  %8246 = vmatmul.bf16.vlgmr.msra.gmra.mxu0 %v15403_v23 }
 0x45c   :  { %8290 = vmatpush.bf16.msrb.mxu0 %v12652_v62  ;;  %8251 = vmatpush.bf16.msra.mxu1 %v12904_v48  ;;  %v6457_v14 = vpop.f32.mrf.mxu3  ;;  %v6496_v55 = vpop.f32.mrf.mxu2  ;;  %v12457_v62 = vld [vmem:[#allocation5 + $0x868] sm:$0xf0]  ;;  %v14602_v48 = vld [vmem:[#allocation5 + $0xa64] sm:$0xf0] }
 0x45d   :  { %8229 = vmatpush.bf16.msrb.mxu3 %v13284_v38  ;;  %v12460_v4 = vor.u32 %v14534_v61, %v12457_v62  ;;  %v12712_v31 = vor.u32 %v14602_v48, %v12711_v53  ;;  %v13220_v14 = vor.u32 %v14725_v56, %v13217_v10  ;;  %v12591_v38 = vld [vmem:[#allocation5 + $0x950] sm:$0xf]  ;;  %v12809_v61 = vld [vmem:[#allocation5 + $0xb28] sm:$0xf0]  ;;  %v13064_v53 = vor.u32 %v14690_v11, %v13063_v57 }
 0x45e   :  { %v12559_v62 = vld [vmem:[#allocation5 + $0x910] sm:$0xf]  ;;  %v14614_v56 = vld [vmem:[#allocation5 + $0xacc] sm:$0xf] }
 0x45f   :  { %v12777_v10 = vld [vmem:[#allocation5 + $0xae8] sm:$0xf0] }
 0x460   :  { %8291 = vmatpush.bf16.msrb.mxu0 %v12620_v12  ;;  %8252 = vmatpush.bf16.msra.mxu1 %v12872_v45  ;;  %v12679_v12 = vld [vmem:[#allocation5 + $0xa08] sm:$0xf]  ;;  %v12780_v42 = vor.u32 %v14614_v56, %v12777_v10  ;;  %v14575_v56 = vld [vmem:[#allocation5 + $0x994] sm:$0xf] }
 0x461   :  { %8230 = vmatpush.bf16.msrb.mxu3 %v13252_v33  ;;  %v14594_v45 = vld [vmem:[#allocation5 + $0xa24] sm:$0xf0]  ;;  %v14563_v33 = vld [vmem:[#allocation5 + $0x92c] sm:$0xf0]  ;;  %v12625_v10 = vld [vmem:[#allocation5 + $0x9b0] sm:$0xf0] }
 0x462   :  { %v12680_v20 = vor.u32 %v14594_v45, %v12679_v12  ;;  %v6138_v12 = vld.sshfl [vmem:[#allocation1 + $0x38] sm:$0xff pattern:$0x73625140] }
 0x463   :  { %v14674_v45 = vld [vmem:[#allocation5 + $0xca4] sm:$0xf0]  ;;  %v6521_v27 = vadd.f32 %v15396_v44, %v6138_v12 }
 0x464   :  { %8292 = vmatpush.bf16.msrb.mxu0 %v12588_v7  ;;  %8253 = vmatpush.bf16.msra.mxu1 %v12840_v26  ;;  %v13185_v7 = vld [vmem:[#allocation5 + $0xe20] sm:$0xf0] }
 0x465   :  { %8231 = vmatpush.bf16.msrb.mxu3 %v13220_v14  ;;  %v13188_v41 = vor.u32 %v14717_v28, %v13185_v7  ;;  %v12999_v14 = vld [vmem:[#allocation5 + $0xc88] sm:$0xf] }
 0x466   :  { %v13000_v40 = vor.u32 %v14674_v45, %v12999_v14  ;;  %v14666_v7 = vld [vmem:[#allocation5 + $0xc64] sm:$0xf0]  ;;  %v14694_v14 = vld [vmem:[#allocation5 + $0xd4c] sm:$0xf]  ;;  %v12628_v45 = vor.u32 %v14575_v56, %v12625_v10  ;;  %v12719_v56 = vld [vmem:[#allocation5 + $0xa50] sm:$0xf] }
 0x467   :  { %v12968_v44 = vor.u32 %v14666_v7, %v12967_v3  ;;  %v14754_v7 = vld [vmem:[#allocation5 + $0xf24] sm:$0xf0]  ;;  %v14603_v10 = vld [vmem:[#allocation5 + $0xa6c] sm:$0xf0] }
 0x468   :  { %8293 = vmatpush.bf16.msrb.mxu0 %v12556_v24  ;;  %8254 = vmatpush.bf16.msra.mxu1 %v12808_v36  ;;  %v14638_v24 = vld [vmem:[#allocation5 + $0xb8c] sm:$0xf] }
 0x469   :  { %v12873_v36 = vld [vmem:[#allocation5 + $0xba8] sm:$0xf0]  ;;  %8232 = vmatpush.bf16.msrb.mxu3 %v13188_v41  ;;  %v14658_v41 = vld [vmem:[#allocation5 + $0xc24] sm:$0xf0] }
 0x46a   :  { %v12876_v47 = vor.u32 %v14638_v24, %v12873_v36  ;;  %v12935_v36 = vld [vmem:[#allocation5 + $0xc08] sm:$0xf] }
 0x46b   :  { %8207 = vmatmul.bf16.vlgmr.msrb.gmra.mxu1 %v15415_v9  ;;  %v12936_v0 = vor.u32 %v14658_v41, %v12935_v36  ;;  %v13287_v41 = vld [vmem:[#allocation5 + $0xec8] sm:$0xf] }
 0x46c   :  { %8294 = vmatpush.bf16.msrb.mxu0 %v12524_v18  ;;  %8255 = vmatpush.bf16.msra.mxu1 %v12776_v15  ;;  %v13095_v18 = vld [vmem:[#allocation5 + $0xd48] sm:$0xf] }
 0x46d   :  { %v14698_v15 = vld [vmem:[#allocation5 + $0xd64] sm:$0xf0] }
 0x46e   :  { %v13096_v8 = vor.u32 %v14698_v15, %v13095_v18  ;;  %v14710_v15 = vld [vmem:[#allocation5 + $0xdcc] sm:$0xf] }
 0x470   :  { %8295 = vmatpush.bf16.msrb.mxu0 %v12492_v58  ;;  %8256 = vmatpush.bf16.msra.mxu1 %v12744_v2  ;;  %v12592_v58 = vor.u32 %v14571_v50, %v12591_v38  ;;  %v14622_v2 = vld [vmem:[#allocation5 + $0xb0c] sm:$0xf]  ;;  %v14651_v50 = vld [vmem:[#allocation5 + $0xbec] sm:$0xf0] }
 0x471   :  { %v12812_v48 = vor.u32 %v14622_v2, %v12809_v61  ;;  %v13383_v61 = vld [vmem:[#allocation5 + $0xf88] sm:$0xf] }
 0x474   :  { %v6507_v55 = vpop.f32.mrf.mxu3  ;;  %v15424_v17 = vpop.f32.mrf.mxu2  ;;  %8296 = vmatpush.bf16.msrb.mxu0 %v12460_v4  ;;  %8257 = vmatpush.bf16.msra.mxu1 %v12712_v31  ;;  %v14682_v4 = vld [vmem:[#allocation5 + $0xce4] sm:$0xf0]  ;;  %v14555_v31 = vld [vmem:[#allocation5 + $0x8ec] sm:$0xf0] }
 0x475   :  { %v6508_v32 = vadd.f32 %v6507_v55, %v6495_v13  ;;  %v12527_v13 = vld [vmem:[#allocation5 + $0x8d0] sm:$0xf]  ;;  %v13032_v25 = vor.u32 %v14682_v4, %v13031_v35  ;;  %v13129_v35 = vld [vmem:[#allocation5 + $0xda8] sm:$0xf0] }
 0x476   :  { %v12528_v55 = vor.u32 %v14555_v31, %v12527_v13  ;;  %v14643_v4 = vld [vmem:[#allocation5 + $0xbac] sm:$0xf0] }
 0x477   :  { %v6569_v26 = vadd.f32 %v6565_v1, %v6508_v32  ;;  %v12560_v1 = vor.u32 %v14563_v33, %v12559_v62  ;;  %v12495_v32 = vld [vmem:[#allocation5 + $0x890] sm:$0xf]  ;;  %v14770_v62 = vld [vmem:[#allocation5 + $0xfa4] sm:$0xf0]  ;;  %v12912_v33 = vor.u32 %v14651_v50, %v12911_v46  ;;  %v14670_v50 = vld [vmem:[#allocation5 + $0xc8c] sm:$0xf] }
 0x478   :  { %8297 = vmatpush.bf16.msrb.mxu0 %v12428_v30  ;;  %8258 = vmatpush.bf16.msra.mxu1 %v12680_v20  ;;  %v12748_v30 = vor.u32 %v14606_v60, %v12745_v16  ;;  %v12496_v28 = vor.u32 %v14547_v6, %v12495_v32  ;;  %v12713_v20 = vld [vmem:[#allocation5 + $0xa68] sm:$0xf0]  ;;  %v13384_v31 = vor.u32 %v14770_v62, %v13383_v61  ;;  %v12847_v16 = vld [vmem:[#allocation5 + $0xb50] sm:$0xf]  ;;  %v14567_v6 = vld [vmem:[#allocation5 + $0x954] sm:$0xf] }
 0x479   :  { %v15426_v34 = vpack.c.bf16 %v6569_v26, %v6569_v26  ;;  %v14598_v26 = vld [vmem:[#allocation5 + $0xa4c] sm:$0xf]  ;;  %v14635_v32 = vld [vmem:[#allocation5 + $0xb6c] sm:$0xf0]  ;;  %v13255_v46 = vld [vmem:[#allocation5 + $0xe88] sm:$0xf] }
 0x47a   :  { %v12716_v24 = vor.u32 %v14598_v26, %v12713_v20  ;;  %v13097_v60 = vld [vmem:[#allocation5 + $0xd68] sm:$0xf0]  ;;  %v12848_v26 = vor.u32 %v14635_v32, %v12847_v16  ;;  %v12687_v32 = vld [vmem:[#allocation5 + $0xa10] sm:$0xf] }
 0x47b   :  { %8168 = vmatmul.bf16.vlgmr.msra.gmra.mxu2 %v15426_v34  ;;  %8298 = vmatmul.bf16.vlgmr.msrb.gmra.mxu0 %v15403_v23  ;;  %v13100_v3 = vor.u32 %v14694_v14, %v13097_v60  ;;  %v14722_v14 = vld [vmem:[#allocation5 + $0xe24] sm:$0xf0]  ;;  %v12720_v60 = vor.u32 %v14603_v10, %v12719_v56  ;;  %v14691_v56 = vld [vmem:[#allocation5 + $0xd2c] sm:$0xf0]  ;;  %v14623_v10 = vld [vmem:[#allocation5 + $0xb14] sm:$0xf] }
 0x47c   :  { %8264 = vmatpush.bf16.msra.mxu2 %v13160_v21  ;;  %8303 = vmatpush.bf16.msrb.mxu1 %v12908_v39  ;;  %v6509_v43 = vpop.f32.mrf.mxu3  ;;  %v6548_v51 = vpop.f32.mrf.mxu2  ;;  %v6534_v21 = vadd.f32 %v15408_v19, %v6521_v27  ;;  %v12463_v39 = vld [vmem:[#allocation5 + $0x850] sm:$0xf]  ;;  %v12593_v27 = vld [vmem:[#allocation5 + $0x970] sm:$0xf0] }
 0x47d   :  { %8342 = vmatpush.bf16.msra.mxu0 %v12656_v37  ;;  %8259 = vmatmul.bf16.vlgmr.msra.gmra.mxu1 %v15415_v9  ;;  %v6566_v37 = vmax.f32 %v15391_v49, 0.0  ;;  %v12464_v22 = vor.u32 %v14539_v5, %v12463_v39  ;;  %v14590_v43 = vld [vmem:[#allocation5 + $0xa0c] sm:$0xf]  ;;  %v14531_v19 = vld [vmem:[#allocation5 + $0x82c] sm:$0xf0]  ;;  %v12596_v20 = vor.u32 %v14567_v6, %v12593_v27 }
 0x47e   :  { %v6547_v63 = vadd.f32 %v15424_v17, %v6534_v21  ;;  %v13415_v51 = vld [vmem:[#allocation5 + $0xfc8] sm:$0xf]  ;;  %v13161_v49 = vld [vmem:[#allocation5 + $0xde8] sm:$0xf0]  ;;  %v12815_v5 = vld [vmem:[#allocation5 + $0xb10] sm:$0xf] }
 0x47f   :  { %v13164_v2 = vor.u32 %v14710_v15, %v13161_v49  ;;  %v14686_v21 = vld [vmem:[#allocation5 + $0xd0c] sm:$0xf]  ;;  %v14595_v6 = vld [vmem:[#allocation5 + $0xa2c] sm:$0xf0]  ;;  %v14527_v27 = vld [vmem:[#allocation5 + $0x814] sm:$0xf] }
 0x480   :  { %8265 = vmatpush.bf16.msra.mxu2 %v13128_v59  ;;  %8304 = vmatpush.bf16.msrb.mxu1 %v12876_v47  ;;  %v12681_v59 = vld [vmem:[#allocation5 + $0xa28] sm:$0xf0]  ;;  %v12431_v47 = vld [vmem:[#allocation5 + $0x810] sm:$0xf] }
 0x481   :  { %8343 = vmatpush.bf16.msra.mxu0 %v12624_v52  ;;  %v14778_v52 = vld [vmem:[#allocation5 + $0xfe4] sm:$0xf0]  ;;  %v12684_v38 = vor.u32 %v14590_v43, %v12681_v59  ;;  %v12432_v57 = vor.u32 %v14531_v19, %v12431_v47  ;;  %v13065_v39 = vld [vmem:[#allocation5 + $0xd28] sm:$0xf0]  ;;  %v14619_v19 = vld [vmem:[#allocation5 + $0xaec] sm:$0xf0] }
 0x482   :  { %v13416_v11 = vor.u32 %v14778_v52, %v13415_v51  ;;  %v13068_v36 = vor.u32 %v14686_v21, %v13065_v39  ;;  %v14678_v59 = vld [vmem:[#allocation5 + $0xccc] sm:$0xf]  ;;  %v14551_v51 = vld [vmem:[#allocation5 + $0x8d4] sm:$0xf] }
 0x483   :  { %v13033_v47 = vld [vmem:[#allocation5 + $0xce8] sm:$0xf0]  ;;  %v12529_v52 = vld [vmem:[#allocation5 + $0x8f0] sm:$0xf0] }
 0x484   :  { %8266 = vmatpush.bf16.msra.mxu2 %v13096_v8  ;;  %8305 = vmatpush.bf16.msrb.mxu1 %v12844_v54  ;;  %v14583_v8 = vld [vmem:[#allocation5 + $0x9d4] sm:$0xf]  ;;  %v13036_v49 = vor.u32 %v14678_v59, %v13033_v47  ;;  %v13135_v59 = vld [vmem:[#allocation5 + $0xd90] sm:$0xf] }
 0x485   :  { %8344 = vmatpush.bf16.msra.mxu0 %v12592_v58  ;;  %v12657_v54 = vld [vmem:[#allocation5 + $0x9f0] sm:$0xf0]  ;;  %v14707_v47 = vld [vmem:[#allocation5 + $0xdac] sm:$0xf0] }
 0x486   :  { %v12913_v39 = vld [vmem:[#allocation5 + $0xbf0] sm:$0xf0] }
 0x488   :  { %8267 = vmatpush.bf16.msra.mxu2 %v13064_v53  ;;  %8306 = vmatpush.bf16.msrb.mxu1 %v12812_v48  ;;  %v12660_v53 = vor.u32 %v14583_v8, %v12657_v54  ;;  %v14702_v48 = vld [vmem:[#allocation5 + $0xd8c] sm:$0xf]  ;;  %v12751_v54 = vld [vmem:[#allocation5 + $0xa90] sm:$0xf] }
 0x489   :  { %8345 = vmatpush.bf16.msra.mxu0 %v12560_v1  ;;  %v12879_v1 = vld [vmem:[#allocation5 + $0xb90] sm:$0xf]  ;;  %v13132_v12 = vor.u32 %v14702_v48, %v13129_v35  ;;  %v13001_v8 = vld [vmem:[#allocation5 + $0xca8] sm:$0xf0] }
 0x48a   :  { %v13004_v62 = vor.u32 %v14670_v50, %v13001_v8  ;;  %v13103_v50 = vld [vmem:[#allocation5 + $0xd50] sm:$0xf] }
 0x48b   :  { %8220 = vmatmul.bf16.vlgmr.msrb.gmra.mxu2 %v15426_v34  ;;  %v14699_v8 = vld [vmem:[#allocation5 + $0xd6c] sm:$0xf0] }
 0x48c   :  { %8268 = vmatpush.bf16.msra.mxu2 %v13032_v25  ;;  %8307 = vmatpush.bf16.msrb.mxu1 %v12780_v42  ;;  %v13351_v25 = vld [vmem:[#allocation5 + $0xf48] sm:$0xf] }
 0x48d   :  { %8346 = vmatpush.bf16.msra.mxu0 %v12528_v55  ;;  %v14762_v42 = vld [vmem:[#allocation5 + $0xf64] sm:$0xf0]  ;;  %v12880_v55 = vor.u32 %v14643_v4, %v12879_v1  ;;  %v14662_v1 = vld [vmem:[#allocation5 + $0xc4c] sm:$0xf] }
 0x48e   :  { %v12969_v4 = vld [vmem:[#allocation5 + $0xc68] sm:$0xf0] }
 0x490   :  { %8269 = vmatpush.bf16.msra.mxu2 %v13000_v40  ;;  %8308 = vmatpush.bf16.msrb.mxu1 %v12748_v30  ;;  %v6831_v40 = vld [vmem:[#allocation7 + $0x10] sm:$0xff]  ;;  %v13352_v30 = vor.u32 %v14762_v42, %v13351_v25  ;;  %v12972_v42 = vor.u32 %v14662_v1, %v12969_v4 }
 0x491   :  { %8347 = vmatpush.bf16.msra.mxu0 %v12496_v28  ;;  %8115 = vst [vmem:[#allocation1] ss:$4 sm:$0xff] %v6831_v40  ;;  %v13319_v28 = vld [vmem:[#allocation5 + $0xf08] sm:$0xf]  ;;  %v12433_v40 = vld [vmem:[#allocation5 + $0x830] sm:$0xf0] }
 0x492   :  { %v13071_v4 = vld [vmem:[#allocation5 + $0xd10] sm:$0xf] }
 0x494   :  { %v6559_v29 = vpop.f32.mrf.mxu3  ;;  %8270 = vmatpush.bf16.msra.mxu2 %v12968_v44  ;;  %8309 = vmatpush.bf16.msrb.mxu1 %v12716_v24  ;;  %v12561_v44 = vld [vmem:[#allocation5 + $0x930] sm:$0xf0]  ;;  %v13320_v24 = vor.u32 %v14754_v7, %v13319_v28  ;;  %v13167_v28 = vld [vmem:[#allocation5 + $0xdd0] sm:$0xf] }
 0x495   :  { %v6560_v18 = vadd.f32 %v6559_v29, %v6547_v63  ;;  %8348 = vmatpush.bf16.msra.mxu0 %v12464_v22  ;;  %v14559_v63 = vld [vmem:[#allocation5 + $0x914] sm:$0xf]  ;;  %v14746_v29 = vld [vmem:[#allocation5 + $0xee4] sm:$0xf0]  ;;  %v14715_v7 = vld [vmem:[#allocation5 + $0xdec] sm:$0xf0] }
 0x496   :  { %v12564_v43 = vor.u32 %v14559_v63, %v12561_v44  ;;  %v13288_v15 = vor.u32 %v14746_v29, %v13287_v41  ;;  %v12688_v63 = vor.u32 %v14595_v6, %v12687_v32  ;;  %v12436_v44 = vor.u32 %v14527_v27, %v12433_v40  ;;  %v14766_v41 = vld [vmem:[#allocation5 + $0xf8c] sm:$0xf]  ;;  %v14683_v32 = vld [vmem:[#allocation5 + $0xcec] sm:$0xf0]  ;;  %v14615_v6 = vld [vmem:[#allocation5 + $0xad4] sm:$0xf] }
 0x497   :  { %v6570_v17 = vadd.f32 %v6566_v37, %v6560_v18  ;;  %v14627_v37 = vld [vmem:[#allocation5 + $0xb2c] sm:$0xf0]  ;;  %v13385_v29 = vld [vmem:[#allocation5 + $0xfa8] sm:$0xf0]  ;;  %v12785_v27 = vld [vmem:[#allocation5 + $0xaf0] sm:$0xf0] }
 0x498   :  { %8271 = vmatpush.bf16.msra.mxu2 %v12936_v0  ;;  %8310 = vmatpush.bf16.msrb.mxu1 %v12684_v38  ;;  %v12816_v22 = vor.u32 %v14627_v37, %v12815_v5  ;;  %v12783_v18 = vld [vmem:[#allocation5 + $0xad0] sm:$0xf]  ;;  %v12532_v38 = vor.u32 %v14551_v51, %v12529_v52  ;;  %v12663_v5 = vld [vmem:[#allocation5 + $0x9d8] sm:$0xf] }
 0x499   :  { %v15436_v58 = vpack.c.bf16 %v6570_v17, %v6570_v17  ;;  %8349 = vmatpush.bf16.msra.mxu0 %v12432_v57  ;;  %v14738_v17 = vld [vmem:[#allocation5 + $0xea4] sm:$0xf0]  ;;  %v12784_v0 = vor.u32 %v14619_v19, %v12783_v18  ;;  %v14611_v57 = vld [vmem:[#allocation5 + $0xaac] sm:$0xf0]  ;;  %v14588_v37 = vld [vmem:[#allocation5 + $0x9f4] sm:$0xf0] }
 0x49a   :  { %v13256_v61 = vor.u32 %v14738_v17, %v13255_v46  ;;  %v12752_v48 = vor.u32 %v14611_v57, %v12751_v54  ;;  %v14639_v18 = vld [vmem:[#allocation5 + $0xb94] sm:$0xf]  ;;  %v12631_v51 = vld [vmem:[#allocation5 + $0x998] sm:$0xf]  ;;  %v14758_v46 = vld [vmem:[#allocation5 + $0xf4c] sm:$0xf] }
 0x49b   :  { %8181 = vmatmul.bf16.vlgmr.msra.gmra.mxu3 %v15436_v58  ;;  %8311 = vmatmul.bf16.vlgmr.msrb.gmra.mxu1 %v15415_v9  ;;  %v12881_v19 = vld [vmem:[#allocation5 + $0xbb0] sm:$0xf0]  ;;  %v14580_v52 = vld [vmem:[#allocation5 + $0x9b4] sm:$0xf0]  ;;  %v13353_v17 = vld [vmem:[#allocation5 + $0xf68] sm:$0xf0] }
 0x49c   :  { %v6561_v13 = vpop.f32.mrf.mxu3  ;;  %8277 = vmatpush.bf16.msra.mxu3 %v13416_v11  ;;  %8316 = vmatpush.bf16.msrb.mxu2 %v13164_v2  ;;  %v14543_v11 = vld [vmem:[#allocation5 + $0x894] sm:$0xf]  ;;  %v12535_v40 = vld [vmem:[#allocation5 + $0x8d8] sm:$0xf] }
 0x49d   :  { %8355 = vmatpush.bf16.msra.mxu1 %v12912_v33  ;;  %8394 = vmatpush.bf16.msrb.mxu0 %v12660_v53  ;;  %v12497_v2 = vld [vmem:[#allocation5 + $0x8b0] sm:$0xf0]  ;;  %v13223_v33 = vld [vmem:[#allocation5 + $0xe48] sm:$0xf] }
 0x49e   :  { %8350 = vmatmul.bf16.vlgmr.msra.gmra.mxu0 %v15403_v23  ;;  %8272 = vmatmul.bf16.vlgmr.msra.gmra.mxu2 %v15426_v34  ;;  %v14730_v53 = vld [vmem:[#allocation5 + $0xe64] sm:$0xf0]  ;;  %v12500_v35 = vor.u32 %v14543_v11, %v12497_v2  ;;  %v14535_v13 = vld [vmem:[#allocation5 + $0x854] sm:$0xf]  ;;  %v12599_v11 = vld [vmem:[#allocation5 + $0x958] sm:$0xf] }
 0x49f   :  { %v13224_v25 = vor.u32 %v14730_v53, %v13223_v33  ;;  %v14631_v54 = vld [vmem:[#allocation5 + $0xb54] sm:$0xf]  ;;  %v14572_v2 = vld [vmem:[#allocation5 + $0x974] sm:$0xf0]  ;;  %v14750_v33 = vld [vmem:[#allocation5 + $0xf0c] sm:$0xf] }
 0x4a0   :  { %8278 = vmatpush.bf16.msra.mxu3 %v13384_v31  ;;  %8317 = vmatpush.bf16.msrb.mxu2 %v13132_v12  ;;  %v12465_v31 = vld [vmem:[#allocation5 + $0x870] sm:$0xf0]  ;;  %v13191_v12 = vld [vmem:[#allocation5 + $0xe08] sm:$0xf]  ;;  %v13321_v53 = vld [vmem:[#allocation5 + $0xf28] sm:$0xf0] }
 0x4a1   :  { %8356 = vmatpush.bf16.msra.mxu1 %v12880_v55  ;;  %8395 = vmatpush.bf16.msrb.mxu0 %v12628_v45  ;;  %v14654_v55 = vld [vmem:[#allocation5 + $0xc0c] sm:$0xf]  ;;  %v12468_v16 = vor.u32 %v14535_v13, %v12465_v31  ;;  %v12849_v57 = vld [vmem:[#allocation5 + $0xb70] sm:$0xf0]  ;;  %v12567_v31 = vld [vmem:[#allocation5 + $0x918] sm:$0xf] }
 0x4a2   :  { %v12937_v45 = vld [vmem:[#allocation5 + $0xc28] sm:$0xf0]  ;;  %v12817_v13 = vld [vmem:[#allocation5 + $0xb30] sm:$0xf0] }
 0x4a3   :  { %v12940_v21 = vor.u32 %v14654_v55, %v12937_v45  ;;  %v13289_v55 = vld [vmem:[#allocation5 + $0xee8] sm:$0xf0]  ;;  %v12820_v45 = vor.u32 %v14623_v10, %v12817_v13 }
 0x4a4   :  { %8279 = vmatpush.bf16.msra.mxu3 %v13352_v30  ;;  %8318 = vmatpush.bf16.msrb.mxu2 %v13100_v3  ;;  %v14774_v30 = vld [vmem:[#allocation5 + $0xfcc] sm:$0xf] }
 0x4a5   :  { %8357 = vmatpush.bf16.msra.mxu1 %v12848_v26  ;;  %8396 = vmatpush.bf16.msrb.mxu0 %v12596_v20  ;;  %v13417_v3 = vld [vmem:[#allocation5 + $0xfe8] sm:$0xf0]  ;;  %v14647_v26 = vld [vmem:[#allocation5 + $0xbd4] sm:$0xf]  ;;  %v13192_v20 = vor.u32 %v14722_v14, %v13191_v12  ;;  %v14564_v12 = vld [vmem:[#allocation5 + $0x934] sm:$0xf0] }
 0x4a6   :  { %v14742_v14 = vld [vmem:[#allocation5 + $0xecc] sm:$0xf] }
 0x4a8   :  { %8280 = vmatpush.bf16.msra.mxu3 %v13320_v24  ;;  %8319 = vmatpush.bf16.msrb.mxu2 %v13068_v36  ;;  %v13420_v24 = vor.u32 %v14774_v30, %v13417_v3  ;;  %v13168_v36 = vor.u32 %v14715_v7, %v13167_v28  ;;  %v14556_v30 = vld [vmem:[#allocation5 + $0x8f4] sm:$0xf0]  ;;  %v13292_v3 = vor.u32 %v14742_v14, %v13289_v55  ;;  %v14734_v7 = vld [vmem:[#allocation5 + $0xe8c] sm:$0xf] }
 0x4a9   :  { %8358 = vmatpush.bf16.msra.mxu1 %v12816_v22  ;;  %8397 = vmatpush.bf16.msrb.mxu0 %v12564_v43  ;;  %v12916_v22 = vor.u32 %v14647_v26, %v12913_v39  ;;  %v12664_v43 = vor.u32 %v14588_v37, %v12663_v5  ;;  %v13257_v26 = vld [vmem:[#allocation5 + $0xea8] sm:$0xf0]  ;;  %v13007_v5 = vld [vmem:[#allocation5 + $0xc90] sm:$0xf] }
 0x4aa   :  { %v14675_v37 = vld [vmem:[#allocation5 + $0xcac] sm:$0xf0] }
 0x4ab   :  { %8233 = vmatmul.bf16.vlgmr.msrb.gmra.mxu3 %v15436_v58 }
 0x4ac   :  { %8281 = vmatpush.bf16.msra.mxu3 %v13288_v15  ;;  %8320 = vmatpush.bf16.msrb.mxu2 %v13036_v49  ;;  %v13388_v15 = vor.u32 %v14766_v41, %v13385_v29  ;;  %v13136_v49 = vor.u32 %v14707_v47, %v13135_v59  ;;  %v13260_v41 = vor.u32 %v14734_v7, %v13257_v26  ;;  %v12633_v7 = vld [vmem:[#allocation5 + $0x9b8] sm:$0xf0]  ;;  %v8118_v26 = vld.sshfl [vmem:[#allocation1] sm:$0xff pattern:$0x73625140] }
 0x4ad   :  { %8359 = vmatpush.bf16.msra.mxu1 %v12784_v0  ;;  %8398 = vmatpush.bf16.msrb.mxu0 %v12532_v38  ;;  %v12884_v0 = vor.u32 %v14639_v18, %v12881_v19  ;;  %v12632_v38 = vor.u32 %v14580_v52, %v12631_v51  ;;  %v13008_v29 = vor.u32 %v14675_v37, %v13007_v5  ;;  %v12975_v18 = vld [vmem:[#allocation5 + $0xc50] sm:$0xf]  ;;  %v14599_v51 = vld [vmem:[#allocation5 + $0xa54] sm:$0xf] }
 0x4ae   :  { %v14667_v19 = vld [vmem:[#allocation5 + $0xc6c] sm:$0xf0]  ;;  %v12721_v52 = vld [vmem:[#allocation5 + $0xa70] sm:$0xf0] }
 0x4af   :  { %v13359_v5 = vld [vmem:[#allocation5 + $0xf50] sm:$0xf] }
 0x4b0   :  { %8282 = vmatpush.bf16.msra.mxu3 %v13256_v61  ;;  %8321 = vmatpush.bf16.msrb.mxu2 %v13004_v62  ;;  %v13356_v61 = vor.u32 %v14758_v46, %v13353_v17  ;;  %v13104_v62 = vor.u32 %v14699_v8, %v13103_v50  ;;  %v14718_v46 = vld [vmem:[#allocation5 + $0xe0c] sm:$0xf]  ;;  %v12943_v50 = vld [vmem:[#allocation5 + $0xc10] sm:$0xf] }
 0x4b1   :  { %8360 = vmatpush.bf16.msra.mxu1 %v12752_v48  ;;  %8399 = vmatpush.bf16.msrb.mxu0 %v12500_v35  ;;  %v12852_v48 = vor.u32 %v14631_v54, %v12849_v57  ;;  %v12600_v35 = vor.u32 %v14572_v2, %v12599_v11  ;;  %v14659_v8 = vld [vmem:[#allocation5 + $0xc2c] sm:$0xf0]  ;;  %v12724_v54 = vor.u32 %v14599_v51, %v12721_v52  ;;  %v14591_v2 = vld [vmem:[#allocation5 + $0xa14] sm:$0xf] }
 0x4b2   :  { %v12944_v13 = vor.u32 %v14659_v8, %v12943_v50  ;;  %v14763_v37 = vld [vmem:[#allocation5 + $0xf6c] sm:$0xf0]  ;;  %v14628_v50 = vld [vmem:[#allocation5 + $0xb34] sm:$0xf0]  ;;  %v14560_v8 = vld [vmem:[#allocation5 + $0x91c] sm:$0xf] }
 0x4b3   :  { %v14755_v51 = vld [vmem:[#allocation5 + $0xf2c] sm:$0xf0] }
 0x4b4   :  { %8283 = vmatpush.bf16.msra.mxu3 %v13224_v25  ;;  %8322 = vmatpush.bf16.msrb.mxu2 %v12972_v42  ;;  %v13324_v25 = vor.u32 %v14750_v33, %v13321_v53  ;;  %v13072_v42 = vor.u32 %v14691_v56, %v13071_v4  ;;  %v14532_v33 = vld [vmem:[#allocation5 + $0x834] sm:$0xf0]  ;;  %v13423_v53 = vld [vmem:[#allocation5 + $0xfd0] sm:$0xf]  ;;  %v13169_v4 = vld [vmem:[#allocation5 + $0xdf0] sm:$0xf0] }
 0x4b5   :  { %8361 = vmatpush.bf16.msra.mxu1 %v12720_v60  ;;  %8400 = vmatpush.bf16.msrb.mxu0 %v12468_v16  ;;  %v12568_v60 = vor.u32 %v14564_v12, %v12567_v31  ;;  %v13039_v16 = vld [vmem:[#allocation5 + $0xcd0] sm:$0xf]  ;;  %v12919_v56 = vld [vmem:[#allocation5 + $0xbd8] sm:$0xf]  ;;  %v14584_v12 = vld [vmem:[#allocation5 + $0x9dc] sm:$0xf] }
 0x4b6   :  { %v13040_v28 = vor.u32 %v14683_v32, %v13039_v16  ;;  %v14652_v31 = vld [vmem:[#allocation5 + $0xbf4] sm:$0xf0]  ;;  %v14771_v16 = vld [vmem:[#allocation5 + $0xfac] sm:$0xf0] }
 0x4b7   :  { %v12920_v32 = vor.u32 %v14652_v31, %v12919_v56  ;;  %v14620_v56 = vld [vmem:[#allocation5 + $0xaf4] sm:$0xf0] }
 0x4b8   :  { %8284 = vmatpush.bf16.msra.mxu3 %v13192_v20  ;;  %8323 = vmatpush.bf16.msrb.mxu2 %v12940_v21  ;;  %v15447_v1 = vpop.f32.mrf.mxu0  ;;  %v12788_v20 = vor.u32 %v14615_v6, %v12785_v27  ;;  %v12536_v21 = vor.u32 %v14556_v30, %v12535_v40  ;;  %v14703_v27 = vld [vmem:[#allocation5 + $0xd94] sm:$0xf]  ;;  %v12887_v30 = vld [vmem:[#allocation5 + $0xb98] sm:$0xf] }
 0x4b9   :  { %8362 = vmatpush.bf16.msra.mxu1 %v12688_v63  ;;  %8401 = vmatpush.bf16.msrb.mxu0 %v12436_v44  ;;  %v14607_v63 = vld [vmem:[#allocation5 + $0xa94] sm:$0xf] }
 0x4ba   :  { %v12753_v44 = vld [vmem:[#allocation5 + $0xab0] sm:$0xf0] }
 0x4bb   :  { %8324 = vmatmul.bf16.vlgmr.msrb.gmra.mxu2 %v15426_v34  ;;  %8285 = vmatmul.bf16.vlgmr.msra.gmra.mxu3 %v15436_v58  ;;  %v12756_v59 = vor.u32 %v14607_v63, %v12753_v44  ;;  %v13137_v40 = vld [vmem:[#allocation5 + $0xdb0] sm:$0xf0] }
 0x4bc   :  { %8329 = vmatpush.bf16.msrb.mxu3 %v13420_v24  ;;  %8368 = vmatpush.bf16.msra.mxu2 %v13168_v36  ;;  %v12503_v24 = vld [vmem:[#allocation5 + $0x898] sm:$0xf] }
 0x4bd   :  { %8407 = vmatpush.bf16.msrb.mxu1 %v12916_v22  ;;  %8446 = vmatpush.bf16.msra.mxu0 %v12664_v43  ;;  %v14548_v36 = vld [vmem:[#allocation5 + $0x8b4] sm:$0xf0]  ;;  %v14726_v22 = vld [vmem:[#allocation5 + $0xe4c] sm:$0xf] }
 0x4be   :  { %8363 = vmatmul.bf16.vlgmr.msra.gmra.mxu1 %v15415_v9  ;;  %8402 = vmatmul.bf16.vlgmr.msrb.gmra.mxu0 %v15403_v23  ;;  %v13225_v43 = vld [vmem:[#allocation5 + $0xe68] sm:$0xf0]  ;;  %v12504_v47 = vor.u32 %v14548_v36, %v12503_v24  ;;  %v14695_v24 = vld [vmem:[#allocation5 + $0xd54] sm:$0xf] }
 0x4bf   :  { %v13228_v17 = vor.u32 %v14726_v22, %v13225_v43  ;;  %v13105_v36 = vld [vmem:[#allocation5 + $0xd70] sm:$0xf0]  ;;  %v14568_v22 = vld [vmem:[#allocation5 + $0x95c] sm:$0xf] }
 0x4c0   :  { %8330 = vmatpush.bf16.msrb.mxu3 %v13388_v15  ;;  %8369 = vmatpush.bf16.msra.mxu2 %v13136_v49  ;;  %v8145_v39 = vpop.f32.mrf.mxu0  ;;  %v12471_v15 = vld [vmem:[#allocation5 + $0x858] sm:$0xf]  ;;  %v12601_v43 = vld [vmem:[#allocation5 + $0x978] sm:$0xf0] }
 0x4c1   :  { %8408 = vmatpush.bf16.msrb.mxu1 %v12884_v0  ;;  %8447 = vmatpush.bf16.msra.mxu0 %v12632_v38  ;;  %v14540_v49 = vld [vmem:[#allocation5 + $0x874] sm:$0xf0]  ;;  %v12976_v0 = vor.u32 %v14667_v19, %v12975_v18  ;;  %v13193_v38 = vld [vmem:[#allocation5 + $0xe28] sm:$0xf0]  ;;  %v13140_v39 = vor.u32 %v14703_v27, %v13137_v40  ;;  %v13108_v18 = vor.u32 %v14695_v24, %v13105_v36  ;;  %v13327_v19 = vld [vmem:[#allocation5 + $0xf10] sm:$0xf] }
 0x4c2   :  { %v12472_v57 = vor.u32 %v14540_v49, %v12471_v15  ;;  %v13196_v10 = vor.u32 %v14718_v46, %v13193_v38  ;;  %v12604_v15 = vor.u32 %v14568_v22, %v12601_v43  ;;  %v14687_v46 = vld [vmem:[#allocation5 + $0xd14] sm:$0xf]  ;;  %v14544_v27 = vld [vmem:[#allocation5 + $0x89c] sm:$0xf]  ;;  %v13199_v43 = vld [vmem:[#allocation5 + $0xe10] sm:$0xf] }
 0x4c3   :  { %v12505_v40 = vld [vmem:[#allocation5 + $0x8b8] sm:$0xf0] }
 0x4c4   :  { %8331 = vmatpush.bf16.msrb.mxu3 %v13356_v61  ;;  %8370 = vmatpush.bf16.msra.mxu2 %v13104_v62  ;;  %v12689_v61 = vld [vmem:[#allocation5 + $0xa30] sm:$0xf0]  ;;  %v12439_v62 = vld [vmem:[#allocation5 + $0x818] sm:$0xf]  ;;  %v14536_v24 = vld [vmem:[#allocation5 + $0x85c] sm:$0xf] }
 0x4c5   :  { %8409 = vmatpush.bf16.msrb.mxu1 %v12852_v48  ;;  %8448 = vmatpush.bf16.msra.mxu0 %v12600_v35  ;;  %v14779_v48 = vld [vmem:[#allocation5 + $0xfec] sm:$0xf0]  ;;  %v14711_v35 = vld [vmem:[#allocation5 + $0xdd4] sm:$0xf]  ;;  %v12440_v14 = vor.u32 %v14532_v33, %v12439_v62  ;;  %v12473_v36 = vld [vmem:[#allocation5 + $0x878] sm:$0xf0] }
 0x4c6   :  { %v13424_v55 = vor.u32 %v14779_v48, %v13423_v53  ;;  %v14747_v62 = vld [vmem:[#allocation5 + $0xeec] sm:$0xf0]  ;;  %v14679_v48 = vld [vmem:[#allocation5 + $0xcd4] sm:$0xf] }
 0x4c8   :  { %8332 = vmatpush.bf16.msrb.mxu3 %v13324_v25  ;;  %8371 = vmatpush.bf16.msra.mxu2 %v13072_v42  ;;  %v15449_v11 = vpop.f32.mrf.mxu0  ;;  %v12665_v25 = vld [vmem:[#allocation5 + $0x9f8] sm:$0xf0]  ;;  %v12692_v42 = vor.u32 %v14591_v2, %v12689_v61  ;;  %v13295_v61 = vld [vmem:[#allocation5 + $0xed0] sm:$0xf] }
 0x4c9   :  { %8410 = vmatpush.bf16.msrb.mxu1 %v12820_v45  ;;  %8449 = vmatpush.bf16.msra.mxu0 %v12568_v60  ;;  %v13172_v45 = vor.u32 %v14711_v35, %v13169_v4  ;;  %v13391_v60 = vld [vmem:[#allocation5 + $0xf90] sm:$0xf]  ;;  %v12668_v6 = vor.u32 %v14584_v12, %v12665_v25  ;;  %v13041_v35 = vld [vmem:[#allocation5 + $0xcf0] sm:$0xf0]  ;;  %v12791_v4 = vld [vmem:[#allocation5 + $0xad8] sm:$0xf]  ;;  %v13296_v31 = vor.u32 %v14747_v62, %v13295_v61 }
 0x4ca   :  { %v13044_v12 = vor.u32 %v14679_v48, %v13041_v35  ;;  %v13263_v25 = vld [vmem:[#allocation5 + $0xe90] sm:$0xf]  ;;  %v14648_v61 = vld [vmem:[#allocation5 + $0xbdc] sm:$0xf] }
 0x4cb   :  { %v12921_v62 = vld [vmem:[#allocation5 + $0xbf8] sm:$0xf0] }
 0x4cc   :  { %8333 = vmatpush.bf16.msrb.mxu3 %v13292_v3  ;;  %8372 = vmatpush.bf16.msra.mxu2 %v13040_v28  ;;  %v14644_v3 = vld [vmem:[#allocation5 + $0xbb4] sm:$0xf0]  ;;  %v14576_v28 = vld [vmem:[#allocation5 + $0x99c] sm:$0xf] }
 0x4cd   :  { %8411 = vmatpush.bf16.msrb.mxu1 %v12788_v20  ;;  %8450 = vmatpush.bf16.msra.mxu0 %v12536_v21  ;;  %v13392_v21 = vor.u32 %v14771_v16, %v13391_v60  ;;  %v12888_v63 = vor.u32 %v14644_v3, %v12887_v30  ;;  %v12636_v44 = vor.u32 %v14576_v28, %v12633_v7  ;;  %v14671_v60 = vld [vmem:[#allocation5 + $0xc94] sm:$0xf]  ;;  %v8119_v30 = vld.sshfl [vmem:[#allocation1 + $0x8] sm:$0xff pattern:$0x73625140] }
 0x4ce   :  { %v13009_v16 = vld [vmem:[#allocation5 + $0xcb0] sm:$0xf0] }
 0x4cf   :  { %v13012_v7 = vor.u32 %v14671_v60, %v13009_v16  ;;  %v13361_v60 = vld [vmem:[#allocation5 + $0xf70] sm:$0xf0] }
 0x4d0   :  { %8334 = vmatpush.bf16.msrb.mxu3 %v13260_v41  ;;  %8373 = vmatpush.bf16.msra.mxu2 %v13008_v29  ;;  %v8197_v20 = vpop.f32.mrf.mxu0  ;;  %v12855_v41 = vld [vmem:[#allocation5 + $0xb58] sm:$0xf] }
 0x4d1   :  { %8412 = vmatpush.bf16.msrb.mxu1 %v12756_v59  ;;  %8451 = vmatpush.bf16.msra.mxu0 %v12504_v47  ;;  %v14636_v29 = vld [vmem:[#allocation5 + $0xb74] sm:$0xf0]  ;;  %v8144_v59 = vadd.f32 %v15447_v1, %v8118_v26  ;;  %v13360_v47 = vor.u32 %v14763_v37, %v13359_v5  ;;  %v13231_v26 = vld [vmem:[#allocation5 + $0xe50] sm:$0xf]  ;;  %v14663_v5 = vld [vmem:[#allocation5 + $0xc54] sm:$0xf] }
 0x4d2   :  { %v12856_v52 = vor.u32 %v14636_v29, %v12855_v41  ;;  %v14731_v20 = vld [vmem:[#allocation5 + $0xe6c] sm:$0xf0]  ;;  %v12977_v37 = vld [vmem:[#allocation5 + $0xc70] sm:$0xf0]  ;;  %v8196_v41 = vadd.f32 %v15449_v11, %v8119_v30  ;;  %v12857_v30 = vld [vmem:[#allocation5 + $0xb78] sm:$0xf0] }
 0x4d3   :  { %v13232_v29 = vor.u32 %v14731_v20, %v13231_v26  ;;  %v12980_v22 = vor.u32 %v14663_v5, %v12977_v37  ;;  %v14775_v11 = vld [vmem:[#allocation5 + $0xfd4] sm:$0xf]  ;;  %v14692_v5 = vld [vmem:[#allocation5 + $0xd34] sm:$0xf0] }
 0x4d4   :  { %8335 = vmatpush.bf16.msrb.mxu3 %v13228_v17  ;;  %8374 = vmatpush.bf16.msra.mxu2 %v12976_v0  ;;  %v13073_v17 = vld [vmem:[#allocation5 + $0xd30] sm:$0xf0]  ;;  %v12823_v0 = vld [vmem:[#allocation5 + $0xb18] sm:$0xf] }
 0x4d5   :  { %8413 = vmatpush.bf16.msrb.mxu1 %v12724_v54  ;;  %8452 = vmatpush.bf16.msra.mxu0 %v12472_v57  ;;  %v12569_v54 = vld [vmem:[#allocation5 + $0x938] sm:$0xf0]  ;;  %v13328_v57 = vor.u32 %v14755_v51, %v13327_v19  ;;  %v13076_v2 = vor.u32 %v14687_v46, %v13073_v17  ;;  %v12824_v33 = vor.u32 %v14628_v50, %v12823_v0  ;;  %v13425_v50 = vld [vmem:[#allocation5 + $0xff0] sm:$0xf0] }
 0x4d6   :  { %v12572_v53 = vor.u32 %v14560_v8, %v12569_v54  ;;  %v12476_v19 = vor.u32 %v14536_v24, %v12473_v36  ;;  %v14528_v17 = vld [vmem:[#allocation5 + $0x81c] sm:$0xf]  ;;  %v13175_v8 = vld [vmem:[#allocation5 + $0xdd8] sm:$0xf]  ;;  %v13428_v48 = vor.u32 %v14775_v11, %v13425_v50  ;;  %v14751_v26 = vld [vmem:[#allocation5 + $0xf14] sm:$0xf] }
 0x4d7   :  { %v12441_v0 = vld [vmem:[#allocation5 + $0x838] sm:$0xf0]  ;;  %v14716_v54 = vld [vmem:[#allocation5 + $0xdf4] sm:$0xf0]  ;;  %v13265_v11 = vld [vmem:[#allocation5 + $0xeb0] sm:$0xf0] }
 0x4d8   :  { %8336 = vmatpush.bf16.msrb.mxu3 %v13196_v10  ;;  %8375 = vmatpush.bf16.msra.mxu2 %v12944_v13  ;;  %v8156_v49 = vpop.f32.mrf.mxu1  ;;  %v15458_v1 = vpop.f32.mrf.mxu0  ;;  %v14552_v10 = vld [vmem:[#allocation5 + $0x8dc] sm:$0xf]  ;;  %v13176_v35 = vor.u32 %v14716_v54, %v13175_v8  ;;  %v13015_v50 = vld [vmem:[#allocation5 + $0xc98] sm:$0xf] }
 0x4d9   :  { %8414 = vmatpush.bf16.msrb.mxu1 %v12692_v42  ;;  %8453 = vmatpush.bf16.msra.mxu0 %v12440_v14  ;;  %v15456_v38 = vadd.f32 %v8156_v49, %v8144_v59  ;;  %v12537_v13 = vld [vmem:[#allocation5 + $0x8f8] sm:$0xf0]  ;;  %v14739_v42 = vld [vmem:[#allocation5 + $0xeac] sm:$0xf0]  ;;  %v12792_v14 = vor.u32 %v14620_v56, %v12791_v4  ;;  %v14596_v49 = vld [vmem:[#allocation5 + $0xa34] sm:$0xf0]  ;;  %v12924_v56 = vor.u32 %v14648_v61, %v12921_v62 }
 0x4da   :  { %v13264_v28 = vor.u32 %v14739_v42, %v13263_v25  ;;  %v14723_v59 = vld [vmem:[#allocation5 + $0xe2c] sm:$0xf0]  ;;  %v14767_v4 = vld [vmem:[#allocation5 + $0xf94] sm:$0xf]  ;;  %v12889_v25 = vld [vmem:[#allocation5 + $0xbb8] sm:$0xf0] }
 0x4db   :  { %8337 = vmatmul.bf16.vlgmr.msrb.gmra.mxu3 %v15436_v58  ;;  %8376 = vmatmul.bf16.vlgmr.msra.gmra.mxu2 %v15426_v34  ;;  %v14676_v8 = vld [vmem:[#allocation5 + $0xcb4] sm:$0xf0]  ;;  %v14608_v54 = vld [vmem:[#allocation5 + $0xa9c] sm:$0xf] }
 0x4dc   :  { %8381 = vmatpush.bf16.msra.mxu3 %v13424_v55  ;;  %8420 = vmatpush.bf16.msrb.mxu2 %v13172_v45  ;;  %v12540_v55 = vor.u32 %v14552_v10, %v12537_v13  ;;  %v13393_v10 = vld [vmem:[#allocation5 + $0xfb0] sm:$0xf0]  ;;  %v13143_v13 = vld [vmem:[#allocation5 + $0xd98] sm:$0xf] }
 0x4dd   :  { %8459 = vmatpush.bf16.msra.mxu1 %v12920_v32  ;;  %8498 = vmatpush.bf16.msrb.mxu0 %v12668_v6  ;;  %v12759_v32 = vld [vmem:[#allocation5 + $0xa98] sm:$0xf] }
 0x4de   :  { %8415 = vmatmul.bf16.vlgmr.msrb.gmra.mxu1 %v15415_v9  ;;  %8454 = vmatmul.bf16.vlgmr.msra.gmra.mxu0 %v15403_v23  ;;  %v14612_v6 = vld [vmem:[#allocation5 + $0xab4] sm:$0xf0] }
 0x4e0   :  { %8382 = vmatpush.bf16.msra.mxu3 %v13392_v21  ;;  %8421 = vmatpush.bf16.msrb.mxu2 %v13140_v39  ;;  %v8158_v45 = vpop.f32.mrf.mxu1  ;;  %v8249_v3 = vpop.f32.mrf.mxu0  ;;  %v12760_v21 = vor.u32 %v14612_v6, %v12759_v32  ;;  %v12508_v39 = vor.u32 %v14544_v27, %v12505_v40  ;;  %v13111_v32 = vld [vmem:[#allocation5 + $0xd58] sm:$0xf]  ;;  %v14632_v40 = vld [vmem:[#allocation5 + $0xb5c] sm:$0xf] }
 0x4e1   :  { %8460 = vmatpush.bf16.msra.mxu1 %v12888_v63  ;;  %8499 = vmatpush.bf16.msrb.mxu0 %v12636_v44  ;;  %v12727_v63 = vld [vmem:[#allocation5 + $0xa58] sm:$0xf]  ;;  %v14759_v45 = vld [vmem:[#allocation5 + $0xf54] sm:$0xf]  ;;  %v12860_v20 = vor.u32 %v14632_v40, %v12857_v30  ;;  %v13177_v40 = vld [vmem:[#allocation5 + $0xdf8] sm:$0xf0] }
 0x4e2   :  { %v14604_v44 = vld [vmem:[#allocation5 + $0xa74] sm:$0xf0]  ;;  %v8120_v3 = vld.sshfl [vmem:[#allocation1 + $0x10] sm:$0xff pattern:$0x73625140] }
 0x4e3   :  { %v14700_v6 = vld [vmem:[#allocation5 + $0xd74] sm:$0xf0]  ;;  %v8248_v37 = vadd.f32 %v15458_v1, %v8120_v3  ;;  %v12793_v1 = vld [vmem:[#allocation5 + $0xaf8] sm:$0xf0] }
 0x4e4   :  { %8383 = vmatpush.bf16.msra.mxu3 %v13360_v47  ;;  %8422 = vmatpush.bf16.msrb.mxu2 %v13108_v18  ;;  %v14655_v47 = vld [vmem:[#allocation5 + $0xc14] sm:$0xf]  ;;  %v12728_v18 = vor.u32 %v14604_v44, %v12727_v63  ;;  %v6832_v27 = vld [vmem:[#allocation7 + $0x18] sm:$0xff] }
 0x4e5   :  { %8461 = vmatpush.bf16.msra.mxu1 %v12856_v52  ;;  %8500 = vmatpush.bf16.msrb.mxu0 %v12604_v15  ;;  %v12945_v52 = vld [vmem:[#allocation5 + $0xc30] sm:$0xf0]  ;;  %v12695_v15 = vld [vmem:[#allocation5 + $0xa18] sm:$0xf]  ;;  %8117 = vst [vmem:[#allocation1 + $0x20] ss:$4 sm:$0xff] %v6832_v27 }
 0x4e6   :  { %v14624_v63 = vld [vmem:[#allocation5 + $0xb1c] sm:$0xf] }
 0x4e7   :  { %v12825_v44 = vld [vmem:[#allocation5 + $0xb38] sm:$0xf0] }
 0x4e8   :  { %8384 = vmatpush.bf16.msra.mxu3 %v13328_v57  ;;  %8423 = vmatpush.bf16.msrb.mxu2 %v13076_v2  ;;  %v8208_v51 = vpop.f32.mrf.mxu1  ;;  %v13200_v57 = vor.u32 %v14723_v59, %v13199_v43  ;;  %v12948_v2 = vor.u32 %v14655_v47, %v12945_v52  ;;  %v12828_v43 = vor.u32 %v14624_v63, %v12825_v44  ;;  %v13297_v59 = vld [vmem:[#allocation5 + $0xef0] sm:$0xf0]  ;;  %v13047_v47 = vld [vmem:[#allocation5 + $0xcd8] sm:$0xf]  ;;  %v14712_v27 = vld [vmem:[#allocation5 + $0xddc] sm:$0xf] }
 0x4e9   :  { %8462 = vmatpush.bf16.msra.mxu1 %v12824_v33  ;;  %8501 = vmatpush.bf16.msrb.mxu0 %v12572_v53  ;;  %v15461_v46 = vadd.f32 %v8208_v51, %v8196_v41  ;;  %v12696_v33 = vor.u32 %v14596_v49, %v12695_v15  ;;  %v12444_v53 = vor.u32 %v14528_v17, %v12441_v0  ;;  %v14616_v51 = vld [vmem:[#allocation5 + $0xadc] sm:$0xf]  ;;  %v14735_v17 = vld [vmem:[#allocation5 + $0xe94] sm:$0xf] }
 0x4ea   :  { %v12796_v0 = vor.u32 %v14616_v51, %v12793_v1  ;;  %v13268_v62 = vor.u32 %v14735_v17, %v13265_v11  ;;  %v13145_v63 = vld [vmem:[#allocation5 + $0xdb8] sm:$0xf0]  ;;  %v14756_v51 = vld [vmem:[#allocation5 + $0xf34] sm:$0xf0] }
 0x4eb   :  { %v14688_v1 = vld [vmem:[#allocation5 + $0xd1c] sm:$0xf] }
 0x4ec   :  { %8385 = vmatpush.bf16.msra.mxu3 %v13296_v31  ;;  %8424 = vmatpush.bf16.msrb.mxu2 %v13044_v12  ;;  %v14708_v31 = vld [vmem:[#allocation5 + $0xdb4] sm:$0xf0]  ;;  %v14640_v12 = vld [vmem:[#allocation5 + $0xb9c] sm:$0xf] }
 0x4ed   :  { %8463 = vmatpush.bf16.msra.mxu1 %v12792_v14  ;;  %8502 = vmatpush.bf16.msrb.mxu0 %v12540_v55  ;;  %v13396_v14 = vor.u32 %v14767_v4, %v13393_v10  ;;  %v13144_v55 = vor.u32 %v14708_v31, %v13143_v13  ;;  %v12892_v16 = vor.u32 %v14640_v12, %v12889_v25  ;;  %v14668_v4 = vld [vmem:[#allocation5 + $0xc74] sm:$0xf0]  ;;  %v14600_v10 = vld [vmem:[#allocation5 + $0xa5c] sm:$0xf]  ;;  %v14719_v25 = vld [vmem:[#allocation5 + $0xe14] sm:$0xf] }
 0x4ee   :  { %v12729_v13 = vld [vmem:[#allocation5 + $0xa78] sm:$0xf0] }
 0x4f0   :  { %8386 = vmatpush.bf16.msra.mxu3 %v13264_v28  ;;  %8425 = vmatpush.bf16.msrb.mxu2 %v13012_v7  ;;  %v8210_v42 = vpop.f32.mrf.mxu1  ;;  %v13364_v28 = vor.u32 %v14759_v45, %v13361_v60  ;;  %v13112_v7 = vor.u32 %v14700_v6, %v13111_v32  ;;  %v14660_v45 = vld [vmem:[#allocation5 + $0xc34] sm:$0xf0]  ;;  %v14592_v60 = vld [vmem:[#allocation5 + $0xa1c] sm:$0xf] }
 0x4f1   :  { %8464 = vmatpush.bf16.msra.mxu1 %v12760_v21  ;;  %8503 = vmatpush.bf16.msrb.mxu0 %v12508_v39  ;;  %v13329_v21 = vld [vmem:[#allocation5 + $0xf30] sm:$0xf0]  ;;  %v13079_v39 = vld [vmem:[#allocation5 + $0xd18] sm:$0xf] }
 0x4f2   :  { %v13332_v41 = vor.u32 %v14751_v26, %v13329_v21  ;;  %v13201_v42 = vld [vmem:[#allocation5 + $0xe30] sm:$0xf0]  ;;  %v13431_v32 = vld [vmem:[#allocation5 + $0xfd8] sm:$0xf]  ;;  %v13180_v26 = vor.u32 %v14712_v27, %v13177_v40  ;;  %v12953_v27 = vld [vmem:[#allocation5 + $0xc38] sm:$0xf0] }
 0x4f3   :  { %v14780_v6 = vld [vmem:[#allocation5 + $0xff4] sm:$0xf0]  ;;  %v13204_v30 = vor.u32 %v14719_v25, %v13201_v42  ;;  %v14664_v42 = vld [vmem:[#allocation5 + $0xc5c] sm:$0xf] }
 0x4f4   :  { %8387 = vmatpush.bf16.msra.mxu3 %v13232_v29  ;;  %8426 = vmatpush.bf16.msrb.mxu2 %v12980_v22  ;;  %v13080_v29 = vor.u32 %v14692_v5, %v13079_v39  ;;  %v14743_v22 = vld [vmem:[#allocation5 + $0xed4] sm:$0xf]  ;;  %v13399_v21 = vld [vmem:[#allocation5 + $0xf98] sm:$0xf]  ;;  %v13433_v40 = vld [vmem:[#allocation5 + $0xff8] sm:$0xf0] }
 0x4f5   :  { %8465 = vmatpush.bf16.msra.mxu1 %v12728_v18  ;;  %8504 = vmatpush.bf16.msrb.mxu0 %v12476_v19  ;;  %v14684_v18 = vld [vmem:[#allocation5 + $0xcf4] sm:$0xf0]  ;;  %v13300_v15 = vor.u32 %v14743_v22, %v13297_v59  ;;  %v14696_v22 = vld [vmem:[#allocation5 + $0xd5c] sm:$0xf] }
 0x4f6   :  { %v13048_v49 = vor.u32 %v14684_v18, %v13047_v47  ;;  %v14772_v39 = vld [vmem:[#allocation5 + $0xfb4] sm:$0xf0] }
 0x4f7   :  { %v13400_v44 = vor.u32 %v14772_v39, %v13399_v21  ;;  %v13239_v25 = vld [vmem:[#allocation5 + $0xe58] sm:$0xf] }
 0x4f8   :  { %8388 = vmatpush.bf16.msra.mxu3 %v13200_v57  ;;  %8427 = vmatpush.bf16.msrb.mxu2 %v12948_v2  ;;  %v15468_v24 = vpop.f32.mrf.mxu0  ;;  %v12761_v57 = vld [vmem:[#allocation5 + $0xab8] sm:$0xf0] }
 0x4f9   :  { %8466 = vmatpush.bf16.msra.mxu1 %v12696_v33  ;;  %8505 = vmatpush.bf16.msrb.mxu0 %v12444_v53  ;;  %v13016_v33 = vor.u32 %v14676_v8, %v13015_v50  ;;  %v12764_v53 = vor.u32 %v14608_v54, %v12761_v57  ;;  %v13303_v8 = vld [vmem:[#allocation5 + $0xed8] sm:$0xf]  ;;  %v14680_v57 = vld [vmem:[#allocation5 + $0xcdc] sm:$0xf] }
 0x4fa   :  { %v8260_v36 = vpop.f32.mrf.mxu1  ;;  %v14748_v54 = vld [vmem:[#allocation5 + $0xef4] sm:$0xf0] }
 0x4fb   :  { %8389 = vmatmul.bf16.vlgmr.msra.gmra.mxu3 %v15436_v58  ;;  %8428 = vmatmul.bf16.vlgmr.msrb.gmra.mxu2 %v15426_v34 }
 0x4fc   :  { %8433 = vmatpush.bf16.msrb.mxu3 %v13428_v48  ;;  %8472 = vmatpush.bf16.msra.mxu2 %v13176_v35  ;;  %v13233_v48 = vld [vmem:[#allocation5 + $0xe70] sm:$0xf0]  ;;  %v12983_v35 = vld [vmem:[#allocation5 + $0xc58] sm:$0xf] }
 0x4fd   :  { %8511 = vmatpush.bf16.msrb.mxu1 %v12924_v56  ;;  %8506 = vmatmul.bf16.vlgmr.msrb.gmra.mxu0 %v15403_v23  ;;  %v15470_v23 = vadd.f32 %v8260_v36, %v8248_v37  ;;  %v12984_v12 = vor.u32 %v14668_v4, %v12983_v35  ;;  %v14704_v37 = vld [vmem:[#allocation5 + $0xd9c] sm:$0xf] }
 0x4fe   :  { %8467 = vmatmul.bf16.vlgmr.msra.gmra.mxu1 %v15415_v9  ;;  %v8169_v19 = vpop.f32.mrf.mxu2  ;;  %v13148_v36 = vor.u32 %v14704_v37, %v13145_v63  ;;  %v13017_v35 = vld [vmem:[#allocation5 + $0xcb8] sm:$0xf0]  ;;  %v13495_v37 = vld [vmem:[#allocation8 + $0x70] sm:$0xf]  ;;  %v14796_v63 = vld [vmem:[#allocation8 + $0x74] sm:$0xf0] }
 0x4ff   :  { %v15473_v52 = vadd.f32 %v8169_v19, %v15456_v38  ;;  %v14727_v38 = vld [vmem:[#allocation5 + $0xe54] sm:$0xf]  ;;  %v13335_v19 = vld [vmem:[#allocation5 + $0xf18] sm:$0xf] }
 0x500   :  { %8434 = vmatpush.bf16.msrb.mxu3 %v13396_v14  ;;  %8473 = vmatpush.bf16.msra.mxu2 %v13144_v55  ;;  %v8301_v2 = vpop.f32.mrf.mxu0  ;;  %v13236_v31 = vor.u32 %v14727_v38, %v13233_v48  ;;  %v12732_v14 = vor.u32 %v14600_v10, %v12729_v13  ;;  %v12951_v55 = vld [vmem:[#allocation5 + $0xc18] sm:$0xf]  ;;  %v13336_v11 = vor.u32 %v14756_v51, %v13335_v19  ;;  %v14672_v48 = vld [vmem:[#allocation5 + $0xc9c] sm:$0xf] }
 0x501   :  { %8512 = vmatpush.bf16.msrb.mxu1 %v12892_v16  ;;  %v12697_v16 = vld [vmem:[#allocation5 + $0xa38] sm:$0xf0]  ;;  %v12952_v3 = vor.u32 %v14660_v45, %v12951_v55  ;;  %v13271_v38 = vld [vmem:[#allocation5 + $0xe98] sm:$0xf] }
 0x502   :  { %v8262_v61 = vpop.f32.mrf.mxu1  ;;  %v13049_v2 = vld [vmem:[#allocation5 + $0xcf8] sm:$0xf0] }
 0x503   :  { %v14744_v51 = vld [vmem:[#allocation5 + $0xedc] sm:$0xf] }
 0x504   :  { %8435 = vmatpush.bf16.msrb.mxu3 %v13364_v28  ;;  %8474 = vmatpush.bf16.msra.mxu2 %v13112_v7  ;;  %v12700_v28 = vor.u32 %v14592_v60, %v12697_v16  ;;  %v13432_v7 = vor.u32 %v14780_v6, %v13431_v32  ;;  %v13207_v16 = vld [vmem:[#allocation5 + $0xe18] sm:$0xf]  ;;  %v14656_v6 = vld [vmem:[#allocation5 + $0xc1c] sm:$0xf] }
 0x505   :  { %8513 = vmatpush.bf16.msrb.mxu1 %v12860_v20  ;;  %v14724_v32 = vld [vmem:[#allocation5 + $0xe34] sm:$0xf0] }
 0x506   :  { %v8171_v56 = vpop.f32.mrf.mxu2 }
 0x508   :  { %8436 = vmatpush.bf16.msrb.mxu3 %v13332_v41  ;;  %8475 = vmatpush.bf16.msra.mxu2 %v13080_v29  ;;  %v13367_v41 = vld [vmem:[#allocation5 + $0xf58] sm:$0xf] }
 0x509   :  { %8514 = vmatpush.bf16.msrb.mxu1 %v12828_v43  ;;  %v14764_v29 = vld [vmem:[#allocation5 + $0xf74] sm:$0xf0]  ;;  %v13113_v43 = vld [vmem:[#allocation5 + $0xd78] sm:$0xf0] }
 0x50a   :  { %v13368_v59 = vor.u32 %v14764_v29, %v13367_v41  ;;  %v13116_v47 = vor.u32 %v14696_v22, %v13113_v43  ;;  %v14760_v41 = vld [vmem:[#allocation5 + $0xf5c] sm:$0xf] }
 0x50b   :  { %v13369_v29 = vld [vmem:[#allocation5 + $0xf78] sm:$0xf0] }
 0x50c   :  { %8437 = vmatpush.bf16.msrb.mxu3 %v13300_v15  ;;  %8476 = vmatpush.bf16.msra.mxu2 %v13048_v49  ;;  %v13081_v15 = vld [vmem:[#allocation5 + $0xd38] sm:$0xf0]  ;;  %v13372_v22 = vor.u32 %v14760_v41, %v13369_v29  ;;  %v13489_v41 = vld [vmem:[#allocation8 + $0x68] sm:$0xf0] }
 0x50d   :  { %8515 = vmatpush.bf16.msrb.mxu1 %v12796_v0  ;;  %v14752_v43 = vld [vmem:[#allocation5 + $0xf1c] sm:$0xf] }
 0x50e   :  { %v8221_v20 = vpop.f32.mrf.mxu2 }
 0x50f   :  { %v15476_v5 = vadd.f32 %v8221_v20, %v15461_v46  ;;  %v8121_v46 = vld.sshfl [vmem:[#allocation1 + $0x18] sm:$0xff pattern:$0x73625140]  ;;  %v13401_v20 = vld [vmem:[#allocation5 + $0xfb8] sm:$0xf0] }
 0x510   :  { %8438 = vmatpush.bf16.msrb.mxu3 %v13268_v62  ;;  %8477 = vmatpush.bf16.msra.mxu2 %v13016_v33  ;;  %v8300_v49 = vadd.f32 %v15468_v24, %v8121_v46  ;;  %v13304_v33 = vor.u32 %v14748_v54, %v13303_v8  ;;  %v13052_v24 = vor.u32 %v14680_v57, %v13049_v2  ;;  %v13337_v46 = vld [vmem:[#allocation5 + $0xf38] sm:$0xf0] }
 0x511   :  { %8516 = vmatpush.bf16.msrb.mxu1 %v12764_v53  ;;  %v14740_v53 = vld [vmem:[#allocation5 + $0xeb4] sm:$0xf0]  ;;  %v13273_v8 = vld [vmem:[#allocation5 + $0xeb8] sm:$0xf0] }
 0x514   :  { %8439 = vmatpush.bf16.msrb.mxu3 %v13236_v31  ;;  %8478 = vmatpush.bf16.msra.mxu2 %v12984_v12  ;;  %v13272_v31 = vor.u32 %v14740_v53, %v13271_v38  ;;  %v13020_v12 = vor.u32 %v14672_v48, %v13017_v35  ;;  %v14790_v38 = vld [vmem:[#allocation8 + $0x44] sm:$0xf0]  ;;  %v14728_v35 = vld [vmem:[#allocation5 + $0xe5c] sm:$0xf] }
 0x515   :  { %8517 = vmatpush.bf16.msrb.mxu1 %v12732_v14  ;;  %v12985_v14 = vld [vmem:[#allocation5 + $0xc78] sm:$0xf0] }
 0x516   :  { %v8223_v18 = vpop.f32.mrf.mxu2  ;;  %v12988_v60 = vor.u32 %v14664_v42, %v12985_v14  ;;  %v13455_v14 = vld [vmem:[#allocation8 + $0x20] sm:$0xf] }
 0x517   :  { %v14794_v18 = vld [vmem:[#allocation8 + $0x64] sm:$0xf0] }
 0x518   :  { %8440 = vmatpush.bf16.msrb.mxu3 %v13204_v30  ;;  %8479 = vmatpush.bf16.msra.mxu2 %v12952_v3  ;;  %v8312_v17 = vpop.f32.mrf.mxu1  ;;  %v13208_v3 = vor.u32 %v14724_v32, %v13207_v16  ;;  %v14812_v16 = vld [vmem:[#allocation8 + $0xf4] sm:$0xf0] }
 0x519   :  { %8518 = vmatpush.bf16.msrb.mxu1 %v12700_v28  ;;  %v15484_v50 = vadd.f32 %v8312_v17, %v8300_v49  ;;  %v12956_v28 = vor.u32 %v14656_v6, %v12953_v27  ;;  %v13447_v27 = vld [vmem:[#allocation8 + $0x10] sm:$0xf] }
 0x51b   :  { %8441 = vmatmul.bf16.vlgmr.msrb.gmra.mxu3 %v15436_v58  ;;  %8480 = vmatmul.bf16.vlgmr.msra.gmra.mxu2 %v15426_v34  ;;  %v15482_v0 = vpop.f32.mrf.mxu0 }
 0x51c   :  { %8485 = vmatpush.bf16.msra.mxu3 %v13432_v7  ;;  %8524 = vmatpush.bf16.msrb.mxu2 %v13180_v26  ;;  %v14768_v26 = vld [vmem:[#allocation5 + $0xf9c] sm:$0xf] }
 0x51d   :  { %8519 = vmatmul.bf16.vlgmr.msrb.gmra.mxu1 %v15415_v9  ;;  %v13084_v9 = vor.u32 %v14688_v1, %v13081_v15  ;;  %v13305_v1 = vld [vmem:[#allocation5 + $0xef8] sm:$0xf0] }
 0x51e   :  { %v8182_v61 = vpop.f32.mrf.mxu3  ;;  %v13308_v17 = vor.u32 %v14744_v51, %v13305_v1 }
 0x51f   :  { %v15487_v62 = vadd.f32 %v8182_v61, %v15473_v52  ;;  %v14732_v52 = vld [vmem:[#allocation5 + $0xe74] sm:$0xf0] }
 0x520   :  { %8486 = vmatpush.bf16.msra.mxu3 %v13400_v44  ;;  %8525 = vmatpush.bf16.msrb.mxu2 %v13148_v36  ;;  %v8314_v10 = vpop.f32.mrf.mxu1  ;;  %v13240_v45 = vor.u32 %v14732_v52, %v13239_v25  ;;  %v13404_v44 = vor.u32 %v14768_v26, %v13401_v20  ;;  %v13496_v36 = vor.u32 %v14796_v63, %v13495_v37  ;;  %v13463_v25 = vld [vmem:[#allocation8 + $0x30] sm:$0xf]  ;;  %v14788_v52 = vld [vmem:[#allocation8 + $0x34] sm:$0xf0]  ;;  %v13497_v26 = vld [vmem:[#allocation8 + $0x78] sm:$0xf0] }
 0x521   :  { %v8273_v4 = vpop.f32.mrf.mxu2  ;;  %v13464_v42 = vor.u32 %v14788_v52, %v13463_v25  ;;  %v13551_v37 = vld [vmem:[#allocation8 + $0xe0] sm:$0xf]  ;;  %v14810_v63 = vld [vmem:[#allocation8 + $0xe4] sm:$0xf0] }
 0x522   :  { %v15490_v56 = vadd.f32 %v8273_v4, %v15470_v23  ;;  %v14776_v23 = vld [vmem:[#allocation5 + $0xfdc] sm:$0xf]  ;;  %8953 = vmatpush.bf16.msra.mxu0 %v13496_v36  ;;  %v13552_v36 = vor.u32 %v14810_v63, %v13551_v37  ;;  %v13615_v37 = vld [vmem:[#allocation8 + $0x160] sm:$0xf]  ;;  %v14826_v63 = vld [vmem:[#allocation8 + $0x164] sm:$0xf0] }
 0x523   :  { %v8353_v13 = vpop.f32.mrf.mxu0  ;;  %v13436_v7 = vor.u32 %v14776_v23, %v13433_v40  ;;  %v13241_v4 = vld [vmem:[#allocation5 + $0xe78] sm:$0xf0]  ;;  %v14784_v23 = vld [vmem:[#allocation8 + $0x14] sm:$0xf0] }
 0x524   :  { %8487 = vmatpush.bf16.msra.mxu3 %v13368_v59  ;;  %8526 = vmatpush.bf16.msrb.mxu2 %v13116_v47  ;;  %v13487_v47 = vld [vmem:[#allocation8 + $0x60] sm:$0xf] }
 0x525   :  { %v13488_v15 = vor.u32 %v14794_v18, %v13487_v47  ;;  %v13481_v47 = vld [vmem:[#allocation8 + $0x58] sm:$0xf0] }
 0x526   :  { %v8184_v55 = vpop.f32.mrf.mxu3 }
 0x527   :  { %8954 = vmatpush.bf16.msra.mxu0 %v13488_v15  ;;  %v14786_v55 = vld [vmem:[#allocation8 + $0x24] sm:$0xf0]  ;;  %v13535_v15 = vld [vmem:[#allocation8 + $0xc0] sm:$0xf] }
 0x528   :  { %8488 = vmatpush.bf16.msra.mxu3 %v13336_v11  ;;  %8527 = vmatpush.bf16.msrb.mxu2 %v13084_v9  ;;  %v14792_v11 = vld [vmem:[#allocation8 + $0x54] sm:$0xf0]  ;;  %v14736_v9 = vld [vmem:[#allocation5 + $0xe9c] sm:$0xf] }
 0x529   :  { %v8275_v30 = vpop.f32.mrf.mxu2 }
 0x52a   :  { %v13448_v30 = vor.u32 %v14784_v23, %v13447_v27  ;;  %v13503_v27 = vld [vmem:[#allocation8 + $0x80] sm:$0xf]  ;;  %v14798_v23 = vld [vmem:[#allocation8 + $0x84] sm:$0xf0] }
 0x52c   :  { %8489 = vmatpush.bf16.msra.mxu3 %v13304_v33  ;;  %8528 = vmatpush.bf16.msrb.mxu2 %v13052_v24  ;;  %v13276_v33 = vor.u32 %v14736_v9, %v13273_v8  ;;  %v13471_v24 = vld [vmem:[#allocation8 + $0x40] sm:$0xf]  ;;  %v13473_v8 = vld [vmem:[#allocation8 + $0x48] sm:$0xf0] }
 0x52d   :  { %v13472_v10 = vor.u32 %v14790_v38, %v13471_v24  ;;  %v14804_v24 = vld [vmem:[#allocation8 + $0xb4] sm:$0xf0]  ;;  %v14787_v38 = vld [vmem:[#allocation8 + $0x34] sm:$0xf] }
 0x52e   :  { %v8234_v21 = vpop.f32.mrf.mxu3 }
 0x52f   :  { %v15493_v39 = vadd.f32 %v8234_v21, %v15476_v5  ;;  %v13340_v5 = vor.u32 %v14752_v43, %v13337_v46  ;;  %v13543_v46 = vld [vmem:[#allocation8 + $0xd0] sm:$0xf] }
 0x530   :  { %8490 = vmatpush.bf16.msra.mxu3 %v13272_v31  ;;  %8529 = vmatpush.bf16.msrb.mxu2 %v13020_v12  ;;  %v13244_v31 = vor.u32 %v14728_v35, %v13241_v4  ;;  %v14720_v12 = vld [vmem:[#allocation5 + $0xe1c] sm:$0xf] }
 0x531   :  { %v13465_v35 = vld [vmem:[#allocation8 + $0x38] sm:$0xf0] }
 0x532   :  { %v13468_v4 = vor.u32 %v14787_v38, %v13465_v35 }
 0x534   :  { %8491 = vmatpush.bf16.msra.mxu3 %v13240_v45  ;;  %8530 = vmatpush.bf16.msrb.mxu2 %v12988_v60  ;;  %v13456_v60 = vor.u32 %v14786_v55, %v13455_v14  ;;  %v14800_v14 = vld [vmem:[#allocation8 + $0x94] sm:$0xf0]  ;;  %v14783_v55 = vld [vmem:[#allocation8 + $0x14] sm:$0xf] }
 0x536   :  { %v8236_v59 = vpop.f32.mrf.mxu3 }
 0x537   :  { %v14808_v59 = vld [vmem:[#allocation8 + $0xd4] sm:$0xf0] }
 0x538   :  { %8492 = vmatpush.bf16.msra.mxu3 %v13208_v3  ;;  %8531 = vmatpush.bf16.msrb.mxu2 %v12956_v28  ;;  %v13439_v3 = vld [vmem:[#allocation8] sm:$0xf]  ;;  %v14782_v28 = vld [vmem:[#allocation8 + $0x4] sm:$0xf0] }
 0x539   :  { %v13440_v20 = vor.u32 %v14782_v28, %v13439_v3  ;;  %v14811_v3 = vld [vmem:[#allocation8 + $0xf4] sm:$0xf]  ;;  %v13561_v28 = vld [vmem:[#allocation8 + $0xf8] sm:$0xf0] }
 0x53b   :  { %8493 = vmatmul.bf16.vlgmr.msra.gmra.mxu3 %v15436_v58  ;;  %8532 = vmatmul.bf16.vlgmr.msrb.gmra.mxu2 %v15426_v34  ;;  %v15497_v19 = vpop.f32.mrf.mxu1  ;;  %v15499_v49 = vpop.f32.mrf.mxu0  ;;  %v13479_v34 = vld [vmem:[#allocation8 + $0x50] sm:$0xf] }
 0x53c   :  { %8537 = vmatpush.bf16.msrb.mxu3 %v13436_v7  ;;  %v13480_v54 = vor.u32 %v14792_v11, %v13479_v34  ;;  %v14795_v7 = vld [vmem:[#allocation8 + $0x74] sm:$0xf]  ;;  %v14789_v34 = vld [vmem:[#allocation8 + $0x44] sm:$0xf] }
 0x53d   :  { %v13500_v21 = vor.u32 %v14795_v7, %v13497_v26  ;;  %v13504_v7 = vor.u32 %v14798_v23, %v13503_v27  ;;  %v13513_v27 = vld [vmem:[#allocation8 + $0x98] sm:$0xf0]  ;;  %v13687_v23 = vld [vmem:[#allocation8 + $0x1f0] sm:$0xf] }
 0x53e   :  { %v8325_v57 = vpop.f32.mrf.mxu2  ;;  %8955 = vmatpush.bf16.msra.mxu0 %v13480_v54  ;;  %v8286_v61 = vpop.f32.mrf.mxu3  ;;  %v13476_v54 = vor.u32 %v14789_v34, %v13473_v8 }
 0x53f   :  { %v15502_v2 = vadd.f32 %v8325_v57, %v15484_v50  ;;  %v15505_v53 = vadd.f32 %v8286_v61, %v15490_v56  ;;  %v13209_v50 = vld [vmem:[#allocation5 + $0xe38] sm:$0xf0]  ;;  %v13559_v56 = vld [vmem:[#allocation8 + $0xf0] sm:$0xf] }
 0x540   :  { %8538 = vmatpush.bf16.msrb.mxu3 %v13404_v44  ;;  %v13212_v6 = vor.u32 %v14720_v12, %v13209_v50  ;;  %v13560_v40 = vor.u32 %v14812_v16, %v13559_v56  ;;  %v14793_v44 = vld [vmem:[#allocation8 + $0x64] sm:$0xf]  ;;  %v14828_v56 = vld [vmem:[#allocation8 + $0x174] sm:$0xf0] }
 0x541   :  { %v13492_v29 = vor.u32 %v14793_v44, %v13489_v41  ;;  %v14809_v44 = vld [vmem:[#allocation8 + $0xe4] sm:$0xf]  ;;  %v13553_v41 = vld [vmem:[#allocation8 + $0xe8] sm:$0xf0] }
 0x542   :  { %8956 = vmatpush.bf16.msra.mxu0 %v13472_v10  ;;  %8966 = vmatpush.bf16.msra.mxu1 %v13560_v40  ;;  %v13519_v10 = vld [vmem:[#allocation8 + $0xa0] sm:$0xf]  ;;  %v14781_v40 = vld [vmem:[#allocation8 + $0x4] sm:$0xf] }
 0x543   :  { %v8366_v48 = vpop.f32.mrf.mxu1  ;;  %v8405_v13 = vpop.f32.mrf.mxu0 }
 0x544   :  { %8539 = vmatpush.bf16.msrb.mxu3 %v13372_v22  ;;  %v14802_v13 = vld [vmem:[#allocation8 + $0xa4] sm:$0xf0] }
 0x545   :  { %v13520_v12 = vor.u32 %v14802_v13, %v13519_v10  ;;  %v14820_v13 = vld [vmem:[#allocation8 + $0x134] sm:$0xf0] }
 0x546   :  { %v8327_v45 = vpop.f32.mrf.mxu2  ;;  %8957 = vmatpush.bf16.msra.mxu0 %v13464_v42  ;;  %v8288_v32 = vpop.f32.mrf.mxu3  ;;  %8967 = vmatpush.bf16.msra.mxu1 %v13552_v36  ;;  %v13511_v42 = vld [vmem:[#allocation8 + $0x90] sm:$0xf]  ;;  %v13616_v36 = vor.u32 %v14826_v63, %v13615_v37  ;;  %v14827_v37 = vld [vmem:[#allocation8 + $0x174] sm:$0xf]  ;;  %v13625_v63 = vld [vmem:[#allocation8 + $0x178] sm:$0xf0] }
 0x547   :  { %v13449_v45 = vld [vmem:[#allocation8 + $0x18] sm:$0xf0]  ;;  %v13512_v16 = vor.u32 %v14800_v14, %v13511_v42  ;;  %v14801_v42 = vld [vmem:[#allocation8 + $0xa4] sm:$0xf] }
 0x548   :  { %8540 = vmatpush.bf16.msrb.mxu3 %v13340_v5  ;;  %v13544_v5 = vor.u32 %v14808_v59, %v13543_v46 }
 0x54a   :  { %8958 = vmatpush.bf16.msra.mxu0 %v13456_v60  ;;  %8968 = vmatpush.bf16.msra.mxu1 %v13544_v5  ;;  %v13623_v60 = vld [vmem:[#allocation8 + $0x170] sm:$0xf] }
 0x54b   :  { %v13624_v32 = vor.u32 %v14828_v56, %v13623_v60  ;;  %v13607_v5 = vld [vmem:[#allocation8 + $0x150] sm:$0xf] }
 0x54c   :  { %8541 = vmatpush.bf16.msrb.mxu3 %v13308_v17  ;;  %v14806_v17 = vld [vmem:[#allocation8 + $0xc4] sm:$0xf0]  ;;  %v13575_v56 = vld [vmem:[#allocation8 + $0x110] sm:$0xf] }
 0x54d   :  { %v13536_v9 = vor.u32 %v14806_v17, %v13535_v15  ;;  %8979 = vmatpush.bf16.msra.mxu2 %v13624_v32  ;;  %v13545_v17 = vld [vmem:[#allocation8 + $0xd8] sm:$0xf0] }
 0x54e   :  { %8959 = vmatpush.bf16.msra.mxu0 %v13448_v30  ;;  %v13441_v30 = vld [vmem:[#allocation8 + $0x8] sm:$0xf0] }
 0x54f   :  { %8969 = vmatpush.bf16.msra.mxu1 %v13536_v9  ;;  %v13444_v26 = vor.u32 %v14781_v40, %v13441_v30  ;;  %v14844_v40 = vld [vmem:[#allocation8 + $0x1f4] sm:$0xf0] }
 0x550   :  { %8542 = vmatpush.bf16.msrb.mxu3 %v13276_v33  ;;  %v13527_v33 = vld [vmem:[#allocation8 + $0xb0] sm:$0xf] }
 0x551   :  { %v13528_v48 = vor.u32 %v14804_v24, %v13527_v33  ;;  %8980 = vmatpush.bf16.msra.mxu2 %v13616_v36 }
 0x552   :  { %8960 = vmatpush.bf16.msra.mxu0 %v13440_v20  ;;  %v13564_v20 = vor.u32 %v14811_v3, %v13561_v28  ;;  %v13688_v3 = vor.u32 %v14844_v40, %v13687_v23  ;;  %v14815_v40 = vld [vmem:[#allocation8 + $0x114] sm:$0xf] }
 0x553   :  { %8970 = vmatpush.bf16.msra.mxu1 %v13528_v48  ;;  %v13537_v48 = vld [vmem:[#allocation8 + $0xc8] sm:$0xf0] }
 0x554   :  { %8543 = vmatpush.bf16.msrb.mxu3 %v13244_v31  ;;  %v14785_v31 = vld [vmem:[#allocation8 + $0x24] sm:$0xf] }
 0x556   :  { %9005 = vmatpush.bf16.msrb.mxu0 %v13500_v21  ;;  %v8122_v21 = vld.sshfl [vmem:[#allocation1 + $0x20] sm:$0xff pattern:$0x73625140] }
 0x557   :  { %8971 = vmatpush.bf16.msra.mxu1 %v13520_v12  ;;  %v8352_v46 = vadd.f32 %v15482_v0, %v8122_v21  ;;  %v13599_v0 = vld [vmem:[#allocation8 + $0x140] sm:$0xf]  ;;  %v13505_v21 = vld [vmem:[#allocation8 + $0x88] sm:$0xf0] }
 0x558   :  { %8544 = vmatpush.bf16.msrb.mxu3 %v13212_v6  ;;  %v13452_v6 = vor.u32 %v14783_v55, %v13449_v45  ;;  %v13521_v55 = vld [vmem:[#allocation8 + $0xa8] sm:$0xf0] }
 0x559   :  { %v13524_v60 = vor.u32 %v14801_v42, %v13521_v55  ;;  %v13647_v55 = vld [vmem:[#allocation8 + $0x1a0] sm:$0xf] }
 0x55a   :  { %9006 = vmatpush.bf16.msrb.mxu0 %v13492_v29  ;;  %v13556_v29 = vor.u32 %v14809_v44, %v13553_v41  ;;  %v13628_v41 = vor.u32 %v14827_v37, %v13625_v63  ;;  %v14843_v37 = vld [vmem:[#allocation8 + $0x1f4] sm:$0xf]  ;;  %v13689_v63 = vld [vmem:[#allocation8 + $0x1f8] sm:$0xf0] }
 0x55b   :  { %8545 = vmatmul.bf16.vlgmr.msrb.gmra.mxu3 %v15436_v58  ;;  %v15508_v22 = vpop.f32.mrf.mxu1  ;;  %v15510_v43 = vpop.f32.mrf.mxu0  ;;  %v14791_v58 = vld [vmem:[#allocation8 + $0x54] sm:$0xf]  ;;  %8972 = vmatpush.bf16.msra.mxu1 %v13512_v16  ;;  %v14816_v16 = vld [vmem:[#allocation8 + $0x114] sm:$0xf0] }
 0x55c   :  { %v13484_v18 = vor.u32 %v14791_v58, %v13481_v47  ;;  %v14824_v47 = vld [vmem:[#allocation8 + $0x154] sm:$0xf0]  ;;  %v13576_v30 = vor.u32 %v14816_v16, %v13575_v56  ;;  %8992 = vmatpush.bf16.msra.mxu3 %v13688_v3  ;;  %v13585_v56 = vld [vmem:[#allocation8 + $0x128] sm:$0xf0]  ;;  %v13639_v16 = vld [vmem:[#allocation8 + $0x190] sm:$0xf] }
 0x55d   :  { %v13608_v15 = vor.u32 %v14824_v47, %v13607_v5  ;;  %v14825_v5 = vld [vmem:[#allocation8 + $0x164] sm:$0xf]  ;;  %v8123_v47 = vld.sshfl [vmem:[#allocation1 + $0x28] sm:$0xff pattern:$0x73625140] }
 0x55e   :  { %v8338_v51 = vpop.f32.mrf.mxu3  ;;  %v15512_v1 = vpop.f32.mrf.mxu2  ;;  %9007 = vmatpush.bf16.msrb.mxu0 %v13484_v18  ;;  %v14807_v18 = vld [vmem:[#allocation8 + $0xd4] sm:$0xf] }
 0x55f   :  { %v15515_v11 = vadd.f32 %v8338_v51, %v15502_v2  ;;  %v13457_v2 = vld [vmem:[#allocation8 + $0x28] sm:$0xf0]  ;;  %8973 = vmatpush.bf16.msra.mxu1 %v13504_v7  ;;  %v8365_v51 = vadd.f32 %v15497_v19, %v8352_v46  ;;  %v13548_v34 = vor.u32 %v14807_v18, %v13545_v17  ;;  %8981 = vmatpush.bf16.msra.mxu2 %v13608_v15  ;;  %v13567_v7 = vld [vmem:[#allocation8 + $0x100] sm:$0xf]  ;;  %v14842_v46 = vld [vmem:[#allocation8 + $0x1e4] sm:$0xf0] }
 0x560   :  { %v13460_v50 = vor.u32 %v14785_v31, %v13457_v2  ;;  %v14803_v31 = vld [vmem:[#allocation8 + $0xb4] sm:$0xf]  ;;  %v8404_v17 = vadd.f32 %v15499_v49, %v8123_v47 }
 0x561   :  { %v8378_v9 = vadd.f32 %v15512_v1, %v8365_v51  ;;  %v13591_v1 = vld [vmem:[#allocation8 + $0x130] sm:$0xf]  ;;  %v13617_v51 = vld [vmem:[#allocation8 + $0x168] sm:$0xf0] }
 0x562   :  { %9008 = vmatpush.bf16.msrb.mxu0 %v13476_v54  ;;  %v14822_v54 = vld [vmem:[#allocation8 + $0x144] sm:$0xf0]  ;;  %v13592_v2 = vor.u32 %v14820_v13, %v13591_v1  ;;  %v13620_v15 = vor.u32 %v14825_v5, %v13617_v51  ;;  %v13601_v1 = vld [vmem:[#allocation8 + $0x148] sm:$0xf0]  ;;  %v8551_v13 = vmax.f32 %v15493_v39, 0.0 }
 0x563   :  { %v8418_v57 = vpop.f32.mrf.mxu1  ;;  %v8457_v61 = vpop.f32.mrf.mxu0  ;;  %9018 = vmatpush.bf16.msrb.mxu1 %v13564_v20  ;;  %v13600_v38 = vor.u32 %v14822_v54, %v13599_v0  ;;  %v14797_v20 = vld [vmem:[#allocation8 + $0x84] sm:$0xf]  ;;  %v14823_v0 = vld [vmem:[#allocation8 + $0x154] sm:$0xf] }
 0x564   :  { %v14805_v57 = vld [vmem:[#allocation8 + $0xc4] sm:$0xf]  ;;  %v8550_v61 = vmax.f32 %v15487_v62, 0.0  ;;  %v14818_v62 = vld [vmem:[#allocation8 + $0x124] sm:$0xf0]  ;;  %v13508_v36 = vor.u32 %v14797_v20, %v13505_v21 }
 0x565   :  { %v13540_v35 = vor.u32 %v14805_v57, %v13537_v48  ;;  %8982 = vmatpush.bf16.msra.mxu2 %v13600_v38  ;;  %v13609_v57 = vld [vmem:[#allocation8 + $0x158] sm:$0xf0]  ;;  %v13663_v48 = vld [vmem:[#allocation8 + $0x1c0] sm:$0xf]  ;;  %v14813_v20 = vld [vmem:[#allocation8 + $0x104] sm:$0xf] }
 0x566   :  { %v8340_v25 = vpop.f32.mrf.mxu3  ;;  %v8379_v52 = vpop.f32.mrf.mxu2  ;;  %9009 = vmatpush.bf16.msrb.mxu0 %v13468_v4  ;;  %v13569_v21 = vld [vmem:[#allocation8 + $0x108] sm:$0xf0]  ;;  %v8124_v5 = vld.sshfl [vmem:[#allocation1 + $0x30] sm:$0xff pattern:$0x73625140] }
 0x567   :  { %9019 = vmatpush.bf16.msrb.mxu1 %v13556_v29  ;;  %v13529_v25 = vld [vmem:[#allocation8 + $0xb8] sm:$0xf0]  ;;  %v13679_v29 = vld [vmem:[#allocation8 + $0x1e0] sm:$0xf]  ;;  %v14839_v51 = vld [vmem:[#allocation8 + $0x1d4] sm:$0xf] }
 0x568   :  { %v13532_v52 = vor.u32 %v14803_v31, %v13529_v25  ;;  %v13680_v18 = vor.u32 %v14842_v46, %v13679_v29  ;;  %v14841_v29 = vld [vmem:[#allocation8 + $0x1e4] sm:$0xf]  ;;  %v13681_v46 = vld [vmem:[#allocation8 + $0x1e8] sm:$0xf0] }
 0x569   :  { %8983 = vmatpush.bf16.msra.mxu2 %v13592_v2  ;;  %v13684_v47 = vor.u32 %v14841_v29, %v13681_v46 }
 0x56a   :  { %9010 = vmatpush.bf16.msrb.mxu0 %v13460_v50  ;;  %v13583_v50 = vld [vmem:[#allocation8 + $0x120] sm:$0xf]  ;;  %8993 = vmatpush.bf16.msra.mxu3 %v13680_v18  ;;  %v8456_v18 = vadd.f32 %v15510_v43, %v8124_v5 }
 0x56b   :  { %9020 = vmatpush.bf16.msrb.mxu1 %v13548_v34  ;;  %v13584_v14 = vor.u32 %v14818_v62, %v13583_v50  ;;  %v14819_v50 = vld [vmem:[#allocation8 + $0x134] sm:$0xf]  ;;  %v13593_v62 = vld [vmem:[#allocation8 + $0x138] sm:$0xf0] }
 0x56d   :  { %8984 = vmatpush.bf16.msra.mxu2 %v13584_v14  ;;  %v13596_v14 = vor.u32 %v14819_v50, %v13593_v62  ;;  %v8626_v50 = vld [vmem:[#allocation10] sm:$0xf] }
 0x56e   :  { %9011 = vmatpush.bf16.msrb.mxu0 %v13452_v6  ;;  %v14799_v6 = vld [vmem:[#allocation8 + $0x94] sm:$0xf]  ;;  %8948 = vst [vmem:[#allocation1] ss:$4 sm:$0xff] %v8626_v50 }
 0x56f   :  { %9021 = vmatpush.bf16.msrb.mxu1 %v13540_v35  ;;  %v13516_v28 = vor.u32 %v14799_v6, %v13513_v27  ;;  %v14838_v35 = vld [vmem:[#allocation8 + $0x1c4] sm:$0xf0] }
 0x571   :  { %8985 = vmatpush.bf16.msra.mxu2 %v13576_v30  ;;  %v13577_v30 = vld [vmem:[#allocation8 + $0x118] sm:$0xf0] }
 0x572   :  { %9012 = vmatpush.bf16.msrb.mxu0 %v13444_v26  ;;  %v14814_v26 = vld [vmem:[#allocation8 + $0x104] sm:$0xf0] }
 0x573   :  { %9022 = vmatpush.bf16.msrb.mxu1 %v13532_v52  ;;  %v13568_v44 = vor.u32 %v14814_v26, %v13567_v7  ;;  %v14836_v52 = vld [vmem:[#allocation8 + $0x1b4] sm:$0xf0]  ;;  %v13631_v7 = vld [vmem:[#allocation8 + $0x180] sm:$0xf]  ;;  %v14830_v26 = vld [vmem:[#allocation8 + $0x184] sm:$0xf0] }
 0x575   :  { %8986 = vmatpush.bf16.msra.mxu2 %v13568_v44  ;;  %v13632_v44 = vor.u32 %v14830_v26, %v13631_v7 }
 0x577   :  { %9023 = vmatpush.bf16.msrb.mxu1 %v13524_v60  ;;  %v14817_v60 = vld [vmem:[#allocation8 + $0x124] sm:$0xf] }
 0x578   :  { %v13588_v23 = vor.u32 %v14817_v60, %v13585_v56 }
 0x579   :  { %9031 = vmatpush.bf16.msrb.mxu2 %v13628_v41  ;;  %v13692_v41 = vor.u32 %v14843_v37, %v13689_v63  ;;  %v8950_v63 = vld.sshfl [vmem:[#allocation1 + $0x8] sm:$0xff pattern:$0x73625140] }
 0x57a   :  { %v15520_v58 = vpop.f32.mrf.mxu0 }
 0x57b   :  { %v15518_v59 = vpop.f32.mrf.mxu1  ;;  %9024 = vmatpush.bf16.msrb.mxu1 %v13516_v28  ;;  %v13580_v28 = vor.u32 %v14815_v40, %v13577_v30  ;;  %v8949_v40 = vld.sshfl [vmem:[#allocation1] sm:$0xff pattern:$0x73625140] }
 0x57d   :  { %9032 = vmatpush.bf16.msrb.mxu2 %v13620_v15  ;;  %v13673_v15 = vld [vmem:[#allocation8 + $0x1d8] sm:$0xf0] }
 0x57e   :  { %v8390_v8 = vpop.f32.mrf.mxu3  ;;  %v15525_v24 = vpop.f32.mrf.mxu2 }
 0x57f   :  { %v8391_v33 = vadd.f32 %v8390_v8, %v8378_v9  ;;  %9025 = vmatpush.bf16.msrb.mxu1 %v13508_v36  ;;  %v13671_v9 = vld [vmem:[#allocation8 + $0x1d0] sm:$0xf]  ;;  %v14840_v8 = vld [vmem:[#allocation8 + $0x1d4] sm:$0xf0]  ;;  %v13572_v36 = vor.u32 %v14813_v20, %v13569_v21 }
 0x580   :  { %v13672_v54 = vor.u32 %v14840_v8, %v13671_v9  ;;  %v8469_v9 = vadd.f32 %v15518_v59, %v8456_v18 }
 0x581   :  { %v8554_v19 = vadd.f32 %v8550_v61, %v8391_v33  ;;  %v8417_v61 = vadd.f32 %v15508_v22, %v8404_v17  ;;  %v13612_v33 = vor.u32 %v14823_v0, %v13609_v57  ;;  %v13655_v22 = vld [vmem:[#allocation8 + $0x1b0] sm:$0xf]  ;;  %v13676_v17 = vor.u32 %v14839_v51, %v13673_v15  ;;  %v14837_v0 = vld [vmem:[#allocation8 + $0x1c4] sm:$0xf] }
 0x582   :  { %v8509_v10 = vpop.f32.mrf.mxu0  ;;  %8994 = vmatpush.bf16.msra.mxu3 %v13672_v54  ;;  %v13665_v54 = vld [vmem:[#allocation8 + $0x1c8] sm:$0xf0] }
 0x583   :  { %v8470_v4 = vpop.f32.mrf.mxu1  ;;  %v8558_v12 = vpack.c.bf16 %v8554_v19, %v8554_v19  ;;  %v8430_v38 = vadd.f32 %v15525_v24, %v8417_v61  ;;  %9033 = vmatpush.bf16.msrb.mxu2 %v13612_v33  ;;  %v14821_v19 = vld [vmem:[#allocation8 + $0x144] sm:$0xf]  ;;  %v13664_v10 = vor.u32 %v14838_v35, %v13663_v48  ;;  %v13656_v24 = vor.u32 %v14836_v52, %v13655_v22  ;;  %v13633_v22 = vld [vmem:[#allocation8 + $0x188] sm:$0xf0] }
 0x584   :  { %v13668_v61 = vor.u32 %v14837_v0, %v13665_v54  ;;  %v8552_v33 = vmax.f32 %v15505_v53, 0.0  ;;  %v14829_v53 = vld [vmem:[#allocation8 + $0x184] sm:$0xf] }
 0x585   :  { %8961 = vmatmul.bf16.vlgmr.msra.gmra.mxu0 %v8558_v12  ;;  %v13636_v52 = vor.u32 %v14829_v53, %v13633_v22 }
 0x586   :  { %v8392_v45 = vpop.f32.mrf.mxu3  ;;  %v8431_v32 = vpop.f32.mrf.mxu2  ;;  %8995 = vmatpush.bf16.msra.mxu3 %v13664_v10 }
 0x587   :  { %v14834_v45 = vld [vmem:[#allocation8 + $0x1a4] sm:$0xf0]  ;;  %v14832_v32 = vld [vmem:[#allocation8 + $0x194] sm:$0xf0] }
 0x588   :  { %v13648_v39 = vor.u32 %v14834_v45, %v13647_v55  ;;  %v13640_v3 = vor.u32 %v14832_v32, %v13639_v16  ;;  %v8553_v45 = vmax.f32 %v15515_v11, 0.0 }
 0x58a   :  { %8996 = vmatpush.bf16.msra.mxu3 %v13656_v24  ;;  %v8125_v24 = vld.sshfl [vmem:[#allocation1 + $0x38] sm:$0xff pattern:$0x73625140] }
 0x58b   :  { %v8508_v62 = vadd.f32 %v15520_v58, %v8125_v24 }
 0x58e   :  { %8997 = vmatpush.bf16.msra.mxu3 %v13648_v39 }
 0x592   :  { %8998 = vmatpush.bf16.msra.mxu3 %v13640_v3 }
 0x595   :  { %9013 = vmatmul.bf16.vlgmr.msrb.gmra.mxu0 %v8558_v12  ;;  %v13604_v12 = vor.u32 %v14821_v19, %v13601_v1  ;;  %v14835_v19 = vld [vmem:[#allocation8 + $0x1b4] sm:$0xf]  ;;  %v14833_v1 = vld [vmem:[#allocation8 + $0x1a4] sm:$0xf] }
 0x596   :  { %8999 = vmatpush.bf16.msra.mxu3 %v13632_v44 }
 0x597   :  { %9034 = vmatpush.bf16.msrb.mxu2 %v13604_v12 }
 0x59a   :  { %v15528_v34 = vpop.f32.mrf.mxu1  ;;  %9044 = vmatpush.bf16.msrb.mxu3 %v13692_v41 }
 0x59b   :  { %9035 = vmatpush.bf16.msrb.mxu2 %v13596_v14 }
 0x59e   :  { %v8442_v4 = vpop.f32.mrf.mxu3  ;;  %v8481_v49 = vpop.f32.mrf.mxu2  ;;  %9045 = vmatpush.bf16.msrb.mxu3 %v13684_v47 }
 0x59f   :  { %v8443_v31 = vadd.f32 %v8442_v4, %v8430_v38  ;;  %9036 = vmatpush.bf16.msrb.mxu2 %v13588_v23  ;;  %v8482_v8 = vadd.f32 %v8481_v49, %v8469_v9  ;;  %v13657_v4 = vld [vmem:[#allocation8 + $0x1b8] sm:$0xf0]  ;;  %v14831_v49 = vld [vmem:[#allocation8 + $0x194] sm:$0xf] }
 0x5a0   :  { %v13660_v43 = vor.u32 %v14835_v19, %v13657_v4 }
 0x5a1   :  { %v8555_v2 = vadd.f32 %v8551_v13, %v8443_v31  ;;  %v13649_v13 = vld [vmem:[#allocation8 + $0x1a8] sm:$0xf0]  ;;  %v13641_v31 = vld [vmem:[#allocation8 + $0x198] sm:$0xf0] }
 0x5a2   :  { %v8522_v25 = vpop.f32.mrf.mxu1  ;;  %9046 = vmatpush.bf16.msrb.mxu3 %v13676_v17  ;;  %v13652_v59 = vor.u32 %v14833_v1, %v13649_v13 }
 0x5a3   :  { %v8559_v42 = vpack.c.bf16 %v8555_v2, %v8555_v2  ;;  %9037 = vmatpush.bf16.msrb.mxu2 %v13580_v28  ;;  %v13644_v25 = vor.u32 %v14831_v49, %v13641_v31 }
 0x5a5   :  { %8974 = vmatmul.bf16.vlgmr.msra.gmra.mxu1 %v8559_v42 }
 0x5a6   :  { %v8444_v6 = vpop.f32.mrf.mxu3  ;;  %v8483_v27 = vpop.f32.mrf.mxu2  ;;  %9047 = vmatpush.bf16.msrb.mxu3 %v13668_v61 }
 0x5a7   :  { %9038 = vmatpush.bf16.msrb.mxu2 %v13572_v36 }
 0x5aa   :  { %9048 = vmatpush.bf16.msrb.mxu3 %v13660_v43 }
 0x5ae   :  { %9049 = vmatpush.bf16.msrb.mxu3 %v13652_v59 }
 0x5b2   :  { %9050 = vmatpush.bf16.msrb.mxu3 %v13644_v25 }
 0x5b5   :  { %9026 = vmatmul.bf16.vlgmr.msrb.gmra.mxu1 %v8559_v42  ;;  %v8521_v42 = vadd.f32 %v15528_v34, %v8508_v62 }
 0x5b6   :  { %9051 = vmatpush.bf16.msrb.mxu3 %v13636_v52 }
 0x5be   :  { %v8494_v57 = vpop.f32.mrf.mxu3  ;;  %v8533_v48 = vpop.f32.mrf.mxu2 }
 0x5bf   :  { %v8495_v38 = vadd.f32 %v8494_v57, %v8482_v8  ;;  %v8534_v14 = vadd.f32 %v8533_v48, %v8521_v42 }
 0x5c1   :  { %v8556_v35 = vadd.f32 %v8552_v33, %v8495_v38 }
 0x5c3   :  { %v8560_v10 = vpack.c.bf16 %v8556_v35, %v8556_v35 }
 0x5c5   :  { %8987 = vmatmul.bf16.vlgmr.msra.gmra.mxu2 %v8560_v10 }
 0x5c6   :  { %v8496_v12 = vpop.f32.mrf.mxu3  ;;  %v8535_v2 = vpop.f32.mrf.mxu2 }
 0x5d5   :  { %9039 = vmatmul.bf16.vlgmr.msrb.gmra.mxu2 %v8560_v10 }
 0x5de   :  { %v8546_v55 = vpop.f32.mrf.mxu3 }
 0x5df   :  { %v8547_v60 = vadd.f32 %v8546_v55, %v8534_v14 }
 0x5e1   :  { %v8557_v39 = vadd.f32 %v8553_v45, %v8547_v60 }
 0x5e3   :  { %v8561_v56 = vpack.c.bf16 %v8557_v39, %v8557_v39 }
 0x5e5   :  { %9000 = vmatmul.bf16.vlgmr.msra.gmra.mxu3 %v8561_v56 }
 0x5e6   :  { %v8548_v16 = vpop.f32.mrf.mxu3 }
 0x5f5   :  { %9052 = vmatmul.bf16.vlgmr.msrb.gmra.mxu3 %v8561_v56 }
 0x602   :  { %v8962_v32 = vpop.f32.mrf.mxu0 }
 0x603   :  { %v8963_v30 = vadd.f32 %v8962_v32, %v8949_v40 }
 0x60a   :  { %v8964_v6 = vpop.f32.mrf.mxu0 }
 0x612   :  { %v9014_v27 = vpop.f32.mrf.mxu0 }
 0x613   :  { %v9015_v36 = vadd.f32 %v9014_v27, %v8950_v63 }
 0x61a   :  { %v9016_v23 = vpop.f32.mrf.mxu0 }
 0x622   :  { %v8975_v3 = vpop.f32.mrf.mxu1 }
 0x623   :  { %v8976_v58 = vadd.f32 %v8975_v3, %v8963_v30 }
 0x62a   :  { %v8977_v28 = vpop.f32.mrf.mxu1 }
 0x632   :  { %v9027_v34 = vpop.f32.mrf.mxu1 }
 0x633   :  { %v9028_v41 = vadd.f32 %v9027_v34, %v9015_v36 }
 0x63a   :  { %v9029_v7 = vpop.f32.mrf.mxu1 }
 0x648   :  { %v8988_v26 = vpop.f32.mrf.mxu2 }
 0x649   :  { %v8989_v5 = vadd.f32 %v8988_v26, %v8976_v58 }
 0x650   :  { %v8990_v20 = vpop.f32.mrf.mxu2 }
 0x658   :  { %v9040_v11 = vpop.f32.mrf.mxu2 }
 0x659   :  { %v9041_v29 = vadd.f32 %v9040_v11, %v9028_v41 }
 0x660   :  { %v9042_v21 = vpop.f32.mrf.mxu2 }
 0x668   :  { %v9001_v37 = vpop.f32.mrf.mxu3 }
 0x669   :  { %v9002_v18 = vadd.f32 %v9001_v37, %v8989_v5 }
 0x670   :  { %v9003_v44 = vpop.f32.mrf.mxu3 }
 0x678   :  { %v9053_v46 = vpop.f32.mrf.mxu3 }
 0x679   :  { %v9054_v47 = vadd.f32 %v9053_v46, %v9041_v29 }
 0x67b   :  { %v9059_v51 = vrot.slane %v9054_v47, 6 }
 0x67d   :  { %v9060_v15 = vsel %vm4584_vm0, %v9002_v18, %v9059_v51 }
 0x67e   :  { %9063 = vst [vmem:[#allocation11 + $0x4] sm:$0xf] %v9060_v15 }
 0x67f   :  { %9076 = dma.vmem_to_hbm [thread:$0]  %s9069_s4, 128, %s9071_s23, [#allocation4], %s15023_s24, %s15023_s24, %s15024_s25  }
 0x680   :  { %v9055_v17 = vpop.f32.mrf.mxu3 }
 0x681   :  { %15009 = dma.done.wait [#allocation4], 128  }
 0x682   :  { %15010 = vsyncadd [#allocation4], 4294967168 }
 0x683   :  { %9081 = vsyncpa [#allocation3], 1 }
 0x684   :  { %9082 = vsyncpa [#allocation6], 1 }
 0x685   :  { %9083 = vsyncpa [#allocation9], 1 }
 0x686   :  { %9084 = vsyncpa [#allocation4], 1 }

</bundles_post_ra>
